<compile_context>
chip_gen: v7x
topology: tpu7x:2x2x1
jax: 0.10.0
libtpu: 0.0.40
codegen_flags: <defaults>
</compile_context>

<pallas_src>
import functools
import math

import jax
import jax.numpy as jnp
from jax.experimental import pallas as pl
from jax.experimental.pallas import tpu as pltpu

_LN_EPS = 1e-5
_INV_SQRT2 = 0.7071067811865476
_LANES = 128

# Abramowitz & Stegun 7.1.26 erf approximation (max abs err ~1.5e-7 with an
# exact reciprocal; approx EUP reciprocal adds a tiny extra error, well inside
# the verification tolerance).
_ERF_P = 0.3275911
_ERF_A1 = 0.254829592
_ERF_A2 = -0.284496736
_ERF_A3 = 1.421413741
_ERF_A4 = -1.453152027
_ERF_A5 = 1.061405429


def _erf(x):
    ax = jnp.abs(x)
    # EUP approximate reciprocal instead of a VALU divide.
    t = pl.reciprocal(1.0 + _ERF_P * ax, approx=True)
    poly = t * (_ERF_A1 + t * (_ERF_A2 + t * (_ERF_A3 + t * (_ERF_A4 + t * _ERF_A5))))
    y = 1.0 - poly * jnp.exp(-ax * ax)
    return jnp.where(x >= 0.0, y, -y)


def _gelu(x):
    # erf-based GELU, matching torch.nn.functional.gelu default.
    return 0.5 * x * (1.0 + _erf(x * _INV_SQRT2))


def _layernorm(x, gamma, beta):
    mean = jnp.mean(x, axis=-1, keepdims=True)
    var = jnp.mean((x - mean) * (x - mean), axis=-1, keepdims=True)
    return (x - mean) * jax.lax.rsqrt(var + _LN_EPS) * gamma + beta


# ---------------------------------------------------------------------------
# Fused forward kernel: patch-embed -> depth x mixer layer -> norm/pool/fc.
# ---------------------------------------------------------------------------

def _fused_mixer_kernel(patches_ref, conv_w_ref, vecs_ref,
                        tok_w1_ref, tok_w2_ref, tok_b_ref,
                        chan_w1_ref, chan_w2_ref, head_w_ref,
                        out_ref, *, B, P, D, Ht, Hc, depth, mm_dtype):
    f32 = jnp.float32

    def mm(a, b):
        return jnp.dot(a.astype(mm_dtype), b.astype(mm_dtype),
                       preferred_element_type=f32)

    def bmm(spec, a, b):
        return jnp.einsum(spec, a.astype(mm_dtype), b.astype(mm_dtype),
                          preferred_element_type=f32)

    def vrow(r, w):
        # One packed (1, w) gamma/beta/bias row from the lane-dense slab.
        return vecs_ref[r:r + 1, 0:w]

    # ---- patch embedding: Conv2d(kernel=stride=patch) as ONE whole-batch matmul
    toks = mm(patches_ref[...], conv_w_ref[...]) + vrow(0, D)        # (B*P, D)

    # ---- mixer layers. depth is small -> static unroll; weights are already
    #      stacked on a leading depth axis, so switch to lax.fori_loop with
    #      dynamic leading-axis indexing if depth grows.
    for l in range(depth):
        r = 1 + 6 * l
        g1, be1 = vrow(r, D), vrow(r + 1, D)
        g2, be2 = vrow(r + 2, D), vrow(r + 3, D)
        bc1, bc2 = vrow(r + 4, Hc), vrow(r + 5, D)

        # --- token mixing: left-multiply keeps D on the lane axis; the
        #     activation slab is never transposed. Dropout = identity (eval). ---
        y3 = _layernorm(toks, g1, be1).reshape(B, P, D)              # (B, P, D)
        w1 = jnp.broadcast_to(tok_w1_ref[l], (B, Ht, P))             # fc1.weight
        h = bmm('bhp,bpd->bhd', w1, y3) + tok_b_ref[l, 0:Ht, :]      # (B, Ht, D)
        h = _gelu(h)
        w2 = jnp.broadcast_to(tok_w2_ref[l], (B, P, Ht))             # fc2.weight
        y3 = bmm('bph,bhd->bpd', w2, h) + tok_b_ref[l, Ht:Ht + P, :] # (B, P, D)
        toks = toks + y3.reshape(B * P, D)

        # --- channel mixing: whole batch folded into the matmul M dimension ---
        y = _layernorm(toks, g2, be2)                                # (B*P, D)
        h = _gelu(mm(y, chan_w1_ref[l]) + bc1)                       # (B*P, Hc)
        toks = toks + (mm(h, chan_w2_ref[l]) + bc2)                  # (B*P, D)

    # ---- head: LayerNorm -> mean over patches -> Linear (lane-padded output)
    rh = 1 + 6 * depth
    y = _layernorm(toks, vrow(rh, D), vrow(rh + 1, D))               # (B*P, D)
    pooled = jnp.mean(y.reshape(B, P, D), axis=1)                    # (B, D)
    out_ref[...] = (mm(pooled, head_w_ref[...])
                    + vecs_ref[rh + 2:rh + 3, :]).astype(out_ref.dtype)


# ---------------------------------------------------------------------------
# Wrapper: host-side packing glue + a single no-grid pallas_call.
# ---------------------------------------------------------------------------

def cifar10_mlp_mixer(x, params, *, patch_size, matmul_dtype=jnp.float32):
    """Forward pass. x is NCHW float32 (PyTorch convention)."""
    conv_w, conv_b, layers, gN, bN, wf, bf = params
    f32 = jnp.float32
    B, C, H, W = x.shape
    p = patch_size
    hp, wp = H // p, W // p
    P = hp * wp
    K = C * p * p
    D = conv_w.shape[1]
    NC = wf.shape[1]
    Ht = layers[0][2].shape[0]
    Hc = layers[0][8].shape[1]
    depth = len(layers)

    # Patch extraction (== Conv2d(kernel=stride=patch)); feature order (c,u,v)
    # matches the flattened conv weight. Lane-pad K so the embed matmul is dense.
    Kp = ((K + _LANES - 1) // _LANES) * _LANES
    patches = (x.reshape(B, C, hp, p, wp, p)
                .transpose(0, 2, 4, 1, 3, 5)
                .reshape(B * P, K)).astype(f32)
    patches = jnp.pad(patches, ((0, 0), (0, Kp - K)))
    conv_w_p = jnp.pad(conv_w.astype(f32), ((0, Kp - K), (0, 0)))     # (Kp, D)

    # Pack every 1-D gamma/beta/bias into a single lane-dense (R, 128) slab.
    rows = [conv_b]
    for (g1, be1, _tw1, _tb1, _tw2, _tb2, g2, be2, _cw1, cb1, _cw2, cb2) in layers:
        rows += [g1, be1, g2, be2, cb1, cb2]
    rows += [gN, bN, bf]
    vecs = jnp.stack([jnp.pad(r.astype(f32), (0, _LANES - r.shape[0]))
                      for r in rows])                                 # (R, 128)

    # Stack per-layer weights along a leading depth axis (one DMA per kind).
    tok_w1 = jnp.stack([l[2] for l in layers]).astype(f32)            # (depth, Ht, P)
    tok_w2 = jnp.stack([l[4] for l in layers]).astype(f32)            # (depth, P, Ht)
    tok_b = jnp.stack([jnp.concatenate(
        [jnp.broadcast_to(l[3][:, None], (Ht, D)),
         jnp.broadcast_to(l[5][:, None], (P, D))], axis=0)
        for l in layers]).astype(f32)                                 # (depth, Ht+P, D)
    chan_w1 = jnp.stack([l[8] for l in layers]).astype(f32)           # (depth, D, Hc)
    chan_w2 = jnp.stack([l[10] for l in layers]).astype(f32)          # (depth, Hc, D)

    head_w = jnp.pad(wf.astype(f32), ((0, 0), (0, _LANES - NC)))      # (D, 128)

    kernel = functools.partial(_fused_mixer_kernel, B=B, P=P, D=D, Ht=Ht,
                               Hc=Hc, depth=depth, mm_dtype=matmul_dtype)

    out = pl.pallas_call(
        kernel,
        out_shape=jax.ShapeDtypeStruct((B, _LANES), f32),
        in_specs=[pl.BlockSpec(memory_space=pltpu.MemorySpace.VMEM)
                  for _ in range(9)],
        out_specs=pl.BlockSpec(memory_space=pltpu.MemorySpace.VMEM),
    )(patches, conv_w_p, vecs, tok_w1, tok_w2, tok_b, chan_w1, chan_w2, head_w)
    return out[:, :NC]


# ---------------------------------------------------------------------------
# Deterministic parameter init (PyTorch-default-like uniform).
#   - token-MLP weights kept in natural (out, in) orientation (left-multiply),
#   - channel-MLP / head weights stored pre-transposed (in, out),
#   - conv weight stored as (C*p*p, D).
# ---------------------------------------------------------------------------

def init_params(key, *, C, D, NC, p, P, depth, Ht, Hc):
    keys = iter(jax.random.split(key, 8 + 8 * depth))

    def u(shape, fan_in):
        bound = 1.0 / math.sqrt(fan_in)
        return jax.random.uniform(next(keys), shape, jnp.float32, -bound, bound)

    K = C * p * p
    conv_w = u((K, D), K)
    conv_b = u((D,), K)

    layers = []
    for _ in range(depth):
        g1 = jnp.ones((D,), jnp.float32)
        be1 = jnp.zeros((D,), jnp.float32)
        tw1 = u((Ht, P), P)          # token fc1.weight (out, in)
        tb1 = u((Ht,), P)
        tw2 = u((P, Ht), Ht)         # token fc2.weight (out, in)
        tb2 = u((P,), Ht)
        g2 = jnp.ones((D,), jnp.float32)
        be2 = jnp.zeros((D,), jnp.float32)
        cw1 = u((D, Hc), D)          # channel fc1.weight^T
        cb1 = u((Hc,), D)
        cw2 = u((Hc, D), Hc)         # channel fc2.weight^T
        cb2 = u((D,), Hc)
        layers.append((g1, be1, tw1, tb1, tw2, tb2, g2, be2, cw1, cb1, cw2, cb2))

    gN = jnp.ones((D,), jnp.float32)
    bN = jnp.zeros((D,), jnp.float32)
    wf = u((D, NC), D)
    bf = u((NC,), D)
    return conv_w, conv_b, tuple(layers), gN, bN, wf, bf


# ---------------------------------------------------------------------------
# Pure-JAX reference of the same forward (numerical sanity check).
# ---------------------------------------------------------------------------

def _reference_forward(x, params, patch_size):
    conv_w, conv_b, layers, gN, bN, wf, bf = params
    B, C, H, W = x.shape
    p = patch_size
    hp, wp = H // p, W // p

    def ln(z, g, b):
        m = z.mean(-1, keepdims=True)
        v = ((z - m) ** 2).mean(-1, keepdims=True)
        return (z - m) * jax.lax.rsqrt(v + _LN_EPS) * g + b

    def gelu(z):
        return 0.5 * z * (1.0 + jax.scipy.special.erf(z * _INV_SQRT2))

    patches = (x.reshape(B, C, hp, p, wp, p)
                .transpose(0, 2, 4, 1, 3, 5)
                .reshape(B, hp * wp, C * p * p))
    t = patches @ conv_w + conv_b                                    # (B, P, D)
    for (g1, be1, tw1, tb1, tw2, tb2, g2, be2, cw1, cb1, cw2, cb2) in layers:
        y = ln(t, g1, be1)
        y = jnp.swapaxes(y, 1, 2)                                    # (B, D, P)
        y = gelu(y @ tw1.T + tb1) @ tw2.T + tb2
        y = jnp.swapaxes(y, 1, 2)
        t = t + y
        y = ln(t, g2, be2)
        y = gelu(y @ cw1 + cb1) @ cw2 + cb2
        t = t + y
    pooled = ln(t, gN, bN).mean(axis=1)                              # (B, D)
    return pooled @ wf + bf


# ---------------------------------------------------------------------------

if __name__ == "__main__":
    # Shapes consistent with the module: in_channels=3, embed_dim=32,
    # num_classes=10, patch_size=4, img_size=16, depth=2,
    # token_intermediate_dim=16, channel_intermediate_dim=64, dropout=0 (eval).
    # B=8 so B*P = 128 fills the matmul M dimension (per perf review).
    B, C, IMG, PATCH = 8, 3, 16, 4
    D, NC, DEPTH, HT, HC = 32, 10, 2, 16, 64
    P = (IMG // PATCH) ** 2

    key = jax.random.PRNGKey(0)
    kx, kp = jax.random.split(key)
    x = jax.random.normal(kx, (B, C, IMG, IMG), jnp.float32)
    params = init_params(kp, C=C, D=D, NC=NC, p=PATCH, P=P,
                         depth=DEPTH, Ht=HT, Hc=HC)

    ref = _reference_forward(x, params, PATCH)

    # f32 MXU-operand path (exact).
    fwd_f32 = jax.jit(functools.partial(cifar10_mlp_mixer, patch_size=PATCH,
                                        matmul_dtype=jnp.float32))
    logits = fwd_f32(x, params)
    jax.block_until_ready(logits)
    assert logits.shape == (B, NC) and logits.dtype == jnp.float32
    err = float(jnp.max(jnp.abs(logits - ref)))
    assert err < 2e-2, f"f32 path mismatch vs pure-JAX reference: {err}"

    # bf16 MXU-operand path (v6e/v7x throughput suggestion); f32 accumulation.
    fwd_bf16 = jax.jit(functools.partial(cifar10_mlp_mixer, patch_size=PATCH,
                                         matmul_dtype=jnp.bfloat16))
    logits_bf16 = fwd_bf16(x, params)
    jax.block_until_ready(logits_bf16)
    err_bf16 = float(jnp.max(jnp.abs(logits_bf16 - ref)))
    assert err_bf16 < 2e-1, f"bf16 path mismatch vs pure-JAX reference: {err_bf16}"

    print("KERNEL_OK")
</pallas_src>

<mosaic_0001>
module attributes {stable_mosaic.version = 11 : i64} {
  func.func @_fused_mixer_kernel(%arg0: memref<128x128xf32, #tpu.memory_space<vmem>>, %arg1: memref<128x32xf32, #tpu.memory_space<vmem>>, %arg2: memref<16x128xf32, #tpu.memory_space<vmem>>, %arg3: memref<2x16x16xf32, #tpu.memory_space<vmem>>, %arg4: memref<2x16x16xf32, #tpu.memory_space<vmem>>, %arg5: memref<2x32x32xf32, #tpu.memory_space<vmem>>, %arg6: memref<2x32x64xf32, #tpu.memory_space<vmem>>, %arg7: memref<2x64x32xf32, #tpu.memory_space<vmem>>, %arg8: memref<32x128xf32, #tpu.memory_space<vmem>>, %arg9: memref<8x128xf32, #tpu.memory_space<vmem>>) attributes {dimension_semantics = [], scalar_prefetch = 0 : i64, scratch_operands = 0 : i64, tpu.core_type = #tpu.core_type<tc>} {
    %c0 = arith.constant 0 : index
    %c0_0 = arith.constant 0 : index
    %0 = vector.load %arg0[%c0, %c0_0] : memref<128x128xf32, #tpu.memory_space<vmem>>, vector<128x128xf32>
    %c0_1 = arith.constant 0 : index
    %c0_2 = arith.constant 0 : index
    %1 = vector.load %arg1[%c0_1, %c0_2] : memref<128x32xf32, #tpu.memory_space<vmem>>, vector<128x32xf32>
    %cst = arith.constant dense<0.000000e+00> : vector<128x32xf32>
    %2 = tpu.matmul %0, %1, %cst {dimension_numbers = #tpu.dot_dimension_numbers<[1], [0], [0], [1], [0, 0, 1, 1], [], []>} : vector<128x128xf32>, vector<128x32xf32>, vector<128x32xf32> -> vector<128x32xf32>
    %c0_3 = arith.constant 0 : index
    %c0_4 = arith.constant 0 : index
    %3 = vector.load %arg2[%c0_3, %c0_4] : memref<16x128xf32, #tpu.memory_space<vmem>>, vector<1x32xf32>
    %4 = vector.broadcast %3 : vector<1x32xf32> to vector<128x32xf32>
    %5 = arith.addf %2, %4 : vector<128x32xf32>
    %c1 = arith.constant 1 : index
    %c0_5 = arith.constant 0 : index
    %6 = vector.load %arg2[%c1, %c0_5] : memref<16x128xf32, #tpu.memory_space<vmem>>, vector<1x32xf32>
    %c2 = arith.constant 2 : index
    %c0_6 = arith.constant 0 : index
    %7 = vector.load %arg2[%c2, %c0_6] : memref<16x128xf32, #tpu.memory_space<vmem>>, vector<1x32xf32>
    %c3 = arith.constant 3 : index
    %c0_7 = arith.constant 0 : index
    %8 = vector.load %arg2[%c3, %c0_7] : memref<16x128xf32, #tpu.memory_space<vmem>>, vector<1x32xf32>
    %c4 = arith.constant 4 : index
    %c0_8 = arith.constant 0 : index
    %9 = vector.load %arg2[%c4, %c0_8] : memref<16x128xf32, #tpu.memory_space<vmem>>, vector<1x32xf32>
    %c5 = arith.constant 5 : index
    %c0_9 = arith.constant 0 : index
    %10 = vector.load %arg2[%c5, %c0_9] : memref<16x128xf32, #tpu.memory_space<vmem>>, vector<1x64xf32>
    %c6 = arith.constant 6 : index
    %c0_10 = arith.constant 0 : index
    %11 = vector.load %arg2[%c6, %c0_10] : memref<16x128xf32, #tpu.memory_space<vmem>>, vector<1x32xf32>
    %cst_11 = arith.constant dense<0.000000e+00> : vector<128xf32>
    %12 = vector.multi_reduction <add>, %5, %cst_11 [1] : vector<128x32xf32> to vector<128xf32>
    %13 = vector.shape_cast %12 : vector<128xf32> to vector<128x1xf32>
    %cst_12 = arith.constant 3.200000e+01 : f32
    %14 = vector.broadcast %cst_12 : f32 to vector<128x1xf32>
    %15 = arith.divf %13, %14 : vector<128x1xf32>
    %16 = vector.broadcast %15 : vector<128x1xf32> to vector<128x32xf32>
    %17 = arith.subf %5, %16 : vector<128x32xf32>
    %18 = vector.broadcast %15 : vector<128x1xf32> to vector<128x32xf32>
    %19 = arith.subf %5, %18 : vector<128x32xf32>
    %20 = arith.mulf %17, %19 : vector<128x32xf32>
    %cst_13 = arith.constant dense<0.000000e+00> : vector<128xf32>
    %21 = vector.multi_reduction <add>, %20, %cst_13 [1] : vector<128x32xf32> to vector<128xf32>
    %22 = vector.shape_cast %21 : vector<128xf32> to vector<128x1xf32>
    %cst_14 = arith.constant 3.200000e+01 : f32
    %23 = vector.broadcast %cst_14 : f32 to vector<128x1xf32>
    %24 = arith.divf %22, %23 : vector<128x1xf32>
    %25 = vector.broadcast %15 : vector<128x1xf32> to vector<128x32xf32>
    %26 = arith.subf %5, %25 : vector<128x32xf32>
    %cst_15 = arith.constant 9.99999974E-6 : f32
    %27 = vector.broadcast %cst_15 : f32 to vector<128x1xf32>
    %28 = arith.addf %24, %27 : vector<128x1xf32>
    %29 = math.rsqrt %28 : vector<128x1xf32>
    %30 = vector.broadcast %29 : vector<128x1xf32> to vector<128x32xf32>
    %31 = arith.mulf %26, %30 : vector<128x32xf32>
    %32 = vector.broadcast %6 : vector<1x32xf32> to vector<128x32xf32>
    %33 = arith.mulf %31, %32 : vector<128x32xf32>
    %34 = vector.broadcast %7 : vector<1x32xf32> to vector<128x32xf32>
    %35 = arith.addf %33, %34 : vector<128x32xf32>
    %36 = vector.shape_cast %35 : vector<128x32xf32> to vector<8x16x32xf32>
    %c0_16 = arith.constant 0 : index
    %c0_17 = arith.constant 0 : index
    %c0_18 = arith.constant 0 : index
    %37 = vector.load %arg3[%c0_16, %c0_17, %c0_18] : memref<2x16x16xf32, #tpu.memory_space<vmem>>, vector<1x16x16xf32>
    %38 = vector.shape_cast %37 : vector<1x16x16xf32> to vector<16x16xf32>
    %39 = vector.shape_cast %38 : vector<16x16xf32> to vector<1x16x16xf32>
    %40 = vector.broadcast %39 : vector<1x16x16xf32> to vector<8x16x16xf32>
    "tpu.trace_start"() <{level = 10 : i32, message = "bhp,bpd->bhd"}> : () -> ()
    %cst_19 = arith.constant dense<0.000000e+00> : vector<8x16x32xf32>
    %41 = tpu.matmul %40, %36, %cst_19 {dimension_numbers = #tpu.dot_dimension_numbers<[2], [1], [1], [2], [0, 0, 0, 1, 1, 2], [0], [0]>} : vector<8x16x16xf32>, vector<8x16x32xf32>, vector<8x16x32xf32> -> vector<8x16x32xf32>
    "tpu.trace_stop"() : () -> ()
    %c0_20 = arith.constant 0 : index
    %c0_21 = arith.constant 0 : index
    %c0_22 = arith.constant 0 : index
    %42 = vector.load %arg5[%c0_20, %c0_21, %c0_22] : memref<2x32x32xf32, #tpu.memory_space<vmem>>, vector<1x16x32xf32>
    %43 = vector.shape_cast %42 : vector<1x16x32xf32> to vector<16x32xf32>
    %44 = vector.shape_cast %43 : vector<16x32xf32> to vector<1x16x32xf32>
    %45 = vector.broadcast %44 : vector<1x16x32xf32> to vector<8x16x32xf32>
    %46 = arith.addf %41, %45 : vector<8x16x32xf32>
    %cst_23 = arith.constant 5.000000e-01 : f32
    %47 = vector.broadcast %cst_23 : f32 to vector<8x16x32xf32>
    %48 = arith.mulf %47, %46 : vector<8x16x32xf32>
    %cst_24 = arith.constant 0.707106769 : f32
    %49 = vector.broadcast %cst_24 : f32 to vector<8x16x32xf32>
    %50 = arith.mulf %46, %49 : vector<8x16x32xf32>
    %51 = math.absf %50 : vector<8x16x32xf32>
    %cst_25 = arith.constant 0.327591091 : f32
    %52 = vector.broadcast %cst_25 : f32 to vector<8x16x32xf32>
    %53 = arith.mulf %52, %51 : vector<8x16x32xf32>
    %cst_26 = arith.constant 1.000000e+00 : f32
    %54 = vector.broadcast %cst_26 : f32 to vector<8x16x32xf32>
    %55 = arith.addf %54, %53 : vector<8x16x32xf32>
    %56 = tpu.reciprocal %55 {approx = true} : vector<8x16x32xf32> -> vector<8x16x32xf32>
    %cst_27 = arith.constant 1.06140542 : f32
    %57 = vector.broadcast %cst_27 : f32 to vector<8x16x32xf32>
    %58 = arith.mulf %56, %57 : vector<8x16x32xf32>
    %cst_28 = arith.constant -1.45315206 : f32
    %59 = vector.broadcast %cst_28 : f32 to vector<8x16x32xf32>
    %60 = arith.addf %59, %58 : vector<8x16x32xf32>
    %61 = arith.mulf %56, %60 : vector<8x16x32xf32>
    %cst_29 = arith.constant 1.42141378 : f32
    %62 = vector.broadcast %cst_29 : f32 to vector<8x16x32xf32>
    %63 = arith.addf %62, %61 : vector<8x16x32xf32>
    %64 = arith.mulf %56, %63 : vector<8x16x32xf32>
    %cst_30 = arith.constant -0.284496725 : f32
    %65 = vector.broadcast %cst_30 : f32 to vector<8x16x32xf32>
    %66 = arith.addf %65, %64 : vector<8x16x32xf32>
    %67 = arith.mulf %56, %66 : vector<8x16x32xf32>
    %cst_31 = arith.constant 0.254829586 : f32
    %68 = vector.broadcast %cst_31 : f32 to vector<8x16x32xf32>
    %69 = arith.addf %68, %67 : vector<8x16x32xf32>
    %70 = arith.mulf %56, %69 : vector<8x16x32xf32>
    %cst_32 = arith.constant 0.000000e+00 : f32
    %71 = vector.broadcast %cst_32 : f32 to vector<8x16x32xf32>
    %72 = arith.subf %71, %51 : vector<8x16x32xf32>
    %73 = arith.mulf %72, %51 : vector<8x16x32xf32>
    %74 = math.exp %73 : vector<8x16x32xf32>
    %75 = arith.mulf %70, %74 : vector<8x16x32xf32>
    %cst_33 = arith.constant 1.000000e+00 : f32
    %76 = vector.broadcast %cst_33 : f32 to vector<8x16x32xf32>
    %77 = arith.subf %76, %75 : vector<8x16x32xf32>
    %cst_34 = arith.constant 0.000000e+00 : f32
    %78 = vector.broadcast %cst_34 : f32 to vector<8x16x32xf32>
    %79 = arith.cmpf oge, %50, %78 : vector<8x16x32xf32>
    %cst_35 = arith.constant 0.000000e+00 : f32
    %80 = vector.broadcast %cst_35 : f32 to vector<8x16x32xf32>
    %81 = arith.subf %80, %77 : vector<8x16x32xf32>
    %82 = arith.select %79, %77, %81 : vector<8x16x32xi1>, vector<8x16x32xf32>
    %cst_36 = arith.constant 1.000000e+00 : f32
    %83 = vector.broadcast %cst_36 : f32 to vector<8x16x32xf32>
    %84 = arith.addf %83, %82 : vector<8x16x32xf32>
    %85 = arith.mulf %48, %84 : vector<8x16x32xf32>
    %c0_37 = arith.constant 0 : index
    %c0_38 = arith.constant 0 : index
    %c0_39 = arith.constant 0 : index
    %86 = vector.load %arg4[%c0_37, %c0_38, %c0_39] : memref<2x16x16xf32, #tpu.memory_space<vmem>>, vector<1x16x16xf32>
    %87 = vector.shape_cast %86 : vector<1x16x16xf32> to vector<16x16xf32>
    %88 = vector.shape_cast %87 : vector<16x16xf32> to vector<1x16x16xf32>
    %89 = vector.broadcast %88 : vector<1x16x16xf32> to vector<8x16x16xf32>
    "tpu.trace_start"() <{level = 10 : i32, message = "bph,bhd->bpd"}> : () -> ()
    %cst_40 = arith.constant dense<0.000000e+00> : vector<8x16x32xf32>
    %90 = tpu.matmul %89, %85, %cst_40 {dimension_numbers = #tpu.dot_dimension_numbers<[2], [1], [1], [2], [0, 0, 0, 1, 1, 2], [0], [0]>} : vector<8x16x16xf32>, vector<8x16x32xf32>, vector<8x16x32xf32> -> vector<8x16x32xf32>
    "tpu.trace_stop"() : () -> ()
    %c0_41 = arith.constant 0 : index
    %c16 = arith.constant 16 : index
    %c0_42 = arith.constant 0 : index
    %91 = vector.load %arg5[%c0_41, %c16, %c0_42] : memref<2x32x32xf32, #tpu.memory_space<vmem>>, vector<1x16x32xf32>
    %92 = vector.shape_cast %91 : vector<1x16x32xf32> to vector<16x32xf32>
    %93 = vector.shape_cast %92 : vector<16x32xf32> to vector<1x16x32xf32>
    %94 = vector.broadcast %93 : vector<1x16x32xf32> to vector<8x16x32xf32>
    %95 = arith.addf %90, %94 : vector<8x16x32xf32>
    %96 = vector.shape_cast %95 : vector<8x16x32xf32> to vector<128x32xf32>
    %97 = arith.addf %5, %96 : vector<128x32xf32>
    %cst_43 = arith.constant dense<0.000000e+00> : vector<128xf32>
    %98 = vector.multi_reduction <add>, %97, %cst_43 [1] : vector<128x32xf32> to vector<128xf32>
    %99 = vector.shape_cast %98 : vector<128xf32> to vector<128x1xf32>
    %cst_44 = arith.constant 3.200000e+01 : f32
    %100 = vector.broadcast %cst_44 : f32 to vector<128x1xf32>
    %101 = arith.divf %99, %100 : vector<128x1xf32>
    %102 = vector.broadcast %101 : vector<128x1xf32> to vector<128x32xf32>
    %103 = arith.subf %97, %102 : vector<128x32xf32>
    %104 = vector.broadcast %101 : vector<128x1xf32> to vector<128x32xf32>
    %105 = arith.subf %97, %104 : vector<128x32xf32>
    %106 = arith.mulf %103, %105 : vector<128x32xf32>
    %cst_45 = arith.constant dense<0.000000e+00> : vector<128xf32>
    %107 = vector.multi_reduction <add>, %106, %cst_45 [1] : vector<128x32xf32> to vector<128xf32>
    %108 = vector.shape_cast %107 : vector<128xf32> to vector<128x1xf32>
    %cst_46 = arith.constant 3.200000e+01 : f32
    %109 = vector.broadcast %cst_46 : f32 to vector<128x1xf32>
    %110 = arith.divf %108, %109 : vector<128x1xf32>
    %111 = vector.broadcast %101 : vector<128x1xf32> to vector<128x32xf32>
    %112 = arith.subf %97, %111 : vector<128x32xf32>
    %cst_47 = arith.constant 9.99999974E-6 : f32
    %113 = vector.broadcast %cst_47 : f32 to vector<128x1xf32>
    %114 = arith.addf %110, %113 : vector<128x1xf32>
    %115 = math.rsqrt %114 : vector<128x1xf32>
    %116 = vector.broadcast %115 : vector<128x1xf32> to vector<128x32xf32>
    %117 = arith.mulf %112, %116 : vector<128x32xf32>
    %118 = vector.broadcast %8 : vector<1x32xf32> to vector<128x32xf32>
    %119 = arith.mulf %117, %118 : vector<128x32xf32>
    %120 = vector.broadcast %9 : vector<1x32xf32> to vector<128x32xf32>
    %121 = arith.addf %119, %120 : vector<128x32xf32>
    %c0_48 = arith.constant 0 : index
    %c0_49 = arith.constant 0 : index
    %c0_50 = arith.constant 0 : index
    %122 = vector.load %arg6[%c0_48, %c0_49, %c0_50] : memref<2x32x64xf32, #tpu.memory_space<vmem>>, vector<1x32x64xf32>
    %123 = vector.shape_cast %122 : vector<1x32x64xf32> to vector<32x64xf32>
    %cst_51 = arith.constant dense<0.000000e+00> : vector<128x64xf32>
    %124 = tpu.matmul %121, %123, %cst_51 {dimension_numbers = #tpu.dot_dimension_numbers<[1], [0], [0], [1], [0, 0, 1, 1], [], []>} : vector<128x32xf32>, vector<32x64xf32>, vector<128x64xf32> -> vector<128x64xf32>
    %125 = vector.broadcast %10 : vector<1x64xf32> to vector<128x64xf32>
    %126 = arith.addf %124, %125 : vector<128x64xf32>
    %cst_52 = arith.constant 5.000000e-01 : f32
    %127 = vector.broadcast %cst_52 : f32 to vector<128x64xf32>
    %128 = arith.mulf %127, %126 : vector<128x64xf32>
    %cst_53 = arith.constant 0.707106769 : f32
    %129 = vector.broadcast %cst_53 : f32 to vector<128x64xf32>
    %130 = arith.mulf %126, %129 : vector<128x64xf32>
    %131 = math.absf %130 : vector<128x64xf32>
    %cst_54 = arith.constant 0.327591091 : f32
    %132 = vector.broadcast %cst_54 : f32 to vector<128x64xf32>
    %133 = arith.mulf %132, %131 : vector<128x64xf32>
    %cst_55 = arith.constant 1.000000e+00 : f32
    %134 = vector.broadcast %cst_55 : f32 to vector<128x64xf32>
    %135 = arith.addf %134, %133 : vector<128x64xf32>
    %136 = tpu.reciprocal %135 {approx = true} : vector<128x64xf32> -> vector<128x64xf32>
    %cst_56 = arith.constant 1.06140542 : f32
    %137 = vector.broadcast %cst_56 : f32 to vector<128x64xf32>
    %138 = arith.mulf %136, %137 : vector<128x64xf32>
    %cst_57 = arith.constant -1.45315206 : f32
    %139 = vector.broadcast %cst_57 : f32 to vector<128x64xf32>
    %140 = arith.addf %139, %138 : vector<128x64xf32>
    %141 = arith.mulf %136, %140 : vector<128x64xf32>
    %cst_58 = arith.constant 1.42141378 : f32
    %142 = vector.broadcast %cst_58 : f32 to vector<128x64xf32>
    %143 = arith.addf %142, %141 : vector<128x64xf32>
    %144 = arith.mulf %136, %143 : vector<128x64xf32>
    %cst_59 = arith.constant -0.284496725 : f32
    %145 = vector.broadcast %cst_59 : f32 to vector<128x64xf32>
    %146 = arith.addf %145, %144 : vector<128x64xf32>
    %147 = arith.mulf %136, %146 : vector<128x64xf32>
    %cst_60 = arith.constant 0.254829586 : f32
    %148 = vector.broadcast %cst_60 : f32 to vector<128x64xf32>
    %149 = arith.addf %148, %147 : vector<128x64xf32>
    %150 = arith.mulf %136, %149 : vector<128x64xf32>
    %cst_61 = arith.constant 0.000000e+00 : f32
    %151 = vector.broadcast %cst_61 : f32 to vector<128x64xf32>
    %152 = arith.subf %151, %131 : vector<128x64xf32>
    %153 = arith.mulf %152, %131 : vector<128x64xf32>
    %154 = math.exp %153 : vector<128x64xf32>
    %155 = arith.mulf %150, %154 : vector<128x64xf32>
    %cst_62 = arith.constant 1.000000e+00 : f32
    %156 = vector.broadcast %cst_62 : f32 to vector<128x64xf32>
    %157 = arith.subf %156, %155 : vector<128x64xf32>
    %cst_63 = arith.constant 0.000000e+00 : f32
    %158 = vector.broadcast %cst_63 : f32 to vector<128x64xf32>
    %159 = arith.cmpf oge, %130, %158 : vector<128x64xf32>
    %cst_64 = arith.constant 0.000000e+00 : f32
    %160 = vector.broadcast %cst_64 : f32 to vector<128x64xf32>
    %161 = arith.subf %160, %157 : vector<128x64xf32>
    %162 = arith.select %159, %157, %161 : vector<128x64xi1>, vector<128x64xf32>
    %cst_65 = arith.constant 1.000000e+00 : f32
    %163 = vector.broadcast %cst_65 : f32 to vector<128x64xf32>
    %164 = arith.addf %163, %162 : vector<128x64xf32>
    %165 = arith.mulf %128, %164 : vector<128x64xf32>
    %c0_66 = arith.constant 0 : index
    %c0_67 = arith.constant 0 : index
    %c0_68 = arith.constant 0 : index
    %166 = vector.load %arg7[%c0_66, %c0_67, %c0_68] : memref<2x64x32xf32, #tpu.memory_space<vmem>>, vector<1x64x32xf32>
    %167 = vector.shape_cast %166 : vector<1x64x32xf32> to vector<64x32xf32>
    %cst_69 = arith.constant dense<0.000000e+00> : vector<128x32xf32>
    %168 = tpu.matmul %165, %167, %cst_69 {dimension_numbers = #tpu.dot_dimension_numbers<[1], [0], [0], [1], [0, 0, 1, 1], [], []>} : vector<128x64xf32>, vector<64x32xf32>, vector<128x32xf32> -> vector<128x32xf32>
    %169 = vector.broadcast %11 : vector<1x32xf32> to vector<128x32xf32>
    %170 = arith.addf %168, %169 : vector<128x32xf32>
    %171 = arith.addf %97, %170 : vector<128x32xf32>
    %c7 = arith.constant 7 : index
    %c0_70 = arith.constant 0 : index
    %172 = vector.load %arg2[%c7, %c0_70] : memref<16x128xf32, #tpu.memory_space<vmem>>, vector<1x32xf32>
    %c8 = arith.constant 8 : index
    %c0_71 = arith.constant 0 : index
    %173 = vector.load %arg2[%c8, %c0_71] : memref<16x128xf32, #tpu.memory_space<vmem>>, vector<1x32xf32>
    %c9 = arith.constant 9 : index
    %c0_72 = arith.constant 0 : index
    %174 = vector.load %arg2[%c9, %c0_72] : memref<16x128xf32, #tpu.memory_space<vmem>>, vector<1x32xf32>
    %c10 = arith.constant 10 : index
    %c0_73 = arith.constant 0 : index
    %175 = vector.load %arg2[%c10, %c0_73] : memref<16x128xf32, #tpu.memory_space<vmem>>, vector<1x32xf32>
    %c11 = arith.constant 11 : index
    %c0_74 = arith.constant 0 : index
    %176 = vector.load %arg2[%c11, %c0_74] : memref<16x128xf32, #tpu.memory_space<vmem>>, vector<1x64xf32>
    %c12 = arith.constant 12 : index
    %c0_75 = arith.constant 0 : index
    %177 = vector.load %arg2[%c12, %c0_75] : memref<16x128xf32, #tpu.memory_space<vmem>>, vector<1x32xf32>
    %cst_76 = arith.constant dense<0.000000e+00> : vector<128xf32>
    %178 = vector.multi_reduction <add>, %171, %cst_76 [1] : vector<128x32xf32> to vector<128xf32>
    %179 = vector.shape_cast %178 : vector<128xf32> to vector<128x1xf32>
    %cst_77 = arith.constant 3.200000e+01 : f32
    %180 = vector.broadcast %cst_77 : f32 to vector<128x1xf32>
    %181 = arith.divf %179, %180 : vector<128x1xf32>
    %182 = vector.broadcast %181 : vector<128x1xf32> to vector<128x32xf32>
    %183 = arith.subf %171, %182 : vector<128x32xf32>
    %184 = vector.broadcast %181 : vector<128x1xf32> to vector<128x32xf32>
    %185 = arith.subf %171, %184 : vector<128x32xf32>
    %186 = arith.mulf %183, %185 : vector<128x32xf32>
    %cst_78 = arith.constant dense<0.000000e+00> : vector<128xf32>
    %187 = vector.multi_reduction <add>, %186, %cst_78 [1] : vector<128x32xf32> to vector<128xf32>
    %188 = vector.shape_cast %187 : vector<128xf32> to vector<128x1xf32>
    %cst_79 = arith.constant 3.200000e+01 : f32
    %189 = vector.broadcast %cst_79 : f32 to vector<128x1xf32>
    %190 = arith.divf %188, %189 : vector<128x1xf32>
    %191 = vector.broadcast %181 : vector<128x1xf32> to vector<128x32xf32>
    %192 = arith.subf %171, %191 : vector<128x32xf32>
    %cst_80 = arith.constant 9.99999974E-6 : f32
    %193 = vector.broadcast %cst_80 : f32 to vector<128x1xf32>
    %194 = arith.addf %190, %193 : vector<128x1xf32>
    %195 = math.rsqrt %194 : vector<128x1xf32>
    %196 = vector.broadcast %195 : vector<128x1xf32> to vector<128x32xf32>
    %197 = arith.mulf %192, %196 : vector<128x32xf32>
    %198 = vector.broadcast %172 : vector<1x32xf32> to vector<128x32xf32>
    %199 = arith.mulf %197, %198 : vector<128x32xf32>
    %200 = vector.broadcast %173 : vector<1x32xf32> to vector<128x32xf32>
    %201 = arith.addf %199, %200 : vector<128x32xf32>
    %202 = vector.shape_cast %201 : vector<128x32xf32> to vector<8x16x32xf32>
    %c1_81 = arith.constant 1 : index
    %c0_82 = arith.constant 0 : index
    %c0_83 = arith.constant 0 : index
    %203 = vector.load %arg3[%c1_81, %c0_82, %c0_83] : memref<2x16x16xf32, #tpu.memory_space<vmem>>, vector<1x16x16xf32>
    %204 = vector.shape_cast %203 : vector<1x16x16xf32> to vector<16x16xf32>
    %205 = vector.shape_cast %204 : vector<16x16xf32> to vector<1x16x16xf32>
    %206 = vector.broadcast %205 : vector<1x16x16xf32> to vector<8x16x16xf32>
    "tpu.trace_start"() <{level = 10 : i32, message = "bhp,bpd->bhd"}> : () -> ()
    %cst_84 = arith.constant dense<0.000000e+00> : vector<8x16x32xf32>
    %207 = tpu.matmul %206, %202, %cst_84 {dimension_numbers = #tpu.dot_dimension_numbers<[2], [1], [1], [2], [0, 0, 0, 1, 1, 2], [0], [0]>} : vector<8x16x16xf32>, vector<8x16x32xf32>, vector<8x16x32xf32> -> vector<8x16x32xf32>
    "tpu.trace_stop"() : () -> ()
    %c1_85 = arith.constant 1 : index
    %c0_86 = arith.constant 0 : index
    %c0_87 = arith.constant 0 : index
    %208 = vector.load %arg5[%c1_85, %c0_86, %c0_87] : memref<2x32x32xf32, #tpu.memory_space<vmem>>, vector<1x16x32xf32>
    %209 = vector.shape_cast %208 : vector<1x16x32xf32> to vector<16x32xf32>
    %210 = vector.shape_cast %209 : vector<16x32xf32> to vector<1x16x32xf32>
    %211 = vector.broadcast %210 : vector<1x16x32xf32> to vector<8x16x32xf32>
    %212 = arith.addf %207, %211 : vector<8x16x32xf32>
    %cst_88 = arith.constant 5.000000e-01 : f32
    %213 = vector.broadcast %cst_88 : f32 to vector<8x16x32xf32>
    %214 = arith.mulf %213, %212 : vector<8x16x32xf32>
    %cst_89 = arith.constant 0.707106769 : f32
    %215 = vector.broadcast %cst_89 : f32 to vector<8x16x32xf32>
    %216 = arith.mulf %212, %215 : vector<8x16x32xf32>
    %217 = math.absf %216 : vector<8x16x32xf32>
    %cst_90 = arith.constant 0.327591091 : f32
    %218 = vector.broadcast %cst_90 : f32 to vector<8x16x32xf32>
    %219 = arith.mulf %218, %217 : vector<8x16x32xf32>
    %cst_91 = arith.constant 1.000000e+00 : f32
    %220 = vector.broadcast %cst_91 : f32 to vector<8x16x32xf32>
    %221 = arith.addf %220, %219 : vector<8x16x32xf32>
    %222 = tpu.reciprocal %221 {approx = true} : vector<8x16x32xf32> -> vector<8x16x32xf32>
    %cst_92 = arith.constant 1.06140542 : f32
    %223 = vector.broadcast %cst_92 : f32 to vector<8x16x32xf32>
    %224 = arith.mulf %222, %223 : vector<8x16x32xf32>
    %cst_93 = arith.constant -1.45315206 : f32
    %225 = vector.broadcast %cst_93 : f32 to vector<8x16x32xf32>
    %226 = arith.addf %225, %224 : vector<8x16x32xf32>
    %227 = arith.mulf %222, %226 : vector<8x16x32xf32>
    %cst_94 = arith.constant 1.42141378 : f32
    %228 = vector.broadcast %cst_94 : f32 to vector<8x16x32xf32>
    %229 = arith.addf %228, %227 : vector<8x16x32xf32>
    %230 = arith.mulf %222, %229 : vector<8x16x32xf32>
    %cst_95 = arith.constant -0.284496725 : f32
    %231 = vector.broadcast %cst_95 : f32 to vector<8x16x32xf32>
    %232 = arith.addf %231, %230 : vector<8x16x32xf32>
    %233 = arith.mulf %222, %232 : vector<8x16x32xf32>
    %cst_96 = arith.constant 0.254829586 : f32
    %234 = vector.broadcast %cst_96 : f32 to vector<8x16x32xf32>
    %235 = arith.addf %234, %233 : vector<8x16x32xf32>
    %236 = arith.mulf %222, %235 : vector<8x16x32xf32>
    %cst_97 = arith.constant 0.000000e+00 : f32
    %237 = vector.broadcast %cst_97 : f32 to vector<8x16x32xf32>
    %238 = arith.subf %237, %217 : vector<8x16x32xf32>
    %239 = arith.mulf %238, %217 : vector<8x16x32xf32>
    %240 = math.exp %239 : vector<8x16x32xf32>
    %241 = arith.mulf %236, %240 : vector<8x16x32xf32>
    %cst_98 = arith.constant 1.000000e+00 : f32
    %242 = vector.broadcast %cst_98 : f32 to vector<8x16x32xf32>
    %243 = arith.subf %242, %241 : vector<8x16x32xf32>
    %cst_99 = arith.constant 0.000000e+00 : f32
    %244 = vector.broadcast %cst_99 : f32 to vector<8x16x32xf32>
    %245 = arith.cmpf oge, %216, %244 : vector<8x16x32xf32>
    %cst_100 = arith.constant 0.000000e+00 : f32
    %246 = vector.broadcast %cst_100 : f32 to vector<8x16x32xf32>
    %247 = arith.subf %246, %243 : vector<8x16x32xf32>
    %248 = arith.select %245, %243, %247 : vector<8x16x32xi1>, vector<8x16x32xf32>
    %cst_101 = arith.constant 1.000000e+00 : f32
    %249 = vector.broadcast %cst_101 : f32 to vector<8x16x32xf32>
    %250 = arith.addf %249, %248 : vector<8x16x32xf32>
    %251 = arith.mulf %214, %250 : vector<8x16x32xf32>
    %c1_102 = arith.constant 1 : index
    %c0_103 = arith.constant 0 : index
    %c0_104 = arith.constant 0 : index
    %252 = vector.load %arg4[%c1_102, %c0_103, %c0_104] : memref<2x16x16xf32, #tpu.memory_space<vmem>>, vector<1x16x16xf32>
    %253 = vector.shape_cast %252 : vector<1x16x16xf32> to vector<16x16xf32>
    %254 = vector.shape_cast %253 : vector<16x16xf32> to vector<1x16x16xf32>
    %255 = vector.broadcast %254 : vector<1x16x16xf32> to vector<8x16x16xf32>
    "tpu.trace_start"() <{level = 10 : i32, message = "bph,bhd->bpd"}> : () -> ()
    %cst_105 = arith.constant dense<0.000000e+00> : vector<8x16x32xf32>
    %256 = tpu.matmul %255, %251, %cst_105 {dimension_numbers = #tpu.dot_dimension_numbers<[2], [1], [1], [2], [0, 0, 0, 1, 1, 2], [0], [0]>} : vector<8x16x16xf32>, vector<8x16x32xf32>, vector<8x16x32xf32> -> vector<8x16x32xf32>
    "tpu.trace_stop"() : () -> ()
    %c1_106 = arith.constant 1 : index
    %c16_107 = arith.constant 16 : index
    %c0_108 = arith.constant 0 : index
    %257 = vector.load %arg5[%c1_106, %c16_107, %c0_108] : memref<2x32x32xf32, #tpu.memory_space<vmem>>, vector<1x16x32xf32>
    %258 = vector.shape_cast %257 : vector<1x16x32xf32> to vector<16x32xf32>
    %259 = vector.shape_cast %258 : vector<16x32xf32> to vector<1x16x32xf32>
    %260 = vector.broadcast %259 : vector<1x16x32xf32> to vector<8x16x32xf32>
    %261 = arith.addf %256, %260 : vector<8x16x32xf32>
    %262 = vector.shape_cast %261 : vector<8x16x32xf32> to vector<128x32xf32>
    %263 = arith.addf %171, %262 : vector<128x32xf32>
    %cst_109 = arith.constant dense<0.000000e+00> : vector<128xf32>
    %264 = vector.multi_reduction <add>, %263, %cst_109 [1] : vector<128x32xf32> to vector<128xf32>
    %265 = vector.shape_cast %264 : vector<128xf32> to vector<128x1xf32>
    %cst_110 = arith.constant 3.200000e+01 : f32
    %266 = vector.broadcast %cst_110 : f32 to vector<128x1xf32>
    %267 = arith.divf %265, %266 : vector<128x1xf32>
    %268 = vector.broadcast %267 : vector<128x1xf32> to vector<128x32xf32>
    %269 = arith.subf %263, %268 : vector<128x32xf32>
    %270 = vector.broadcast %267 : vector<128x1xf32> to vector<128x32xf32>
    %271 = arith.subf %263, %270 : vector<128x32xf32>
    %272 = arith.mulf %269, %271 : vector<128x32xf32>
    %cst_111 = arith.constant dense<0.000000e+00> : vector<128xf32>
    %273 = vector.multi_reduction <add>, %272, %cst_111 [1] : vector<128x32xf32> to vector<128xf32>
    %274 = vector.shape_cast %273 : vector<128xf32> to vector<128x1xf32>
    %cst_112 = arith.constant 3.200000e+01 : f32
    %275 = vector.broadcast %cst_112 : f32 to vector<128x1xf32>
    %276 = arith.divf %274, %275 : vector<128x1xf32>
    %277 = vector.broadcast %267 : vector<128x1xf32> to vector<128x32xf32>
    %278 = arith.subf %263, %277 : vector<128x32xf32>
    %cst_113 = arith.constant 9.99999974E-6 : f32
    %279 = vector.broadcast %cst_113 : f32 to vector<128x1xf32>
    %280 = arith.addf %276, %279 : vector<128x1xf32>
    %281 = math.rsqrt %280 : vector<128x1xf32>
    %282 = vector.broadcast %281 : vector<128x1xf32> to vector<128x32xf32>
    %283 = arith.mulf %278, %282 : vector<128x32xf32>
    %284 = vector.broadcast %174 : vector<1x32xf32> to vector<128x32xf32>
    %285 = arith.mulf %283, %284 : vector<128x32xf32>
    %286 = vector.broadcast %175 : vector<1x32xf32> to vector<128x32xf32>
    %287 = arith.addf %285, %286 : vector<128x32xf32>
    %c1_114 = arith.constant 1 : index
    %c0_115 = arith.constant 0 : index
    %c0_116 = arith.constant 0 : index
    %288 = vector.load %arg6[%c1_114, %c0_115, %c0_116] : memref<2x32x64xf32, #tpu.memory_space<vmem>>, vector<1x32x64xf32>
    %289 = vector.shape_cast %288 : vector<1x32x64xf32> to vector<32x64xf32>
    %cst_117 = arith.constant dense<0.000000e+00> : vector<128x64xf32>
    %290 = tpu.matmul %287, %289, %cst_117 {dimension_numbers = #tpu.dot_dimension_numbers<[1], [0], [0], [1], [0, 0, 1, 1], [], []>} : vector<128x32xf32>, vector<32x64xf32>, vector<128x64xf32> -> vector<128x64xf32>
    %291 = vector.broadcast %176 : vector<1x64xf32> to vector<128x64xf32>
    %292 = arith.addf %290, %291 : vector<128x64xf32>
    %cst_118 = arith.constant 5.000000e-01 : f32
    %293 = vector.broadcast %cst_118 : f32 to vector<128x64xf32>
    %294 = arith.mulf %293, %292 : vector<128x64xf32>
    %cst_119 = arith.constant 0.707106769 : f32
    %295 = vector.broadcast %cst_119 : f32 to vector<128x64xf32>
    %296 = arith.mulf %292, %295 : vector<128x64xf32>
    %297 = math.absf %296 : vector<128x64xf32>
    %cst_120 = arith.constant 0.327591091 : f32
    %298 = vector.broadcast %cst_120 : f32 to vector<128x64xf32>
    %299 = arith.mulf %298, %297 : vector<128x64xf32>
    %cst_121 = arith.constant 1.000000e+00 : f32
    %300 = vector.broadcast %cst_121 : f32 to vector<128x64xf32>
    %301 = arith.addf %300, %299 : vector<128x64xf32>
    %302 = tpu.reciprocal %301 {approx = true} : vector<128x64xf32> -> vector<128x64xf32>
    %cst_122 = arith.constant 1.06140542 : f32
    %303 = vector.broadcast %cst_122 : f32 to vector<128x64xf32>
    %304 = arith.mulf %302, %303 : vector<128x64xf32>
    %cst_123 = arith.constant -1.45315206 : f32
    %305 = vector.broadcast %cst_123 : f32 to vector<128x64xf32>
    %306 = arith.addf %305, %304 : vector<128x64xf32>
    %307 = arith.mulf %302, %306 : vector<128x64xf32>
    %cst_124 = arith.constant 1.42141378 : f32
    %308 = vector.broadcast %cst_124 : f32 to vector<128x64xf32>
    %309 = arith.addf %308, %307 : vector<128x64xf32>
    %310 = arith.mulf %302, %309 : vector<128x64xf32>
    %cst_125 = arith.constant -0.284496725 : f32
    %311 = vector.broadcast %cst_125 : f32 to vector<128x64xf32>
    %312 = arith.addf %311, %310 : vector<128x64xf32>
    %313 = arith.mulf %302, %312 : vector<128x64xf32>
    %cst_126 = arith.constant 0.254829586 : f32
    %314 = vector.broadcast %cst_126 : f32 to vector<128x64xf32>
    %315 = arith.addf %314, %313 : vector<128x64xf32>
    %316 = arith.mulf %302, %315 : vector<128x64xf32>
    %cst_127 = arith.constant 0.000000e+00 : f32
    %317 = vector.broadcast %cst_127 : f32 to vector<128x64xf32>
    %318 = arith.subf %317, %297 : vector<128x64xf32>
    %319 = arith.mulf %318, %297 : vector<128x64xf32>
    %320 = math.exp %319 : vector<128x64xf32>
    %321 = arith.mulf %316, %320 : vector<128x64xf32>
    %cst_128 = arith.constant 1.000000e+00 : f32
    %322 = vector.broadcast %cst_128 : f32 to vector<128x64xf32>
    %323 = arith.subf %322, %321 : vector<128x64xf32>
    %cst_129 = arith.constant 0.000000e+00 : f32
    %324 = vector.broadcast %cst_129 : f32 to vector<128x64xf32>
    %325 = arith.cmpf oge, %296, %324 : vector<128x64xf32>
    %cst_130 = arith.constant 0.000000e+00 : f32
    %326 = vector.broadcast %cst_130 : f32 to vector<128x64xf32>
    %327 = arith.subf %326, %323 : vector<128x64xf32>
    %328 = arith.select %325, %323, %327 : vector<128x64xi1>, vector<128x64xf32>
    %cst_131 = arith.constant 1.000000e+00 : f32
    %329 = vector.broadcast %cst_131 : f32 to vector<128x64xf32>
    %330 = arith.addf %329, %328 : vector<128x64xf32>
    %331 = arith.mulf %294, %330 : vector<128x64xf32>
    %c1_132 = arith.constant 1 : index
    %c0_133 = arith.constant 0 : index
    %c0_134 = arith.constant 0 : index
    %332 = vector.load %arg7[%c1_132, %c0_133, %c0_134] : memref<2x64x32xf32, #tpu.memory_space<vmem>>, vector<1x64x32xf32>
    %333 = vector.shape_cast %332 : vector<1x64x32xf32> to vector<64x32xf32>
    %cst_135 = arith.constant dense<0.000000e+00> : vector<128x32xf32>
    %334 = tpu.matmul %331, %333, %cst_135 {dimension_numbers = #tpu.dot_dimension_numbers<[1], [0], [0], [1], [0, 0, 1, 1], [], []>} : vector<128x64xf32>, vector<64x32xf32>, vector<128x32xf32> -> vector<128x32xf32>
    %335 = vector.broadcast %177 : vector<1x32xf32> to vector<128x32xf32>
    %336 = arith.addf %334, %335 : vector<128x32xf32>
    %337 = arith.addf %263, %336 : vector<128x32xf32>
    %c13 = arith.constant 13 : index
    %c0_136 = arith.constant 0 : index
    %338 = vector.load %arg2[%c13, %c0_136] : memref<16x128xf32, #tpu.memory_space<vmem>>, vector<1x32xf32>
    %c14 = arith.constant 14 : index
    %c0_137 = arith.constant 0 : index
    %339 = vector.load %arg2[%c14, %c0_137] : memref<16x128xf32, #tpu.memory_space<vmem>>, vector<1x32xf32>
    %cst_138 = arith.constant dense<0.000000e+00> : vector<128xf32>
    %340 = vector.multi_reduction <add>, %337, %cst_138 [1] : vector<128x32xf32> to vector<128xf32>
    %341 = vector.shape_cast %340 : vector<128xf32> to vector<128x1xf32>
    %cst_139 = arith.constant 3.200000e+01 : f32
    %342 = vector.broadcast %cst_139 : f32 to vector<128x1xf32>
    %343 = arith.divf %341, %342 : vector<128x1xf32>
    %344 = vector.broadcast %343 : vector<128x1xf32> to vector<128x32xf32>
    %345 = arith.subf %337, %344 : vector<128x32xf32>
    %346 = vector.broadcast %343 : vector<128x1xf32> to vector<128x32xf32>
    %347 = arith.subf %337, %346 : vector<128x32xf32>
    %348 = arith.mulf %345, %347 : vector<128x32xf32>
    %cst_140 = arith.constant dense<0.000000e+00> : vector<128xf32>
    %349 = vector.multi_reduction <add>, %348, %cst_140 [1] : vector<128x32xf32> to vector<128xf32>
    %350 = vector.shape_cast %349 : vector<128xf32> to vector<128x1xf32>
    %cst_141 = arith.constant 3.200000e+01 : f32
    %351 = vector.broadcast %cst_141 : f32 to vector<128x1xf32>
    %352 = arith.divf %350, %351 : vector<128x1xf32>
    %353 = vector.broadcast %343 : vector<128x1xf32> to vector<128x32xf32>
    %354 = arith.subf %337, %353 : vector<128x32xf32>
    %cst_142 = arith.constant 9.99999974E-6 : f32
    %355 = vector.broadcast %cst_142 : f32 to vector<128x1xf32>
    %356 = arith.addf %352, %355 : vector<128x1xf32>
    %357 = math.rsqrt %356 : vector<128x1xf32>
    %358 = vector.broadcast %357 : vector<128x1xf32> to vector<128x32xf32>
    %359 = arith.mulf %354, %358 : vector<128x32xf32>
    %360 = vector.broadcast %338 : vector<1x32xf32> to vector<128x32xf32>
    %361 = arith.mulf %359, %360 : vector<128x32xf32>
    %362 = vector.broadcast %339 : vector<1x32xf32> to vector<128x32xf32>
    %363 = arith.addf %361, %362 : vector<128x32xf32>
    %364 = vector.shape_cast %363 : vector<128x32xf32> to vector<8x16x32xf32>
    %cst_143 = arith.constant dense<0.000000e+00> : vector<8x32xf32>
    %365 = vector.multi_reduction <add>, %364, %cst_143 [1] : vector<8x16x32xf32> to vector<8x32xf32>
    %cst_144 = arith.constant 1.600000e+01 : f32
    %366 = vector.broadcast %cst_144 : f32 to vector<8x32xf32>
    %367 = arith.divf %365, %366 : vector<8x32xf32>
    %c0_145 = arith.constant 0 : index
    %c0_146 = arith.constant 0 : index
    %368 = vector.load %arg8[%c0_145, %c0_146] : memref<32x128xf32, #tpu.memory_space<vmem>>, vector<32x128xf32>
    %cst_147 = arith.constant dense<0.000000e+00> : vector<8x128xf32>
    %369 = tpu.matmul %367, %368, %cst_147 {dimension_numbers = #tpu.dot_dimension_numbers<[1], [0], [0], [1], [0, 0, 1, 1], [], []>} : vector<8x32xf32>, vector<32x128xf32>, vector<8x128xf32> -> vector<8x128xf32>
    %c15 = arith.constant 15 : index
    %c0_148 = arith.constant 0 : index
    %370 = vector.load %arg2[%c15, %c0_148] : memref<16x128xf32, #tpu.memory_space<vmem>>, vector<1x128xf32>
    %371 = vector.broadcast %370 : vector<1x128xf32> to vector<8x128xf32>
    %372 = arith.addf %369, %371 : vector<8x128xf32>
    %c0_149 = arith.constant 0 : index
    %c0_150 = arith.constant 0 : index
    %373 = vector.load %arg9[%c0_149, %c0_150] : memref<8x128xf32, #tpu.memory_space<vmem>>, vector<8x128xf32>
    tpu.vector_store %arg9[%c0_149, %c0_150], %372 {strides = array<i32>} : memref<8x128xf32, #tpu.memory_space<vmem>>, vector<8x128xf32>,
    return
  }
}

</mosaic_0001>

<bundles_post_ra>
// kernel: cifar10_mlp_mixer.1
= control target key start
LH: loop header
LB: loop body
LE: loop exit
PB: predicated region body
PF: predicated region fallthrough
CT: control target
= control target key end

     0   :  { %s11195_s0 = inlined_call_operand.vmem [shape: f32[128,128], index: 0, kind: input, shape index: {}]   ;;  %s11196_s1 = inlined_call_operand.vmem [shape: f32[128,32], index: 1, kind: input, shape index: {}]   ;;  %s11197_s2 = inlined_call_operand.vmem [shape: f32[16,128], index: 2, kind: input, shape index: {}]   ;;  %s11198_s3 = inlined_call_operand.vmem [shape: f32[2,16,16], index: 3, kind: input, shape index: {}]   ;;  %s11199_s4 = inlined_call_operand.vmem [shape: f32[2,16,16], index: 4, kind: input, shape index: {}]   ;;  %s11200_s5 = inlined_call_operand.vmem [shape: f32[2,32,32], index: 5, kind: input, shape index: {}]   ;;  %s11201_s6 = inlined_call_operand.vmem [shape: f32[2,32,64], index: 6, kind: input, shape index: {}]   ;;  %s11202_s7 = inlined_call_operand.vmem [shape: f32[2,64,32], index: 7, kind: input, shape index: {}]   ;;  %s11203_s8 = inlined_call_operand.vmem [shape: f32[32,128], index: 8, kind: input, shape index: {}]   ;;  %s11204_s9 = inlined_call_operand.hbm [shape: f32[8,128], index: 9, kind: output, shape index: {}]  }
   0x1   :  { %v49_v0 = vld [vmem:[%s11196_s1] sm:$0xff]  ;;  %v50_v1 = vld [vmem:[%s11196_s1 + $0x8] sm:$0xff]  ;;  %v51_v2 = vld [vmem:[%s11196_s1 + $0x10] sm:$0xff] }
   0x2   :  { %v7510_v3 = vpack.c.bf16 %v50_v1, %v49_v0  ;;  %v52_v4 = vld [vmem:[%s11196_s1 + $0x18] sm:$0xff]  ;;  %v53_v6 = vld [vmem:[%s11196_s1 + $0x20] sm:$0xff]  ;;  %v54_v7 = vld [vmem:[%s11196_s1 + $0x28] sm:$0xff] }
   0x3   :  { %v7514_v5 = vpack.c.bf16 %v52_v4, %v51_v2  ;;  %v7518_v8 = vpack.c.bf16 %v54_v7, %v53_v6  ;;  %v33_v9 = vld [vmem:[%s11195_s0] sm:$0xff]  ;;  %v55_v10 = vld [vmem:[%s11196_s1 + $0x30] sm:$0xff]  ;;  %v56_v11 = vld [vmem:[%s11196_s1 + $0x38] sm:$0xff] }
   0x4   :  { %7511 = vmatprep.subr.bf16.mxu0 %v7510_v3  ;;  %7107 = vmatprep.mubr.f32.mxu0 %v33_v9  ;;  %v7522_v12 = vpack.c.bf16 %v56_v11, %v55_v10  ;;  %v57_v13 = vld [vmem:[%s11196_s1 + $0x40] sm:$0xff]  ;;  %v58_v14 = vld [vmem:[%s11196_s1 + $0x48] sm:$0xff] }
   0x5   :  { %7513 = vmatpush3.bf16.msra.mxu0 %v7510_v3 }
   0x6   :  { %7515 = vmatprep.subr.bf16.mxu0 %v7514_v5 }
   0x9   :  { %7517 = vmatpush3.bf16.msra.mxu0 %v7514_v5 }
   0xa   :  { %7519 = vmatprep.subr.bf16.mxu0 %v7518_v8 }
   0xb   :  { %14 = vsyncpa [#allocation3], 0  ;;  %v7526_v15 = vpack.c.bf16 %v58_v14, %v57_v13  ;;  %v59_v16 = vld [vmem:[%s11196_s1 + $0x50] sm:$0xff]  ;;  %v60_v17 = vld [vmem:[%s11196_s1 + $0x58] sm:$0xff]  ;;  %vm221_vm0 = vcmask 261120   ;;  %vm475_vm1 = vcmask 130048  }
   0xc   :  { %v7530_v18 = vpack.c.bf16 %v60_v17, %v59_v16  ;;  %v61_v19 = vld [vmem:[%s11196_s1 + $0x60] sm:$0xff]  ;;  %v62_v20 = vld [vmem:[%s11196_s1 + $0x68] sm:$0xff]  ;;  %v63_v22 = vld [vmem:[%s11196_s1 + $0x70] sm:$0xff]  ;;  %s8172_s26 = smov [#allocation2]  }
   0xd   :  { %7521 = vmatpush3.bf16.msra.mxu0 %v7518_v8  ;;  %v7534_v21 = vpack.c.bf16 %v62_v20, %v61_v19  ;;  %v64_v23 = vld [vmem:[%s11196_s1 + $0x78] sm:$0xff]  ;;  %v34_v25 = vld [vmem:[%s11195_s0 + $0x8] sm:$0xff]  ;;  %v35_v26 = vld [vmem:[%s11195_s0 + $0x10] sm:$0xff]  ;;  %s6649_s27 = sshll.u32 %s8172_s26, 4  ;;  %s6650_s27 = int_to_ptr.vmem [resolvable:$true] %s6649_s27 }
   0xe   :  { %7523 = vmatprep.subr.bf16.mxu0 %v7522_v12  ;;  %v7538_v24 = vpack.c.bf16 %v64_v23, %v63_v22  ;;  %v36_v27 = vld [vmem:[%s11195_s0 + $0x18] sm:$0xff]  ;;  %v37_v28 = vld [vmem:[%s11195_s0 + $0x20] sm:$0xff]  ;;  %v38_v29 = vld [vmem:[%s11195_s0 + $0x28] sm:$0xff]  ;;  %s8145_s1 = scalar_lea.vmem %s6650_s27, 128  ;;  %p8150_p1 = scmp.lt.s32.totalorder %s6650_s27, %s6650_s27 }
   0xf   :  { %v39_v30 = vld [vmem:[%s11195_s0 + $0x30] sm:$0xff]  ;;  %v40_v31 = vld [vmem:[%s11195_s0 + $0x38] sm:$0xff]  ;;  %v41_v32 = vld [vmem:[%s11195_s0 + $0x40] sm:$0xff]  ;;  %p8146_p0 = scmp.ne.s32.totalorder %s6650_s27, %s8145_s1  ;;  %p8151_p2 = scmp.lt.s32.totalorder %s8145_s1, %s8145_s1 }
  0x10   :  { %v42_v33 = vld [vmem:[%s11195_s0 + $0x48] sm:$0xff]  ;;  %v43_v34 = vld [vmem:[%s11195_s0 + $0x50] sm:$0xff]  ;;  %v44_v35 = vld [vmem:[%s11195_s0 + $0x58] sm:$0xff] }
  0x11   :  { %7525 = vmatpush3.bf16.msra.mxu0 %v7522_v12  ;;  %v45_v36 = vld [vmem:[%s11195_s0 + $0x60] sm:$0xff]  ;;  %v46_v37 = vld [vmem:[%s11195_s0 + $0x68] sm:$0xff]  ;;  %v47_v38 = vld [vmem:[%s11195_s0 + $0x70] sm:$0xff]  ;;  %p8152_p3 = por %p8151_p2, %p8150_p1 }
  0x12   :  { %7527 = vmatprep.subr.bf16.mxu0 %v7526_v15  ;;  %v48_v39 = vld [vmem:[%s11195_s0 + $0x78] sm:$0xff]  ;;  %v6657_v40 = vld [vmem:[%s11197_s2] ss:$0 sm:$0xff] }
  0x13   :  { %p8153_p4 = pnand %p8152_p3, %p8146_p0 }
  0x15   :  { %7529 = vmatpush3.bf16.msra.mxu0 %v7526_v15 }
  0x16   :  { %7531 = vmatprep.subr.bf16.mxu0 %v7530_v18 }
  0x19   :  { %7533 = vmatpush3.bf16.msra.mxu0 %v7530_v18 }
  0x1a   :  { %7535 = vmatprep.subr.bf16.mxu0 %v7534_v21 }
  0x1d   :  { %7537 = vmatpush3.bf16.msra.mxu0 %v7534_v21 }
  0x1e   :  { %7539 = vmatprep.subr.bf16.mxu0 %v7538_v24 }
  0x21   :  { %7541 = vmatpush3.bf16.msra.mxu0 %v7538_v24 }
  0x24   :  { %7108 = vmatmul.mubr.f32.vlgmr.msra.gmra.mrb[0].mxu0 %v34_v25 }
  0x25   :  { %7110 = vmatprep.mubr.f32.mxu0 %v35_v26 }
  0x28   :  { %7111 = vmatmul.mubr.f32.gmra.mrb[2].mxu0 %v36_v27 }
  0x29   :  { %7113 = vmatprep.mubr.f32.mxu0 %v37_v28 }
  0x2c   :  { %7114 = vmatmul.mubr.f32.gmra.mrb[4].mxu0 %v38_v29 }
  0x2d   :  { %7116 = vmatprep.mubr.f32.mxu0 %v39_v30 }
  0x30   :  { %7117 = vmatmul.mubr.f32.gmra.mrb[6].mxu0 %v40_v31 }
  0x31   :  { %7119 = vmatprep.mubr.f32.mxu0 %v41_v32 }
  0x34   :  { %7120 = vmatmul.mubr.f32.gmra.mrb[8].mxu0 %v42_v33 }
  0x35   :  { %7122 = vmatprep.mubr.f32.mxu0 %v43_v34 }
  0x38   :  { %7123 = vmatmul.mubr.f32.gmra.mrb[10].mxu0 %v44_v35 }
  0x39   :  { %7125 = vmatprep.mubr.f32.mxu0 %v45_v36 }
  0x3c   :  { %7126 = vmatmul.mubr.f32.gmra.mrb[12].mxu0 %v46_v37 }
  0x3d   :  { %7128 = vmatprep.mubr.f32.mxu0 %v47_v38 }
  0x40   :  { %7129 = vmatmul.mubr.f32.gmra.mrb[14].mxu0 %v48_v39 }
  0xf7   :  { %v7109_v41 = vpop.f32.mrb[0].mxu0 }
  0xf8   :  { %v136_v42 = vpop.f32.mrb[1].mxu0  ;;  %v8324_v44 = vadd.f32 %v7109_v41, %v6657_v40 }
  0xf9   :  { %v8322_v43 = vadd.f32 %v6657_v40, %v136_v42 }
  0xfa   :  { %v225_v52 = vsel %vm221_vm0, %v8324_v44, 0.0 }
  0xfb   :  { %v7112_v45 = vpop.f32.mrb[2].mxu0  ;;  %v222_v46 = vsel %vm221_vm0, %v8322_v43, 0.0 }
  0xfc   :  { %v8328_v47 = vadd.f32 %v7112_v45, %v6657_v40  ;;  %v146_v48 = vpop.f32.mrb[3].mxu0  ;;  %223 = vadd.xlane.f32.xlu0 %v222_v46 }
  0xfd   :  { %v8330_v49 = vadd.f32 %v6657_v40, %v146_v48 }
  0xfe   :  { %v231_v50 = vsel %vm221_vm0, %v8328_v47, 0.0 }
  0xff   :  { %11233 = vst [vmem:[#allocation5_spill] sm:$0xff] %v8330_v49  ;;  %232 = vadd.xlane.f32.xlu1 %v231_v50  ;;  %v7115_v51 = vpop.f32.mrb[4].mxu0  ;;  %v228_v56 = vsel %vm221_vm0, %v8330_v49, 0.0 }
 0x100   :  { %v8336_v53 = vadd.f32 %v7115_v51, %v6657_v40  ;;  %v156_v54 = vpop.f32.mrb[5].mxu0  ;;  %226 = vadd.xlane.f32.xlu0 %v225_v52 }
 0x101   :  { %v8338_v55 = vadd.f32 %v6657_v40, %v156_v54 }
 0x102   :  { %11234 = vst [vmem:[#allocation6_spill] sm:$0xff] %v8336_v53  ;;  %v237_v61 = vsel %vm221_vm0, %v8336_v53, 0.0 }
 0x103   :  { %11235 = vst [vmem:[#allocation7_spill] sm:$0xff] %v8338_v55  ;;  %v7118_v57 = vpop.f32.mrb[6].mxu0  ;;  %229 = vadd.xlane.f32.xlu1 %v228_v56  ;;  %v234_v58 = vsel %vm221_vm0, %v8338_v55, 0.0 }
 0x104   :  { %v8344_v59 = vadd.f32 %v7118_v57, %v6657_v40  ;;  %v166_v60 = vpop.f32.mrb[7].mxu0  ;;  %235 = vadd.xlane.f32.xlu0 %v234_v58 }
 0x105   :  { %v8348_v62 = vadd.f32 %v6657_v40, %v166_v60 }
 0x106   :  { %11236 = vst [vmem:[#allocation8_spill] sm:$0xff] %v8344_v59  ;;  %v243_v3 = vsel %vm221_vm0, %v8344_v59, 0.0 }
 0x107   :  { %11237 = vst [vmem:[#allocation9_spill] sm:$0xff] %v8348_v62  ;;  %v7121_v63 = vpop.f32.mrb[8].mxu0  ;;  %238 = vadd.xlane.f32.xlu1 %v237_v61  ;;  %v240_v0 = vsel %vm221_vm0, %v8348_v62, 0.0 }
 0x108   :  { %v8352_v1 = vadd.f32 %v7121_v63, %v6657_v40  ;;  %v176_v2 = vpop.f32.mrb[9].mxu0  ;;  %241 = vadd.xlane.f32.xlu0 %v240_v0 }
 0x109   :  { %v8356_v4 = vadd.f32 %v6657_v40, %v176_v2 }
 0x10a   :  { %11238 = vst [vmem:[#allocation10_spill] sm:$0xff] %v8352_v1  ;;  %v249_v9 = vsel %vm221_vm0, %v8352_v1, 0.0 }
 0x10b   :  { %11239 = vst [vmem:[#allocation11_spill] sm:$0xff] %v8356_v4  ;;  %v7124_v5 = vpop.f32.mrb[10].mxu0  ;;  %244 = vadd.xlane.f32.xlu1 %v243_v3  ;;  %v246_v6 = vsel %vm221_vm0, %v8356_v4, 0.0 }
 0x10c   :  { %v8360_v7 = vadd.f32 %v7124_v5, %v6657_v40  ;;  %v186_v8 = vpop.f32.mrb[11].mxu0  ;;  %247 = vadd.xlane.f32.xlu0 %v246_v6 }
 0x10d   :  { %v8364_v10 = vadd.f32 %v6657_v40, %v186_v8 }
 0x10e   :  { %11240 = vst [vmem:[#allocation12_spill] sm:$0xff] %v8360_v7  ;;  %v255_v15 = vsel %vm221_vm0, %v8360_v7, 0.0 }
 0x10f   :  { %11241 = vst [vmem:[#allocation13_spill] sm:$0xff] %v8364_v10  ;;  %v7127_v11 = vpop.f32.mrb[12].mxu0  ;;  %250 = vadd.xlane.f32.xlu1 %v249_v9  ;;  %v252_v12 = vsel %vm221_vm0, %v8364_v10, 0.0 }
 0x110   :  { %v8368_v13 = vadd.f32 %v7127_v11, %v6657_v40  ;;  %v196_v14 = vpop.f32.mrb[13].mxu0  ;;  %253 = vadd.xlane.f32.xlu0 %v252_v12 }
 0x111   :  { %v8372_v16 = vadd.f32 %v6657_v40, %v196_v14 }
 0x112   :  { %11242 = vst [vmem:[#allocation14_spill] sm:$0xff] %v8368_v13  ;;  %v261_v21 = vsel %vm221_vm0, %v8368_v13, 0.0 }
 0x113   :  { %11243 = vst [vmem:[#allocation15_spill] sm:$0xff] %v8372_v16  ;;  %v7130_v17 = vpop.f32.mrb[14].mxu0  ;;  %256 = vadd.xlane.f32.xlu1 %v255_v15  ;;  %v258_v18 = vsel %vm221_vm0, %v8372_v16, 0.0 }
 0x114   :  { %v8376_v19 = vadd.f32 %v7130_v17, %v6657_v40  ;;  %v206_v20 = vpop.f32.mrb[15].mxu0  ;;  %259 = vadd.xlane.f32.xlu0 %v258_v18 }
 0x115   :  { %v8380_v22 = vadd.f32 %v6657_v40, %v206_v20 }
 0x116   :  { %11244 = vst [vmem:[#allocation16_spill] sm:$0xff] %v8376_v19  ;;  %v267_v24 = vsel %vm221_vm0, %v8376_v19, 0.0 }
 0x117   :  { %11245 = vst [vmem:[#allocation17_spill] sm:$0xff] %v8380_v22  ;;  %262 = vadd.xlane.f32.xlu1 %v261_v21  ;;  %v264_v23 = vsel %vm221_vm0, %v8380_v22, 0.0 }
 0x118   :  { %265 = vadd.xlane.f32.xlu0 %v264_v23 }
 0x11b   :  { %268 = vadd.xlane.f32.xlu1 %v267_v24 }
 0x189   :  { %v224_v25 = vpop.xlane.xlu0 %223 }
 0x18a   :  { %v271_v26 = vmul.f32 0.03125, %v224_v25 }
 0x18c   :  { %v8387_v27 = vsub.f32 %v8322_v43, %v271_v26  ;;  %v233_v28 = vpop.xlane.xlu1 %232 }
 0x18d   :  { %v274_v29 = vmul.f32 0.03125, %v233_v28  ;;  %v227_v30 = vpop.xlane.xlu0 %226 }
 0x18e   :  { %v272_v31 = vmul.f32 0.03125, %v227_v30  ;;  %v303_v32 = vmul.f32 %v8387_v27, %v8387_v27 }
 0x18f   :  { %v8392_v33 = vsub.f32 %v8328_v47, %v274_v29 }
 0x190   :  { %v8395_v34 = vsub.f32 %v8324_v44, %v272_v31  ;;  %v230_v35 = vpop.xlane.xlu1 %229  ;;  %v319_v36 = vsel %vm221_vm0, %v303_v32, 0.0 }
 0x191   :  { %v273_v37 = vmul.f32 0.03125, %v230_v35  ;;  %320 = vadd.xlane.f32.xlu0 %v319_v36  ;;  %v236_v38 = vpop.xlane.xlu0 %235  ;;  %v306_v48 = vmul.f32 %v8392_v33, %v8392_v33 }
 0x192   :  { %v275_v39 = vmul.f32 0.03125, %v236_v38  ;;  %v304_v40 = vmul.f32 %v8395_v34, %v8395_v34 }
 0x193   :  { %v8401_v41 = vsub.f32 %v8330_v49, %v273_v37  ;;  %v328_v63 = vsel %vm221_vm0, %v306_v48, 0.0 }
 0x194   :  { %v8404_v42 = vsub.f32 %v8338_v55, %v275_v39  ;;  %v239_v45 = vpop.xlane.xlu1 %238  ;;  %v322_v46 = vsel %vm221_vm0, %v304_v40, 0.0 }
 0x195   :  { %v276_v50 = vmul.f32 0.03125, %v239_v45  ;;  %323 = vadd.xlane.f32.xlu1 %v322_v46  ;;  %v242_v51 = vpop.xlane.xlu0 %241  ;;  %v305_v52 = vmul.f32 %v8401_v41, %v8401_v41 }
 0x196   :  { %v277_v54 = vmul.f32 0.03125, %v242_v51  ;;  %v307_v58 = vmul.f32 %v8404_v42, %v8404_v42 }
 0x197   :  { %v8412_v56 = vsub.f32 %v8336_v53, %v276_v50  ;;  %v325_v57 = vsel %vm221_vm0, %v305_v52, 0.0 }
 0x198   :  { %v8418_v60 = vsub.f32 %v8348_v62, %v277_v54  ;;  %v245_v61 = vpop.xlane.xlu1 %244  ;;  %326 = vadd.xlane.f32.xlu0 %v325_v57  ;;  %v331_v8 = vsel %vm221_vm0, %v307_v58, 0.0 }
 0x199   :  { %v278_v0 = vmul.f32 0.03125, %v245_v61  ;;  %329 = vadd.xlane.f32.xlu1 %v328_v63  ;;  %v248_v2 = vpop.xlane.xlu0 %247  ;;  %v308_v3 = vmul.f32 %v8412_v56, %v8412_v56 }
 0x19a   :  { %v279_v5 = vmul.f32 0.03125, %v248_v2  ;;  %v309_v11 = vmul.f32 %v8418_v60, %v8418_v60 }
 0x19b   :  { %v8424_v6 = vsub.f32 %v8344_v59, %v278_v0  ;;  %v334_v9 = vsel %vm221_vm0, %v308_v3, 0.0 }
 0x19c   :  { %v8431_v12 = vsub.f32 %v8356_v4, %v279_v5  ;;  %v251_v14 = vpop.xlane.xlu1 %250  ;;  %332 = vadd.xlane.f32.xlu0 %v331_v8  ;;  %v337_v23 = vsel %vm221_vm0, %v309_v11, 0.0 }
 0x19d   :  { %v280_v15 = vmul.f32 0.03125, %v251_v14  ;;  %335 = vadd.xlane.f32.xlu1 %v334_v9  ;;  %v254_v17 = vpop.xlane.xlu0 %253  ;;  %v310_v18 = vmul.f32 %v8424_v6, %v8424_v6 }
 0x19e   :  { %v281_v20 = vmul.f32 0.03125, %v254_v17  ;;  %v311_v25 = vmul.f32 %v8431_v12, %v8431_v12 }
 0x19f   :  { %v8436_v21 = vsub.f32 %v8352_v1, %v280_v15  ;;  %v340_v24 = vsel %vm221_vm0, %v310_v18, 0.0  ;;  %v8485_v15 = vld [vmem:[%s11198_s3] sm:$0xff] }
 0x1a0   :  { %v8443_v26 = vsub.f32 %v8364_v10, %v281_v20  ;;  %v257_v28 = vpop.xlane.xlu1 %256  ;;  %338 = vadd.xlane.f32.xlu0 %v337_v23  ;;  %v343_v36 = vsel %vm221_vm0, %v311_v25, 0.0  ;;  %7135 = vmatprep.mubr.msk.f32.mxu1 %vm475_vm1, %v8485_v15 }
 0x1a1   :  { %v282_v29 = vmul.f32 0.03125, %v257_v28  ;;  %341 = vadd.xlane.f32.xlu1 %v340_v24  ;;  %v260_v30 = vpop.xlane.xlu0 %259  ;;  %v312_v31 = vmul.f32 %v8436_v21, %v8436_v21 }
 0x1a2   :  { %v283_v32 = vmul.f32 0.03125, %v260_v30  ;;  %v313_v38 = vmul.f32 %v8443_v26, %v8443_v26 }
 0x1a3   :  { %v8448_v35 = vsub.f32 %v8360_v7, %v282_v29  ;;  %v346_v37 = vsel %vm221_vm0, %v312_v31, 0.0 }
 0x1a4   :  { %v8455_v39 = vsub.f32 %v8372_v16, %v283_v32  ;;  %v263_v40 = vpop.xlane.xlu1 %262  ;;  %344 = vadd.xlane.f32.xlu0 %v343_v36  ;;  %v349_v52 = vsel %vm221_vm0, %v313_v38, 0.0 }
 0x1a5   :  { %v284_v45 = vmul.f32 0.03125, %v263_v40  ;;  %347 = vadd.xlane.f32.xlu1 %v346_v37  ;;  %v266_v46 = vpop.xlane.xlu0 %265  ;;  %v314_v48 = vmul.f32 %v8448_v35, %v8448_v35 }
 0x1a6   :  { %v285_v50 = vmul.f32 0.03125, %v266_v46  ;;  %v315_v57 = vmul.f32 %v8455_v39, %v8455_v39 }
 0x1a7   :  { %v8460_v51 = vsub.f32 %v8368_v13, %v284_v45  ;;  %v352_v54 = vsel %vm221_vm0, %v314_v48, 0.0 }
 0x1a8   :  { %v8467_v58 = vsub.f32 %v8380_v22, %v285_v50  ;;  %v269_v61 = vpop.xlane.xlu1 %268  ;;  %350 = vadd.xlane.f32.xlu0 %v349_v52  ;;  %v355_v3 = vsel %vm221_vm0, %v315_v57, 0.0 }
 0x1a9   :  { %v286_v63 = vmul.f32 0.03125, %v269_v61  ;;  %353 = vadd.xlane.f32.xlu1 %v352_v54  ;;  %v316_v0 = vmul.f32 %v8460_v51, %v8460_v51  ;;  %v8492_v61 = vld [vmem:[%s11197_s2 + $0x1] ss:$0 sm:$0xff] }
 0x1aa   :  { %v317_v8 = vmul.f32 %v8467_v58, %v8467_v58 }
 0x1ab   :  { %v8472_v2 = vsub.f32 %v8376_v19, %v286_v63  ;;  %v358_v5 = vsel %vm221_vm0, %v316_v0, 0.0 }
 0x1ac   :  { %356 = vadd.xlane.f32.xlu0 %v355_v3  ;;  %v361_v11 = vsel %vm221_vm0, %v317_v8, 0.0 }
 0x1ad   :  { %359 = vadd.xlane.f32.xlu1 %v358_v5  ;;  %v318_v9 = vmul.f32 %v8472_v2, %v8472_v2 }
 0x1af   :  { %v364_v14 = vsel %vm221_vm0, %v318_v9, 0.0 }
 0x1b0   :  { %362 = vadd.xlane.f32.xlu0 %v361_v11 }
 0x1b1   :  { %365 = vadd.xlane.f32.xlu1 %v364_v14 }
 0x21e   :  { %v321_v17 = vpop.xlane.xlu0 %320 }
 0x21f   :  { %v367_v18 = vmul.f32 0.03125, %v321_v17 }
 0x221   :  { %v383_v20 = vadd.f32 1e-05, %v367_v18  ;;  %v8499_v18 = vld [vmem:[%s11197_s2 + $0x2] ss:$0 sm:$0xff] }
 0x222   :  { %v324_v23 = vpop.xlane.xlu1 %323 }
 0x223   :  { %7728 = vrsqrt.f32 %v383_v20  ;;  %v368_v24 = vmul.f32 0.03125, %v324_v23 }
 0x225   :  { %v384_v25 = vadd.f32 1e-05, %v368_v24  ;;  %v327_v28 = vpop.xlane.xlu0 %326 }
 0x226   :  { %v369_v29 = vmul.f32 0.03125, %v327_v28  ;;  %v330_v30 = vpop.xlane.xlu1 %329 }
 0x227   :  { %7730 = vrsqrt.f32 %v384_v25  ;;  %v370_v31 = vmul.f32 0.03125, %v330_v30 }
 0x228   :  { %v385_v32 = vadd.f32 1e-05, %v369_v29 }
 0x229   :  { %v386_v36 = vadd.f32 1e-05, %v370_v31  ;;  %v333_v37 = vpop.xlane.xlu0 %332 }
 0x22a   :  { %7732 = vrsqrt.f32 %v385_v32  ;;  %v371_v38 = vmul.f32 0.03125, %v333_v37  ;;  %v336_v40 = vpop.xlane.xlu1 %335 }
 0x22b   :  { %7734 = vrsqrt.f32 %v386_v36  ;;  %v372_v45 = vmul.f32 0.03125, %v336_v40 }
 0x22c   :  { %v387_v46 = vadd.f32 1e-05, %v371_v38 }
 0x22d   :  { %v7729_v48 = vpop.eup %7728  ;;  %v388_v50 = vadd.f32 1e-05, %v372_v45  ;;  %v339_v52 = vpop.xlane.xlu0 %338 }
 0x22e   :  { %7736 = vrsqrt.f32 %v387_v46  ;;  %v373_v54 = vmul.f32 0.03125, %v339_v52  ;;  %v342_v57 = vpop.xlane.xlu1 %341  ;;  %v415_v63 = vmul.f32 %v7729_v48, %v8387_v27 }
 0x22f   :  { %7738 = vrsqrt.f32 %v388_v50  ;;  %v374_v0 = vmul.f32 0.03125, %v342_v57 }
 0x230   :  { %v389_v3 = vadd.f32 1e-05, %v373_v54  ;;  %v435_v11 = vmul.f32 %v8492_v61, %v415_v63 }
 0x231   :  { %v7731_v5 = vpop.eup %7730  ;;  %v390_v8 = vadd.f32 1e-05, %v374_v0  ;;  %v345_v9 = vpop.xlane.xlu0 %344 }
 0x232   :  { %7740 = vrsqrt.f32 %v389_v3  ;;  %v375_v14 = vmul.f32 0.03125, %v345_v9  ;;  %v348_v17 = vpop.xlane.xlu1 %347  ;;  %v416_v20 = vmul.f32 %v7731_v5, %v8395_v34  ;;  %v455_v31 = vadd.f32 %v8499_v18, %v435_v11  ;;  %v8516_v11 = vld [vmem:[%s11198_s3 + $0x8] sm:$0xff] }
 0x233   :  { %7742 = vrsqrt.f32 %v390_v8  ;;  %v376_v27 = vmul.f32 0.03125, %v348_v17 }
 0x234   :  { %v7733_v23 = vpop.eup %7732  ;;  %v391_v24 = vadd.f32 1e-05, %v375_v14  ;;  %v436_v25 = vmul.f32 %v8492_v61, %v416_v20 }
 0x235   :  { %v7735_v28 = vpop.eup %7734  ;;  %v392_v29 = vadd.f32 1e-05, %v376_v27  ;;  %v351_v30 = vpop.xlane.xlu0 %350  ;;  %v417_v32 = vmul.f32 %v7733_v23, %v8401_v41 }
 0x236   :  { %7744 = vrsqrt.f32 %v391_v24  ;;  %v377_v36 = vmul.f32 0.03125, %v351_v30  ;;  %v354_v37 = vpop.xlane.xlu1 %353  ;;  %v456_v38 = vadd.f32 %v8499_v18, %v436_v25  ;;  %v418_v34 = vmul.f32 %v7735_v28, %v8392_v33 }
 0x237   :  { %7746 = vrsqrt.f32 %v392_v29  ;;  %v378_v40 = vmul.f32 0.03125, %v354_v37  ;;  %v437_v45 = vmul.f32 %v8492_v61, %v417_v32 }
 0x238   :  { %v7737_v46 = vpop.eup %7736  ;;  %v393_v48 = vadd.f32 1e-05, %v377_v36  ;;  %v7542_v50 = vpack.c.bf16 %v456_v38, %v455_v31  ;;  %v438_v52 = vmul.f32 %v8492_v61, %v418_v34 }
 0x239   :  { %v7739_v54 = vpop.eup %7738  ;;  %v394_v57 = vadd.f32 1e-05, %v378_v40  ;;  %v357_v63 = vpop.xlane.xlu0 %356  ;;  %v457_v41 = vadd.f32 %v8499_v18, %v437_v45  ;;  %v419_v0 = vmul.f32 %v7737_v46, %v8404_v42 }
 0x23a   :  { %7748 = vrsqrt.f32 %v393_v48  ;;  %v379_v3 = vmul.f32 0.03125, %v357_v63  ;;  %v360_v5 = vpop.xlane.xlu1 %359  ;;  %7543 = vmatprep.subr.bf16.mxu1 %v7542_v50  ;;  %v458_v33 = vadd.f32 %v8499_v18, %v438_v52  ;;  %v420_v8 = vmul.f32 %v7739_v54, %v8412_v56 }
 0x23b   :  { %7750 = vrsqrt.f32 %v394_v57  ;;  %v380_v9 = vmul.f32 0.03125, %v360_v5  ;;  %7545 = vmatpush3.bf16.msra.mxu1 %v7542_v50  ;;  %v439_v14 = vmul.f32 %v8492_v61, %v419_v0 }
 0x23c   :  { %v7741_v17 = vpop.eup %7740  ;;  %v395_v42 = vadd.f32 1e-05, %v379_v3  ;;  %v7546_v20 = vpack.c.bf16 %v458_v33, %v457_v41  ;;  %v440_v27 = vmul.f32 %v8492_v61, %v420_v8 }
 0x23d   :  { %v7743_v23 = vpop.eup %7742  ;;  %v396_v24 = vadd.f32 1e-05, %v380_v9  ;;  %v363_v25 = vpop.xlane.xlu0 %362  ;;  %v459_v56 = vadd.f32 %v8499_v18, %v439_v14  ;;  %v421_v28 = vmul.f32 %v7741_v17, %v8418_v60 }
 0x23e   :  { %7752 = vrsqrt.f32 %v395_v42  ;;  %v381_v29 = vmul.f32 0.03125, %v363_v25  ;;  %v366_v30 = vpop.xlane.xlu1 %365  ;;  %7136 = vmatmul.mubr.msk.f32.vlgmr.msra.gmra.mrb[0].mxu1 %vm475_vm1, %v8516_v11  ;;  %7547 = vmatprep.subr.bf16.mxu1 %v7546_v20  ;;  %v460_v31 = vadd.f32 %v8499_v18, %v440_v27  ;;  %v422_v32 = vmul.f32 %v7743_v23, %v8424_v6 }
 0x23f   :  { %7754 = vrsqrt.f32 %v396_v24  ;;  %v382_v36 = vmul.f32 0.03125, %v366_v30  ;;  %7549 = vmatpush3.bf16.msra.mxu1 %v7546_v20  ;;  %7142 = vmatprep.mubr.msk.f32.mxu1 %vm475_vm1, %v8485_v15  ;;  %v441_v37 = vmul.f32 %v8492_v61, %v421_v28 }
 0x240   :  { %v7745_v60 = vpop.eup %7744  ;;  %v397_v38 = vadd.f32 1e-05, %v381_v29  ;;  %v7550_v34 = vpack.c.bf16 %v460_v31, %v459_v56  ;;  %v442_v40 = vmul.f32 %v8492_v61, %v422_v32 }
 0x241   :  { %v7747_v45 = vpop.eup %7746  ;;  %v398_v46 = vadd.f32 1e-05, %v382_v36  ;;  %v461_v48 = vadd.f32 %v8499_v18, %v441_v37  ;;  %v423_v50 = vmul.f32 %v7745_v60, %v8431_v12 }
 0x242   :  { %7756 = vrsqrt.f32 %v397_v38  ;;  %7143 = vmatmul.mubr.msk.f32.vlgmr.msra.gmra.mrb[2].mxu1 %vm475_vm1, %v8516_v11  ;;  %7551 = vmatprep.subr.bf16.mxu1 %v7550_v34  ;;  %v462_v6 = vadd.f32 %v8499_v18, %v442_v40  ;;  %v424_v52 = vmul.f32 %v7747_v45, %v8436_v21 }
 0x243   :  { %7758 = vrsqrt.f32 %v398_v46  ;;  %7553 = vmatpush3.bf16.msra.mxu1 %v7550_v34  ;;  %7149 = vmatprep.mubr.msk.f32.mxu1 %vm475_vm1, %v8485_v15  ;;  %v443_v54 = vmul.f32 %v8492_v61, %v423_v50 }
 0x244   :  { %v7749_v57 = vpop.eup %7748  ;;  %v7554_v63 = vpack.c.bf16 %v462_v6, %v461_v48  ;;  %v444_v12 = vmul.f32 %v8492_v61, %v424_v52 }
 0x245   :  { %v7751_v41 = vpop.eup %7750  ;;  %v463_v0 = vadd.f32 %v8499_v18, %v443_v54  ;;  %v425_v3 = vmul.f32 %v7749_v57, %v8443_v26 }
 0x246   :  { %7150 = vmatmul.mubr.msk.f32.vlgmr.msra.gmra.mrb[4].mxu1 %vm475_vm1, %v8516_v11  ;;  %7555 = vmatprep.subr.bf16.mxu1 %v7554_v63  ;;  %v464_v21 = vadd.f32 %v8499_v18, %v444_v12  ;;  %v426_v5 = vmul.f32 %v7751_v41, %v8448_v35 }
 0x247   :  { %7557 = vmatpush3.bf16.msra.mxu1 %v7554_v63  ;;  %7156 = vmatprep.mubr.msk.f32.mxu1 %vm475_vm1, %v8485_v15  ;;  %v445_v33 = vmul.f32 %v8492_v61, %v425_v3 }
 0x248   :  { %v7753_v8 = vpop.eup %7752  ;;  %v7558_v9 = vpack.c.bf16 %v464_v21, %v463_v0  ;;  %v446_v14 = vmul.f32 %v8492_v61, %v426_v5 }
 0x249   :  { %v7755_v17 = vpop.eup %7754  ;;  %v465_v26 = vadd.f32 %v8499_v18, %v445_v33  ;;  %v427_v42 = vmul.f32 %v7753_v8, %v8455_v39 }
 0x24a   :  { %7157 = vmatmul.mubr.msk.f32.vlgmr.msra.gmra.mrb[6].mxu1 %vm475_vm1, %v8516_v11  ;;  %7559 = vmatprep.subr.bf16.mxu1 %v7558_v9  ;;  %v466_v35 = vadd.f32 %v8499_v18, %v446_v14  ;;  %v428_v20 = vmul.f32 %v7755_v17, %v8460_v51 }
 0x24b   :  { %7561 = vmatpush3.bf16.msra.mxu1 %v7558_v9  ;;  %7163 = vmatprep.mubr.msk.f32.mxu1 %vm475_vm1, %v8485_v15  ;;  %v447_v27 = vmul.f32 %v8492_v61, %v427_v42 }
 0x24c   :  { %v7757_v23 = vpop.eup %7756  ;;  %v7562_v24 = vpack.c.bf16 %v466_v35, %v465_v26  ;;  %v448_v25 = vmul.f32 %v8492_v61, %v428_v20 }
 0x24d   :  { %v7759_v56 = vpop.eup %7758  ;;  %v467_v39 = vadd.f32 %v8499_v18, %v447_v27  ;;  %v429_v28 = vmul.f32 %v7757_v23, %v8467_v58 }
 0x24e   :  { %7164 = vmatmul.mubr.msk.f32.vlgmr.msra.gmra.mrb[8].mxu1 %vm475_vm1, %v8516_v11  ;;  %7563 = vmatprep.subr.bf16.mxu1 %v7562_v24  ;;  %v468_v51 = vadd.f32 %v8499_v18, %v448_v25  ;;  %v430_v29 = vmul.f32 %v7759_v56, %v8472_v2 }
 0x24f   :  { %7565 = vmatpush3.bf16.msra.mxu1 %v7562_v24  ;;  %7170 = vmatprep.mubr.msk.f32.mxu1 %vm475_vm1, %v8485_v15  ;;  %v449_v30 = vmul.f32 %v8492_v61, %v429_v28 }
 0x250   :  { %v7566_v31 = vpack.c.bf16 %v468_v51, %v467_v39  ;;  %v450_v32 = vmul.f32 %v8492_v61, %v430_v29  ;;  %v8585_v61 = vld [vmem:[%s11199_s4] sm:$0xff] }
 0x251   :  { %v469_v36 = vadd.f32 %v8499_v18, %v449_v30 }
 0x252   :  { %7171 = vmatmul.mubr.msk.f32.vlgmr.msra.gmra.mrb[10].mxu1 %vm475_vm1, %v8516_v11  ;;  %7567 = vmatprep.subr.bf16.mxu1 %v7566_v31  ;;  %v470_v58 = vadd.f32 %v8499_v18, %v450_v32  ;;  %v8592_v18 = vld [vmem:[%s11200_s5 + $0x8] sm:$0xff] }
 0x253   :  { %7569 = vmatpush3.bf16.msra.mxu1 %v7566_v31  ;;  %7177 = vmatprep.mubr.msk.f32.mxu1 %vm475_vm1, %v8485_v15 }
 0x254   :  { %v7570_v2 = vpack.c.bf16 %v470_v58, %v469_v36 }
 0x256   :  { %7178 = vmatmul.mubr.msk.f32.vlgmr.msra.gmra.mrb[12].mxu1 %vm475_vm1, %v8516_v11  ;;  %7571 = vmatprep.subr.bf16.mxu1 %v7570_v2 }
 0x257   :  { %7573 = vmatpush3.bf16.msra.mxu1 %v7570_v2  ;;  %7184 = vmatprep.mubr.msk.f32.mxu1 %vm475_vm1, %v8485_v15  ;;  %v8597_v15 = vld [vmem:[%s11200_s5] sm:$0xff] }
 0x25a   :  { %7185 = vmatmul.mubr.msk.f32.vlgmr.msra.gmra.mrb[14].mxu1 %vm475_vm1, %v8516_v11 }
 0x25b   :  { %7191 = vmatprep.mubr.msk.f32.mxu1 %vm475_vm1, %v8585_v61 }
 0x311   :  { %v7137_v37 = vpop.f32.mrb[0].mxu1 }
 0x312   :  { %v554_v11 = vadd.f32 %v7137_v37, %v8592_v18  ;;  %v548_v60 = vpop.f32.mrb[1].mxu1 }
 0x313   :  { %v8601_v38 = vadd.f32 %v548_v60, %v8597_v15 }
 0x314   :  { %v8603_v34 = vmul.f32 0.70710677, %v554_v11  ;;  %v8648_v58 = vmul.f32 0.5, %v554_v11 }
 0x315   :  { %v8606_v40 = vmul.f32 0.70710677, %v8601_v38  ;;  %v7144_v45 = vpop.f32.mrb[2].mxu1 }
 0x316   :  { %v1115_v46 = vand.u32 2147483647, %v8603_v34  ;;  %v8610_v48 = vadd.f32 %v7144_v45, %v8592_v18  ;;  %v623_v50 = vpop.f32.mrb[3].mxu1  ;;  %vm1419_vm2 = vcmp.ge.f32.partialorder %v8603_v34, 0.0 }
 0x317   :  { %v1114_v6 = vand.u32 2147483647, %v8606_v40  ;;  %v8614_v52 = vadd.f32 %v623_v50, %v8597_v15  ;;  %vm1418_vm3 = vcmp.ge.f32.partialorder %v8606_v40, 0.0 }
 0x318   :  { %v1131_v54 = vmul.f32 0.3275911, %v1115_v46  ;;  %v8617_v57 = vmul.f32 0.70710677, %v8610_v48  ;;  %v1323_v21 = vsub.f32 0.0, %v1115_v46 }
 0x319   :  { %v1130_v63 = vmul.f32 0.3275911, %v1114_v6  ;;  %v8620_v12 = vmul.f32 0.70710677, %v8614_v52  ;;  %v7151_v3 = vpop.f32.mrb[4].mxu1  ;;  %v1322_v14 = vsub.f32 0.0, %v1114_v6 }
 0x31a   :  { %v1147_v41 = vadd.f32 1.0, %v1131_v54  ;;  %v1117_v0 = vand.u32 2147483647, %v8617_v57  ;;  %v698_v8 = vpop.f32.mrb[5].mxu1  ;;  %v8625_v35 = vadd.f32 %v7151_v3, %v8592_v18  ;;  %v1339_v27 = vmul.f32 %v1323_v21, %v1115_v46 }
 0x31b   :  { %v1146_v5 = vadd.f32 1.0, %v1130_v63  ;;  %v1116_v33 = vand.u32 2147483647, %v8620_v12  ;;  %v8628_v24 = vadd.f32 %v698_v8, %v8597_v15  ;;  %v1338_v56 = vmul.f32 %v1322_v14, %v1114_v6 }
 0x31c   :  { %7760 = vrcp.f32 %v1147_v41  ;;  %v1133_v9 = vmul.f32 0.3275911, %v1117_v0  ;;  %v8631_v25 = vmul.f32 0.70710677, %v8625_v35  ;;  %v1356_v31 = vmul.f32 1.442695, %v1339_v27 }
 0x31d   :  { %7762 = vrcp.f32 %v1146_v5  ;;  %v1132_v17 = vmul.f32 0.3275911, %v1116_v33  ;;  %v7158_v26 = vpop.f32.mrb[6].mxu1  ;;  %v8634_v39 = vmul.f32 0.70710677, %v8628_v24  ;;  %v1325_v2 = vsub.f32 0.0, %v1117_v0 }
 0x31e   :  { %v1149_v42 = vadd.f32 1.0, %v1133_v9  ;;  %v773_v20 = vpop.f32.mrb[7].mxu1  ;;  %v1119_v51 = vand.u32 2147483647, %v8631_v25  ;;  %v8640_v29 = vadd.f32 %v7158_v26, %v8592_v18  ;;  %v1354_v45 = vmul.f32 1.442695, %v1338_v56 }
 0x31f   :  { %v1148_v23 = vadd.f32 1.0, %v1132_v17  ;;  %v1118_v32 = vand.u32 2147483647, %v8634_v39  ;;  %v8646_v36 = vadd.f32 %v773_v20, %v8597_v15  ;;  %v1324_v54 = vsub.f32 0.0, %v1116_v33 }
 0x320   :  { %7764 = vrcp.f32 %v1149_v42  ;;  %v1135_v37 = vmul.f32 0.3275911, %v1119_v51  ;;  %v8651_v60 = vmul.f32 0.70710677, %v8640_v29  ;;  %v1327_v41 = vsub.f32 0.0, %v1119_v51 }
 0x321   :  { %7766 = vrcp.f32 %v1148_v23  ;;  %v8636_v28 = vpop.f32.mrb[8].mxu1  ;;  %v1134_v46 = vmul.f32 0.3275911, %v1118_v32  ;;  %v8654_v50 = vmul.f32 0.70710677, %v8646_v36  ;;  %v1341_v26 = vmul.f32 %v1325_v2, %v1117_v0 }
 0x322   :  { %v8642_v30 = vpop.f32.mrb[9].mxu1  ;;  %v1151_v63 = vadd.f32 1.0, %v1135_v37  ;;  %v1121_v3 = vand.u32 2147483647, %v8651_v60  ;;  %v1326_v27 = vsub.f32 0.0, %v1118_v32  ;;  %vm1421_vm4 = vcmp.ge.f32.partialorder %v8617_v57, 0.0 }
 0x323   :  { %v1150_v8 = vadd.f32 1.0, %v1134_v46  ;;  %v8665_v9 = vand.u32 2147483647, %v8654_v50  ;;  %v1360_v4 = vmul.f32 1.442695, %v1341_v26  ;;  %vm1420_vm5 = vcmp.ge.f32.partialorder %v8620_v12, 0.0 }
 0x324   :  { %7768 = vrcp.f32 %v1151_v63  ;;  %v1137_v42 = vmul.f32 0.3275911, %v1121_v3  ;;  %v1329_v23 = vsub.f32 0.0, %v1121_v3  ;;  %v1340_v63 = vmul.f32 %v1324_v54, %v1116_v33 }
 0x325   :  { %v8659_v21 = vpop.f32.mrb[10].mxu1  ;;  %7770 = vrcp.f32 %v1150_v8  ;;  %v1136_v19 = vmul.f32 0.3275911, %v8665_v9  ;;  %v1342_v1 = vmul.f32 %v1326_v27, %v1118_v32  ;;  %v8687_v33 = vmul.f32 0.5, %v8601_v38 }
 0x326   :  { %v8656_v6 = vpop.eup %7760  ;;  %v8667_v14 = vpop.f32.mrb[11].mxu1  ;;  %v1153_v46 = vadd.f32 1.0, %v1137_v42  ;;  %v1345_v55 = vmul.f32 %v1329_v23, %v1121_v3  ;;  %v1358_v54 = vmul.f32 1.442695, %v1340_v63  ;;  %vm1423_vm6 = vcmp.ge.f32.partialorder %v8631_v25, 0.0 }
 0x327   :  { %v8661_v11 = vpop.eup %7762  ;;  %v1179_v5 = vmul.f32 1.0614054, %v8656_v6  ;;  %v1152_v7 = vadd.f32 1.0, %v1136_v19  ;;  %v1362_v3 = vmul.f32 1.442695, %v1342_v1  ;;  %vm1422_vm7 = vcmp.ge.f32.partialorder %v8634_v39, 0.0 }
 0x328   :  { %v1178_v17 = vmul.f32 1.0614054, %v8661_v11  ;;  %7772 = vrcp.f32 %v1153_v46  ;;  %v1368_v27 = vmul.f32 1.442695, %v1345_v55  ;;  %v1328_v55 = vsub.f32 0.0, %v8665_v9 }
 0x329   :  { %v1195_v20 = vadd.f32 -1.4531521, %v1179_v5  ;;  %v8670_v56 = vpop.f32.mrb[12].mxu1  ;;  %v1343_v5 = vmul.f32 %v1327_v41, %v1119_v51  ;;  %7774 = vrcp.f32 %v1152_v7  ;;  %vm1425_vm8 = vcmp.ge.f32.partialorder %v8651_v60, 0.0 }
 0x32a   :  { %v8672_v37 = vpop.eup %7764  ;;  %v1194_v22 = vadd.f32 -1.4531521, %v1178_v17  ;;  %v8675_v16 = vpop.f32.mrb[13].mxu1  ;;  %7776 = vpow2.f32 %v1356_v31  ;;  %v8804_v12 = vadd.f32 %v8670_v56, %v8592_v18  ;;  %vm1424_vm9 = vcmp.ge.f32.partialorder %v8654_v50, 0.0 }
 0x32b   :  { %v8677_v13 = vpop.eup %7766  ;;  %v1211_v0 = vmul.f32 %v8656_v6, %v1195_v20  ;;  %v1181_v2 = vmul.f32 1.0614054, %v8672_v37  ;;  %7778 = vpow2.f32 %v1354_v45 }
 0x32c   :  { %v1210_v8 = vmul.f32 %v8661_v11, %v1194_v22  ;;  %v1180_v10 = vmul.f32 1.0614054, %v8677_v13  ;;  %7780 = vpow2.f32 %v1360_v4 }
 0x32d   :  { %v1227_v17 = vadd.f32 1.4214138, %v1211_v0  ;;  %v1197_v42 = vadd.f32 -1.4531521, %v1181_v2  ;;  %v8683_v53 = vpop.f32.mrb[14].mxu1  ;;  %v8703_v0 = vadd.f32 %v8636_v28, %v8592_v18  ;;  %7782 = vpow2.f32 %v1358_v54 }
 0x32e   :  { %v1226_v62 = vadd.f32 1.4214138, %v1210_v8  ;;  %v1196_v59 = vadd.f32 -1.4531521, %v1180_v10  ;;  %v8690_v51 = vpop.f32.mrb[15].mxu1  ;;  %v8694_v26 = vpop.eup %7768 }
 0x32f   :  { %v1243_v20 = vmul.f32 %v8656_v6, %v1227_v17  ;;  %v1213_v22 = vmul.f32 %v8672_v37, %v1197_v42  ;;  %v1364_v10 = vmul.f32 1.442695, %v1343_v5  ;;  %v8696_v23 = vpop.eup %7770 }
 0x330   :  { %v1242_v19 = vmul.f32 %v8661_v11, %v1226_v62  ;;  %v1212_v32 = vmul.f32 %v8677_v13, %v1196_v59  ;;  %v1183_v59 = vmul.f32 1.0614054, %v8694_v26  ;;  %v1182_v4 = vmul.f32 1.0614054, %v8696_v23 }
 0x331   :  { %v1259_v41 = vadd.f32 -0.28449672, %v1243_v20  ;;  %v1229_v7 = vadd.f32 1.4214138, %v1213_v22  ;;  %7784 = vpow2.f32 %v1364_v10 }
 0x332   :  { %v1258_v31 = vadd.f32 -0.28449672, %v1242_v19  ;;  %v1228_v38 = vadd.f32 1.4214138, %v1212_v32  ;;  %v1199_v5 = vadd.f32 -1.4531521, %v1183_v59  ;;  %v8709_v8 = vpop.eup %7772  ;;  %7786 = vpow2.f32 %v1362_v3 }
 0x333   :  { %v1275_v46 = vmul.f32 %v8656_v6, %v1259_v41  ;;  %v1245_v62 = vmul.f32 %v8672_v37, %v1229_v7  ;;  %v1198_v20 = vadd.f32 -1.4531521, %v1182_v4  ;;  %v1185_v19 = vmul.f32 1.0614054, %v8709_v8  ;;  %v8717_v41 = vpop.eup %7774 }
 0x334   :  { %v1274_v1 = vmul.f32 %v8661_v11, %v1258_v31  ;;  %v1244_v45 = vmul.f32 %v8677_v13, %v1228_v38  ;;  %v1215_v22 = vmul.f32 %v8694_v26, %v1199_v5  ;;  %v8715_v32 = vmul.f32 0.70710677, %v8703_v0 }
 0x335   :  { %v1291_v2 = vadd.f32 0.2548296, %v1275_v46  ;;  %v1261_v63 = vadd.f32 -0.28449672, %v1245_v62  ;;  %v1214_v54 = vmul.f32 %v8696_v23, %v1198_v20  ;;  %v7777_v46 = vpop.eup %7776  ;;  %7788 = vpow2.f32 %v1368_v27 }
 0x336   :  { %v1290_v17 = vadd.f32 0.2548296, %v1274_v1  ;;  %v1260_v42 = vadd.f32 -0.28449672, %v1244_v45  ;;  %v1231_v59 = vadd.f32 1.4214138, %v1215_v22  ;;  %v7779_v5 = vpop.eup %7778 }
 0x337   :  { %v1277_v28 = vmul.f32 %v8672_v37, %v1261_v63  ;;  %v1307_v7 = vmul.f32 %v8656_v6, %v1291_v2  ;;  %v1201_v1 = vadd.f32 -1.4531521, %v1185_v19  ;;  %v1230_v4 = vadd.f32 1.4214138, %v1214_v54 }
 0x338   :  { %v1306_v31 = vmul.f32 %v8661_v11, %v1290_v17  ;;  %v1276_v38 = vmul.f32 %v8677_v13, %v1260_v42  ;;  %v1184_v63 = vmul.f32 1.0614054, %v8717_v41  ;;  %v1247_v6 = vmul.f32 %v8694_v26, %v1231_v59  ;;  %v7781_v17 = vpop.eup %7780 }
 0x339   :  { %v1293_v62 = vadd.f32 0.2548296, %v1277_v28  ;;  %v1217_v11 = vmul.f32 %v8709_v8, %v1201_v1  ;;  %v1344_v2 = vmul.f32 %v1328_v55, %v8665_v9  ;;  %v1387_v42 = vmul.f32 %v7777_v46, %v1307_v7  ;;  %v7783_v7 = vpop.eup %7782 }
 0x33a   :  { %v1292_v45 = vadd.f32 0.2548296, %v1276_v38  ;;  %v1386_v20 = vmul.f32 %v7779_v5, %v1306_v31  ;;  %v1246_v28 = vmul.f32 %v8696_v23, %v1230_v4  ;;  %v1200_v22 = vadd.f32 -1.4531521, %v1184_v63 }
 0x33b   :  { %v1309_v49 = vmul.f32 %v8672_v37, %v1293_v62  ;;  %v1263_v19 = vadd.f32 -0.28449672, %v1247_v6  ;;  %v1233_v38 = vadd.f32 1.4214138, %v1217_v11  ;;  %v8731_v54 = vand.u32 2147483647, %v8715_v32 }
 0x33c   :  { %v1308_v10 = vmul.f32 %v8677_v13, %v1292_v45  ;;  %v1262_v62 = vadd.f32 -0.28449672, %v1246_v28  ;;  %v1216_v59 = vmul.f32 %v8717_v41, %v1200_v22  ;;  %v1403_v31 = vsub.f32 1.0, %v1387_v42 }
 0x33d   :  { %v1389_v37 = vmul.f32 %v7781_v17, %v1309_v49  ;;  %v1279_v9 = vmul.f32 %v8694_v26, %v1263_v19  ;;  %v1249_v55 = vmul.f32 %v8709_v8, %v1233_v38  ;;  %v1402_v13 = vsub.f32 1.0, %v1386_v20  ;;  %v7785_v20 = vpop.eup %7784 }
 0x33e   :  { %v1278_v46 = vmul.f32 %v8696_v23, %v1262_v62  ;;  %v1366_v1 = vmul.f32 1.442695, %v1344_v2  ;;  %v1388_v49 = vmul.f32 %v7783_v7, %v1308_v10  ;;  %v1139_v4 = vmul.f32 0.3275911, %v8731_v54 }
 0x33f   :  { %v1295_v45 = vadd.f32 0.2548296, %v1279_v9  ;;  %v1265_v3 = vadd.f32 -0.28449672, %v1249_v55  ;;  %v8741_v63 = vmul.f32 0.5, %v8610_v48  ;;  %v1405_v5 = vsub.f32 1.0, %v1389_v37  ;;  %v7787_v9 = vpop.eup %7786 }
 0x340   :  { %v1294_v6 = vadd.f32 0.2548296, %v1278_v46  ;;  %v1232_v11 = vadd.f32 1.4214138, %v1216_v59  ;;  %v8744_v27 = vmul.f32 0.5, %v8614_v52  ;;  %v8750_v2 = vadd.f32 %v8642_v30, %v8597_v15 }
 0x341   :  { %v1311_v17 = vmul.f32 %v8694_v26, %v1295_v45  ;;  %v1281_v42 = vmul.f32 %v8709_v8, %v1265_v3  ;;  %v1435_v28 = vsub.f32 0.0, %v1403_v31  ;;  %v1434_v22 = vsub.f32 0.0, %v1402_v13 }
 0x342   :  { %v1248_v48 = vmul.f32 %v8717_v41, %v1232_v11  ;;  %7790 = vpow2.f32 %v1366_v1  ;;  %v1404_v10 = vsub.f32 1.0, %v1388_v49  ;;  %v1310_v19 = vmul.f32 %v8696_v23, %v1294_v6  ;;  %v7789_v1 = vpop.eup %7788 }
 0x343   :  { %v1297_v38 = vadd.f32 0.2548296, %v1281_v42  ;;  %v1155_v52 = vadd.f32 1.0, %v1139_v4  ;;  %v1437_v26 = vsub.f32 0.0, %v1405_v5  ;;  %v1391_v37 = vmul.f32 %v7785_v20, %v1311_v17 }
 0x344   :  { %v1264_v62 = vadd.f32 -0.28449672, %v1248_v48  ;;  %v8757_v30 = vmul.f32 0.5, %v8625_v35  ;;  %v1451_v55 = vsel %vm1419_vm2, %v1403_v31, %v1435_v28  ;;  %v8763_v23 = vmul.f32 0.5, %v8628_v24 }
 0x345   :  { %v1313_v59 = vmul.f32 %v8709_v8, %v1297_v38  ;;  %7792 = vrcp.f32 %v1155_v52  ;;  %v8768_v46 = vadd.f32 %v8659_v21, %v8592_v18  ;;  %v1450_v35 = vsel %vm1418_vm3, %v1402_v13, %v1434_v22 }
 0x346   :  { %v1280_v7 = vmul.f32 %v8717_v41, %v1264_v62  ;;  %v1436_v49 = vsub.f32 0.0, %v1404_v10  ;;  %v1390_v8 = vmul.f32 %v7787_v9, %v1310_v19  ;;  %v8774_v34 = vmul.f32 0.70710677, %v8750_v2 }
 0x347   :  { %v1453_v24 = vsel %vm1421_vm4, %v1405_v5, %v1437_v26  ;;  %v1407_v31 = vsub.f32 1.0, %v1391_v37  ;;  %v1393_v45 = vmul.f32 %v7789_v1, %v1313_v59  ;;  %v8779_v21 = vmul.f32 0.5, %v8640_v29 }
 0x348   :  { %v1296_v3 = vadd.f32 0.2548296, %v1280_v7  ;;  %v8782_v4 = vmul.f32 0.5, %v8646_v36  ;;  %v1331_v40 = vsub.f32 0.0, %v8731_v54  ;;  %v1122_v13 = vand.u32 2147483647, %v8774_v34 }
 0x349   :  { %v1467_v6 = vadd.f32 1.0, %v1451_v55  ;;  %v1466_v11 = vadd.f32 1.0, %v1450_v35  ;;  %v8790_v5 = vadd.f32 %v8667_v14, %v8597_v15  ;;  %v1469_v17 = vadd.f32 1.0, %v1453_v24 }
 0x34a   :  { %v1312_v57 = vmul.f32 %v8717_v41, %v1296_v3  ;;  %v1452_v29 = vsel %vm1420_vm5, %v1404_v10, %v1436_v49  ;;  %v1406_v36 = vsub.f32 1.0, %v1390_v8  ;;  %v1138_v42 = vmul.f32 0.3275911, %v1122_v13 }
 0x34b   :  { %v1439_v28 = vsub.f32 0.0, %v1407_v31  ;;  %v1409_v22 = vsub.f32 1.0, %v1393_v45  ;;  %v8796_v48 = vmul.f32 0.5, %v8703_v0  ;;  %v8799_v41 = vmul.f32 0.70710677, %v8768_v46 }
 0x34c   :  { %v7791_v20 = vpop.eup %7790  ;;  %v1347_v14 = vmul.f32 %v1331_v40, %v8731_v54  ;;  %v1154_v38 = vadd.f32 1.0, %v1138_v42  ;;  %v8807_v10 = vmul.f32 %v1467_v6, %v8648_v58  ;;  %v8810_v52 = vmul.f32 %v1466_v11, %v8687_v33 }
 0x34d   :  { %v1392_v19 = vmul.f32 %v7791_v20, %v1312_v57  ;;  %v1468_v26 = vadd.f32 1.0, %v1452_v29  ;;  %v1125_v0 = vand.u32 2147483647, %v8799_v41  ;;  %v8816_v62 = vmul.f32 %v1469_v17, %v8741_v63 }
 0x34e   :  { %v1438_v54 = vsub.f32 0.0, %v1406_v36  ;;  %7794 = vrcp.f32 %v1154_v38  ;;  %v8819_v59 = vmul.f32 0.70710677, %v8790_v5  ;;  %v1455_v58 = vsel %vm1423_vm6, %v1407_v31, %v1439_v28 }
 0x34f   :  { %v8813_v37 = vpop.eup %7792  ;;  %v1441_v56 = vsub.f32 0.0, %v1409_v22  ;;  %v1141_v9 = vmul.f32 0.3275911, %v1125_v0  ;;  %v1408_v55 = vsub.f32 1.0, %v1392_v19  ;;  %v1372_v7 = vmul.f32 1.442695, %v1347_v14 }
 0x350   :  { %v1187_v33 = vmul.f32 1.0614054, %v8813_v37  ;;  %v1330_v1 = vsub.f32 0.0, %v1122_v13  ;;  %v1124_v63 = vand.u32 2147483647, %v8819_v59  ;;  %v8827_v35 = vmul.f32 %v1468_v26, %v8744_v27 }
 0x351   :  { %v1157_v8 = vadd.f32 1.0, %v1141_v9  ;;  %v8830_v24 = vmul.f32 0.70710677, %v8804_v12  ;;  %v1471_v25 = vadd.f32 1.0, %v1455_v58  ;;  %v1454_v31 = vsel %vm1422_vm7, %v1406_v36, %v1438_v54 }
 0x352   :  { %v1203_v49 = vadd.f32 -1.4531521, %v1187_v33  ;;  %v8835_v45 = vmul.f32 0.5, %v8750_v2  ;;  %v1140_v3 = vmul.f32 0.3275911, %v1124_v63  ;;  %v1457_v40 = vsel %vm1425_vm8, %v1409_v22, %v1441_v56 }
 0x353   :  { %7796 = vrcp.f32 %v1157_v8  ;;  %v8841_v27 = vand.u32 2147483647, %v8830_v24  ;;  %v1440_v11 = vsub.f32 0.0, %v1408_v55  ;;  %v1346_v57 = vmul.f32 %v1330_v1, %v1122_v13 }
 0x354   :  { %v1219_v6 = vmul.f32 %v8813_v37, %v1203_v49  ;;  %v1333_v17 = vsub.f32 0.0, %v1125_v0  ;;  %v1156_v29 = vadd.f32 1.0, %v1140_v3  ;;  %7798 = vpow2.f32 %v1372_v7 }
 0x355   :  { %v1143_v39 = vmul.f32 0.3275911, %v8841_v27  ;;  %v8846_v2 = vadd.f32 %v8675_v16, %v8597_v15  ;;  %v8849_v60 = vmul.f32 %v1471_v25, %v8757_v30  ;;  %v1470_v36 = vadd.f32 1.0, %v1454_v31 }
 0x356   :  { %v1235_v42 = vadd.f32 1.4214138, %v1219_v6  ;;  %v1473_v20 = vadd.f32 1.0, %v1457_v40  ;;  %v8853_v28 = vadd.f32 %v8683_v53, %v8592_v18  ;;  %7800 = vrcp.f32 %v1156_v29 }
 0x357   :  { %v1159_v22 = vadd.f32 1.0, %v1143_v39  ;;  %v8858_v19 = vadd.f32 %v8690_v51, %v8597_v15  ;;  %v1456_v16 = vsel %vm1424_vm9, %v1408_v55, %v1440_v11  ;;  %v1370_v30 = vmul.f32 1.442695, %v1346_v57 }
 0x358   :  { %v1251_v13 = vmul.f32 %v8813_v37, %v1235_v42  ;;  %v8860_v14 = vpop.eup %7794  ;;  %v1349_v38 = vmul.f32 %v1333_v17, %v1125_v0  ;;  %v8865_v26 = vmul.f32 0.70710677, %v8846_v2  ;;  %v1332_v54 = vsub.f32 0.0, %v1124_v63 }
 0x359   :  { %v1186_v18 = vmul.f32 1.0614054, %v8860_v14  ;;  %7802 = vrcp.f32 %v1159_v22  ;;  %v8869_v58 = vmul.f32 %v1470_v36, %v8763_v23  ;;  %v8872_v15 = vmul.f32 %v1473_v20, %v8779_v21 }
 0x35a   :  { %v1267_v53 = vadd.f32 -0.28449672, %v1251_v13  ;;  %v1126_v51 = vand.u32 2147483647, %v8865_v26  ;;  %v8876_v50 = vmul.f32 0.70710677, %v8853_v28  ;;  %7804 = vpow2.f32 %v1370_v30 }
 0x35b   :  { %v1472_v0 = vadd.f32 1.0, %v1456_v16  ;;  %v1202_v33 = vadd.f32 -1.4531521, %v1186_v18  ;;  %v8880_v9 = vmul.f32 0.70710677, %v8858_v19  ;;  %v1348_v8 = vmul.f32 %v1332_v54, %v1124_v63 }
 0x35c   :  { %v1283_v56 = vmul.f32 %v8813_v37, %v1267_v53  ;;  %v1376_v55 = vmul.f32 1.442695, %v1349_v38  ;;  %v1142_v7 = vmul.f32 0.3275911, %v1126_v51  ;;  %v1129_v23 = vand.u32 2147483647, %v8876_v50 }
 0x35d   :  { %v8883_v1 = vpop.eup %7796  ;;  %v1218_v49 = vmul.f32 %v8860_v14, %v1202_v33  ;;  %v8887_v25 = vand.u32 2147483647, %v8880_v9  ;;  %v1335_v3 = vsub.f32 0.0, %v8841_v27  ;;  %v1334_v29 = vsub.f32 0.0, %v1126_v51 }
 0x35e   :  { %v1299_v21 = vadd.f32 0.2548296, %v1283_v56  ;;  %v1189_v31 = vmul.f32 1.0614054, %v8883_v1  ;;  %v1158_v40 = vadd.f32 1.0, %v1142_v7  ;;  %v7799_v11 = vpop.eup %7798  ;;  %v1488_v39 = vmul.f32 %v1472_v0, %v8782_v4 }
 0x35f   :  { %v1145_v6 = vmul.f32 0.3275911, %v1129_v23  ;;  %v1234_v17 = vadd.f32 1.4214138, %v1218_v49  ;;  %v1144_v42 = vmul.f32 0.3275911, %v8887_v25  ;;  %v1351_v53 = vmul.f32 %v1335_v3, %v8841_v27 }
 0x360   :  { %v1315_v57 = vmul.f32 %v8813_v37, %v1299_v21  ;;  %v1205_v36 = vadd.f32 -1.4531521, %v1189_v31  ;;  %7806 = vrcp.f32 %v1158_v40  ;;  %v8894_v20 = vpop.eup %7800  ;;  %vm1427_vm10 = vcmp.ge.f32.partialorder %v8715_v32, 0.0 }
 0x361   :  { %v1161_v63 = vadd.f32 1.0, %v1145_v6  ;;  %v1250_v22 = vmul.f32 %v8860_v14, %v1234_v17  ;;  %v1374_v16 = vmul.f32 1.442695, %v1348_v8  ;;  %v1160_v30 = vadd.f32 1.0, %v1144_v42 }
 0x362   :  { %v1395_v13 = vmul.f32 %v7799_v11, %v1315_v57  ;;  %v1221_v37 = vmul.f32 %v8883_v1, %v1205_v36  ;;  %7808 = vpow2.f32 %v1376_v55  ;;  %v1188_v38 = vmul.f32 1.0614054, %v8894_v20 }
 0x363   :  { %v8901_v4 = vpop.eup %7802  ;;  %v1266_v54 = vadd.f32 -0.28449672, %v1250_v22  ;;  %v1350_v0 = vmul.f32 %v1334_v29, %v1126_v51  ;;  %7810 = vrcp.f32 %v1161_v63  ;;  %v1337_v55 = vsub.f32 0.0, %v1129_v23 }
 0x364   :  { %v1411_v18 = vsub.f32 1.0, %v1395_v13  ;;  %v1237_v56 = vadd.f32 1.4214138, %v1221_v37  ;;  %v1204_v33 = vadd.f32 -1.4531521, %v1188_v38  ;;  %7812 = vrcp.f32 %v1160_v30  ;;  %v7805_v8 = vpop.eup %7804 }
 0x365   :  { %v1191_v7 = vmul.f32 1.0614054, %v8901_v4  ;;  %v1282_v49 = vmul.f32 %v8860_v14, %v1266_v54  ;;  %7814 = vpow2.f32 %v1374_v16  ;;  %v7574_v51 = vpack.c.bf16 %v8807_v10, %v8810_v52  ;;  %v8918_v10 = vld [vmem:[%s11199_s4 + $0x8] sm:$0xff] }
 0x366   :  { %v1443_v21 = vsub.f32 0.0, %v1411_v18  ;;  %v1253_v31 = vmul.f32 %v8883_v1, %v1237_v56  ;;  %v1220_v27 = vmul.f32 %v8894_v20, %v1204_v33  ;;  %v1380_v6 = vmul.f32 1.442695, %v1351_v53 }
 0x367   :  { %v1207_v3 = vadd.f32 -1.4531521, %v1191_v7  ;;  %v1298_v40 = vadd.f32 0.2548296, %v1282_v49  ;;  %v1336_v11 = vsub.f32 0.0, %v8887_v25  ;;  %v7578_v57 = vpack.c.bf16 %v8816_v62, %v8827_v35  ;;  %7575 = vmatprep.subr.bf16.mxu1 %v7574_v51 }
 0x368   :  { %vm1426_vm11 = vcmp.ge.f32.partialorder %v8774_v34, 0.0  ;;  %v1269_v17 = vadd.f32 -0.28449672, %v1253_v31  ;;  %v1236_v29 = vadd.f32 1.4214138, %v1220_v27  ;;  %v1353_v13 = vmul.f32 %v1337_v55, %v1129_v23  ;;  %7577 = vmatpush3.bf16.msra.mxu1 %v7574_v51 }
 0x369   :  { %v1223_v42 = vmul.f32 %v8901_v4, %v1207_v3  ;;  %v1378_v36 = vmul.f32 1.442695, %v1350_v0  ;;  %v1314_v63 = vmul.f32 %v8860_v14, %v1298_v40  ;;  %v7582_v52 = vpack.c.bf16 %v8849_v60, %v8869_v58  ;;  %7579 = vmatprep.subr.bf16.mxu1 %v7578_v57 }
 0x36a   :  { %v8923_v62 = vpack.c.bf16 %v8872_v15, %v1488_v39  ;;  %v8925_v35 = vpop.eup %7806  ;;  %v1459_v22 = vsel %vm1427_vm10, %v1411_v18, %v1443_v21  ;;  %v1285_v14 = vmul.f32 %v8883_v1, %v1269_v17  ;;  %v1252_v23 = vmul.f32 %v8894_v20, %v1236_v29 }
 0x36b   :  { %v1239_v16 = vadd.f32 1.4214138, %v1223_v42  ;;  %v1394_v30 = vmul.f32 %v7805_v8, %v1314_v63  ;;  %7816 = vpow2.f32 %v1380_v6  ;;  %v1190_v37 = vmul.f32 1.0614054, %v8925_v35  ;;  %7192 = vmatmul.mubr.msk.f32.vlgmr.msra.gmra.mrb[16].mxu1 %vm475_vm1, %v8918_v10 }
 0x36c   :  { %v1352_v60 = vmul.f32 %v1336_v11, %v8887_v25  ;;  %v7809_v58 = vpop.eup %7808  ;;  %v1301_v15 = vadd.f32 0.2548296, %v1285_v14  ;;  %v1268_v39 = vadd.f32 -0.28449672, %v1252_v23  ;;  %7818 = vpow2.f32 %v1378_v36  ;;  %7581 = vmatpush3.bf16.msra.mxu1 %v7578_v57  ;;  %7198 = vmatprep.mubr.msk.f32.mxu1 %vm475_vm1, %v8585_v61 }
 0x36d   :  { %v1255_v38 = vmul.f32 %v8901_v4, %v1239_v16  ;;  %v8936_v32 = vpop.eup %7810  ;;  %v1475_v53 = vadd.f32 1.0, %v1459_v22  ;;  %v1410_v18 = vsub.f32 1.0, %v1394_v30  ;;  %vm1429_vm12 = vcmp.ge.f32.partialorder %v8799_v41, 0.0  ;;  %7583 = vmatprep.subr.bf16.mxu1 %v7582_v52 }
 0x36e   :  { %v1206_v54 = vadd.f32 -1.4531521, %v1190_v37  ;;  %v1384_v0 = vmul.f32 1.442695, %v1353_v13  ;;  %v8941_v25 = vpop.eup %7812  ;;  %v1317_v56 = vmul.f32 %v8883_v1, %v1301_v15  ;;  %v1284_v33 = vmul.f32 %v8894_v20, %v1268_v39 }
 0x36f   :  { %v1271_v7 = vadd.f32 -0.28449672, %v1255_v38  ;;  %v1193_v21 = vmul.f32 1.0614054, %v8936_v32  ;;  %v7815_v49 = vpop.eup %7814  ;;  %v1442_v55 = vsub.f32 0.0, %v1410_v18  ;;  %7199 = vmatmul.mubr.msk.f32.vlgmr.msra.gmra.mrb[18].mxu1 %vm475_vm1, %v8918_v10  ;;  %v1491_v1 = vmul.f32 %v1475_v53, %v8796_v48 }
 0x370   :  { %v1222_v8 = vmul.f32 %v8925_v35, %v1206_v54  ;;  %v1192_v31 = vmul.f32 1.0614054, %v8941_v25  ;;  %v1382_v27 = vmul.f32 1.442695, %v1352_v60  ;;  %v1397_v3 = vmul.f32 %v7809_v58, %v1317_v56  ;;  %7585 = vmatpush3.bf16.msra.mxu1 %v7582_v52  ;;  %7205 = vmatprep.mubr.msk.f32.mxu1 %vm475_vm1, %v8585_v61 }
 0x371   :  { %v1300_v51 = vadd.f32 0.2548296, %v1284_v33  ;;  %v1287_v40 = vmul.f32 %v8901_v4, %v1271_v7  ;;  %v1209_v6 = vadd.f32 -1.4531521, %v1193_v21  ;;  %v1458_v11 = vsel %vm1426_vm11, %v1410_v18, %v1442_v55  ;;  %7587 = vmatprep.subr.bf16.mxu1 %v8923_v62 }
 0x372   :  { %v1238_v57 = vadd.f32 1.4214138, %v1222_v8  ;;  %v1208_v17 = vadd.f32 -1.4531521, %v1192_v31  ;;  %v1474_v29 = vadd.f32 1.0, %v1458_v11  ;;  %v1413_v42 = vsub.f32 1.0, %v1397_v3 }
 0x373   :  { %v1316_v36 = vmul.f32 %v8894_v20, %v1300_v51  ;;  %v1303_v63 = vadd.f32 0.2548296, %v1287_v40  ;;  %v1225_v48 = vmul.f32 %v8936_v32, %v1209_v6  ;;  %7820 = vpow2.f32 %v1384_v0  ;;  %7206 = vmatmul.mubr.msk.f32.vlgmr.msra.gmra.mrb[20].mxu1 %vm475_vm1, %v8918_v10 }
 0x374   :  { %v1254_v13 = vmul.f32 %v8925_v35, %v1238_v57  ;;  %v1224_v34 = vmul.f32 %v8941_v25, %v1208_v17  ;;  %v1490_v22 = vmul.f32 %v1474_v29, %v8835_v45  ;;  %v1445_v52 = vsub.f32 0.0, %v1413_v42  ;;  %7589 = vmatpush3.bf16.msra.mxu1 %v8923_v62  ;;  %7212 = vmatprep.mubr.msk.f32.mxu1 %vm475_vm1, %v8585_v61 }
 0x375   :  { %v1396_v14 = vmul.f32 %v7815_v49, %v1316_v36  ;;  %v1319_v23 = vmul.f32 %v8901_v4, %v1303_v63  ;;  %v7817_v20 = vpop.eup %7816  ;;  %v1241_v30 = vadd.f32 1.4214138, %v1225_v48  ;;  %7822 = vpow2.f32 %v1382_v27 }
 0x376   :  { %v1270_v16 = vadd.f32 -0.28449672, %v1254_v13  ;;  %v1240_v37 = vadd.f32 1.4214138, %v1224_v34  ;;  %v7819_v60 = vpop.eup %7818  ;;  %v1461_v45 = vsel %vm1429_vm12, %v1413_v42, %v1445_v52  ;;  %v7590_v4 = vpack.c.bf16 %v1491_v1, %v1490_v22 }
 0x377   :  { %v1412_v58 = vsub.f32 1.0, %v1396_v14  ;;  %v1399_v15 = vmul.f32 %v7817_v20, %v1319_v23  ;;  %v1477_v39 = vadd.f32 1.0, %v1461_v45  ;;  %v1257_v53 = vmul.f32 %v8936_v32, %v1241_v30  ;;  %7213 = vmatmul.mubr.msk.f32.vlgmr.msra.gmra.mrb[22].mxu1 %vm475_vm1, %v8918_v10 }
 0x378   :  { %v1286_v38 = vmul.f32 %v8925_v35, %v1270_v16  ;;  %v1256_v18 = vmul.f32 %v8941_v25, %v1240_v37  ;;  %v1093_v54 = vmul.f32 0.5, %v8768_v46  ;;  %vm1428_vm13 = vcmp.ge.f32.partialorder %v8819_v59, 0.0  ;;  %7591 = vmatprep.subr.bf16.mxu1 %v7590_v4  ;;  %7219 = vmatprep.mubr.msk.f32.mxu1 %vm475_vm1, %v8585_v61 }
 0x379   :  { %v1444_v62 = vsub.f32 0.0, %v1412_v58  ;;  %v1415_v0 = vsub.f32 1.0, %v1399_v15  ;;  %v1273_v56 = vadd.f32 -0.28449672, %v1257_v53  ;;  %7593 = vmatpush3.bf16.msra.mxu1 %v7590_v4  ;;  %v1092_v21 = vmul.f32 0.5, %v8790_v5 }
 0x37a   :  { %v1302_v41 = vadd.f32 0.2548296, %v1286_v38  ;;  %v1272_v33 = vadd.f32 -0.28449672, %v1256_v18  ;;  %v1493_v7 = vmul.f32 %v1477_v39, %v1093_v54  ;;  %vm1431_vm14 = vcmp.ge.f32.partialorder %v8830_v24, 0.0 }
 0x37b   :  { %v1460_v49 = vsel %vm1428_vm13, %v1412_v58, %v1444_v62  ;;  %v1447_v46 = vsub.f32 0.0, %v1415_v0  ;;  %v1289_v8 = vmul.f32 %v8936_v32, %v1273_v56  ;;  %v1095_v36 = vmul.f32 0.5, %v8804_v12 }
 0x37c   :  { %v1476_v55 = vadd.f32 1.0, %v1460_v49  ;;  %v1318_v59 = vmul.f32 %v8925_v35, %v1302_v41  ;;  %v1288_v31 = vmul.f32 %v8941_v25, %v1272_v33  ;;  %7220 = vmatmul.mubr.msk.f32.vlgmr.msra.gmra.mrb[24].mxu1 %vm475_vm1, %v8918_v10  ;;  %vm1430_vm15 = vcmp.ge.f32.partialorder %v8865_v26, 0.0 }
 0x37d   :  { %v7821_v27 = vpop.eup %7820  ;;  %v1463_v51 = vsel %vm1431_vm14, %v1415_v0, %v1447_v46  ;;  %v1305_v6 = vadd.f32 0.2548296, %v1289_v8  ;;  %7226 = vmatprep.mubr.msk.f32.mxu1 %vm475_vm1, %v8585_v61  ;;  %v1094_v22 = vmul.f32 0.5, %v8846_v2  ;;  %vm1433_vm2 = vcmp.ge.f32.partialorder %v8876_v50, 0.0 }
 0x37e   :  { %v1492_v3 = vmul.f32 %v1476_v55, %v1092_v21  ;;  %v1398_v40 = vmul.f32 %v7819_v60, %v1318_v59  ;;  %v1304_v5 = vadd.f32 0.2548296, %v1288_v31  ;;  %v1479_v17 = vadd.f32 1.0, %v1463_v51  ;;  %v11247_v55 = vld [vmem:[#allocation6_spill] sm:$0xff]  ;;  %v11249_v59 = vld [vmem:[#allocation7_spill] sm:$0xff] }
 0x37f   :  { %v7823_v1 = vpop.eup %7822  ;;  %v1321_v11 = vmul.f32 %v8936_v32, %v1305_v6  ;;  %vm1432_vm3 = vcmp.ge.f32.partialorder %v8880_v9, 0.0  ;;  %v1097_v26 = vmul.f32 0.5, %v8853_v28  ;;  %v1096_v30 = vmul.f32 0.5, %v8858_v19  ;;  %v9012_v28 = vld [vmem:[%s11200_s5 + $0x18] sm:$0xff]  ;;  %v9017_v19 = vld [vmem:[%s11200_s5 + $0x10] sm:$0xff] }
 0x380   :  { %v1414_v35 = vsub.f32 1.0, %v1398_v40  ;;  %v7594_v57 = vpack.c.bf16 %v1493_v7, %v1492_v3  ;;  %v1320_v24 = vmul.f32 %v8941_v25, %v1304_v5  ;;  %v1495_v34 = vmul.f32 %v1479_v17, %v1095_v36  ;;  %v11251_v5 = vld [vmem:[#allocation8_spill] sm:$0xff] }
 0x381   :  { %v1401_v42 = vmul.f32 %v7821_v27, %v1321_v11  ;;  %vm3001_vm7 = vcmask 523264  }
 0x382   :  { %v1446_v29 = vsub.f32 0.0, %v1414_v35  ;;  %7595 = vmatprep.subr.bf16.mxu1 %v7594_v57  ;;  %v1400_v63 = vmul.f32 %v7823_v1, %v1320_v24 }
 0x383   :  { %7597 = vmatpush3.bf16.msra.mxu1 %v7594_v57  ;;  %v1417_v48 = vsub.f32 1.0, %v1401_v42 }
 0x384   :  { %v1462_v13 = vsel %vm1430_vm15, %v1414_v35, %v1446_v29  ;;  %v1416_v32 = vsub.f32 1.0, %v1400_v63  ;;  %v11253_v35 = vld [vmem:[#allocation9_spill] sm:$0xff]  ;;  %v11255_v63 = vld [vmem:[#allocation10_spill] sm:$0xff] }
 0x385   :  { %v1478_v52 = vadd.f32 1.0, %v1462_v13  ;;  %v1449_v14 = vsub.f32 0.0, %v1417_v48 }
 0x386   :  { %7227 = vmatmul.mubr.msk.f32.vlgmr.msra.gmra.mrb[26].mxu1 %vm475_vm1, %v8918_v10  ;;  %v1448_v23 = vsub.f32 0.0, %v1416_v32 }
 0x387   :  { %v1494_v25 = vmul.f32 %v1478_v52, %v1094_v22  ;;  %7233 = vmatprep.mubr.msk.f32.mxu1 %vm475_vm1, %v8585_v61  ;;  %v1465_v12 = vsel %vm1433_vm2, %v1417_v48, %v1449_v14  ;;  %v8144_v61 = vld [vmem:[%s11199_s4] sm:$0xff]  ;;  %v11257_v48 = vld [vmem:[#allocation11_spill] sm:$0xff] }
 0x388   :  { %v1481_v20 = vadd.f32 1.0, %v1465_v12  ;;  %v1464_v2 = vsel %vm1432_vm3, %v1416_v32, %v1448_v23  ;;  %v11259_v12 = vld [vmem:[#allocation12_spill] sm:$0xff] }
 0x389   :  { %v7598_v16 = vpack.c.bf16 %v1495_v34, %v1494_v25  ;;  %v1480_v37 = vadd.f32 1.0, %v1464_v2 }
 0x38a   :  { %v1497_v60 = vmul.f32 %v1481_v20, %v1097_v26  ;;  %v11261_v20 = vld [vmem:[#allocation13_spill] sm:$0xff] }
 0x38b   :  { %7599 = vmatprep.subr.bf16.mxu1 %v7598_v16  ;;  %v1496_v45 = vmul.f32 %v1480_v37, %v1096_v30 }
 0x38c   :  { %7601 = vmatpush3.bf16.msra.mxu1 %v7598_v16 }
 0x38d   :  { %v7602_v50 = vpack.c.bf16 %v1497_v60, %v1496_v45 }
 0x38f   :  { %7234 = vmatmul.mubr.msk.f32.vlgmr.msra.gmra.mrb[28].mxu1 %vm475_vm1, %v8918_v10  ;;  %7603 = vmatprep.subr.bf16.mxu1 %v7602_v50 }
 0x390   :  { %7240 = vmatprep.mubr.msk.f32.mxu1 %vm475_vm1, %v8144_v61  ;;  %7605 = vmatpush3.bf16.msra.mxu1 %v7602_v50  ;;  %v11263_v61 = vld [vmem:[#allocation14_spill] sm:$0xff] }
 0x393   :  { %7241 = vmatmul.mubr.msk.f32.vlgmr.msra.gmra.mrb[30].mxu1 %vm475_vm1, %v8918_v10 }
 0x43e   :  { %v7193_v9 = vpop.f32.mrb[16].mxu1 }
 0x43f   :  { %v1580_v58 = vadd.f32 %v7193_v9, %v9012_v28  ;;  %v1574_v15 = vpop.f32.mrb[17].mxu1 }
 0x440   :  { %v1575_v4 = vadd.f32 %v1574_v15, %v9017_v19 }
 0x441   :  { %v9022_v39 = vadd.f32 %v1580_v58, %v8324_v44  ;;  %v11246_v44 = vld [vmem:[#allocation5_spill] sm:$0xff]  ;;  %v11265_v58 = vld [vmem:[#allocation15_spill] sm:$0xff] }
 0x442   :  { %v9025_v10 = vadd.f32 %v1575_v4, %v8322_v43  ;;  %v7200_v38 = vpop.f32.mrb[18].mxu1 }
 0x443   :  { %v1655_v53 = vadd.f32 %v7200_v38, %v9012_v28  ;;  %v1649_v18 = vpop.f32.mrb[19].mxu1  ;;  %v2127_v54 = vsel %vm221_vm0, %v9022_v39, 0.0 }
 0x444   :  { %v1650_v62 = vadd.f32 %v1649_v18, %v9017_v19  ;;  %2128 = vadd.xlane.f32.xlu1 %v2127_v54  ;;  %v2124_v0 = vsel %vm221_vm0, %v9025_v10, 0.0 }
 0x445   :  { %v9034_v41 = vadd.f32 %v1655_v53, %v8328_v47  ;;  %2125 = vadd.xlane.f32.xlu0 %v2124_v0  ;;  %v11267_v0 = vld [vmem:[#allocation16_spill] sm:$0xff] }
 0x446   :  { %v9037_v43 = vadd.f32 %v1650_v62, %v11246_v44  ;;  %v7207_v56 = vpop.f32.mrb[20].mxu1 }
 0x447   :  { %v1730_v33 = vadd.f32 %v7207_v56, %v9012_v28  ;;  %v1724_v7 = vpop.f32.mrb[21].mxu1  ;;  %v2133_v21 = vsel %vm221_vm0, %v9034_v41, 0.0  ;;  %v11269_v56 = vld [vmem:[#allocation17_spill] sm:$0xff] }
 0x448   :  { %v1725_v49 = vadd.f32 %v1724_v7, %v9017_v19  ;;  %2134 = vadd.xlane.f32.xlu1 %v2133_v21  ;;  %v2130_v46 = vsel %vm221_vm0, %v9037_v43, 0.0 }
 0x449   :  { %v9046_v47 = vadd.f32 %v1730_v33, %v11247_v55  ;;  %2131 = vadd.xlane.f32.xlu0 %v2130_v46 }
 0x44a   :  { %v9049_v8 = vadd.f32 %v1725_v49, %v11249_v59  ;;  %v7214_v31 = vpop.f32.mrb[22].mxu1 }
 0x44b   :  { %11248 = vst [vmem:[#allocation5_spill] sm:$0xff] %v9046_v47  ;;  %v1805_v27 = vadd.f32 %v7214_v31, %v9012_v28  ;;  %v1799_v3 = vpop.f32.mrb[23].mxu1  ;;  %v2139_v51 = vsel %vm221_vm0, %v9046_v47, 0.0 }
 0x44c   :  { %11250 = vst [vmem:[#allocation6_spill] sm:$0xff] %v9049_v8  ;;  %v1800_v40 = vadd.f32 %v1799_v3, %v9017_v19  ;;  %2140 = vadd.xlane.f32.xlu1 %v2139_v51  ;;  %v2136_v6 = vsel %vm221_vm0, %v9049_v8, 0.0 }
 0x44d   :  { %v9058_v1 = vadd.f32 %v1805_v27, %v11251_v5  ;;  %2137 = vadd.xlane.f32.xlu0 %v2136_v6 }
 0x44e   :  { %v9061_v11 = vadd.f32 %v1800_v40, %v11253_v35 }
 0x44f   :  { %11252 = vst [vmem:[#allocation7_spill] sm:$0xff] %v9058_v1  ;;  %v7221_v57 = vpop.f32.mrb[24].mxu1  ;;  %v2145_v29 = vsel %vm221_vm0, %v9058_v1, 0.0 }
 0x450   :  { %11254 = vst [vmem:[#allocation8_spill] sm:$0xff] %v9061_v11  ;;  %v1880_v17 = vadd.f32 %v7221_v57, %v9012_v28  ;;  %v1874_v24 = vpop.f32.mrb[25].mxu1  ;;  %2146 = vadd.xlane.f32.xlu1 %v2145_v29  ;;  %v2142_v36 = vsel %vm221_vm0, %v9061_v11, 0.0 }
 0x451   :  { %v1875_v42 = vadd.f32 %v1874_v24, %v9017_v19  ;;  %2143 = vadd.xlane.f32.xlu0 %v2142_v36 }
 0x452   :  { %v9070_v13 = vadd.f32 %v1880_v17, %v11255_v63 }
 0x453   :  { %v9073_v34 = vadd.f32 %v1875_v42, %v11257_v48 }
 0x454   :  { %11256 = vst [vmem:[#allocation9_spill] sm:$0xff] %v9070_v13  ;;  %v2151_v22 = vsel %vm221_vm0, %v9070_v13, 0.0 }
 0x455   :  { %11258 = vst [vmem:[#allocation10_spill] sm:$0xff] %v9073_v34  ;;  %2152 = vadd.xlane.f32.xlu1 %v2151_v22  ;;  %v2148_v52 = vsel %vm221_vm0, %v9073_v34, 0.0 }
 0x456   :  { %2149 = vadd.xlane.f32.xlu0 %v2148_v52 }
 0x459   :  { %v7228_v32 = vpop.f32.mrb[26].mxu1 }
 0x45a   :  { %v1955_v14 = vadd.f32 %v7228_v32, %v9012_v28  ;;  %v1949_v25 = vpop.f32.mrb[27].mxu1 }
 0x45b   :  { %v1950_v23 = vadd.f32 %v1949_v25, %v9017_v19 }
 0x45c   :  { %v9082_v26 = vadd.f32 %v1955_v14, %v11259_v12 }
 0x45d   :  { %v9085_v2 = vadd.f32 %v1950_v23, %v11261_v20 }
 0x45e   :  { %11260 = vst [vmem:[#allocation11_spill] sm:$0xff] %v9082_v26  ;;  %v2157_v16 = vsel %vm221_vm0, %v9082_v26, 0.0 }
 0x45f   :  { %11262 = vst [vmem:[#allocation12_spill] sm:$0xff] %v9085_v2  ;;  %2158 = vadd.xlane.f32.xlu1 %v2157_v16  ;;  %v2154_v30 = vsel %vm221_vm0, %v9085_v2, 0.0 }
 0x460   :  { %2155 = vadd.xlane.f32.xlu0 %v2154_v30 }
 0x462   :  { %v7235_v37 = vpop.f32.mrb[28].mxu1 }
 0x463   :  { %v2030_v60 = vadd.f32 %v7235_v37, %v9012_v28  ;;  %v2024_v45 = vpop.f32.mrb[29].mxu1 }
 0x464   :  { %v2025_v50 = vadd.f32 %v2024_v45, %v9017_v19 }
 0x465   :  { %v9094_v9 = vadd.f32 %v2030_v60, %v11263_v61 }
 0x466   :  { %v9097_v15 = vadd.f32 %v2025_v50, %v11265_v58  ;;  %v7242_v4 = vpop.f32.mrb[30].mxu1 }
 0x467   :  { %11264 = vst [vmem:[#allocation13_spill] sm:$0xff] %v9094_v9  ;;  %v2163_v38 = vsel %vm221_vm0, %v9094_v9, 0.0  ;;  %v2105_v53 = vadd.f32 %v7242_v4, %v9012_v28  ;;  %v2099_v18 = vpop.f32.mrb[31].mxu1 }
 0x468   :  { %11266 = vst [vmem:[#allocation14_spill] sm:$0xff] %v9097_v15  ;;  %2164 = vadd.xlane.f32.xlu1 %v2163_v38  ;;  %v2160_v54 = vsel %vm221_vm0, %v9097_v15, 0.0  ;;  %v2100_v62 = vadd.f32 %v2099_v18, %v9017_v19 }
 0x469   :  { %2161 = vadd.xlane.f32.xlu0 %v2160_v54  ;;  %v9106_v44 = vadd.f32 %v2105_v53, %v11267_v0 }
 0x46a   :  { %v9109_v33 = vadd.f32 %v2100_v62, %v11269_v56 }
 0x46b   :  { %11268 = vst [vmem:[#allocation15_spill] sm:$0xff] %v9106_v44  ;;  %v2169_v7 = vsel %vm221_vm0, %v9106_v44, 0.0 }
 0x46c   :  { %11270 = vst [vmem:[#allocation16_spill] sm:$0xff] %v9109_v33  ;;  %2170 = vadd.xlane.f32.xlu1 %v2169_v7  ;;  %v2166_v28 = vsel %vm221_vm0, %v9109_v33, 0.0 }
 0x46d   :  { %2167 = vadd.xlane.f32.xlu0 %v2166_v28 }
 0x4d1   :  { %v2129_v21 = vpop.xlane.xlu1 %2128 }
 0x4d2   :  { %v2173_v49 = vmul.f32 0.03125, %v2129_v21  ;;  %v2126_v46 = vpop.xlane.xlu0 %2125 }
 0x4d3   :  { %v2172_v55 = vmul.f32 0.03125, %v2126_v46 }
 0x4d4   :  { %v9116_v19 = vsub.f32 %v9022_v39, %v2173_v49 }
 0x4d5   :  { %v9119_v59 = vsub.f32 %v9025_v10, %v2172_v55  ;;  %v2135_v31 = vpop.xlane.xlu1 %2134 }
 0x4d6   :  { %v2175_v27 = vmul.f32 0.03125, %v2135_v31  ;;  %v2132_v3 = vpop.xlane.xlu0 %2131  ;;  %v2205_v51 = vmul.f32 %v9116_v19, %v9116_v19 }
 0x4d7   :  { %v2174_v40 = vmul.f32 0.03125, %v2132_v3  ;;  %v2204_v6 = vmul.f32 %v9119_v59, %v9119_v59 }
 0x4d8   :  { %v9126_v5 = vsub.f32 %v9034_v41, %v2175_v27  ;;  %v2223_v35 = vsel %vm221_vm0, %v2205_v51, 0.0 }
 0x4d9   :  { %v9130_v57 = vsub.f32 %v9037_v43, %v2174_v40  ;;  %v2141_v17 = vpop.xlane.xlu1 %2140  ;;  %2224 = vadd.xlane.f32.xlu1 %v2223_v35  ;;  %v2220_v24 = vsel %vm221_vm0, %v2204_v6, 0.0 }
 0x4da   :  { %v2177_v29 = vmul.f32 0.03125, %v2141_v17  ;;  %v2138_v42 = vpop.xlane.xlu0 %2137  ;;  %2221 = vadd.xlane.f32.xlu0 %v2220_v24  ;;  %v2207_v36 = vmul.f32 %v9126_v5, %v9126_v5 }
 0x4db   :  { %v2176_v63 = vmul.f32 0.03125, %v2138_v42  ;;  %v2206_v48 = vmul.f32 %v9130_v57, %v9130_v57 }
 0x4dc   :  { %v9138_v22 = vsub.f32 %v9046_v47, %v2177_v29  ;;  %v2229_v52 = vsel %vm221_vm0, %v2207_v36, 0.0 }
 0x4dd   :  { %v9142_v32 = vsub.f32 %v9049_v8, %v2176_v63  ;;  %v2147_v14 = vpop.xlane.xlu1 %2146  ;;  %2230 = vadd.xlane.f32.xlu1 %v2229_v52  ;;  %v2226_v25 = vsel %vm221_vm0, %v2206_v48, 0.0 }
 0x4de   :  { %v2179_v23 = vmul.f32 0.03125, %v2147_v14  ;;  %v2144_v12 = vpop.xlane.xlu0 %2143  ;;  %2227 = vadd.xlane.f32.xlu0 %v2226_v25  ;;  %v2209_v20 = vmul.f32 %v9138_v22, %v9138_v22  ;;  %v2372_v25 = vld [vmem:[%s11201_s6] sm:$0xff] }
 0x4df   :  { %v2178_v16 = vmul.f32 0.03125, %v2144_v12  ;;  %v2208_v30 = vmul.f32 %v9142_v32, %v9142_v32 }
 0x4e0   :  { %v9150_v37 = vsub.f32 %v9058_v1, %v2179_v23  ;;  %v2235_v60 = vsel %vm221_vm0, %v2209_v20, 0.0  ;;  %v2373_v23 = vld [vmem:[%s11201_s6 + $0x8] sm:$0xff] }
 0x4e1   :  { %v9154_v45 = vsub.f32 %v9061_v11, %v2178_v16  ;;  %2236 = vadd.xlane.f32.xlu1 %v2235_v60  ;;  %v2232_v61 = vsel %vm221_vm0, %v2208_v30, 0.0  ;;  %v7606_v30 = vpack.c.bf16 %v2373_v23, %v2372_v25 }
 0x4e2   :  { %v2153_v50 = vpop.xlane.xlu1 %2152  ;;  %2233 = vadd.xlane.f32.xlu0 %v2232_v61  ;;  %v2211_v38 = vmul.f32 %v9150_v37, %v9150_v37 }
 0x4e3   :  { %v2181_v58 = vmul.f32 0.03125, %v2153_v50  ;;  %v2150_v4 = vpop.xlane.xlu0 %2149  ;;  %v2210_v18 = vmul.f32 %v9154_v45, %v9154_v45  ;;  %7607 = vmatprep.subr.bf16.mxu1 %v7606_v30 }
 0x4e4   :  { %v2180_v53 = vmul.f32 0.03125, %v2150_v4  ;;  %v2241_v62 = vsel %vm221_vm0, %v2211_v38, 0.0  ;;  %7609 = vmatpush3.bf16.msra.mxu1 %v7606_v30  ;;  %v2374_v38 = vld [vmem:[%s11201_s6 + $0x10] sm:$0xff] }
 0x4e5   :  { %v9162_v54 = vsub.f32 %v9070_v13, %v2181_v58  ;;  %2242 = vadd.xlane.f32.xlu1 %v2241_v62  ;;  %v2238_v56 = vsel %vm221_vm0, %v2210_v18, 0.0 }
 0x4e6   :  { %v9166_v0 = vsub.f32 %v9073_v34, %v2180_v53  ;;  %2239 = vadd.xlane.f32.xlu0 %v2238_v56  ;;  %v2375_v53 = vld [vmem:[%s11201_s6 + $0x18] sm:$0xff] }
 0x4e7   :  { %v2213_v7 = vmul.f32 %v9162_v54, %v9162_v54  ;;  %v7610_v62 = vpack.c.bf16 %v2375_v53, %v2374_v38 }
 0x4e8   :  { %v2212_v28 = vmul.f32 %v9166_v0, %v9166_v0 }
 0x4e9   :  { %v2247_v21 = vsel %vm221_vm0, %v2213_v7, 0.0  ;;  %7611 = vmatprep.subr.bf16.mxu1 %v7610_v62 }
 0x4ea   :  { %2248 = vadd.xlane.f32.xlu1 %v2247_v21  ;;  %v2244_v49 = vsel %vm221_vm0, %v2212_v28, 0.0  ;;  %7613 = vmatpush3.bf16.msra.mxu1 %v7610_v62 }
 0x4eb   :  { %2245 = vadd.xlane.f32.xlu0 %v2244_v49 }
 0x4ec   :  { %v2159_v46 = vpop.xlane.xlu1 %2158 }
 0x4ed   :  { %v2183_v55 = vmul.f32 0.03125, %v2159_v46  ;;  %v2156_v31 = vpop.xlane.xlu0 %2155 }
 0x4ee   :  { %v2182_v27 = vmul.f32 0.03125, %v2156_v31 }
 0x4ef   :  { %v9176_v3 = vsub.f32 %v9082_v26, %v2183_v55 }
 0x4f0   :  { %v9179_v51 = vsub.f32 %v9085_v2, %v2182_v27 }
 0x4f1   :  { %v2215_v40 = vmul.f32 %v9176_v3, %v9176_v3 }
 0x4f2   :  { %v2214_v6 = vmul.f32 %v9179_v51, %v9179_v51 }
 0x4f3   :  { %v2253_v35 = vsel %vm221_vm0, %v2215_v40, 0.0 }
 0x4f4   :  { %2254 = vadd.xlane.f32.xlu1 %v2253_v35  ;;  %v2250_v17 = vsel %vm221_vm0, %v2214_v6, 0.0 }
 0x4f5   :  { %v2165_v24 = vpop.xlane.xlu1 %2164  ;;  %2251 = vadd.xlane.f32.xlu0 %v2250_v17 }
 0x4f6   :  { %v2185_v29 = vmul.f32 0.03125, %v2165_v24  ;;  %v2162_v42 = vpop.xlane.xlu0 %2161 }
 0x4f7   :  { %v2184_v36 = vmul.f32 0.03125, %v2162_v42 }
 0x4f8   :  { %v9188_v63 = vsub.f32 %v9094_v9, %v2185_v29 }
 0x4f9   :  { %v9191_v48 = vsub.f32 %v9097_v15, %v2184_v36  ;;  %v2171_v52 = vpop.xlane.xlu1 %2170 }
 0x4fa   :  { %v2217_v14 = vmul.f32 %v9188_v63, %v9188_v63  ;;  %v2187_v12 = vmul.f32 0.03125, %v2171_v52  ;;  %v2168_v20 = vpop.xlane.xlu0 %2167 }
 0x4fb   :  { %v2216_v16 = vmul.f32 %v9191_v48, %v9191_v48  ;;  %v2186_v60 = vmul.f32 0.03125, %v2168_v20 }
 0x4fc   :  { %v2259_v50 = vsel %vm221_vm0, %v2217_v14, 0.0  ;;  %v9205_v61 = vsub.f32 %v9106_v44, %v2187_v12 }
 0x4fd   :  { %2260 = vadd.xlane.f32.xlu1 %v2259_v50  ;;  %v2256_v58 = vsel %vm221_vm0, %v2216_v16, 0.0  ;;  %v9209_v4 = vsub.f32 %v9109_v33, %v2186_v60 }
 0x4fe   :  { %2257 = vadd.xlane.f32.xlu0 %v2256_v58  ;;  %v2219_v18 = vmul.f32 %v9205_v61, %v9205_v61  ;;  %v9226_v58 = vld [vmem:[%s11197_s2 + $0x3] ss:$0 sm:$0xff] }
 0x4ff   :  { %v2218_v56 = vmul.f32 %v9209_v4, %v9209_v4 }
 0x500   :  { %v2265_v7 = vsel %vm221_vm0, %v2219_v18, 0.0 }
 0x501   :  { %2266 = vadd.xlane.f32.xlu1 %v2265_v7  ;;  %v2262_v28 = vsel %vm221_vm0, %v2218_v56, 0.0 }
 0x502   :  { %2263 = vadd.xlane.f32.xlu0 %v2262_v28 }
 0x566   :  { %v2225_v21 = vpop.xlane.xlu1 %2224 }
 0x567   :  { %v2269_v49 = vmul.f32 0.03125, %v2225_v21  ;;  %v2222_v46 = vpop.xlane.xlu0 %2221 }
 0x568   :  { %v2268_v55 = vmul.f32 0.03125, %v2222_v46 }
 0x569   :  { %v2285_v31 = vadd.f32 1e-05, %v2269_v49  ;;  %v9233_v49 = vld [vmem:[%s11197_s2 + $0x4] ss:$0 sm:$0xff] }
 0x56a   :  { %v2284_v27 = vadd.f32 1e-05, %v2268_v55  ;;  %v2231_v40 = vpop.xlane.xlu1 %2230 }
 0x56b   :  { %7824 = vrsqrt.f32 %v2285_v31  ;;  %v2271_v6 = vmul.f32 0.03125, %v2231_v40  ;;  %v2228_v35 = vpop.xlane.xlu0 %2227 }
 0x56c   :  { %7826 = vrsqrt.f32 %v2284_v27  ;;  %v2270_v17 = vmul.f32 0.03125, %v2228_v35 }
 0x56d   :  { %v2287_v24 = vadd.f32 1e-05, %v2271_v6 }
 0x56e   :  { %v2286_v29 = vadd.f32 1e-05, %v2270_v17  ;;  %v2237_v42 = vpop.xlane.xlu1 %2236 }
 0x56f   :  { %7828 = vrsqrt.f32 %v2287_v24  ;;  %v2273_v36 = vmul.f32 0.03125, %v2237_v42  ;;  %v2234_v52 = vpop.xlane.xlu0 %2233 }
 0x570   :  { %7830 = vrsqrt.f32 %v2286_v29  ;;  %v2272_v14 = vmul.f32 0.03125, %v2234_v52 }
 0x571   :  { %v2289_v25 = vadd.f32 1e-05, %v2273_v36 }
 0x572   :  { %v2288_v23 = vadd.f32 1e-05, %v2272_v14  ;;  %v2243_v12 = vpop.xlane.xlu1 %2242 }
 0x573   :  { %7832 = vrsqrt.f32 %v2289_v25  ;;  %v2275_v20 = vmul.f32 0.03125, %v2243_v12  ;;  %v2240_v16 = vpop.xlane.xlu0 %2239 }
 0x574   :  { %7834 = vrsqrt.f32 %v2288_v23  ;;  %v2274_v30 = vmul.f32 0.03125, %v2240_v16 }
 0x575   :  { %v7825_v60 = vpop.eup %7824  ;;  %v2291_v50 = vadd.f32 1e-05, %v2275_v20 }
 0x576   :  { %v7827_v38 = vpop.eup %7826  ;;  %v2317_v53 = vmul.f32 %v7825_v60, %v9116_v19  ;;  %v2290_v18 = vadd.f32 1e-05, %v2274_v30 }
 0x577   :  { %v2249_v62 = vpop.xlane.xlu1 %2248  ;;  %7836 = vrsqrt.f32 %v2291_v50  ;;  %v2316_v28 = vmul.f32 %v7827_v38, %v9119_v59 }
 0x578   :  { %v2277_v56 = vmul.f32 0.03125, %v2249_v62  ;;  %v2246_v7 = vpop.xlane.xlu0 %2245  ;;  %7838 = vrsqrt.f32 %v2290_v18  ;;  %v2337_v46 = vmul.f32 %v9226_v58, %v2317_v53 }
 0x579   :  { %v2276_v21 = vmul.f32 0.03125, %v2246_v7  ;;  %v7829_v55 = vpop.eup %7828  ;;  %v2336_v19 = vmul.f32 %v9226_v58, %v2316_v28 }
 0x57a   :  { %v2293_v31 = vadd.f32 1e-05, %v2277_v56  ;;  %v7831_v27 = vpop.eup %7830  ;;  %v2319_v6 = vmul.f32 %v7829_v55, %v9126_v5  ;;  %v2357_v17 = vadd.f32 %v9233_v49, %v2337_v46 }
 0x57b   :  { %v2292_v40 = vadd.f32 1e-05, %v2276_v21  ;;  %v2356_v59 = vadd.f32 %v9233_v49, %v2336_v19  ;;  %v2318_v35 = vmul.f32 %v7831_v27, %v9130_v57 }
 0x57c   :  { %7840 = vrsqrt.f32 %v2293_v31  ;;  %v2339_v24 = vmul.f32 %v9226_v58, %v2319_v6 }
 0x57d   :  { %7842 = vrsqrt.f32 %v2292_v40  ;;  %v7833_v29 = vpop.eup %7832  ;;  %7251 = vmatprep.mubr.msk.f32.mxu1 %vm221_vm0, %v2356_v59  ;;  %v2338_v42 = vmul.f32 %v9226_v58, %v2318_v35 }
 0x57e   :  { %v7835_v36 = vpop.eup %7834  ;;  %7252 = vmatmul.mubr.msk.f32.vlgmr.msra.gmra.mrb[32].mxu1 %vm221_vm0, %v2357_v17  ;;  %v2321_v5 = vmul.f32 %v7833_v29, %v9138_v22  ;;  %v2359_v12 = vadd.f32 %v9233_v49, %v2339_v24 }
 0x57f   :  { %v2358_v14 = vadd.f32 %v9233_v49, %v2338_v42  ;;  %v2320_v57 = vmul.f32 %v7835_v36, %v9142_v32 }
 0x580   :  { %v2341_v20 = vmul.f32 %v9226_v58, %v2321_v5 }
 0x581   :  { %v2255_v52 = vpop.xlane.xlu1 %2254  ;;  %v7837_v16 = vpop.eup %7836  ;;  %7254 = vmatprep.mubr.msk.f32.mxu1 %vm221_vm0, %v2358_v14  ;;  %v2340_v60 = vmul.f32 %v9226_v58, %v2320_v57 }
 0x582   :  { %v2279_v25 = vmul.f32 0.03125, %v2255_v52  ;;  %v2252_v23 = vpop.xlane.xlu0 %2251  ;;  %v7839_v50 = vpop.eup %7838  ;;  %7255 = vmatmul.mubr.msk.f32.gmra.mrb[34].mxu1 %vm221_vm0, %v2359_v12  ;;  %v2323_v22 = vmul.f32 %v7837_v16, %v9150_v37  ;;  %v2361_v62 = vadd.f32 %v9233_v49, %v2341_v20 }
 0x583   :  { %v2278_v30 = vmul.f32 0.03125, %v2252_v23  ;;  %v2360_v32 = vadd.f32 %v9233_v49, %v2340_v60  ;;  %v2322_v18 = vmul.f32 %v7839_v50, %v9154_v45 }
 0x584   :  { %v2295_v38 = vadd.f32 1e-05, %v2279_v25  ;;  %v2343_v56 = vmul.f32 %v9226_v58, %v2323_v22 }
 0x585   :  { %v2294_v53 = vadd.f32 1e-05, %v2278_v30  ;;  %7257 = vmatprep.mubr.msk.f32.mxu1 %vm221_vm0, %v2360_v32  ;;  %v2342_v28 = vmul.f32 %v9226_v58, %v2322_v18 }
 0x586   :  { %7844 = vrsqrt.f32 %v2295_v38  ;;  %v7841_v7 = vpop.eup %7840  ;;  %7258 = vmatmul.mubr.msk.f32.gmra.mrb[36].mxu1 %vm221_vm0, %v2361_v62  ;;  %v2363_v31 = vadd.f32 %v9233_v49, %v2343_v56 }
 0x587   :  { %7846 = vrsqrt.f32 %v2294_v53  ;;  %v7843_v21 = vpop.eup %7842  ;;  %v2325_v37 = vmul.f32 %v7841_v7, %v9162_v54  ;;  %v2362_v46 = vadd.f32 %v9233_v49, %v2342_v28 }
 0x588   :  { %v2324_v45 = vmul.f32 %v7843_v21, %v9166_v0 }
 0x589   :  { %v2345_v19 = vmul.f32 %v9226_v58, %v2325_v37  ;;  %7260 = vmatprep.mubr.msk.f32.mxu1 %vm221_vm0, %v2362_v46 }
 0x58a   :  { %v2261_v55 = vpop.xlane.xlu1 %2260  ;;  %v2344_v6 = vmul.f32 %v9226_v58, %v2324_v45  ;;  %7261 = vmatmul.mubr.msk.f32.gmra.mrb[38].mxu1 %vm221_vm0, %v2363_v31  ;;  %v2993_v45 = vld [vmem:[%s11202_s7 + $0x20] sm:$0xff] }
 0x58b   :  { %v2281_v27 = vmul.f32 0.03125, %v2261_v55  ;;  %v2258_v40 = vpop.xlane.xlu0 %2257  ;;  %v2365_v0 = vadd.f32 %v9233_v49, %v2345_v19  ;;  %v2994_v55 = vld [vmem:[%s11202_s7 + $0x28] sm:$0xff]  ;;  %v2995_v19 = vld [vmem:[%s11202_s7 + $0x30] sm:$0xff] }
 0x58c   :  { %v2280_v59 = vmul.f32 0.03125, %v2258_v40  ;;  %v2364_v54 = vadd.f32 %v9233_v49, %v2344_v6  ;;  %v7622_v31 = vpack.c.bf16 %v2994_v55, %v2993_v45  ;;  %v9324_v6 = vld [vmem:[%s11197_s2 + $0x5] ss:$0 sm:$0xff] }
 0x58d   :  { %v2297_v35 = vadd.f32 1e-05, %v2281_v27  ;;  %v2996_v27 = vld [vmem:[%s11202_s7 + $0x38] sm:$0xff] }
 0x58e   :  { %v2296_v17 = vadd.f32 1e-05, %v2280_v59  ;;  %v2267_v24 = vpop.xlane.xlu1 %2266  ;;  %7263 = vmatprep.mubr.msk.f32.mxu1 %vm221_vm0, %v2364_v54  ;;  %v7626_v40 = vpack.c.bf16 %v2996_v27, %v2995_v19 }
 0x58f   :  { %7848 = vrsqrt.f32 %v2297_v35  ;;  %v2283_v42 = vmul.f32 0.03125, %v2267_v24  ;;  %v2264_v36 = vpop.xlane.xlu0 %2263  ;;  %7264 = vmatmul.mubr.msk.f32.gmra.mrb[40].mxu1 %vm221_vm0, %v2365_v0 }
 0x590   :  { %v7845_v29 = vpop.eup %7844  ;;  %7850 = vrsqrt.f32 %v2296_v17  ;;  %v2282_v52 = vmul.f32 0.03125, %v2264_v36 }
 0x591   :  { %v7847_v5 = vpop.eup %7846  ;;  %v2327_v14 = vmul.f32 %v7845_v29, %v9176_v3  ;;  %v2299_v57 = vadd.f32 1e-05, %v2283_v42 }
 0x592   :  { %v2326_v25 = vmul.f32 %v7847_v5, %v9179_v51  ;;  %v2298_v23 = vadd.f32 1e-05, %v2282_v52 }
 0x593   :  { %v2347_v12 = vmul.f32 %v9226_v58, %v2327_v14  ;;  %7852 = vrsqrt.f32 %v2299_v57 }
 0x594   :  { %v2346_v20 = vmul.f32 %v9226_v58, %v2326_v25  ;;  %7854 = vrsqrt.f32 %v2298_v23 }
 0x595   :  { %v2367_v30 = vadd.f32 %v9233_v49, %v2347_v12 }
 0x596   :  { %v2366_v16 = vadd.f32 %v9233_v49, %v2346_v20 }
 0x598   :  { %7266 = vmatprep.mubr.msk.f32.mxu1 %vm221_vm0, %v2366_v16 }
 0x599   :  { %v7849_v60 = vpop.eup %7848  ;;  %7267 = vmatmul.mubr.msk.f32.gmra.mrb[42].mxu1 %vm221_vm0, %v2367_v30 }
 0x59a   :  { %v7851_v3 = vpop.eup %7850  ;;  %v2329_v50 = vmul.f32 %v7849_v60, %v9188_v63 }
 0x59b   :  { %v2328_v51 = vmul.f32 %v7851_v3, %v9191_v48 }
 0x59c   :  { %v2349_v38 = vmul.f32 %v9226_v58, %v2329_v50 }
 0x59d   :  { %v2348_v22 = vmul.f32 %v9226_v58, %v2328_v51  ;;  %v7853_v53 = vpop.eup %7852 }
 0x59e   :  { %v7855_v32 = vpop.eup %7854  ;;  %v2331_v62 = vmul.f32 %v7853_v53, %v9205_v61  ;;  %v2369_v56 = vadd.f32 %v9233_v49, %v2349_v38  ;;  %v2989_v61 = vld [vmem:[%s11202_s7] sm:$0xff] }
 0x59f   :  { %v2368_v18 = vadd.f32 %v9233_v49, %v2348_v22  ;;  %v2330_v7 = vmul.f32 %v7855_v32, %v9209_v4  ;;  %v2990_v4 = vld [vmem:[%s11202_s7 + $0x8] sm:$0xff] }
 0x5a0   :  { %v2351_v63 = vmul.f32 %v9226_v58, %v2331_v62  ;;  %v7614_v37 = vpack.c.bf16 %v2990_v4, %v2989_v61 }
 0x5a1   :  { %7269 = vmatprep.mubr.msk.f32.mxu1 %vm221_vm0, %v2368_v18  ;;  %v2350_v48 = vmul.f32 %v9226_v58, %v2330_v7  ;;  %v2991_v58 = vld [vmem:[%s11202_s7 + $0x10] sm:$0xff] }
 0x5a2   :  { %7270 = vmatmul.mubr.msk.f32.gmra.mrb[44].mxu1 %vm221_vm0, %v2369_v56  ;;  %v2371_v21 = vadd.f32 %v9233_v49, %v2351_v63  ;;  %7615 = vmatprep.subr.bf16.mxu0 %v7614_v37 }
 0x5a3   :  { %v2370_v28 = vadd.f32 %v9233_v49, %v2350_v48  ;;  %7617 = vmatpush3.bf16.msra.mxu0 %v7614_v37  ;;  %v2992_v49 = vld [vmem:[%s11202_s7 + $0x18] sm:$0xff] }
 0x5a4   :  { %v7618_v46 = vpack.c.bf16 %v2992_v49, %v2991_v58 }
 0x5a5   :  { %7272 = vmatprep.mubr.msk.f32.mxu1 %vm221_vm0, %v2370_v28 }
 0x5a6   :  { %7273 = vmatmul.mubr.msk.f32.gmra.mrb[46].mxu1 %vm221_vm0, %v2371_v21  ;;  %7619 = vmatprep.subr.bf16.mxu0 %v7618_v46 }
 0x5a7   :  { %7621 = vmatpush3.bf16.msra.mxu0 %v7618_v46 }
 0x5a8   :  { %7623 = vmatprep.subr.bf16.mxu0 %v7622_v31 }
 0x5ab   :  { %7625 = vmatpush3.bf16.msra.mxu0 %v7622_v31 }
 0x5ac   :  { %7627 = vmatprep.subr.bf16.mxu0 %v7626_v40 }
 0x5af   :  { %7629 = vmatpush3.bf16.msra.mxu0 %v7626_v40 }
 0x651   :  { %v7253_v59 = vpop.f32.mrb[32].mxu1 }
 0x652   :  { %v2500_v35 = vadd.f32 %v7253_v59, %v9324_v6  ;;  %v2494_v54 = vpop.f32.mrb[33].mxu1 }
 0x653   :  { %v2495_v17 = vadd.f32 %v9324_v6, %v2494_v54 }
 0x654   :  { %v9328_v0 = vmul.f32 0.70710677, %v2500_v35  ;;  %v9354_v37 = vmul.f32 0.5, %v2500_v35 }
 0x655   :  { %v9330_v24 = vmul.f32 0.70710677, %v2495_v17  ;;  %v7256_v29 = vpop.f32.mrb[34].mxu1  ;;  %v9365_v27 = vmul.f32 0.5, %v2495_v17 }
 0x656   :  { %v2606_v42 = vand.u32 2147483647, %v9328_v0  ;;  %v9334_v36 = vadd.f32 %v7256_v29, %v9324_v6  ;;  %v2504_v5 = vpop.f32.mrb[35].mxu1  ;;  %vm2910_vm4 = vcmp.ge.f32.partialorder %v9328_v0, 0.0 }
 0x657   :  { %v2605_v52 = vand.u32 2147483647, %v9330_v24  ;;  %v2505_v14 = vadd.f32 %v9324_v6, %v2504_v5  ;;  %vm2909_vm5 = vcmp.ge.f32.partialorder %v9330_v24, 0.0 }
 0x658   :  { %v2622_v57 = vmul.f32 0.3275911, %v2606_v42  ;;  %v9339_v25 = vmul.f32 0.70710677, %v9334_v36  ;;  %v2814_v16 = vsub.f32 0.0, %v2606_v42 }
 0x659   :  { %v2621_v23 = vmul.f32 0.3275911, %v2605_v52  ;;  %v9341_v12 = vmul.f32 0.70710677, %v2505_v14  ;;  %v7259_v60 = vpop.f32.mrb[36].mxu1  ;;  %v2813_v50 = vsub.f32 0.0, %v2605_v52 }
 0x65a   :  { %v2638_v20 = vadd.f32 1.0, %v2622_v57  ;;  %v2608_v30 = vand.u32 2147483647, %v9339_v25  ;;  %v2514_v38 = vpop.f32.mrb[37].mxu1  ;;  %v2830_v18 = vmul.f32 %v2814_v16, %v2606_v42  ;;  %v9346_v7 = vadd.f32 %v7259_v60, %v9324_v6 }
 0x65b   :  { %v2637_v3 = vadd.f32 1.0, %v2621_v23  ;;  %v2607_v51 = vand.u32 2147483647, %v9341_v12  ;;  %v2829_v48 = vmul.f32 %v2813_v50, %v2605_v52  ;;  %v9349_v21 = vadd.f32 %v9324_v6, %v2514_v38 }
 0x65c   :  { %7856 = vrcp.f32 %v2638_v20  ;;  %v2624_v22 = vmul.f32 0.3275911, %v2608_v30  ;;  %v2816_v56 = vsub.f32 0.0, %v2608_v30  ;;  %v9352_v4 = vmul.f32 0.70710677, %v9346_v7 }
 0x65d   :  { %7858 = vrcp.f32 %v2637_v3  ;;  %v2623_v53 = vmul.f32 0.3275911, %v2607_v51  ;;  %v7262_v32 = vpop.f32.mrb[38].mxu1  ;;  %v2815_v61 = vsub.f32 0.0, %v2607_v51  ;;  %v9357_v58 = vmul.f32 0.70710677, %v9349_v21 }
 0x65e   :  { %v2640_v62 = vadd.f32 1.0, %v2624_v22  ;;  %v2524_v63 = vpop.f32.mrb[39].mxu1  ;;  %v2847_v46 = vmul.f32 1.442695, %v2830_v18  ;;  %v2832_v45 = vmul.f32 %v2816_v56, %v2608_v30  ;;  %v2610_v55 = vand.u32 2147483647, %v9352_v4 }
 0x65f   :  { %v2639_v28 = vadd.f32 1.0, %v2623_v53  ;;  %v9361_v31 = vadd.f32 %v7262_v32, %v9324_v6  ;;  %v2845_v40 = vmul.f32 1.442695, %v2829_v48  ;;  %v2609_v59 = vand.u32 2147483647, %v9357_v58 }
 0x660   :  { %7860 = vrcp.f32 %v2640_v62  ;;  %v9369_v35 = vadd.f32 %v9324_v6, %v2524_v63  ;;  %v2831_v54 = vmul.f32 %v2815_v61, %v2607_v51  ;;  %v2626_v29 = vmul.f32 0.3275911, %v2610_v55 }
 0x661   :  { %7862 = vrcp.f32 %v2639_v28  ;;  %v2818_v42 = vsub.f32 0.0, %v2610_v55  ;;  %v9372_v5 = vmul.f32 0.70710677, %v9361_v31  ;;  %v9374_v52 = vmul.f32 0.5, %v2505_v14 }
 0x662   :  { %v7265_v49 = vpop.f32.mrb[40].mxu1  ;;  %v2625_v57 = vmul.f32 0.3275911, %v2609_v59  ;;  %v2817_v23 = vsub.f32 0.0, %v2609_v59  ;;  %v9377_v20 = vmul.f32 0.70710677, %v9369_v35  ;;  %7864 = vpow2.f32 %v2847_v46 }
 0x663   :  { %v9363_v19 = vpop.f32.mrb[41].mxu1  ;;  %v2851_v16 = vmul.f32 1.442695, %v2832_v45  ;;  %v2642_v30 = vadd.f32 1.0, %v2626_v29  ;;  %v2612_v60 = vand.u32 2147483647, %v9372_v5  ;;  %v2834_v51 = vmul.f32 %v2818_v42, %v2610_v55 }
 0x664   :  { %v2641_v38 = vadd.f32 1.0, %v2625_v57  ;;  %v2611_v14 = vand.u32 2147483647, %v9377_v20  ;;  %v2849_v53 = vmul.f32 1.442695, %v2831_v54  ;;  %v2833_v62 = vmul.f32 %v2817_v23, %v2609_v59 }
 0x665   :  { %7866 = vrcp.f32 %v2642_v30  ;;  %v2628_v32 = vmul.f32 0.3275911, %v2612_v60  ;;  %v2820_v56 = vsub.f32 0.0, %v2612_v60  ;;  %v2855_v29 = vmul.f32 1.442695, %v2834_v51 }
 0x666   :  { %v9379_v17 = vpop.eup %7856  ;;  %7868 = vrcp.f32 %v2641_v38  ;;  %v2627_v61 = vmul.f32 0.3275911, %v2611_v14  ;;  %v2853_v38 = vmul.f32 1.442695, %v2833_v62  ;;  %v2819_v33 = vsub.f32 0.0, %v2611_v14 }
 0x667   :  { %v9382_v3 = vpop.eup %7858  ;;  %v2670_v50 = vmul.f32 1.0614054, %v9379_v17  ;;  %7870 = vpow2.f32 %v2845_v40  ;;  %v2644_v28 = vadd.f32 1.0, %v2628_v32  ;;  %v2836_v42 = vmul.f32 %v2820_v56, %v2612_v60 }
 0x668   :  { %v2669_v22 = vmul.f32 1.0614054, %v9382_v3  ;;  %v2643_v40 = vadd.f32 1.0, %v2627_v61  ;;  %v2835_v62 = vmul.f32 %v2819_v33, %v2611_v14  ;;  %vm2912_vm6 = vcmp.ge.f32.partialorder %v9339_v25, 0.0 }
 0x669   :  { %v2686_v18 = vadd.f32 -1.4531521, %v2670_v50  ;;  %7872 = vrcp.f32 %v2644_v28  ;;  %v2859_v56 = vmul.f32 1.442695, %v2836_v42  ;;  %vm2911_vm8 = vcmp.ge.f32.partialorder %v9341_v12, 0.0 }
 0x66a   :  { %v9387_v63 = vpop.eup %7860  ;;  %v2685_v48 = vadd.f32 -1.4531521, %v2669_v22  ;;  %v9400_v22 = vadd.f32 %v7265_v49, %v9324_v6  ;;  %7874 = vrcp.f32 %v2643_v40  ;;  %vm2914_vm9 = vcmp.ge.f32.partialorder %v9352_v4, 0.0 }
 0x66b   :  { %v9391_v45 = vpop.eup %7862  ;;  %v2702_v55 = vmul.f32 %v9379_v17, %v2686_v18  ;;  %v2672_v54 = vmul.f32 1.0614054, %v9387_v63  ;;  %7876 = vpow2.f32 %v2851_v16  ;;  %v2857_v16 = vmul.f32 1.442695, %v2835_v62 }
 0x66c   :  { %v9389_v46 = vpop.f32.mrb[42].mxu1  ;;  %v2701_v59 = vmul.f32 %v9382_v3, %v2685_v48  ;;  %v2671_v23 = vmul.f32 1.0614054, %v9391_v45  ;;  %v7865_v48 = vpop.eup %7864  ;;  %7878 = vpow2.f32 %v2849_v53  ;;  %vm2913_vm10 = vcmp.ge.f32.partialorder %v9357_v58, 0.0 }
 0x66d   :  { %v9395_v57 = vpop.f32.mrb[43].mxu1  ;;  %v2718_v30 = vadd.f32 1.4214138, %v2702_v55  ;;  %v2688_v50 = vadd.f32 -1.4531521, %v2672_v54  ;;  %7880 = vpow2.f32 %v2855_v29  ;;  %vm2916_vm11 = vcmp.ge.f32.partialorder %v9372_v5, 0.0 }
 0x66e   :  { %v2717_v32 = vadd.f32 1.4214138, %v2701_v59  ;;  %v2687_v18 = vadd.f32 -1.4531521, %v2671_v23  ;;  %v9407_v54 = vmul.f32 0.70710677, %v9400_v22  ;;  %7882 = vpow2.f32 %v2853_v38 }
 0x66f   :  { %v2734_v60 = vmul.f32 %v9379_v17, %v2718_v30  ;;  %v2704_v51 = vmul.f32 %v9387_v63, %v2688_v50  ;;  %v9409_v59 = vpop.eup %7866  ;;  %7884 = vpow2.f32 %v2859_v56  ;;  %v9428_v56 = vadd.f32 %v9324_v6, %v9363_v19 }
 0x670   :  { %v2733_v28 = vmul.f32 %v9382_v3, %v2717_v32  ;;  %v2703_v61 = vmul.f32 %v9391_v45, %v2687_v18  ;;  %v9411_v42 = vpop.eup %7868  ;;  %v2674_v33 = vmul.f32 1.0614054, %v9409_v59  ;;  %v9422_v38 = vand.u32 2147483647, %v9407_v54 }
 0x671   :  { %v2750_v55 = vadd.f32 -0.28449672, %v2734_v60  ;;  %v2720_v49 = vadd.f32 1.4214138, %v2704_v51  ;;  %v7871_v53 = vpop.eup %7870  ;;  %v2673_v18 = vmul.f32 1.0614054, %v9411_v42  ;;  %7886 = vpow2.f32 %v2857_v16 }
 0x672   :  { %v2749_v23 = vadd.f32 -0.28449672, %v2733_v28  ;;  %v2719_v40 = vadd.f32 1.4214138, %v2703_v61  ;;  %v2690_v61 = vadd.f32 -1.4531521, %v2674_v33  ;;  %v9496_v4 = vadd.f32 %v9324_v6, %v9395_v57 }
 0x673   :  { %v2766_v30 = vmul.f32 %v9379_v17, %v2750_v55  ;;  %v2736_v50 = vmul.f32 %v9387_v63, %v2720_v49  ;;  %v9430_v62 = vpop.eup %7872  ;;  %v2630_v16 = vmul.f32 0.3275911, %v9422_v38  ;;  %v2580_v5 = vmul.f32 0.5, %v9361_v31 }
 0x674   :  { %v2765_v29 = vmul.f32 %v9382_v3, %v2749_v23  ;;  %v2735_v32 = vmul.f32 %v9391_v45, %v2719_v40  ;;  %v2689_v23 = vadd.f32 -1.4531521, %v2673_v18  ;;  %v2676_v33 = vmul.f32 1.0614054, %v9430_v62  ;;  %v9438_v19 = vpop.eup %7874 }
 0x675   :  { %v9416_v14 = vpop.f32.mrb[44].mxu1  ;;  %v2782_v51 = vadd.f32 0.2548296, %v2766_v30  ;;  %v2752_v28 = vadd.f32 -0.28449672, %v2736_v50  ;;  %v2706_v50 = vmul.f32 %v9409_v59, %v2690_v61  ;;  %vm2915_vm12 = vcmp.ge.f32.partialorder %v9377_v20, 0.0 }
 0x676   :  { %v9424_v60 = vpop.f32.mrb[45].mxu1  ;;  %v2781_v55 = vadd.f32 0.2548296, %v2765_v29  ;;  %v2751_v49 = vadd.f32 -0.28449672, %v2735_v32  ;;  %v2705_v29 = vmul.f32 %v9411_v42, %v2689_v23  ;;  %v2579_v31 = vmul.f32 0.5, %v9369_v35 }
 0x677   :  { %v2798_v40 = vmul.f32 %v9379_v17, %v2782_v51  ;;  %v2768_v30 = vmul.f32 %v9387_v63, %v2752_v28  ;;  %v7877_v17 = vpop.eup %7876  ;;  %v2722_v28 = vadd.f32 1.4214138, %v2706_v50  ;;  %v2692_v9 = vadd.f32 -1.4531521, %v2676_v33 }
 0x678   :  { %v2797_v44 = vmul.f32 %v9382_v3, %v2781_v55  ;;  %v2767_v15 = vmul.f32 %v9391_v45, %v2751_v49  ;;  %v7879_v61 = vpop.eup %7878  ;;  %v2721_v34 = vadd.f32 1.4214138, %v2705_v29  ;;  %v2675_v3 = vmul.f32 1.0614054, %v9438_v19 }
 0x679   :  { %v9444_v32 = vpop.f32.mrb[46].mxu1  ;;  %v2878_v18 = vmul.f32 %v7865_v48, %v2798_v40  ;;  %v2784_v51 = vadd.f32 0.2548296, %v2768_v30  ;;  %v7881_v55 = vpop.eup %7880  ;;  %v2738_v48 = vmul.f32 %v9409_v59, %v2722_v28  ;;  %v2708_v40 = vmul.f32 %v9430_v62, %v2692_v9 }
 0x67a   :  { %v2877_v2 = vmul.f32 %v7871_v53, %v2797_v44  ;;  %v2783_v26 = vadd.f32 0.2548296, %v2767_v15  ;;  %v9452_v30 = vpop.f32.mrb[47].mxu1  ;;  %v7883_v44 = vpop.eup %7882  ;;  %v2737_v50 = vmul.f32 %v9411_v42, %v2721_v34  ;;  %v2691_v33 = vadd.f32 -1.4531521, %v2675_v3 }
 0x67b   :  { %v2894_v49 = vsub.f32 1.0, %v2878_v18  ;;  %v2800_v23 = vmul.f32 %v9387_v63, %v2784_v51  ;;  %v7885_v29 = vpop.eup %7884  ;;  %v2754_v11 = vadd.f32 -0.28449672, %v2738_v48  ;;  %v2724_v63 = vadd.f32 1.4214138, %v2708_v40 }
 0x67c   :  { %v2893_v53 = vsub.f32 1.0, %v2877_v2  ;;  %v2799_v15 = vmul.f32 %v9391_v45, %v2783_v26  ;;  %v2753_v8 = vadd.f32 -0.28449672, %v2737_v50  ;;  %v2707_v28 = vmul.f32 %v9438_v19, %v2691_v33  ;;  %v7887_v34 = vpop.eup %7886 }
 0x67d   :  { %v2926_v13 = vsub.f32 0.0, %v2894_v49  ;;  %v2880_v18 = vmul.f32 %v7877_v17, %v2800_v23  ;;  %v2770_v2 = vmul.f32 %v9409_v59, %v2754_v11  ;;  %v2740_v26 = vmul.f32 %v9430_v62, %v2724_v63 }
 0x67e   :  { %v2925_v51 = vsub.f32 0.0, %v2893_v53  ;;  %v2879_v1 = vmul.f32 %v7879_v61, %v2799_v15  ;;  %v2769_v23 = vmul.f32 %v9411_v42, %v2753_v8  ;;  %v2723_v50 = vadd.f32 1.4214138, %v2707_v28 }
 0x67f   :  { %v2942_v9 = vsel %vm2910_vm4, %v2894_v49, %v2926_v13  ;;  %v2896_v47 = vsub.f32 1.0, %v2880_v18  ;;  %v2786_v40 = vadd.f32 0.2548296, %v2770_v2  ;;  %v2756_v15 = vadd.f32 -0.28449672, %v2740_v26 }
 0x680   :  { %v2958_v45 = vadd.f32 1.0, %v2942_v9  ;;  %v2941_v17 = vsel %vm2909_vm5, %v2893_v53, %v2925_v51  ;;  %v2895_v3 = vsub.f32 1.0, %v2879_v1  ;;  %v2785_v49 = vadd.f32 0.2548296, %v2769_v23 }
 0x681   :  { %v2957_v61 = vadd.f32 1.0, %v2941_v17  ;;  %v2928_v48 = vsub.f32 0.0, %v2896_v47  ;;  %v2802_v24 = vmul.f32 %v9409_v59, %v2786_v40  ;;  %v2772_v1 = vmul.f32 %v9430_v62, %v2756_v15 }
 0x682   :  { %v2974_v0 = vmul.f32 %v2958_v45, %v9354_v37  ;;  %v2927_v13 = vsub.f32 0.0, %v2895_v3  ;;  %v2801_v18 = vmul.f32 %v9411_v42, %v2785_v49  ;;  %v2739_v37 = vmul.f32 %v9438_v19, %v2723_v50 }
 0x683   :  { %v2973_v11 = vmul.f32 %v2957_v61, %v9365_v27  ;;  %v2944_v33 = vsel %vm2912_vm6, %v2896_v47, %v2928_v48  ;;  %v2882_v51 = vmul.f32 %v7881_v55, %v2802_v24  ;;  %v2788_v28 = vadd.f32 0.2548296, %v2772_v1 }
 0x684   :  { %v2960_v53 = vadd.f32 1.0, %v2944_v33  ;;  %v2943_v8 = vsel %vm2911_vm8, %v2895_v3, %v2927_v13  ;;  %v2646_v9 = vadd.f32 1.0, %v2630_v16  ;;  %v2576_v47 = vmul.f32 0.5, %v9334_v36 }
 0x685   :  { %v2959_v63 = vadd.f32 1.0, %v2943_v8  ;;  %7291 = vmatprep.mubr.msk.f32.mxu0 %vm3001_vm7, %v2973_v11  ;;  %v2881_v25 = vmul.f32 %v7883_v44, %v2801_v18  ;;  %v2755_v27 = vadd.f32 -0.28449672, %v2739_v37  ;;  %v2898_v12 = vsub.f32 1.0, %v2882_v51 }
 0x686   :  { %7292 = vmatmul.mubr.msk.f32.vlgmr.msra.gmra.mrb[16].mxu0 %vm3001_vm7, %v2974_v0  ;;  %v2804_v2 = vmul.f32 %v9430_v62, %v2788_v28  ;;  %7888 = vrcp.f32 %v2646_v9  ;;  %v2976_v42 = vmul.f32 %v2960_v53, %v2576_v47  ;;  %v2577_v16 = vmul.f32 0.5, %v9349_v21 }
 0x687   :  { %v2975_v59 = vmul.f32 %v2959_v63, %v9374_v52  ;;  %v2897_v26 = vsub.f32 1.0, %v2881_v25  ;;  %v2771_v55 = vmul.f32 %v9438_v19, %v2755_v27  ;;  %v2930_v45 = vsub.f32 0.0, %v2898_v12 }
 0x688   :  { %v2884_v17 = vmul.f32 %v7885_v29, %v2804_v2  ;;  %v9482_v36 = vmul.f32 0.70710677, %v9428_v56  ;;  %v9488_v62 = vadd.f32 %v9389_v46, %v9324_v6  ;;  %v2822_v46 = vsub.f32 0.0, %v9422_v38 }
 0x689   :  { %7294 = vmatprep.mubr.msk.f32.mxu0 %vm3001_vm7, %v2975_v59  ;;  %v2929_v52 = vsub.f32 0.0, %v2897_v26  ;;  %v2787_v44 = vadd.f32 0.2548296, %v2771_v55  ;;  %v2946_v3 = vsel %vm2914_vm9, %v2898_v12, %v2930_v45  ;;  %v2578_v13 = vmul.f32 0.5, %v9346_v7 }
 0x68a   :  { %7295 = vmatmul.mubr.msk.f32.gmra.mrb[18].mxu0 %vm3001_vm7, %v2976_v42  ;;  %v2900_v21 = vsub.f32 1.0, %v2884_v17  ;;  %v2613_v29 = vand.u32 2147483647, %v9482_v36  ;;  %v2962_v23 = vadd.f32 1.0, %v2946_v3  ;;  %v9501_v58 = vmul.f32 0.70710677, %v9488_v62 }
 0x68b   :  { %v2945_v61 = vsel %vm2913_vm10, %v2897_v26, %v2929_v52  ;;  %v2803_v48 = vmul.f32 %v9438_v19, %v2787_v44  ;;  %v9506_v19 = vadd.f32 %v9416_v14, %v9324_v6  ;;  %v2838_v7 = vmul.f32 %v2822_v46, %v9422_v38 }
 0x68c   :  { %v2961_v40 = vadd.f32 1.0, %v2945_v61  ;;  %v2932_v15 = vsub.f32 0.0, %v2900_v21  ;;  %v2629_v0 = vmul.f32 0.3275911, %v2613_v29  ;;  %v2978_v57 = vmul.f32 %v2962_v23, %v2578_v13 }
 0x68d   :  { %v2883_v49 = vmul.f32 %v7887_v34, %v2803_v48  ;;  %v2616_v1 = vand.u32 2147483647, %v9501_v58  ;;  %v9513_v34 = vmul.f32 0.70710677, %v9496_v4  ;;  %v2821_v63 = vsub.f32 0.0, %v2613_v29 }
 0x68e   :  { %v2977_v50 = vmul.f32 %v2961_v40, %v2577_v16  ;;  %v2645_v11 = vadd.f32 1.0, %v2629_v0  ;;  %v2948_v33 = vsel %vm2916_vm11, %v2900_v21, %v2932_v15  ;;  %v9524_v47 = vmul.f32 0.70710677, %v9506_v19 }
 0x68f   :  { %v2899_v24 = vsub.f32 1.0, %v2883_v49  ;;  %v2632_v18 = vmul.f32 0.3275911, %v2616_v1  ;;  %v2964_v37 = vadd.f32 1.0, %v2948_v33  ;;  %v9521_v38 = vand.u32 2147483647, %v9513_v34 }
 0x690   :  { %v9509_v53 = vpop.eup %7888  ;;  %7890 = vrcp.f32 %v2645_v11  ;;  %7297 = vmatprep.mubr.msk.f32.mxu0 %vm3001_vm7, %v2977_v50  ;;  %v2863_v27 = vmul.f32 1.442695, %v2838_v7  ;;  %v2618_v20 = vand.u32 2147483647, %v9524_v47  ;;  %v2837_v26 = vmul.f32 %v2821_v63, %v2613_v29 }
 0x691   :  { %v2931_v8 = vsub.f32 0.0, %v2899_v24  ;;  %v2678_v14 = vmul.f32 1.0614054, %v9509_v53  ;;  %7298 = vmatmul.mubr.msk.f32.gmra.mrb[20].mxu0 %vm3001_vm7, %v2978_v57  ;;  %v2648_v9 = vadd.f32 1.0, %v2632_v18  ;;  %v2631_v59 = vmul.f32 0.3275911, %v9521_v38 }
 0x692   :  { %v2980_v2 = vmul.f32 %v2964_v37, %v2580_v5  ;;  %v2824_v16 = vsub.f32 0.0, %v2616_v1  ;;  %v2634_v17 = vmul.f32 0.3275911, %v2618_v20  ;;  %v9532_v52 = vadd.f32 %v9324_v6, %v9424_v60 }
 0x693   :  { %v2947_v51 = vsel %vm2915_vm12, %v2899_v24, %v2931_v8  ;;  %v2694_v28 = vadd.f32 -1.4531521, %v2678_v14  ;;  %7892 = vrcp.f32 %v2648_v9  ;;  %v2647_v55 = vadd.f32 1.0, %v2631_v59 }
 0x694   :  { %v2963_v25 = vadd.f32 1.0, %v2947_v51  ;;  %7894 = vpow2.f32 %v2863_v27  ;;  %v9536_v35 = vadd.f32 %v9444_v32, %v9324_v6  ;;  %v2650_v3 = vadd.f32 1.0, %v2634_v17 }
 0x695   :  { %v2710_v12 = vmul.f32 %v9509_v53, %v2694_v28  ;;  %7896 = vrcp.f32 %v2647_v55  ;;  %v9542_v21 = vadd.f32 %v9324_v6, %v9452_v30  ;;  %v2861_v60 = vmul.f32 1.442695, %v2837_v26 }
 0x696   :  { %v2979_v42 = vmul.f32 %v2963_v25, %v2579_v31  ;;  %v9548_v23 = vmul.f32 0.70710677, %v9532_v52  ;;  %v2840_v48 = vmul.f32 %v2824_v16, %v2616_v1  ;;  %7898 = vrcp.f32 %v2650_v3 }
 0x697   :  { %v2726_v45 = vadd.f32 1.4214138, %v2710_v12  ;;  %v9553_v15 = vmul.f32 0.70710677, %v9536_v35  ;;  %v9557_v46 = vmul.f32 0.70710677, %v9542_v21  ;;  %7900 = vpow2.f32 %v2861_v60 }
 0x698   :  { %7300 = vmatprep.mubr.msk.f32.mxu0 %vm3001_vm7, %v2979_v42  ;;  %v2617_v40 = vand.u32 2147483647, %v9548_v23  ;;  %v2823_v0 = vsub.f32 0.0, %v9521_v38  ;;  %v2867_v33 = vmul.f32 1.442695, %v2840_v48  ;;  %v2826_v7 = vsub.f32 0.0, %v2618_v20 }
 0x699   :  { %v2742_v44 = vmul.f32 %v9509_v53, %v2726_v45  ;;  %7301 = vmatmul.mubr.msk.f32.gmra.mrb[22].mxu0 %vm3001_vm7, %v2980_v2  ;;  %v2620_v49 = vand.u32 2147483647, %v9553_v15  ;;  %v2619_v24 = vand.u32 2147483647, %v9557_v46  ;;  %v9572_v2 = vmul.f32 0.5, %v9400_v22 }
 0x69a   :  { %v9545_v29 = vpop.eup %7890  ;;  %v2633_v13 = vmul.f32 0.3275911, %v2617_v40  ;;  %v2825_v37 = vsub.f32 0.0, %v2617_v40  ;;  %v2839_v59 = vmul.f32 %v2823_v0, %v9521_v38  ;;  %v2842_v45 = vmul.f32 %v2826_v7, %v2618_v20 }
 0x69b   :  { %v2758_v32 = vadd.f32 -0.28449672, %v2742_v44  ;;  %v2677_v61 = vmul.f32 1.0614054, %v9545_v29  ;;  %v2636_v8 = vmul.f32 0.3275911, %v2620_v49 }
 0x69c   :  { %v2649_v5 = vadd.f32 1.0, %v2633_v13  ;;  %v2635_v63 = vmul.f32 0.3275911, %v2619_v24  ;;  %v2841_v16 = vmul.f32 %v2825_v37, %v2617_v40  ;;  %v2865_v60 = vmul.f32 1.442695, %v2839_v59 }
 0x69d   :  { %v2774_v6 = vmul.f32 %v9509_v53, %v2758_v32  ;;  %v2693_v30 = vadd.f32 -1.4531521, %v2677_v61  ;;  %v9561_v50 = vpop.eup %7892  ;;  %v2652_v9 = vadd.f32 1.0, %v2636_v8  ;;  %v2828_v32 = vsub.f32 0.0, %v2620_v49 }
 0x69e   :  { %v2680_v1 = vmul.f32 1.0614054, %v9561_v50  ;;  %v7895_v51 = vpop.eup %7894  ;;  %7902 = vrcp.f32 %v2649_v5  ;;  %v2651_v12 = vadd.f32 1.0, %v2635_v63  ;;  %vm2918_vm13 = vcmp.ge.f32.partialorder %v9407_v54, 0.0 }
 0x69f   :  { %v2790_v11 = vadd.f32 0.2548296, %v2774_v6  ;;  %v2709_v57 = vmul.f32 %v9545_v29, %v2693_v30  ;;  %v9567_v31 = vpop.eup %7896  ;;  %7904 = vpow2.f32 %v2867_v33  ;;  %v2581_v40 = vmul.f32 0.5, %v9428_v56 }
 0x6a0   :  { %v2696_v28 = vadd.f32 -1.4531521, %v2680_v1  ;;  %v2679_v42 = vmul.f32 1.0614054, %v9567_v31  ;;  %v9576_v26 = vpop.eup %7898  ;;  %7906 = vrcp.f32 %v2652_v9  ;;  %v2871_v0 = vmul.f32 1.442695, %v2842_v45 }
 0x6a1   :  { %v2806_v14 = vmul.f32 %v9509_v53, %v2790_v11  ;;  %v2725_v18 = vadd.f32 1.4214138, %v2709_v57  ;;  %v2682_v3 = vmul.f32 1.0614054, %v9576_v26  ;;  %7908 = vrcp.f32 %v2651_v12  ;;  %v7901_v61 = vpop.eup %7900 }
 0x6a2   :  { %v2712_v53 = vmul.f32 %v9561_v50, %v2696_v28  ;;  %v2695_v44 = vadd.f32 -1.4531521, %v2679_v42  ;;  %v2827_v13 = vsub.f32 0.0, %v2619_v24  ;;  %v2869_v1 = vmul.f32 1.442695, %v2841_v16 }
 0x6a3   :  { %v2886_v25 = vmul.f32 %v7895_v51, %v2806_v14  ;;  %v2741_v27 = vmul.f32 %v9545_v29, %v2725_v18  ;;  %v2698_v20 = vadd.f32 -1.4531521, %v2682_v3  ;;  %7910 = vpow2.f32 %v2865_v60 }
 0x6a4   :  { %v2728_v17 = vadd.f32 1.4214138, %v2712_v53  ;;  %v2711_v6 = vmul.f32 %v9567_v31, %v2695_v44  ;;  %v2844_v8 = vmul.f32 %v2828_v32, %v2620_v49  ;;  %vm2917_vm14 = vcmp.ge.f32.partialorder %v9482_v36, 0.0 }
 0x6a5   :  { %v2757_v55 = vadd.f32 -0.28449672, %v2741_v27  ;;  %v2902_v38 = vsub.f32 1.0, %v2886_v25  ;;  %v2714_v33 = vmul.f32 %v9576_v26, %v2698_v20  ;;  %7912 = vpow2.f32 %v2871_v0 }
 0x6a6   :  { %v2744_v48 = vmul.f32 %v9561_v50, %v2728_v17  ;;  %v2727_v57 = vadd.f32 1.4214138, %v2711_v6  ;;  %v2843_v28 = vmul.f32 %v2827_v13, %v2619_v24  ;;  %7914 = vpow2.f32 %v2869_v1 }
 0x6a7   :  { %v2773_v22 = vmul.f32 %v9545_v29, %v2757_v55  ;;  %v2934_v7 = vsub.f32 0.0, %v2902_v38  ;;  %v2730_v37 = vadd.f32 1.4214138, %v2714_v33  ;;  %v2875_v42 = vmul.f32 1.442695, %v2844_v8 }
 0x6a8   :  { %v2760_v11 = vadd.f32 -0.28449672, %v2744_v48  ;;  %v9586_v14 = vpop.eup %7902  ;;  %v2743_v56 = vmul.f32 %v9567_v31, %v2727_v57  ;;  %v2873_v60 = vmul.f32 1.442695, %v2843_v28  ;;  %vm2920_vm15 = vcmp.ge.f32.partialorder %v9501_v58, 0.0 }
 0x6a9   :  { %v2789_v30 = vadd.f32 0.2548296, %v2773_v22  ;;  %v2681_v51 = vmul.f32 1.0614054, %v9586_v14  ;;  %v7905_v9 = vpop.eup %7904  ;;  %v2950_v59 = vsel %vm2918_vm13, %v2902_v38, %v2934_v7  ;;  %7916 = vpow2.f32 %v2875_v42 }
 0x6aa   :  { %v2776_v18 = vmul.f32 %v9561_v50, %v2760_v11  ;;  %v2759_v27 = vadd.f32 -0.28449672, %v2743_v56  ;;  %v9593_v49 = vpop.eup %7906  ;;  %v2966_v48 = vadd.f32 1.0, %v2950_v59  ;;  %7918 = vpow2.f32 %v2873_v60 }
 0x6ab   :  { %v2805_v5 = vmul.f32 %v9545_v29, %v2789_v30  ;;  %v2746_v29 = vmul.f32 %v9576_v26, %v2730_v37  ;;  %v2697_v53 = vadd.f32 -1.4531521, %v2681_v51  ;;  %v9597_v55 = vpop.eup %7908  ;;  %v2684_v17 = vmul.f32 1.0614054, %v9593_v49 }
 0x6ac   :  { %v2792_v25 = vadd.f32 0.2548296, %v2776_v18  ;;  %v2775_v24 = vmul.f32 %v9567_v31, %v2759_v27  ;;  %v2683_v22 = vmul.f32 1.0614054, %v9597_v55  ;;  %v2982_v37 = vmul.f32 %v2966_v48, %v9572_v2 }
 0x6ad   :  { %v2885_v63 = vmul.f32 %v7901_v61, %v2805_v5  ;;  %v2762_v16 = vadd.f32 -0.28449672, %v2746_v29  ;;  %v2713_v3 = vmul.f32 %v9586_v14, %v2697_v53  ;;  %v2700_v61 = vadd.f32 -1.4531521, %v2684_v17  ;;  %v7911_v57 = vpop.eup %7910 }
 0x6ae   :  { %v2808_v45 = vmul.f32 %v9561_v50, %v2792_v25  ;;  %v2791_v38 = vadd.f32 0.2548296, %v2775_v24  ;;  %v2699_v20 = vadd.f32 -1.4531521, %v2683_v22  ;;  %vm2919_vm2 = vcmp.ge.f32.partialorder %v9513_v34, 0.0 }
 0x6af   :  { %v2901_v12 = vsub.f32 1.0, %v2885_v63  ;;  %v2778_v32 = vmul.f32 %v9576_v26, %v2762_v16  ;;  %v2729_v6 = vadd.f32 1.4214138, %v2713_v3  ;;  %v2716_v1 = vmul.f32 %v9593_v49, %v2700_v61  ;;  %v7913_v56 = vpop.eup %7912 }
 0x6b0   :  { %v2888_v54 = vmul.f32 %v7905_v9, %v2808_v45  ;;  %v2807_v13 = vmul.f32 %v9567_v31, %v2791_v38  ;;  %v2715_v7 = vmul.f32 %v9597_v55, %v2699_v20  ;;  %v7915_v28 = vpop.eup %7914  ;;  %v2583_v45 = vmul.f32 0.5, %v9496_v4 }
 0x6b1   :  { %v2933_v44 = vsub.f32 0.0, %v2901_v12  ;;  %v2794_v11 = vadd.f32 0.2548296, %v2778_v32  ;;  %v2745_v33 = vmul.f32 %v9586_v14, %v2729_v6  ;;  %v2732_v51 = vadd.f32 1.4214138, %v2716_v1 }
 0x6b2   :  { %v2904_v0 = vsub.f32 1.0, %v2888_v54  ;;  %v2887_v18 = vmul.f32 %v7911_v57, %v2807_v13  ;;  %v2731_v31 = vadd.f32 1.4214138, %v2715_v7  ;;  %v2584_v22 = vmul.f32 0.5, %v9488_v62 }
 0x6b3   :  { %v2949_v50 = vsel %vm2917_vm14, %v2901_v12, %v2933_v44  ;;  %v2810_v36 = vmul.f32 %v9576_v26, %v2794_v11  ;;  %v2761_v63 = vadd.f32 -0.28449672, %v2745_v33  ;;  %v2748_v29 = vmul.f32 %v9593_v49, %v2732_v51  ;;  %v7917_v34 = vpop.eup %7916 }
 0x6b4   :  { %v2965_v30 = vadd.f32 1.0, %v2949_v50  ;;  %v2936_v8 = vsub.f32 0.0, %v2904_v0  ;;  %v2903_v9 = vsub.f32 1.0, %v2887_v18  ;;  %v2747_v26 = vmul.f32 %v9597_v55, %v2731_v31 }
 0x6b5   :  { %v2890_v25 = vmul.f32 %v7913_v56, %v2810_v36  ;;  %v2764_v58 = vadd.f32 -0.28449672, %v2748_v29  ;;  %vm2922_vm3 = vcmp.ge.f32.partialorder %v9524_v47, 0.0  ;;  %vm2921_vm4 = vcmp.ge.f32.partialorder %v9548_v23, 0.0 }
 0x6b6   :  { %v2981_v5 = vmul.f32 %v2965_v30, %v2581_v40  ;;  %v2952_v27 = vsel %vm2920_vm15, %v2904_v0, %v2936_v8  ;;  %v2777_v40 = vmul.f32 %v9586_v14, %v2761_v63  ;;  %v2935_v2 = vsub.f32 0.0, %v2903_v9 }
 0x6b7   :  { %v2906_v59 = vsub.f32 1.0, %v2890_v25  ;;  %v2763_v53 = vadd.f32 -0.28449672, %v2747_v26  ;;  %v2968_v42 = vadd.f32 1.0, %v2952_v27  ;;  %v2780_v44 = vmul.f32 %v9593_v49, %v2764_v58 }
 0x6b8   :  { %7303 = vmatprep.mubr.msk.f32.mxu0 %vm3001_vm7, %v2981_v5  ;;  %v2793_v12 = vadd.f32 0.2548296, %v2777_v40  ;;  %v2951_v24 = vsel %vm2919_vm2, %v2903_v9, %v2935_v2  ;;  %v2585_v47 = vmul.f32 0.5, %v9532_v52  ;;  %v2586_v1 = vmul.f32 0.5, %v9506_v19 }
 0x6b9   :  { %7304 = vmatmul.mubr.msk.f32.gmra.mrb[24].mxu0 %vm3001_vm7, %v2982_v37  ;;  %v2967_v16 = vadd.f32 1.0, %v2951_v24  ;;  %v2779_v3 = vmul.f32 %v9597_v55, %v2763_v53  ;;  %v2938_v60 = vsub.f32 0.0, %v2906_v59  ;;  %v2796_v32 = vadd.f32 0.2548296, %v2780_v44  ;;  %v11272_v24 = vld [vmem:[#allocation6_spill] sm:$0xff] }
 0x6ba   :  { %v2809_v17 = vmul.f32 %v9586_v14, %v2793_v12  ;;  %v2984_v61 = vmul.f32 %v2968_v42, %v2584_v22  ;;  %v7919_v14 = vpop.eup %7918  ;;  %vm2924_vm5 = vcmp.ge.f32.partialorder %v9553_v15, 0.0  ;;  %vm2923_vm6 = vcmp.ge.f32.partialorder %v9557_v46, 0.0  ;;  %v9644_v15 = vld [vmem:[%s11197_s2 + $0x6] ss:$0 sm:$0xff] }
 0x6bb   :  { %v2983_v54 = vmul.f32 %v2967_v16, %v2583_v45  ;;  %v2795_v48 = vadd.f32 0.2548296, %v2779_v3  ;;  %v2812_v50 = vmul.f32 %v9593_v49, %v2796_v32  ;;  %v2954_v6 = vsel %vm2922_vm3, %v2906_v59, %v2938_v60 }
 0x6bc   :  { %v2889_v38 = vmul.f32 %v7915_v28, %v2809_v17  ;;  %v2970_v13 = vadd.f32 1.0, %v2954_v6  ;;  %v2587_v56 = vmul.f32 0.5, %v9542_v21  ;;  %v2588_v19 = vmul.f32 0.5, %v9536_v35 }
 0x6bd   :  { %7306 = vmatprep.mubr.msk.f32.mxu0 %vm3001_vm7, %v2983_v54  ;;  %v2811_v20 = vmul.f32 %v9597_v55, %v2795_v48  ;;  %v2892_v30 = vmul.f32 %v7917_v34, %v2812_v50  ;;  %v11273_v34 = vld [vmem:[#allocation7_spill] sm:$0xff] }
 0x6be   :  { %v2905_v4 = vsub.f32 1.0, %v2889_v38  ;;  %7307 = vmatmul.mubr.msk.f32.gmra.mrb[26].mxu0 %vm3001_vm7, %v2984_v61  ;;  %v2986_v8 = vmul.f32 %v2970_v13, %v2586_v1  ;;  %v11274_v38 = vld [vmem:[#allocation8_spill] sm:$0xff]  ;;  %v11277_v1 = vld [vmem:[#allocation11_spill] sm:$0xff] }
 0x6bf   :  { %v2891_v0 = vmul.f32 %v7919_v14, %v2811_v20  ;;  %v2908_v57 = vsub.f32 1.0, %v2892_v30  ;;  %v11275_v20 = vld [vmem:[#allocation9_spill] sm:$0xff]  ;;  %v11276_v30 = vld [vmem:[#allocation10_spill] sm:$0xff] }
 0x6c0   :  { %v2937_v62 = vsub.f32 0.0, %v2905_v4 }
 0x6c1   :  { %v2907_v49 = vsub.f32 1.0, %v2891_v0  ;;  %v2940_v7 = vsub.f32 0.0, %v2908_v57 }
 0x6c2   :  { %v2953_v11 = vsel %vm2921_vm4, %v2905_v4, %v2937_v62 }
 0x6c3   :  { %v2969_v33 = vadd.f32 1.0, %v2953_v11  ;;  %v2939_v55 = vsub.f32 0.0, %v2907_v49  ;;  %v2956_v18 = vsel %vm2924_vm5, %v2908_v57, %v2940_v7 }
 0x6c4   :  { %v2972_v23 = vadd.f32 1.0, %v2956_v18 }
 0x6c5   :  { %v2985_v5 = vmul.f32 %v2969_v33, %v2585_v47  ;;  %v2955_v36 = vsel %vm2923_vm6, %v2907_v49, %v2939_v55 }
 0x6c6   :  { %v2971_v52 = vadd.f32 1.0, %v2955_v36  ;;  %v2988_v63 = vmul.f32 %v2972_v23, %v2588_v19  ;;  %v11279_v19 = vld [vmem:[#allocation13_spill] sm:$0xff] }
 0x6c7   :  { %7309 = vmatprep.mubr.msk.f32.mxu0 %vm3001_vm7, %v2985_v5  ;;  %v11278_v5 = vld [vmem:[#allocation12_spill] sm:$0xff] }
 0x6c8   :  { %7310 = vmatmul.mubr.msk.f32.gmra.mrb[28].mxu0 %vm3001_vm7, %v2986_v8  ;;  %v2987_v37 = vmul.f32 %v2971_v52, %v2587_v56 }
 0x6ca   :  { %7312 = vmatprep.mubr.msk.f32.mxu0 %vm3001_vm7, %v2987_v37 }
 0x6cc   :  { %7313 = vmatmul.mubr.msk.f32.gmra.mrb[30].mxu0 %vm3001_vm7, %v2988_v63  ;;  %v11280_v63 = vld [vmem:[#allocation14_spill] sm:$0xff] }
 0x759   :  { %v7293_v46 = vpop.f32.mrb[16].mxu0 }
 0x75a   :  { %v3122_v51 = vadd.f32 %v7293_v46, %v9644_v15  ;;  %v3116_v21 = vpop.f32.mrb[17].mxu0 }
 0x75b   :  { %v3117_v31 = vadd.f32 %v9644_v15, %v3116_v21 }
 0x75c   :  { %v9649_v28 = vadd.f32 %v3122_v51, %v9022_v39 }
 0x75d   :  { %v9652_v35 = vadd.f32 %v3117_v31, %v9025_v10  ;;  %v7296_v9 = vpop.f32.mrb[18].mxu0 }
 0x75e   :  { %v3132_v25 = vadd.f32 %v7296_v9, %v9644_v15  ;;  %v3126_v27 = vpop.f32.mrb[19].mxu0  ;;  %v3220_v40 = vsel %vm221_vm0, %v9649_v28, 0.0 }
 0x75f   :  { %v3127_v29 = vadd.f32 %v9644_v15, %v3126_v27  ;;  %3221 = vadd.xlane.f32.xlu1 %v3220_v40  ;;  %v3217_v26 = vsel %vm221_vm0, %v9652_v35, 0.0  ;;  %v11282_v40 = vld [vmem:[#allocation15_spill] sm:$0xff] }
 0x760   :  { %v9661_v2 = vadd.f32 %v3132_v25, %v9034_v41  ;;  %3218 = vadd.xlane.f32.xlu0 %v3217_v26  ;;  %v11271_v41 = vld [vmem:[#allocation5_spill] sm:$0xff]  ;;  %v11284_v26 = vld [vmem:[#allocation16_spill] sm:$0xff] }
 0x761   :  { %v9664_v39 = vadd.f32 %v3127_v29, %v9037_v43 }
 0x762   :  { %v3226_v10 = vsel %vm221_vm0, %v9661_v2, 0.0 }
 0x763   :  { %3227 = vadd.xlane.f32.xlu1 %v3226_v10  ;;  %v3223_v59 = vsel %vm221_vm0, %v9664_v39, 0.0 }
 0x764   :  { %3224 = vadd.xlane.f32.xlu0 %v3223_v59  ;;  %v7299_v12 = vpop.f32.mrb[20].mxu0 }
 0x765   :  { %v3142_v58 = vadd.f32 %v7299_v12, %v9644_v15  ;;  %v3136_v53 = vpop.f32.mrb[21].mxu0 }
 0x766   :  { %v3137_v42 = vadd.f32 %v9644_v15, %v3136_v53 }
 0x767   :  { %v9673_v45 = vadd.f32 %v3142_v58, %v11271_v41 }
 0x768   :  { %v9676_v43 = vadd.f32 %v3137_v42, %v11272_v24 }
 0x769   :  { %v3232_v16 = vsel %vm221_vm0, %v9673_v45, 0.0 }
 0x76a   :  { %3233 = vadd.xlane.f32.xlu1 %v3232_v16  ;;  %v3229_v17 = vsel %vm221_vm0, %v9676_v43, 0.0 }
 0x76b   :  { %3230 = vadd.xlane.f32.xlu0 %v3229_v17 }
 0x76c   :  { %v7302_v44 = vpop.f32.mrb[22].mxu0 }
 0x76d   :  { %v3152_v3 = vadd.f32 %v7302_v44, %v9644_v15  ;;  %v3146_v22 = vpop.f32.mrb[23].mxu0 }
 0x76e   :  { %v3147_v60 = vadd.f32 %v9644_v15, %v3146_v22 }
 0x76f   :  { %v9685_v54 = vadd.f32 %v3152_v3, %v11273_v34 }
 0x770   :  { %v9688_v32 = vadd.f32 %v3147_v60, %v11274_v38 }
 0x771   :  { %v3238_v61 = vsel %vm221_vm0, %v9685_v54, 0.0 }
 0x772   :  { %3239 = vadd.xlane.f32.xlu1 %v3238_v61  ;;  %v3235_v48 = vsel %vm221_vm0, %v9688_v32, 0.0 }
 0x773   :  { %3236 = vadd.xlane.f32.xlu0 %v3235_v48 }
 0x78c   :  { %v7305_v4 = vpop.f32.mrb[24].mxu0 }
 0x78d   :  { %v3162_v50 = vadd.f32 %v7305_v4, %v9644_v15  ;;  %v3156_v14 = vpop.f32.mrb[25].mxu0 }
 0x78e   :  { %v3157_v6 = vadd.f32 %v9644_v15, %v3156_v14 }
 0x78f   :  { %v9697_v62 = vadd.f32 %v3162_v50, %v11275_v20 }
 0x790   :  { %v9700_v0 = vadd.f32 %v3157_v6, %v11276_v30 }
 0x791   :  { %v3244_v13 = vsel %vm221_vm0, %v9697_v62, 0.0  ;;  %v7308_v57 = vpop.f32.mrb[26].mxu0 }
 0x792   :  { %3245 = vadd.xlane.f32.xlu1 %v3244_v13  ;;  %v3241_v11 = vsel %vm221_vm0, %v9700_v0, 0.0  ;;  %v3172_v47 = vadd.f32 %v7308_v57, %v9644_v15  ;;  %v3166_v33 = vpop.f32.mrb[27].mxu0 }
 0x793   :  { %3242 = vadd.xlane.f32.xlu0 %v3241_v11  ;;  %v3167_v49 = vadd.f32 %v9644_v15, %v3166_v33 }
 0x794   :  { %v9709_v7 = vadd.f32 %v3172_v47, %v11277_v1 }
 0x795   :  { %v9712_v55 = vadd.f32 %v3167_v49, %v11278_v5 }
 0x796   :  { %v3250_v8 = vsel %vm221_vm0, %v9709_v7, 0.0 }
 0x797   :  { %3251 = vadd.xlane.f32.xlu1 %v3250_v8  ;;  %v3247_v18 = vsel %vm221_vm0, %v9712_v55, 0.0 }
 0x798   :  { %3248 = vadd.xlane.f32.xlu0 %v3247_v18 }
 0x79b   :  { %v7311_v23 = vpop.f32.mrb[28].mxu0 }
 0x79c   :  { %v3182_v36 = vadd.f32 %v7311_v23, %v9644_v15  ;;  %v3176_v56 = vpop.f32.mrb[29].mxu0 }
 0x79d   :  { %v3177_v52 = vadd.f32 %v9644_v15, %v3176_v56 }
 0x79e   :  { %v9721_v37 = vadd.f32 %v3182_v36, %v11279_v19 }
 0x79f   :  { %v9724_v46 = vadd.f32 %v3177_v52, %v11280_v63  ;;  %v7314_v51 = vpop.f32.mrb[30].mxu0 }
 0x7a0   :  { %v3256_v21 = vsel %vm221_vm0, %v9721_v37, 0.0  ;;  %v3192_v31 = vadd.f32 %v7314_v51, %v9644_v15  ;;  %v3186_v9 = vpop.f32.mrb[31].mxu0 }
 0x7a1   :  { %11281 = vst [vmem:[#allocation17_spill] sm:$0xff] %v9724_v46  ;;  %3257 = vadd.xlane.f32.xlu1 %v3256_v21  ;;  %v3253_v25 = vsel %vm221_vm0, %v9724_v46, 0.0  ;;  %v3187_v27 = vadd.f32 %v9644_v15, %v3186_v9 }
 0x7a2   :  { %3254 = vadd.xlane.f32.xlu0 %v3253_v25  ;;  %v9733_v29 = vadd.f32 %v3192_v31, %v11282_v40 }
 0x7a3   :  { %v9736_v10 = vadd.f32 %v3187_v27, %v11284_v26 }
 0x7a4   :  { %11283 = vst [vmem:[#allocation5_spill] sm:$0xff] %v9733_v29  ;;  %v3262_v59 = vsel %vm221_vm0, %v9733_v29, 0.0 }
 0x7a5   :  { %11285 = vst [vmem:[#allocation6_spill] sm:$0xff] %v9736_v10  ;;  %3263 = vadd.xlane.f32.xlu1 %v3262_v59  ;;  %v3259_v12 = vsel %vm221_vm0, %v9736_v10, 0.0 }
 0x7a6   :  { %3260 = vadd.xlane.f32.xlu0 %v3259_v12 }
 0x7ec   :  { %v3222_v58 = vpop.xlane.xlu1 %3221 }
 0x7ed   :  { %v3266_v53 = vmul.f32 0.03125, %v3222_v58  ;;  %v3219_v42 = vpop.xlane.xlu0 %3218 }
 0x7ee   :  { %v3265_v41 = vmul.f32 0.03125, %v3219_v42 }
 0x7ef   :  { %v9743_v15 = vsub.f32 %v9649_v28, %v3266_v53 }
 0x7f0   :  { %v9746_v24 = vsub.f32 %v9652_v35, %v3265_v41  ;;  %v3228_v16 = vpop.xlane.xlu1 %3227 }
 0x7f1   :  { %v3268_v17 = vmul.f32 0.03125, %v3228_v16  ;;  %v3225_v44 = vpop.xlane.xlu0 %3224  ;;  %v3298_v3 = vmul.f32 %v9743_v15, %v9743_v15 }
 0x7f2   :  { %v3267_v22 = vmul.f32 0.03125, %v3225_v44  ;;  %v3297_v60 = vmul.f32 %v9746_v24, %v9746_v24 }
 0x7f3   :  { %v9753_v34 = vsub.f32 %v9661_v2, %v3268_v17  ;;  %v3316_v38 = vsel %vm221_vm0, %v3298_v3, 0.0 }
 0x7f4   :  { %v9757_v61 = vsub.f32 %v9664_v39, %v3267_v22  ;;  %3317 = vadd.xlane.f32.xlu1 %v3316_v38  ;;  %v3313_v48 = vsel %vm221_vm0, %v3297_v60, 0.0 }
 0x7f5   :  { %3314 = vadd.xlane.f32.xlu0 %v3313_v48  ;;  %v3300_v4 = vmul.f32 %v9753_v34, %v9753_v34 }
 0x7f6   :  { %v3299_v50 = vmul.f32 %v9757_v61, %v9757_v61 }
 0x7f7   :  { %v3322_v14 = vsel %vm221_vm0, %v3300_v4, 0.0  ;;  %v3234_v6 = vpop.xlane.xlu1 %3233 }
 0x7f8   :  { %3323 = vadd.xlane.f32.xlu1 %v3322_v14  ;;  %v3319_v20 = vsel %vm221_vm0, %v3299_v50, 0.0  ;;  %v3270_v30 = vmul.f32 0.03125, %v3234_v6  ;;  %v3231_v13 = vpop.xlane.xlu0 %3230 }
 0x7f9   :  { %3320 = vadd.xlane.f32.xlu0 %v3319_v20  ;;  %v3269_v11 = vmul.f32 0.03125, %v3231_v13 }
 0x7fa   :  { %v9767_v57 = vsub.f32 %v9673_v45, %v3270_v30 }
 0x7fb   :  { %v9770_v47 = vsub.f32 %v9676_v43, %v3269_v11 }
 0x7fc   :  { %v3302_v33 = vmul.f32 %v9767_v57, %v9767_v57 }
 0x7fd   :  { %v3301_v49 = vmul.f32 %v9770_v47, %v9770_v47 }
 0x7fe   :  { %v3328_v1 = vsel %vm221_vm0, %v3302_v33, 0.0 }
 0x7ff   :  { %v3240_v5 = vpop.xlane.xlu1 %3239  ;;  %3329 = vadd.xlane.f32.xlu1 %v3328_v1  ;;  %v3325_v8 = vsel %vm221_vm0, %v3301_v49, 0.0 }
 0x800   :  { %v3272_v18 = vmul.f32 0.03125, %v3240_v5  ;;  %v3237_v23 = vpop.xlane.xlu0 %3236  ;;  %3326 = vadd.xlane.f32.xlu0 %v3325_v8 }
 0x801   :  { %v3271_v36 = vmul.f32 0.03125, %v3237_v23 }
 0x802   :  { %v9779_v56 = vsub.f32 %v9685_v54, %v3272_v18 }
 0x803   :  { %v9782_v52 = vsub.f32 %v9688_v32, %v3271_v36 }
 0x804   :  { %v3304_v19 = vmul.f32 %v9779_v56, %v9779_v56 }
 0x805   :  { %v3303_v63 = vmul.f32 %v9782_v52, %v9782_v52 }
 0x806   :  { %v3334_v51 = vsel %vm221_vm0, %v3304_v19, 0.0 }
 0x807   :  { %3335 = vadd.xlane.f32.xlu1 %v3334_v51  ;;  %v3331_v21 = vsel %vm221_vm0, %v3303_v63, 0.0 }
 0x808   :  { %3332 = vadd.xlane.f32.xlu0 %v3331_v21 }
 0x81f   :  { %v3246_v31 = vpop.xlane.xlu1 %3245 }
 0x820   :  { %v3274_v9 = vmul.f32 0.03125, %v3246_v31  ;;  %v3243_v25 = vpop.xlane.xlu0 %3242  ;;  %v9841_v31 = vld [vmem:[%s11198_s3 + $0x10] sm:$0xff] }
 0x821   :  { %v3273_v27 = vmul.f32 0.03125, %v3243_v25  ;;  %7319 = vmatprep.mubr.msk.f32.mxu0 %vm475_vm1, %v9841_v31  ;;  %7326 = vmatprep.mubr.msk.f32.mxu1 %vm475_vm1, %v9841_v31 }
 0x822   :  { %v9791_v40 = vsub.f32 %v9697_v62, %v3274_v9 }
 0x823   :  { %v9794_v26 = vsub.f32 %v9700_v0, %v3273_v27 }
 0x824   :  { %v3306_v59 = vmul.f32 %v9791_v40, %v9791_v40  ;;  %v3252_v42 = vpop.xlane.xlu1 %3251 }
 0x825   :  { %v3305_v12 = vmul.f32 %v9794_v26, %v9794_v26  ;;  %v3276_v41 = vmul.f32 0.03125, %v3252_v42  ;;  %v3249_v16 = vpop.xlane.xlu0 %3248 }
 0x826   :  { %v3340_v58 = vsel %vm221_vm0, %v3306_v59, 0.0  ;;  %v3275_v17 = vmul.f32 0.03125, %v3249_v16 }
 0x827   :  { %3341 = vadd.xlane.f32.xlu1 %v3340_v58  ;;  %v3337_v53 = vsel %vm221_vm0, %v3305_v12, 0.0  ;;  %v9803_v44 = vsub.f32 %v9709_v7, %v3276_v41 }
 0x828   :  { %3338 = vadd.xlane.f32.xlu0 %v3337_v53  ;;  %v9806_v3 = vsub.f32 %v9712_v55, %v3275_v17 }
 0x829   :  { %v3308_v22 = vmul.f32 %v9803_v44, %v9803_v44 }
 0x82a   :  { %v3307_v60 = vmul.f32 %v9806_v3, %v9806_v3 }
 0x82b   :  { %v3346_v38 = vsel %vm221_vm0, %v3308_v22, 0.0 }
 0x82c   :  { %3347 = vadd.xlane.f32.xlu1 %v3346_v38  ;;  %v3343_v48 = vsel %vm221_vm0, %v3307_v60, 0.0 }
 0x82d   :  { %3344 = vadd.xlane.f32.xlu0 %v3343_v48 }
 0x82e   :  { %v3258_v4 = vpop.xlane.xlu1 %3257 }
 0x82f   :  { %v3278_v50 = vmul.f32 0.03125, %v3258_v4  ;;  %v3255_v14 = vpop.xlane.xlu0 %3254 }
 0x830   :  { %v3277_v6 = vmul.f32 0.03125, %v3255_v14 }
 0x831   :  { %v9815_v20 = vsub.f32 %v9721_v37, %v3278_v50 }
 0x832   :  { %v9818_v30 = vsub.f32 %v9724_v46, %v3277_v6  ;;  %v3264_v13 = vpop.xlane.xlu1 %3263  ;;  %v9850_v6 = vld [vmem:[%s11197_s2 + $0x7] ss:$0 sm:$0xff] }
 0x833   :  { %v3310_v11 = vmul.f32 %v9815_v20, %v9815_v20  ;;  %v3280_v33 = vmul.f32 0.03125, %v3264_v13  ;;  %v3261_v49 = vpop.xlane.xlu0 %3260 }
 0x834   :  { %v3309_v1 = vmul.f32 %v9818_v30, %v9818_v30  ;;  %v3279_v5 = vmul.f32 0.03125, %v3261_v49  ;;  %v9856_v49 = vld [vmem:[%s11197_s2 + $0x8] ss:$0 sm:$0xff] }
 0x835   :  { %v3352_v8 = vsel %vm221_vm0, %v3310_v11, 0.0  ;;  %v9826_v18 = vsub.f32 %v9733_v29, %v3280_v33 }
 0x836   :  { %3353 = vadd.xlane.f32.xlu1 %v3352_v8  ;;  %v3349_v23 = vsel %vm221_vm0, %v3309_v1, 0.0  ;;  %v9830_v36 = vsub.f32 %v9736_v10, %v3279_v5 }
 0x837   :  { %3350 = vadd.xlane.f32.xlu0 %v3349_v23  ;;  %v3312_v19 = vmul.f32 %v9826_v18, %v9826_v18 }
 0x838   :  { %v3311_v63 = vmul.f32 %v9830_v36, %v9830_v36 }
 0x839   :  { %v3358_v51 = vsel %vm221_vm0, %v3312_v19, 0.0 }
 0x83a   :  { %3359 = vadd.xlane.f32.xlu1 %v3358_v51  ;;  %v3355_v21 = vsel %vm221_vm0, %v3311_v63, 0.0 }
 0x83b   :  { %3356 = vadd.xlane.f32.xlu0 %v3355_v21 }
 0x881   :  { %v3318_v9 = vpop.xlane.xlu1 %3317 }
 0x882   :  { %v3362_v25 = vmul.f32 0.03125, %v3318_v9  ;;  %v3315_v27 = vpop.xlane.xlu0 %3314 }
 0x883   :  { %v3361_v59 = vmul.f32 0.03125, %v3315_v27 }
 0x884   :  { %v3378_v12 = vadd.f32 1e-05, %v3362_v25 }
 0x885   :  { %v3377_v58 = vadd.f32 1e-05, %v3361_v59  ;;  %v3324_v53 = vpop.xlane.xlu1 %3323 }
 0x886   :  { %7920 = vrsqrt.f32 %v3378_v12  ;;  %v3364_v42 = vmul.f32 0.03125, %v3324_v53  ;;  %v3321_v41 = vpop.xlane.xlu0 %3320 }
 0x887   :  { %7922 = vrsqrt.f32 %v3377_v58  ;;  %v3363_v16 = vmul.f32 0.03125, %v3321_v41 }
 0x888   :  { %v3380_v17 = vadd.f32 1e-05, %v3364_v42 }
 0x889   :  { %v3379_v22 = vadd.f32 1e-05, %v3363_v16 }
 0x88a   :  { %7924 = vrsqrt.f32 %v3380_v17 }
 0x88b   :  { %7926 = vrsqrt.f32 %v3379_v22 }
 0x88c   :  { %v3330_v60 = vpop.xlane.xlu1 %3329 }
 0x88d   :  { %v3366_v38 = vmul.f32 0.03125, %v3330_v60  ;;  %v3327_v48 = vpop.xlane.xlu0 %3326 }
 0x88e   :  { %v3365_v4 = vmul.f32 0.03125, %v3327_v48 }
 0x88f   :  { %v3382_v14 = vadd.f32 1e-05, %v3366_v38 }
 0x890   :  { %v7921_v50 = vpop.eup %7920  ;;  %v3381_v11 = vadd.f32 1e-05, %v3365_v4 }
 0x891   :  { %v7923_v13 = vpop.eup %7922  ;;  %v3410_v33 = vmul.f32 %v7921_v50, %v9743_v15  ;;  %7928 = vrsqrt.f32 %v3382_v14 }
 0x892   :  { %v3409_v1 = vmul.f32 %v7923_v13, %v9746_v24  ;;  %7930 = vrsqrt.f32 %v3381_v11 }
 0x893   :  { %v3430_v5 = vmul.f32 %v9850_v6, %v3410_v33 }
 0x894   :  { %v7925_v8 = vpop.eup %7924  ;;  %v3429_v23 = vmul.f32 %v9850_v6, %v3409_v1  ;;  %v3336_v63 = vpop.xlane.xlu1 %3335 }
 0x895   :  { %v7927_v19 = vpop.eup %7926  ;;  %v3450_v51 = vadd.f32 %v9856_v49, %v3430_v5  ;;  %v3412_v15 = vmul.f32 %v7925_v8, %v9753_v34  ;;  %v3368_v21 = vmul.f32 0.03125, %v3336_v63  ;;  %v3333_v9 = vpop.xlane.xlu0 %3332 }
 0x896   :  { %v3449_v25 = vadd.f32 %v9856_v49, %v3429_v23  ;;  %v3411_v27 = vmul.f32 %v7927_v19, %v9757_v61  ;;  %v3367_v59 = vmul.f32 0.03125, %v3333_v9  ;;  %v9872_v61 = vld [vmem:[%s11198_s3 + $0x18] sm:$0xff] }
 0x897   :  { %v3432_v24 = vmul.f32 %v9850_v6, %v3412_v15  ;;  %v3384_v12 = vadd.f32 1e-05, %v3368_v21 }
 0x898   :  { %v7630_v58 = vpack.c.bf16 %v3450_v51, %v3449_v25  ;;  %v3431_v53 = vmul.f32 %v9850_v6, %v3411_v27  ;;  %v3383_v42 = vadd.f32 1e-05, %v3367_v59 }
 0x899   :  { %v3452_v41 = vadd.f32 %v9856_v49, %v3432_v24  ;;  %7932 = vrsqrt.f32 %v3384_v12 }
 0x89a   :  { %7631 = vmatprep.subr.bf16.mxu0 %v7630_v58  ;;  %v3451_v34 = vadd.f32 %v9856_v49, %v3431_v53  ;;  %7934 = vrsqrt.f32 %v3383_v42 }
 0x89b   :  { %7633 = vmatpush3.bf16.msra.mxu0 %v7630_v58  ;;  %v7929_v16 = vpop.eup %7928 }
 0x89c   :  { %v7634_v17 = vpack.c.bf16 %v3452_v41, %v3451_v34  ;;  %v7931_v22 = vpop.eup %7930  ;;  %v3414_v60 = vmul.f32 %v7929_v16, %v9767_v57 }
 0x89d   :  { %v3413_v38 = vmul.f32 %v7931_v22, %v9770_v47 }
 0x89e   :  { %7320 = vmatmul.mubr.msk.f32.vlgmr.msra.gmra.mrb[32].mxu0 %vm475_vm1, %v9872_v61  ;;  %7635 = vmatprep.subr.bf16.mxu1 %v7634_v17  ;;  %v3434_v48 = vmul.f32 %v9850_v6, %v3414_v60 }
 0x89f   :  { %7637 = vmatpush3.bf16.msra.mxu1 %v7634_v17  ;;  %7340 = vmatprep.mubr.msk.f32.mxu0 %vm475_vm1, %v9841_v31  ;;  %v3433_v4 = vmul.f32 %v9850_v6, %v3413_v38 }
 0x8a0   :  { %v3454_v50 = vadd.f32 %v9856_v49, %v3434_v48 }
 0x8a1   :  { %v3453_v57 = vadd.f32 %v9856_v49, %v3433_v4 }
 0x8a2   :  { %7327 = vmatmul.mubr.msk.f32.vlgmr.msra.gmra.mrb[48].mxu1 %vm475_vm1, %v9872_v61 }
 0x8a3   :  { %7333 = vmatprep.mubr.msk.f32.mxu1 %vm475_vm1, %v9841_v31  ;;  %v7933_v14 = vpop.eup %7932  ;;  %v7638_v47 = vpack.c.bf16 %v3454_v50, %v3453_v57 }
 0x8a4   :  { %v7935_v13 = vpop.eup %7934  ;;  %v3416_v11 = vmul.f32 %v7933_v14, %v9779_v56 }
 0x8a5   :  { %7639 = vmatprep.subr.bf16.mxu1 %v7638_v47  ;;  %v3415_v33 = vmul.f32 %v7935_v13, %v9782_v52 }
 0x8a6   :  { %7641 = vmatpush3.bf16.msra.mxu1 %v7638_v47  ;;  %v3436_v1 = vmul.f32 %v9850_v6, %v3416_v11 }
 0x8a7   :  { %v3435_v5 = vmul.f32 %v9850_v6, %v3415_v33 }
 0x8a8   :  { %v3456_v8 = vadd.f32 %v9856_v49, %v3436_v1 }
 0x8a9   :  { %7334 = vmatmul.mubr.msk.f32.vlgmr.msra.gmra.mrb[50].mxu1 %vm475_vm1, %v9872_v61  ;;  %v3455_v23 = vadd.f32 %v9856_v49, %v3435_v5 }
 0x8aa   :  { %7347 = vmatprep.mubr.msk.f32.mxu1 %vm475_vm1, %v9841_v31 }
 0x8ab   :  { %v7642_v19 = vpack.c.bf16 %v3456_v8, %v3455_v23 }
 0x8ad   :  { %7643 = vmatprep.subr.bf16.mxu0 %v7642_v19 }
 0x8ae   :  { %7645 = vmatpush3.bf16.msra.mxu0 %v7642_v19 }
 0x8b1   :  { %7341 = vmatmul.mubr.msk.f32.vlgmr.msra.gmra.mrb[34].mxu0 %vm475_vm1, %v9872_v61 }
 0x8b2   :  { %7354 = vmatprep.mubr.msk.f32.mxu0 %vm475_vm1, %v9841_v31 }
 0x8b4   :  { %v3342_v56 = vpop.xlane.xlu1 %3341 }
 0x8b5   :  { %v3370_v52 = vmul.f32 0.03125, %v3342_v56  ;;  %v3339_v63 = vpop.xlane.xlu0 %3338 }
 0x8b6   :  { %v3369_v51 = vmul.f32 0.03125, %v3339_v63 }
 0x8b7   :  { %v3386_v15 = vadd.f32 1e-05, %v3370_v52 }
 0x8b8   :  { %v3385_v21 = vadd.f32 1e-05, %v3369_v51 }
 0x8b9   :  { %7936 = vrsqrt.f32 %v3386_v15  ;;  %v3348_v9 = vpop.xlane.xlu1 %3347 }
 0x8ba   :  { %7938 = vrsqrt.f32 %v3385_v21  ;;  %v3372_v25 = vmul.f32 0.03125, %v3348_v9  ;;  %v3345_v27 = vpop.xlane.xlu0 %3344 }
 0x8bb   :  { %v3371_v59 = vmul.f32 0.03125, %v3345_v27 }
 0x8bc   :  { %v3388_v24 = vadd.f32 1e-05, %v3372_v25 }
 0x8bd   :  { %v3387_v12 = vadd.f32 1e-05, %v3371_v59 }
 0x8be   :  { %7940 = vrsqrt.f32 %v3388_v24 }
 0x8bf   :  { %7942 = vrsqrt.f32 %v3387_v12 }
 0x8c3   :  { %v7937_v58 = vpop.eup %7936  ;;  %v3354_v34 = vpop.xlane.xlu1 %3353 }
 0x8c4   :  { %v7939_v53 = vpop.eup %7938  ;;  %v3418_v42 = vmul.f32 %v7937_v58, %v9791_v40  ;;  %v3374_v17 = vmul.f32 0.03125, %v3354_v34  ;;  %v3351_v22 = vpop.xlane.xlu0 %3350 }
 0x8c5   :  { %v3417_v41 = vmul.f32 %v7939_v53, %v9794_v26  ;;  %v3373_v38 = vmul.f32 0.03125, %v3351_v22 }
 0x8c6   :  { %v3438_v16 = vmul.f32 %v9850_v6, %v3418_v42  ;;  %v3390_v4 = vadd.f32 1e-05, %v3374_v17 }
 0x8c7   :  { %v3437_v60 = vmul.f32 %v9850_v6, %v3417_v41  ;;  %v3389_v57 = vadd.f32 1e-05, %v3373_v38  ;;  %v3360_v14 = vpop.xlane.xlu1 %3359 }
 0x8c8   :  { %v3458_v48 = vadd.f32 %v9856_v49, %v3438_v16  ;;  %7944 = vrsqrt.f32 %v3390_v4  ;;  %v7941_v40 = vpop.eup %7940  ;;  %v3376_v26 = vmul.f32 0.03125, %v3360_v14  ;;  %v3357_v13 = vpop.xlane.xlu0 %3356 }
 0x8c9   :  { %v3457_v50 = vadd.f32 %v9856_v49, %v3437_v60  ;;  %7946 = vrsqrt.f32 %v3389_v57  ;;  %v7943_v11 = vpop.eup %7942  ;;  %v3375_v33 = vmul.f32 0.03125, %v3357_v13  ;;  %v3420_v1 = vmul.f32 %v7941_v40, %v9803_v44 }
 0x8ca   :  { %v3392_v5 = vadd.f32 1e-05, %v3376_v26  ;;  %v3419_v8 = vmul.f32 %v7943_v11, %v9806_v3 }
 0x8cb   :  { %v7646_v47 = vpack.c.bf16 %v3458_v48, %v3457_v50  ;;  %v3391_v23 = vadd.f32 1e-05, %v3375_v33  ;;  %v3440_v19 = vmul.f32 %v9850_v6, %v3420_v1 }
 0x8cc   :  { %7948 = vrsqrt.f32 %v3392_v5  ;;  %v3439_v56 = vmul.f32 %v9850_v6, %v3419_v8 }
 0x8cd   :  { %7647 = vmatprep.subr.bf16.mxu1 %v7646_v47  ;;  %7950 = vrsqrt.f32 %v3391_v23  ;;  %v3460_v52 = vadd.f32 %v9856_v49, %v3440_v19 }
 0x8ce   :  { %7649 = vmatpush3.bf16.msra.mxu1 %v7646_v47  ;;  %v3459_v63 = vadd.f32 %v9856_v49, %v3439_v56 }
 0x8d0   :  { %v7650_v44 = vpack.c.bf16 %v3460_v52, %v3459_v63 }
 0x8d1   :  { %7348 = vmatmul.mubr.msk.f32.vlgmr.msra.gmra.mrb[52].mxu1 %vm475_vm1, %v9872_v61 }
 0x8d2   :  { %7361 = vmatprep.mubr.msk.f32.mxu1 %vm475_vm1, %v9841_v31  ;;  %v7945_v51 = vpop.eup %7944  ;;  %7651 = vmatprep.subr.bf16.mxu0 %v7650_v44 }
 0x8d3   :  { %v7947_v3 = vpop.eup %7946  ;;  %v3422_v15 = vmul.f32 %v7945_v51, %v9815_v20  ;;  %7653 = vmatpush3.bf16.msra.mxu0 %v7650_v44 }
 0x8d4   :  { %v3421_v21 = vmul.f32 %v7947_v3, %v9818_v30 }
 0x8d5   :  { %v3442_v9 = vmul.f32 %v9850_v6, %v3422_v15 }
 0x8d6   :  { %v3441_v25 = vmul.f32 %v9850_v6, %v3421_v21  ;;  %v7949_v27 = vpop.eup %7948  ;;  %7355 = vmatmul.mubr.msk.f32.vlgmr.msra.gmra.mrb[36].mxu0 %vm475_vm1, %v9872_v61 }
 0x8d7   :  { %v3462_v59 = vadd.f32 %v9856_v49, %v3442_v9  ;;  %v7951_v24 = vpop.eup %7950  ;;  %v3424_v58 = vmul.f32 %v7949_v27, %v9826_v18  ;;  %7368 = vmatprep.mubr.msk.f32.mxu0 %vm475_vm1, %v9841_v31  ;;  %v9941_v18 = vld [vmem:[%s11199_s4 + $0x10] sm:$0xff]  ;;  %v9955_v31 = vld [vmem:[%s11200_s5 + $0x20] sm:$0xff] }
 0x8d8   :  { %v3461_v12 = vadd.f32 %v9856_v49, %v3441_v25  ;;  %v3423_v20 = vmul.f32 %v7951_v24, %v9830_v36  ;;  %v9950_v36 = vld [vmem:[%s11200_s5 + $0x28] sm:$0xff] }
 0x8d9   :  { %v3444_v53 = vmul.f32 %v9850_v6, %v3424_v58 }
 0x8da   :  { %v7654_v30 = vpack.c.bf16 %v3462_v59, %v3461_v12  ;;  %v3443_v42 = vmul.f32 %v9850_v6, %v3423_v20 }
 0x8db   :  { %v3464_v41 = vadd.f32 %v9856_v49, %v3444_v53 }
 0x8dc   :  { %7655 = vmatprep.subr.bf16.mxu1 %v7654_v30  ;;  %v3463_v34 = vadd.f32 %v9856_v49, %v3443_v42 }
 0x8dd   :  { %7657 = vmatpush3.bf16.msra.mxu1 %v7654_v30 }
 0x8de   :  { %v7658_v16 = vpack.c.bf16 %v3464_v41, %v3463_v34 }
 0x8e0   :  { %7362 = vmatmul.mubr.msk.f32.vlgmr.msra.gmra.mrb[54].mxu1 %vm475_vm1, %v9872_v61  ;;  %7659 = vmatprep.subr.bf16.mxu0 %v7658_v16 }
 0x8e1   :  { %7661 = vmatpush3.bf16.msra.mxu0 %v7658_v16  ;;  %7375 = vmatprep.mubr.msk.f32.mxu1 %vm475_vm1, %v9941_v18 }
 0x8e4   :  { %7369 = vmatmul.mubr.msk.f32.vlgmr.msra.gmra.mrb[38].mxu0 %vm475_vm1, %v9872_v61 }
 0x8e5   :  { %7382 = vmatprep.mubr.msk.f32.mxu0 %vm475_vm1, %v9941_v18 }
 0x971   :  { %v7321_v6 = vpop.f32.mrb[32].mxu0 }
 0x972   :  { %v3549_v49 = vadd.f32 %v7321_v6, %v9950_v36  ;;  %v3543_v61 = vpop.f32.mrb[33].mxu0 }
 0x973   :  { %v3544_v17 = vadd.f32 %v9955_v31, %v3543_v61 }
 0x974   :  { %v9959_v22 = vmul.f32 0.70710677, %v3549_v49 }
 0x975   :  { %v9961_v60 = vmul.f32 0.70710677, %v3544_v17  ;;  %v7328_v38 = vpop.f32.mrb[48].mxu1 }
 0x976   :  { %v4110_v48 = vand.u32 2147483647, %v9959_v22  ;;  %v9965_v4 = vadd.f32 %v7328_v38, %v9950_v36  ;;  %v3618_v50 = vpop.f32.mrb[49].mxu1  ;;  %vm4414_vm8 = vcmp.ge.f32.partialorder %v9959_v22, 0.0 }
 0x977   :  { %v4109_v57 = vand.u32 2147483647, %v9961_v60  ;;  %v9969_v14 = vadd.f32 %v9955_v31, %v3618_v50  ;;  %vm4413_vm9 = vcmp.ge.f32.partialorder %v9961_v60, 0.0 }
 0x978   :  { %v4126_v47 = vmul.f32 0.3275911, %v4110_v48  ;;  %v9972_v40 = vmul.f32 0.70710677, %v9965_v4  ;;  %v4318_v33 = vsub.f32 0.0, %v4110_v48 }
 0x979   :  { %v4125_v26 = vmul.f32 0.3275911, %v4109_v57  ;;  %v9975_v13 = vmul.f32 0.70710677, %v9969_v14  ;;  %v4317_v9 = vsub.f32 0.0, %v4109_v57 }
 0x97a   :  { %v4142_v11 = vadd.f32 1.0, %v4126_v47  ;;  %v4112_v1 = vand.u32 2147483647, %v9972_v40  ;;  %v4334_v52 = vmul.f32 %v4318_v33, %v4110_v48  ;;  %vm4416_vm10 = vcmp.ge.f32.partialorder %v9972_v40, 0.0 }
 0x97b   :  { %v4141_v5 = vadd.f32 1.0, %v4125_v26  ;;  %v4111_v8 = vand.u32 2147483647, %v9975_v13  ;;  %v4333_v20 = vmul.f32 %v4317_v9, %v4109_v57  ;;  %v10004_v57 = vmul.f32 0.5, %v3549_v49 }
 0x97c   :  { %7952 = vrcp.f32 %v4142_v11  ;;  %v4128_v23 = vmul.f32 0.3275911, %v4112_v1  ;;  %v7335_v56 = vpop.f32.mrb[50].mxu1  ;;  %v4351_v27 = vmul.f32 1.442695, %v4334_v52  ;;  %v4320_v24 = vsub.f32 0.0, %v4112_v1 }
 0x97d   :  { %7954 = vrcp.f32 %v4141_v5  ;;  %v4127_v19 = vmul.f32 0.3275911, %v4111_v8  ;;  %v9980_v44 = vadd.f32 %v7335_v56, %v9950_v36  ;;  %v3693_v51 = vpop.f32.mrb[51].mxu1  ;;  %v4319_v41 = vsub.f32 0.0, %v4111_v8 }
 0x97e   :  { %v4144_v63 = vadd.f32 1.0, %v4128_v23  ;;  %v9983_v15 = vadd.f32 %v9955_v31, %v3693_v51  ;;  %v4336_v48 = vmul.f32 %v4320_v24, %v4112_v1  ;;  %v10006_v26 = vmul.f32 0.5, %v3544_v17 }
 0x97f   :  { %v4143_v3 = vadd.f32 1.0, %v4127_v19  ;;  %v9986_v21 = vmul.f32 0.70710677, %v9980_v44  ;;  %v4349_v5 = vmul.f32 1.442695, %v4333_v20  ;;  %v4335_v56 = vmul.f32 %v4319_v41, %v4111_v8 }
 0x980   :  { %7956 = vrcp.f32 %v4144_v63  ;;  %v9989_v25 = vmul.f32 0.70710677, %v9983_v15  ;;  %vm4415_vm11 = vcmp.ge.f32.partialorder %v9975_v13, 0.0 }
 0x981   :  { %7958 = vrcp.f32 %v4143_v3  ;;  %v4114_v59 = vand.u32 2147483647, %v9986_v21  ;;  %v4355_v3 = vmul.f32 1.442695, %v4336_v48  ;;  %vm4418_vm12 = vcmp.ge.f32.partialorder %v9986_v21, 0.0 }
 0x982   :  { %v4113_v12 = vand.u32 2147483647, %v9989_v25  ;;  %7960 = vpow2.f32 %v4351_v27  ;;  %vm4417_vm13 = vcmp.ge.f32.partialorder %v9989_v25, 0.0 }
 0x983   :  { %v4130_v58 = vmul.f32 0.3275911, %v4114_v59  ;;  %v4322_v52 = vsub.f32 0.0, %v4114_v59 }
 0x984   :  { %v4129_v30 = vmul.f32 0.3275911, %v4113_v12  ;;  %v7342_v53 = vpop.f32.mrb[34].mxu0 }
 0x985   :  { %v4146_v34 = vadd.f32 1.0, %v4130_v58  ;;  %v9996_v16 = vadd.f32 %v7342_v53, %v9950_v36  ;;  %v3768_v6 = vpop.f32.mrb[35].mxu0  ;;  %v4321_v58 = vsub.f32 0.0, %v4113_v12 }
 0x986   :  { %v9993_v42 = vpop.eup %7952  ;;  %v4145_v50 = vadd.f32 1.0, %v4129_v30  ;;  %v10002_v47 = vadd.f32 %v9955_v31, %v3768_v6  ;;  %v4353_v6 = vmul.f32 1.442695, %v4335_v56 }
 0x987   :  { %v9998_v61 = vpop.eup %7954  ;;  %v4174_v38 = vmul.f32 1.0614054, %v9993_v42  ;;  %7962 = vrcp.f32 %v4146_v34  ;;  %v10010_v23 = vmul.f32 0.70710677, %v9996_v16 }
 0x988   :  { %v4173_v11 = vmul.f32 1.0614054, %v9998_v61  ;;  %7964 = vrcp.f32 %v4145_v50  ;;  %v10015_v63 = vmul.f32 0.70710677, %v10002_v47 }
 0x989   :  { %v4190_v33 = vadd.f32 -1.4531521, %v4174_v38  ;;  %v10022_v9 = vand.u32 2147483647, %v10010_v23  ;;  %7966 = vpow2.f32 %v4349_v5  ;;  %v4338_v38 = vmul.f32 %v4322_v52, %v4114_v59 }
 0x98a   :  { %v10012_v19 = vpop.eup %7956  ;;  %v4189_v1 = vadd.f32 -1.4531521, %v4173_v11  ;;  %v10027_v8 = vand.u32 2147483647, %v10015_v63  ;;  %7968 = vpow2.f32 %v4355_v3  ;;  %vm4420_vm14 = vcmp.ge.f32.partialorder %v10010_v23, 0.0 }
 0x98b   :  { %v10017_v49 = vpop.eup %7958  ;;  %v4206_v17 = vmul.f32 %v9993_v42, %v4190_v33  ;;  %v4176_v51 = vmul.f32 1.0614054, %v10012_v19  ;;  %v4132_v53 = vmul.f32 0.3275911, %v10022_v9  ;;  %vm4419_vm15 = vcmp.ge.f32.partialorder %v10015_v63, 0.0 }
 0x98c   :  { %v4205_v27 = vmul.f32 %v9998_v61, %v4189_v1  ;;  %v4175_v24 = vmul.f32 1.0614054, %v10017_v49  ;;  %v4131_v33 = vmul.f32 0.3275911, %v10027_v8  ;;  %v7961_v1 = vpop.eup %7960 }
 0x98d   :  { %v4222_v20 = vadd.f32 1.4214138, %v4206_v17  ;;  %v4192_v30 = vadd.f32 -1.4531521, %v4176_v51  ;;  %v4148_v11 = vadd.f32 1.0, %v4132_v53  ;;  %v4337_v17 = vmul.f32 %v4321_v58, %v4113_v12 }
 0x98e   :  { %v4221_v41 = vadd.f32 1.4214138, %v4205_v27  ;;  %v4191_v34 = vadd.f32 -1.4531521, %v4175_v24  ;;  %v4147_v27 = vadd.f32 1.0, %v4131_v33 }
 0x98f   :  { %v4238_v48 = vmul.f32 %v9993_v42, %v4222_v20  ;;  %v4208_v50 = vmul.f32 %v10012_v19, %v4192_v30  ;;  %7970 = vrcp.f32 %v4148_v11  ;;  %v4359_v24 = vmul.f32 1.442695, %v4338_v38 }
 0x990   :  { %v4237_v10 = vmul.f32 %v9998_v61, %v4221_v41  ;;  %v4207_v5 = vmul.f32 %v10017_v49, %v4191_v34  ;;  %7972 = vpow2.f32 %v4353_v6  ;;  %v4357_v34 = vmul.f32 1.442695, %v4337_v17 }
 0x991   :  { %v4254_v51 = vadd.f32 -0.28449672, %v4238_v48  ;;  %v4224_v29 = vadd.f32 1.4214138, %v4208_v50  ;;  %v10035_v56 = vpop.eup %7962  ;;  %7974 = vrcp.f32 %v4147_v27  ;;  %v4324_v27 = vsub.f32 0.0, %v10022_v9 }
 0x992   :  { %v4253_v59 = vadd.f32 -0.28449672, %v4237_v10  ;;  %v4223_v52 = vadd.f32 1.4214138, %v4207_v5  ;;  %v10037_v20 = vpop.eup %7964  ;;  %v4178_v3 = vmul.f32 1.0614054, %v10035_v56  ;;  %7976 = vpow2.f32 %v4359_v24 }
 0x993   :  { %v4270_v30 = vmul.f32 %v9993_v42, %v4254_v51  ;;  %v4240_v53 = vmul.f32 %v10012_v19, %v4224_v29  ;;  %v4177_v41 = vmul.f32 1.0614054, %v10037_v20  ;;  %v7967_v33 = vpop.eup %7966  ;;  %7978 = vpow2.f32 %v4357_v34 }
 0x994   :  { %v4269_v12 = vmul.f32 %v9998_v61, %v4253_v59  ;;  %v4239_v58 = vmul.f32 %v10017_v49, %v4223_v52  ;;  %v4194_v6 = vadd.f32 -1.4531521, %v4178_v3  ;;  %v4340_v24 = vmul.f32 %v4324_v27, %v10022_v9 }
 0x995   :  { %v4286_v10 = vadd.f32 0.2548296, %v4270_v30  ;;  %v4256_v48 = vadd.f32 -0.28449672, %v4240_v53  ;;  %v4193_v11 = vadd.f32 -1.4531521, %v4177_v41 }
 0x996   :  { %v4285_v38 = vadd.f32 0.2548296, %v4269_v12  ;;  %v4255_v50 = vadd.f32 -0.28449672, %v4239_v58  ;;  %v4210_v51 = vmul.f32 %v10035_v56, %v4194_v6  ;;  %v7969_v12 = vpop.eup %7968 }
 0x997   :  { %v4302_v29 = vmul.f32 %v9993_v42, %v4286_v10  ;;  %v4272_v5 = vmul.f32 %v10012_v19, %v4256_v48  ;;  %v4209_v52 = vmul.f32 %v10037_v20, %v4193_v11  ;;  %v4323_v10 = vsub.f32 0.0, %v10027_v8 }
 0x998   :  { %v4301_v59 = vmul.f32 %v9998_v61, %v4285_v38  ;;  %v4271_v17 = vmul.f32 %v10017_v49, %v4255_v50  ;;  %v4226_v3 = vadd.f32 1.4214138, %v4210_v51 }
 0x999   :  { %v4382_v30 = vmul.f32 %v7961_v1, %v4302_v29  ;;  %v4288_v53 = vadd.f32 0.2548296, %v4272_v5  ;;  %v4225_v41 = vadd.f32 1.4214138, %v4209_v52  ;;  %v10054_v48 = vpop.eup %7970 }
 0x99a   :  { %v4381_v58 = vmul.f32 %v7967_v33, %v4301_v59  ;;  %v4287_v42 = vadd.f32 0.2548296, %v4271_v17  ;;  %v4242_v38 = vmul.f32 %v10035_v56, %v4226_v3  ;;  %v7973_v50 = vpop.eup %7972  ;;  %v4180_v33 = vmul.f32 1.0614054, %v10054_v48 }
 0x99b   :  { %v4398_v6 = vsub.f32 1.0, %v4382_v30  ;;  %v4304_v61 = vmul.f32 %v10012_v19, %v4288_v53  ;;  %v4241_v34 = vmul.f32 %v10037_v20, %v4225_v41  ;;  %v10062_v29 = vpop.eup %7974  ;;  %v4339_v53 = vmul.f32 %v4323_v10, %v10027_v8 }
 0x99c   :  { %v4397_v1 = vsub.f32 1.0, %v4381_v58  ;;  %v4303_v11 = vmul.f32 %v10017_v49, %v4287_v42  ;;  %v4258_v59 = vadd.f32 -0.28449672, %v4242_v38  ;;  %v4196_v30 = vadd.f32 -1.4531521, %v4180_v33  ;;  %v7977_v22 = vpop.eup %7976 }
 0x99d   :  { %v4430_v5 = vsub.f32 0.0, %v4398_v6  ;;  %v4384_v51 = vmul.f32 %v7969_v12, %v4304_v61  ;;  %v4257_v52 = vadd.f32 -0.28449672, %v4241_v34  ;;  %v4179_v27 = vmul.f32 1.0614054, %v10062_v29  ;;  %v7979_v33 = vpop.eup %7978 }
 0x99e   :  { %v4429_v19 = vsub.f32 0.0, %v4397_v1  ;;  %v4383_v17 = vmul.f32 %v7973_v50, %v4303_v11  ;;  %v4274_v49 = vmul.f32 %v10035_v56, %v4258_v59  ;;  %v4363_v12 = vmul.f32 1.442695, %v4340_v24 }
 0x99f   :  { %v4446_v9 = vsel %vm4414_vm8, %v4398_v6, %v4430_v5  ;;  %v4273_v60 = vmul.f32 %v10037_v20, %v4257_v52  ;;  %v4400_v41 = vsub.f32 1.0, %v4384_v51  ;;  %v4212_v38 = vmul.f32 %v10054_v48, %v4196_v30 }
 0x9a0   :  { %v4462_v3 = vadd.f32 1.0, %v4446_v9  ;;  %v4445_v58 = vsel %vm4413_vm9, %v4397_v1, %v4429_v19  ;;  %v4290_v61 = vadd.f32 0.2548296, %v4274_v49  ;;  %v4399_v50 = vsub.f32 1.0, %v4383_v17 }
 0x9a1   :  { %v4461_v42 = vadd.f32 1.0, %v4445_v58  ;;  %v4289_v11 = vadd.f32 0.2548296, %v4273_v60  ;;  %v4195_v34 = vadd.f32 -1.4531521, %v4179_v27  ;;  %7980 = vpow2.f32 %v4363_v12  ;;  %v10094_v12 = vld [vmem:[%s11199_s4 + $0x18] sm:$0xff] }
 0x9a2   :  { %v4478_v6 = vmul.f32 %v4462_v3, %v10004_v57  ;;  %v4306_v10 = vmul.f32 %v10035_v56, %v4290_v61  ;;  %v4228_v1 = vadd.f32 1.4214138, %v4212_v38  ;;  %v4361_v51 = vmul.f32 1.442695, %v4339_v53 }
 0x9a3   :  { %v4477_v8 = vmul.f32 %v4461_v42, %v10006_v26  ;;  %v4305_v24 = vmul.f32 %v10037_v20, %v4289_v11  ;;  %v4211_v5 = vmul.f32 %v10062_v29, %v4195_v34  ;;  %v4432_v59 = vsub.f32 0.0, %v4400_v41 }
 0x9a4   :  { %v4386_v19 = vmul.f32 %v7977_v22, %v4306_v10  ;;  %v4244_v57 = vmul.f32 %v10054_v48, %v4228_v1  ;;  %v7349_v17 = vpop.f32.mrb[52].mxu1  ;;  %v4431_v30 = vsub.f32 0.0, %v4399_v50  ;;  %7982 = vpow2.f32 %v4361_v51 }
 0x9a5   :  { %v7662_v52 = vpack.c.bf16 %v4478_v6, %v4477_v8  ;;  %v4385_v9 = vmul.f32 %v7979_v33, %v4305_v24  ;;  %v4227_v26 = vadd.f32 1.4214138, %v4211_v5  ;;  %v10081_v49 = vadd.f32 %v7349_v17, %v9950_v36  ;;  %v3843_v56 = vpop.f32.mrb[53].mxu1 }
 0x9a6   :  { %v4402_v27 = vsub.f32 1.0, %v4386_v19  ;;  %v4260_v20 = vadd.f32 -0.28449672, %v4244_v57  ;;  %v10085_v3 = vadd.f32 %v9955_v31, %v3843_v56  ;;  %v4448_v42 = vsel %vm4416_vm10, %v4400_v41, %v4432_v59 }
 0x9a7   :  { %7663 = vmatprep.subr.bf16.mxu1 %v7662_v52  ;;  %v4401_v53 = vsub.f32 1.0, %v4385_v9  ;;  %v4243_v58 = vmul.f32 %v10062_v29, %v4227_v26  ;;  %v10089_v60 = vmul.f32 0.70710677, %v10081_v49  ;;  %v4447_v6 = vsel %vm4415_vm11, %v4399_v50, %v4431_v30 }
 0x9a8   :  { %7665 = vmatpush3.bf16.msra.mxu1 %v7662_v52  ;;  %v4434_v61 = vsub.f32 0.0, %v4402_v27  ;;  %v4276_v38 = vmul.f32 %v10054_v48, %v4260_v20  ;;  %v10100_v22 = vmul.f32 0.70710677, %v10085_v3  ;;  %v4464_v10 = vadd.f32 1.0, %v4448_v42 }
 0x9a9   :  { %v4433_v11 = vsub.f32 0.0, %v4401_v53  ;;  %v4259_v34 = vadd.f32 -0.28449672, %v4243_v58  ;;  %v4118_v33 = vand.u32 2147483647, %v10089_v60  ;;  %v4080_v24 = vmul.f32 0.5, %v9965_v4 }
 0x9aa   :  { %v4450_v8 = vsel %vm4418_vm12, %v4402_v27, %v4434_v61  ;;  %v4292_v40 = vadd.f32 0.2548296, %v4276_v38  ;;  %v4117_v41 = vand.u32 2147483647, %v10100_v22  ;;  %v4463_v21 = vadd.f32 1.0, %v4447_v6  ;;  %v7356_v52 = vpop.f32.mrb[36].mxu0 }
 0x9ab   :  { %7376 = vmatmul.mubr.msk.f32.vlgmr.msra.gmra.mrb[56].mxu1 %vm475_vm1, %v10094_v12  ;;  %v4449_v1 = vsel %vm4417_vm13, %v4401_v53, %v4433_v11  ;;  %v4275_v13 = vmul.f32 %v10062_v29, %v4259_v34  ;;  %v4134_v50 = vmul.f32 0.3275911, %v4118_v33  ;;  %v7981_v51 = vpop.eup %7980  ;;  %v4079_v59 = vmul.f32 0.5, %v9969_v14  ;;  %v3918_v27 = vpop.f32.mrb[37].mxu0 }
 0x9ac   :  { %7389 = vmatprep.mubr.msk.f32.mxu1 %vm475_vm1, %v9941_v18  ;;  %v4308_v5 = vmul.f32 %v10054_v48, %v4292_v40  ;;  %v4133_v25 = vmul.f32 0.3275911, %v4117_v41  ;;  %v4466_v19 = vadd.f32 1.0, %v4450_v8  ;;  %v4082_v30 = vmul.f32 0.5, %v9980_v44 }
 0x9ad   :  { %v4291_v57 = vadd.f32 0.2548296, %v4275_v13  ;;  %v4150_v17 = vadd.f32 1.0, %v4134_v50  ;;  %v4081_v9 = vmul.f32 0.5, %v9983_v15  ;;  %v4465_v26 = vadd.f32 1.0, %v4449_v1 }
 0x9ae   :  { %v4149_v56 = vadd.f32 1.0, %v4133_v25  ;;  %v4480_v20 = vmul.f32 %v4464_v10, %v4080_v24  ;;  %v10121_v48 = vadd.f32 %v7356_v52, %v9950_v36  ;;  %v4479_v53 = vmul.f32 %v4463_v21, %v4079_v59  ;;  %v7983_v42 = vpop.eup %7982 }
 0x9af   :  { %v4307_v4 = vmul.f32 %v10062_v29, %v4291_v57  ;;  %7984 = vrcp.f32 %v4150_v17  ;;  %v4388_v14 = vmul.f32 %v7981_v51, %v4308_v5  ;;  %v10124_v58 = vadd.f32 %v9955_v31, %v3918_v27 }
 0x9b0   :  { %7986 = vrcp.f32 %v4149_v56  ;;  %v4482_v44 = vmul.f32 %v4466_v19, %v4082_v30  ;;  %v4326_v61 = vsub.f32 0.0, %v4118_v33  ;;  %v10127_v15 = vmul.f32 0.70710677, %v10121_v48 }
 0x9b1   :  { %v4481_v38 = vmul.f32 %v4465_v26, %v4081_v9  ;;  %v4387_v6 = vmul.f32 %v7983_v42, %v4307_v4  ;;  %v4325_v11 = vsub.f32 0.0, %v4117_v41  ;;  %v10130_v29 = vmul.f32 0.70710677, %v10124_v58 }
 0x9b2   :  { %v4120_v34 = vand.u32 2147483647, %v10127_v15  ;;  %v4404_v8 = vsub.f32 1.0, %v4388_v14  ;;  %v7666_v10 = vpack.c.bf16 %v4480_v20, %v4479_v53  ;;  %v4342_v1 = vmul.f32 %v4326_v61, %v4118_v33 }
 0x9b3   :  { %v10134_v40 = vand.u32 2147483647, %v10130_v29  ;;  %v4403_v50 = vsub.f32 1.0, %v4387_v6  ;;  %v4341_v24 = vmul.f32 %v4325_v11, %v4117_v41  ;;  %v7363_v5 = vpop.f32.mrb[54].mxu1  ;;  %v7670_v25 = vpack.c.bf16 %v4482_v44, %v4481_v38 }
 0x9b4   :  { %v4136_v13 = vmul.f32 0.3275911, %v4120_v34  ;;  %7667 = vmatprep.subr.bf16.mxu0 %v7666_v10  ;;  %v10138_v51 = vmul.f32 0.5, %v9996_v16  ;;  %v10142_v59 = vmul.f32 0.5, %v10002_v47  ;;  %v3993_v57 = vpop.f32.mrb[55].mxu1  ;;  %v4436_v33 = vsub.f32 0.0, %v4404_v8 }
 0x9b5   :  { %v4135_v21 = vmul.f32 0.3275911, %v10134_v40  ;;  %7669 = vmatpush3.bf16.msra.mxu0 %v7666_v10  ;;  %v10146_v17 = vadd.f32 %v7363_v5, %v9950_v36  ;;  %7671 = vmatprep.subr.bf16.mxu1 %v7670_v25  ;;  %v10151_v16 = vmul.f32 0.5, %v10081_v49  ;;  %v4367_v30 = vmul.f32 1.442695, %v4342_v1 }
 0x9b6   :  { %v4152_v19 = vadd.f32 1.0, %v4136_v13  ;;  %v10154_v47 = vadd.f32 %v9955_v31, %v3993_v57  ;;  %7673 = vmatpush3.bf16.msra.mxu1 %v7670_v25  ;;  %v4435_v26 = vsub.f32 0.0, %v4403_v50  ;;  %v4365_v27 = vmul.f32 1.442695, %v4341_v24 }
 0x9b7   :  { %v4151_v41 = vadd.f32 1.0, %v4135_v21  ;;  %v10162_v20 = vmul.f32 0.5, %v10085_v3  ;;  %v10166_v4 = vmul.f32 0.70710677, %v10146_v17  ;;  %v7370_v53 = vpop.f32.mrb[38].mxu0  ;;  %v4452_v14 = vsel %vm4420_vm14, %v4404_v8, %v4436_v33 }
 0x9b8   :  { %7988 = vrcp.f32 %v4152_v19  ;;  %7383 = vmatmul.mubr.msk.f32.vlgmr.msra.gmra.mrb[40].mxu0 %vm475_vm1, %v10094_v12  ;;  %v4328_v44 = vsub.f32 0.0, %v4120_v34  ;;  %v10173_v61 = vmul.f32 0.70710677, %v10154_v47  ;;  %v4068_v38 = vpop.f32.mrb[39].mxu0  ;;  %v10179_v11 = vadd.f32 %v7370_v53, %v9950_v36 }
 0x9b9   :  { %v10148_v52 = vpop.eup %7984  ;;  %7990 = vrcp.f32 %v4151_v41  ;;  %7396 = vmatprep.mubr.msk.f32.mxu0 %vm475_vm1, %v9941_v18  ;;  %7390 = vmatmul.mubr.msk.f32.vlgmr.msra.gmra.mrb[58].mxu1 %vm475_vm1, %v10094_v12  ;;  %v4122_v6 = vand.u32 2147483647, %v10166_v4  ;;  %v4451_v23 = vsel %vm4419_vm15, %v4403_v50, %v4435_v26  ;;  %v4327_v10 = vsub.f32 0.0, %v10134_v40 }
 0x9ba   :  { %v10156_v9 = vpop.eup %7986  ;;  %v4182_v56 = vmul.f32 1.0614054, %v10148_v52  ;;  %7992 = vpow2.f32 %v4367_v30  ;;  %7403 = vmatprep.mubr.msk.f32.mxu1 %vm475_vm1, %v9941_v18  ;;  %v4121_v1 = vand.u32 2147483647, %v10173_v61  ;;  %v4468_v13 = vadd.f32 1.0, %v4452_v14 }
 0x9bb   :  { %v4181_v49 = vmul.f32 1.0614054, %v10156_v9  ;;  %7994 = vpow2.f32 %v4365_v27  ;;  %v4138_v21 = vmul.f32 0.3275911, %v4122_v6  ;;  %v4344_v36 = vmul.f32 %v4328_v44, %v4120_v34 }
 0x9bc   :  { %v4198_v42 = vadd.f32 -1.4531521, %v4182_v56  ;;  %v4137_v25 = vmul.f32 0.3275911, %v4121_v1  ;;  %v10190_v19 = vadd.f32 %v9955_v31, %v4068_v38  ;;  %v4467_v57 = vadd.f32 1.0, %v4451_v23 }
 0x9bd   :  { %v4197_v3 = vadd.f32 -1.4531521, %v4181_v49  ;;  %v4154_v50 = vadd.f32 1.0, %v4138_v21  ;;  %v10193_v33 = vmul.f32 0.70710677, %v10179_v11  ;;  %v4343_v30 = vmul.f32 %v4327_v10, %v10134_v40 }
 0x9be   :  { %v4214_v8 = vmul.f32 %v10148_v52, %v4198_v42  ;;  %v4330_v26 = vsub.f32 0.0, %v4122_v6  ;;  %v4153_v56 = vadd.f32 1.0, %v4137_v25  ;;  %v4329_v49 = vsub.f32 0.0, %v4121_v1 }
 0x9bf   :  { %v4213_v24 = vmul.f32 %v10156_v9, %v4197_v3  ;;  %7996 = vrcp.f32 %v4154_v50  ;;  %v10201_v31 = vand.u32 2147483647, %v10193_v33  ;;  %v10207_v44 = vmul.f32 0.70710677, %v10190_v19 }
 0x9c0   :  { %v4230_v5 = vadd.f32 1.4214138, %v4214_v8  ;;  %7998 = vrcp.f32 %v4153_v56  ;;  %v4484_v40 = vmul.f32 %v4468_v13, %v10138_v51  ;;  %v4483_v8 = vmul.f32 %v4467_v57, %v10142_v59 }
 0x9c1   :  { %v4229_v63 = vadd.f32 1.4214138, %v4213_v24  ;;  %v4140_v23 = vmul.f32 0.3275911, %v10201_v31  ;;  %v4371_v21 = vmul.f32 1.442695, %v4344_v36  ;;  %v4346_v13 = vmul.f32 %v4330_v26, %v4122_v6 }
 0x9c2   :  { %v4246_v41 = vmul.f32 %v10148_v52, %v4230_v5  ;;  %v10197_v27 = vpop.eup %7988  ;;  %v4369_v50 = vmul.f32 1.442695, %v4343_v30  ;;  %vm4422_vm2 = vcmp.ge.f32.partialorder %v10089_v60, 0.0  ;;  %v4345_v36 = vmul.f32 %v4329_v49, %v4121_v1 }
 0x9c3   :  { %v4245_v34 = vmul.f32 %v10156_v9, %v4229_v63  ;;  %v10203_v53 = vpop.eup %7990  ;;  %v4184_v42 = vmul.f32 1.0614054, %v10197_v27  ;;  %vm4421_vm3 = vcmp.ge.f32.partialorder %v10100_v22, 0.0  ;;  %vm4424_vm4 = vcmp.ge.f32.partialorder %v10127_v15, 0.0 }
 0x9c4   :  { %v4262_v14 = vadd.f32 -0.28449672, %v4246_v41  ;;  %v4183_v3 = vmul.f32 1.0614054, %v10203_v53  ;;  %v7993_v5 = vpop.eup %7992  ;;  %v4156_v41 = vadd.f32 1.0, %v4140_v23  ;;  %vm4423_vm5 = vcmp.ge.f32.partialorder %v10130_v29, 0.0 }
 0x9c5   :  { %v4261_v38 = vadd.f32 -0.28449672, %v4245_v34  ;;  %v4200_v24 = vadd.f32 -1.4531521, %v4184_v42  ;;  %v10217_v34 = vand.u32 2147483647, %v10207_v44  ;;  %v7995_v46 = vpop.eup %7994 }
 0x9c6   :  { %v4278_v10 = vmul.f32 %v10148_v52, %v4262_v14  ;;  %v4199_v63 = vadd.f32 -1.4531521, %v4183_v3  ;;  %8000 = vrcp.f32 %v4156_v41  ;;  %vm4426_vm6 = vcmp.ge.f32.partialorder %v10166_v4, 0.0 }
 0x9c7   :  { %v4277_v25 = vmul.f32 %v10156_v9, %v4261_v38  ;;  %v4216_v51 = vmul.f32 %v10197_v27, %v4200_v24  ;;  %8002 = vpow2.f32 %v4371_v21  ;;  %v4139_v42 = vmul.f32 0.3275911, %v10217_v34 }
 0x9c8   :  { %v4294_v56 = vadd.f32 0.2548296, %v4278_v10  ;;  %v4215_v57 = vmul.f32 %v10203_v53, %v4199_v63  ;;  %8004 = vpow2.f32 %v4369_v50  ;;  %v7674_v38 = vpack.c.bf16 %v4484_v40, %v4483_v8 }
 0x9c9   :  { %v4293_v59 = vadd.f32 0.2548296, %v4277_v25  ;;  %v4232_v30 = vadd.f32 1.4214138, %v4216_v51  ;;  %v4375_v10 = vmul.f32 1.442695, %v4346_v13  ;;  %v10226_v1 = vpop.eup %7996 }
 0x9ca   :  { %v4310_v14 = vmul.f32 %v10148_v52, %v4294_v56  ;;  %v4231_v26 = vadd.f32 1.4214138, %v4215_v57  ;;  %v4155_v24 = vadd.f32 1.0, %v4139_v42  ;;  %v4373_v25 = vmul.f32 1.442695, %v4345_v36  ;;  %7675 = vmatprep.subr.bf16.mxu0 %v7674_v38  ;;  %v10230_v63 = vpop.eup %7998 }
 0x9cb   :  { %v4309_v6 = vmul.f32 %v10156_v9, %v4293_v59  ;;  %v4248_v23 = vmul.f32 %v10197_v27, %v4232_v30  ;;  %v4332_v21 = vsub.f32 0.0, %v10201_v31  ;;  %v4186_v40 = vmul.f32 1.0614054, %v10226_v1  ;;  %7677 = vmatpush3.bf16.msra.mxu0 %v7674_v38 }
 0x9cc   :  { %v4390_v3 = vmul.f32 %v7993_v5, %v4310_v14  ;;  %v4247_v52 = vmul.f32 %v10203_v53, %v4231_v26  ;;  %8006 = vrcp.f32 %v4155_v24  ;;  %v10234_v5 = vmul.f32 0.5, %v10121_v48 }
 0x9cd   :  { %v4389_v49 = vmul.f32 %v7995_v46, %v4309_v6  ;;  %v4264_v41 = vadd.f32 -0.28449672, %v4248_v23  ;;  %v4185_v46 = vmul.f32 1.0614054, %v10230_v63  ;;  %v4202_v13 = vadd.f32 -1.4531521, %v4186_v40 }
 0x9ce   :  { %v4406_v9 = vsub.f32 1.0, %v4390_v3  ;;  %v4263_v50 = vadd.f32 -0.28449672, %v4247_v52  ;;  %8008 = vpow2.f32 %v4375_v10  ;;  %v4348_v14 = vmul.f32 %v4332_v21, %v10201_v31  ;;  %7397 = vmatmul.mubr.msk.f32.vlgmr.msra.gmra.mrb[42].mxu0 %vm475_vm1, %v10094_v12 }
 0x9cf   :  { %v4405_v8 = vsub.f32 1.0, %v4389_v49  ;;  %v4280_v51 = vmul.f32 %v10197_v27, %v4264_v41  ;;  %v4201_v36 = vadd.f32 -1.4531521, %v4185_v46  ;;  %v4218_v42 = vmul.f32 %v10226_v1, %v4202_v13  ;;  %7410 = vmatprep.mubr.msk.f32.mxu0 %vm475_vm1, %v9941_v18 }
 0x9d0   :  { %v4438_v56 = vsub.f32 0.0, %v4406_v9  ;;  %v4279_v57 = vmul.f32 %v10203_v53, %v4263_v50  ;;  %v4331_v6 = vsub.f32 0.0, %v10217_v34  ;;  %v10248_v26 = vpop.eup %8000  ;;  %8010 = vpow2.f32 %v4373_v25 }
 0x9d1   :  { %v4437_v59 = vsub.f32 0.0, %v4405_v8  ;;  %v4296_v30 = vadd.f32 0.2548296, %v4280_v51  ;;  %v4217_v23 = vmul.f32 %v10230_v63, %v4201_v36  ;;  %v8003_v10 = vpop.eup %8002  ;;  %v4234_v49 = vadd.f32 1.4214138, %v4218_v42 }
 0x9d2   :  { %v4454_v48 = vsel %vm4422_vm2, %v4406_v9, %v4438_v56  ;;  %v4295_v3 = vadd.f32 0.2548296, %v4279_v57  ;;  %v4188_v52 = vmul.f32 1.0614054, %v10248_v26  ;;  %v8005_v21 = vpop.eup %8004  ;;  %v4347_v13 = vmul.f32 %v4331_v6, %v10217_v34 }
 0x9d3   :  { %v4470_v38 = vadd.f32 1.0, %v4454_v48  ;;  %v4453_v31 = vsel %vm4421_vm3, %v4405_v8, %v4437_v59  ;;  %v4312_v24 = vmul.f32 %v10197_v27, %v4296_v30  ;;  %v4233_v40 = vadd.f32 1.4214138, %v4217_v23 }
 0x9d4   :  { %v4469_v60 = vadd.f32 1.0, %v4453_v31  ;;  %v4311_v41 = vmul.f32 %v10203_v53, %v4295_v3  ;;  %v4250_v50 = vmul.f32 %v10226_v1, %v4234_v49  ;;  %v4204_v46 = vadd.f32 -1.4531521, %v4188_v52 }
 0x9d5   :  { %v4486_v9 = vmul.f32 %v4470_v38, %v10151_v16  ;;  %v4392_v8 = vmul.f32 %v8003_v10, %v4312_v24  ;;  %v4249_v51 = vmul.f32 %v10230_v63, %v4233_v40  ;;  %v4379_v27 = vmul.f32 1.442695, %v4348_v14 }
 0x9d6   :  { %v4485_v22 = vmul.f32 %v4469_v60, %v10162_v20  ;;  %v4391_v56 = vmul.f32 %v8005_v21, %v4311_v41  ;;  %v10261_v59 = vpop.eup %8006  ;;  %v4266_v16 = vadd.f32 -0.28449672, %v4250_v50  ;;  %v4220_v53 = vmul.f32 %v10248_v26, %v4204_v46 }
 0x9d7   :  { %v4408_v57 = vsub.f32 1.0, %v4392_v8  ;;  %v4265_v25 = vadd.f32 -0.28449672, %v4249_v51  ;;  %v4187_v48 = vmul.f32 1.0614054, %v10261_v59  ;;  %8012 = vpow2.f32 %v4379_v27 }
 0x9d8   :  { %v7678_v36 = vpack.c.bf16 %v4486_v9, %v4485_v22  ;;  %v4407_v20 = vsub.f32 1.0, %v4391_v56  ;;  %v8009_v30 = vpop.eup %8008  ;;  %v4282_v14 = vmul.f32 %v10226_v1, %v4266_v16  ;;  %v4236_v34 = vadd.f32 1.4214138, %v4220_v53 }
 0x9d9   :  { %v4440_v42 = vsub.f32 0.0, %v4408_v57  ;;  %v4281_v38 = vmul.f32 %v10230_v63, %v4265_v25  ;;  %v4203_v31 = vadd.f32 -1.4531521, %v4187_v48  ;;  %v4377_v10 = vmul.f32 1.442695, %v4347_v13 }
 0x9da   :  { %7679 = vmatprep.subr.bf16.mxu1 %v7678_v36  ;;  %v4439_v6 = vsub.f32 0.0, %v4407_v20  ;;  %v4298_v15 = vadd.f32 0.2548296, %v4282_v14  ;;  %v4252_v23 = vmul.f32 %v10248_v26, %v4236_v34  ;;  %v4087_v52 = vmul.f32 0.5, %v10124_v58  ;;  %v8011_v40 = vpop.eup %8010 }
 0x9db   :  { %7681 = vmatpush3.bf16.msra.mxu1 %v7678_v36  ;;  %v4456_v3 = vsel %vm4424_vm4, %v4408_v57, %v4440_v42  ;;  %v4297_v49 = vadd.f32 0.2548296, %v4281_v38  ;;  %v4219_v29 = vmul.f32 %v10261_v59, %v4203_v31  ;;  %8014 = vpow2.f32 %v4377_v10 }
 0x9dc   :  { %v4472_v60 = vadd.f32 1.0, %v4456_v3  ;;  %v4455_v24 = vsel %vm4423_vm5, %v4407_v20, %v4439_v6  ;;  %v4314_v9 = vmul.f32 %v10226_v1, %v4298_v15  ;;  %v4268_v41 = vadd.f32 -0.28449672, %v4252_v23 }
 0x9dd   :  { %v4471_v21 = vadd.f32 1.0, %v4455_v24  ;;  %v4313_v8 = vmul.f32 %v10230_v63, %v4297_v49  ;;  %v4235_v50 = vadd.f32 1.4214138, %v4219_v29  ;;  %vm4425_vm8 = vcmp.ge.f32.partialorder %v10173_v61, 0.0 }
 0x9de   :  { %7404 = vmatmul.mubr.msk.f32.vlgmr.msra.gmra.mrb[60].mxu1 %vm475_vm1, %v10094_v12  ;;  %v4488_v22 = vmul.f32 %v4472_v60, %v10234_v5  ;;  %v4394_v56 = vmul.f32 %v8009_v30, %v4314_v9  ;;  %v4284_v58 = vmul.f32 %v10248_v26, %v4268_v41  ;;  %v4090_v42 = vmul.f32 0.5, %v10146_v17 }
 0x9df   :  { %7417 = vmatprep.mubr.msk.f32.mxu1 %vm475_vm1, %v9941_v18  ;;  %v4487_v46 = vmul.f32 %v4471_v21, %v4087_v52  ;;  %v4393_v51 = vmul.f32 %v8011_v40, %v4313_v8  ;;  %v4251_v1 = vmul.f32 %v10261_v59, %v4235_v50  ;;  %v4089_v38 = vmul.f32 0.5, %v10154_v47 }
 0x9e0   :  { %v4410_v27 = vsub.f32 1.0, %v4394_v56  ;;  %v4300_v13 = vadd.f32 0.2548296, %v4284_v58  ;;  %vm4428_vm9 = vcmp.ge.f32.partialorder %v10193_v33, 0.0  ;;  %v4092_v29 = vmul.f32 0.5, %v10179_v11  ;;  %v10303_v11 = vld [vmem:[%s11200_s5 + $0x38] sm:$0xff] }
 0x9e1   :  { %v7682_v57 = vpack.c.bf16 %v4488_v22, %v4487_v46  ;;  %v4409_v16 = vsub.f32 1.0, %v4393_v51  ;;  %v4267_v53 = vadd.f32 -0.28449672, %v4251_v1  ;;  %v8013_v36 = vpop.eup %8012  ;;  %vm4427_vm10 = vcmp.ge.f32.partialorder %v10207_v44, 0.0 }
 0x9e2   :  { %v4442_v5 = vsub.f32 0.0, %v4410_v27  ;;  %v4316_v63 = vmul.f32 %v10248_v26, %v4300_v13 }
 0x9e3   :  { %7683 = vmatprep.subr.bf16.mxu0 %v7682_v57  ;;  %v4441_v20 = vsub.f32 0.0, %v4409_v16  ;;  %v4283_v25 = vmul.f32 %v10261_v59, %v4267_v53 }
 0x9e4   :  { %7685 = vmatpush3.bf16.msra.mxu0 %v7682_v57  ;;  %v4458_v48 = vsel %vm4426_vm6, %v4410_v27, %v4442_v5  ;;  %v4396_v30 = vmul.f32 %v8013_v36, %v4316_v63 }
 0x9e5   :  { %v4474_v14 = vadd.f32 1.0, %v4458_v48  ;;  %v4457_v34 = vsel %vm4425_vm8, %v4409_v16, %v4441_v20  ;;  %v4299_v6 = vadd.f32 0.2548296, %v4283_v25  ;;  %v8015_v61 = vpop.eup %8014 }
 0x9e6   :  { %v4473_v26 = vadd.f32 1.0, %v4457_v34  ;;  %v4412_v31 = vsub.f32 1.0, %v4396_v30 }
 0x9e7   :  { %7411 = vmatmul.mubr.msk.f32.vlgmr.msra.gmra.mrb[44].mxu0 %vm475_vm1, %v10094_v12  ;;  %v4490_v4 = vmul.f32 %v4474_v14, %v4090_v42  ;;  %v4315_v3 = vmul.f32 %v10261_v59, %v4299_v6 }
 0x9e8   :  { %7424 = vmatprep.mubr.msk.f32.mxu0 %vm475_vm1, %v9941_v18  ;;  %v4489_v15 = vmul.f32 %v4473_v26, %v4089_v38  ;;  %v4444_v23 = vsub.f32 0.0, %v4412_v31  ;;  %v4091_v18 = vmul.f32 0.5, %v10190_v19  ;;  %v10308_v19 = vld [vmem:[%s11200_s5 + $0x30] sm:$0xff] }
 0x9e9   :  { %v4395_v17 = vmul.f32 %v8015_v61, %v4315_v3 }
 0x9ea   :  { %v4460_v10 = vsel %vm4428_vm9, %v4412_v31, %v4444_v23  ;;  %v7686_v60 = vpack.c.bf16 %v4490_v4, %v4489_v15 }
 0x9eb   :  { %v4411_v47 = vsub.f32 1.0, %v4395_v17  ;;  %v4476_v24 = vadd.f32 1.0, %v4460_v10 }
 0x9ec   :  { %7687 = vmatprep.subr.bf16.mxu1 %v7686_v60 }
 0x9ed   :  { %v4443_v49 = vsub.f32 0.0, %v4411_v47  ;;  %7689 = vmatpush3.bf16.msra.mxu1 %v7686_v60  ;;  %v4492_v52 = vmul.f32 %v4476_v24, %v4092_v29  ;;  %v11286_v29 = vld [vmem:[#allocation17_spill] sm:$0xff] }
 0x9ef   :  { %v4459_v59 = vsel %vm4427_vm10, %v4411_v47, %v4443_v49 }
 0x9f0   :  { %v4475_v21 = vadd.f32 1.0, %v4459_v59  ;;  %7418 = vmatmul.mubr.msk.f32.vlgmr.msra.gmra.mrb[62].mxu1 %vm475_vm1, %v10094_v12 }
 0x9f2   :  { %v4491_v33 = vmul.f32 %v4475_v21, %v4091_v18 }
 0x9f4   :  { %v7690_v9 = vpack.c.bf16 %v4492_v52, %v4491_v33 }
 0x9f6   :  { %7691 = vmatprep.subr.bf16.mxu0 %v7690_v9 }
 0x9f7   :  { %7693 = vmatpush3.bf16.msra.mxu0 %v7690_v9 }
 0x9fa   :  { %7425 = vmatmul.mubr.msk.f32.vlgmr.msra.gmra.mrb[46].mxu0 %vm475_vm1, %v10094_v12 }
 0xa7e   :  { %v7377_v44 = vpop.f32.mrb[56].mxu1 }
 0xa7f   :  { %v4576_v41 = vadd.f32 %v7377_v44, %v10303_v11  ;;  %v4570_v40 = vpop.f32.mrb[57].mxu1  ;;  %v11287_v44 = vld [vmem:[#allocation5_spill] sm:$0xff] }
 0xa80   :  { %v4571_v22 = vadd.f32 %v10308_v19, %v4570_v40 }
 0xa81   :  { %v10313_v8 = vadd.f32 %v4576_v41, %v9649_v28  ;;  %v11288_v41 = vld [vmem:[#allocation6_spill] sm:$0xff] }
 0xa82   :  { %v10316_v12 = vadd.f32 %v4571_v22, %v9652_v35 }
 0xa83   :  { %v5123_v50 = vsel %vm221_vm0, %v10313_v8, 0.0 }
 0xa84   :  { %5124 = vadd.xlane.f32.xlu1 %v5123_v50  ;;  %v5120_v46 = vsel %vm221_vm0, %v10316_v12, 0.0 }
 0xa85   :  { %5121 = vadd.xlane.f32.xlu0 %v5120_v46 }
 0xa8b   :  { %v7384_v56 = vpop.f32.mrb[40].mxu0 }
 0xa8c   :  { %v4651_v58 = vadd.f32 %v7384_v56, %v10303_v11  ;;  %v4645_v51 = vpop.f32.mrb[41].mxu0  ;;  %v7391_v27 = vpop.f32.mrb[58].mxu1 }
 0xa8d   :  { %v4646_v1 = vadd.f32 %v10308_v19, %v4645_v51  ;;  %v4726_v35 = vadd.f32 %v7391_v27, %v10303_v11  ;;  %v4720_v13 = vpop.f32.mrb[59].mxu1 }
 0xa8e   :  { %v10325_v28 = vadd.f32 %v4651_v58, %v9661_v2  ;;  %v4721_v16 = vadd.f32 %v10308_v19, %v4720_v13 }
 0xa8f   :  { %v10329_v57 = vadd.f32 %v4646_v1, %v9664_v39  ;;  %v10333_v53 = vadd.f32 %v4726_v35, %v9673_v45 }
 0xa90   :  { %v5129_v5 = vsel %vm221_vm0, %v10325_v28, 0.0  ;;  %v10338_v63 = vadd.f32 %v4721_v16, %v9676_v43 }
 0xa91   :  { %5130 = vadd.xlane.f32.xlu1 %v5129_v5  ;;  %v5126_v2 = vsel %vm221_vm0, %v10329_v57, 0.0  ;;  %v5135_v39 = vsel %vm221_vm0, %v10333_v53, 0.0 }
 0xa92   :  { %5127 = vadd.xlane.f32.xlu0 %v5126_v2  ;;  %v5132_v36 = vsel %vm221_vm0, %v10338_v63, 0.0 }
 0xa95   :  { %5136 = vadd.xlane.f32.xlu1 %v5135_v39 }
 0xa96   :  { %5133 = vadd.xlane.f32.xlu0 %v5132_v36 }
 0xaa1   :  { %v7398_v45 = vpop.f32.mrb[42].mxu0 }
 0xaa2   :  { %v4801_v20 = vadd.f32 %v7398_v45, %v10303_v11  ;;  %v4795_v25 = vpop.f32.mrb[43].mxu0 }
 0xaa3   :  { %v4796_v43 = vadd.f32 %v10308_v19, %v4795_v25 }
 0xaa4   :  { %v10349_v48 = vadd.f32 %v4801_v20, %v9685_v54 }
 0xaa5   :  { %v10352_v30 = vadd.f32 %v4796_v43, %v9688_v32 }
 0xaa6   :  { %v5141_v42 = vsel %vm221_vm0, %v10349_v48, 0.0 }
 0xaa7   :  { %5142 = vadd.xlane.f32.xlu1 %v5141_v42  ;;  %v5138_v14 = vsel %vm221_vm0, %v10352_v30, 0.0 }
 0xaa8   :  { %5139 = vadd.xlane.f32.xlu0 %v5138_v14 }
 0xab1   :  { %v7405_v34 = vpop.f32.mrb[60].mxu1 }
 0xab2   :  { %v4876_v6 = vadd.f32 %v7405_v34, %v10303_v11  ;;  %v4870_v38 = vpop.f32.mrb[61].mxu1 }
 0xab3   :  { %v4871_v26 = vadd.f32 %v10308_v19, %v4870_v38 }
 0xab4   :  { %v10361_v54 = vadd.f32 %v4876_v6, %v9697_v62 }
 0xab5   :  { %v10364_v32 = vadd.f32 %v4871_v26, %v9700_v0 }
 0xab6   :  { %v5147_v31 = vsel %vm221_vm0, %v10361_v54, 0.0 }
 0xab7   :  { %5148 = vadd.xlane.f32.xlu1 %v5147_v31  ;;  %v5144_v4 = vsel %vm221_vm0, %v10364_v32, 0.0 }
 0xab8   :  { %5145 = vadd.xlane.f32.xlu0 %v5144_v4 }
 0xaba   :  { %v7412_v3 = vpop.f32.mrb[44].mxu0 }
 0xabb   :  { %v4951_v61 = vadd.f32 %v7412_v3, %v10303_v11  ;;  %v4945_v15 = vpop.f32.mrb[45].mxu0 }
 0xabc   :  { %v4946_v23 = vadd.f32 %v10308_v19, %v4945_v15 }
 0xabd   :  { %v10373_v62 = vadd.f32 %v4951_v61, %v9709_v7 }
 0xabe   :  { %v10376_v0 = vadd.f32 %v4946_v23, %v9712_v55 }
 0xabf   :  { %v5153_v17 = vsel %vm221_vm0, %v10373_v62, 0.0 }
 0xac0   :  { %5154 = vadd.xlane.f32.xlu1 %v5153_v17  ;;  %v5150_v10 = vsel %vm221_vm0, %v10376_v0, 0.0 }
 0xac1   :  { %5151 = vadd.xlane.f32.xlu0 %v5150_v10 }
 0xac3   :  { %v7419_v60 = vpop.f32.mrb[62].mxu1 }
 0xac4   :  { %v5026_v47 = vadd.f32 %v7419_v60, %v10303_v11  ;;  %v5020_v24 = vpop.f32.mrb[63].mxu1 }
 0xac5   :  { %v5021_v49 = vadd.f32 %v10308_v19, %v5020_v24 }
 0xac6   :  { %v10385_v7 = vadd.f32 %v5026_v47, %v9721_v37 }
 0xac7   :  { %v10388_v55 = vadd.f32 %v5021_v49, %v11286_v29 }
 0xac8   :  { %v5159_v59 = vsel %vm221_vm0, %v10385_v7, 0.0 }
 0xac9   :  { %5160 = vadd.xlane.f32.xlu1 %v5159_v59  ;;  %v5156_v52 = vsel %vm221_vm0, %v10388_v55, 0.0 }
 0xaca   :  { %5157 = vadd.xlane.f32.xlu0 %v5156_v52 }
 0xacd   :  { %v7426_v18 = vpop.f32.mrb[46].mxu0 }
 0xace   :  { %v5101_v21 = vadd.f32 %v7426_v18, %v10303_v11  ;;  %v5095_v33 = vpop.f32.mrb[47].mxu0 }
 0xacf   :  { %v5096_v9 = vadd.f32 %v10308_v19, %v5095_v33 }
 0xad0   :  { %v10397_v37 = vadd.f32 %v5101_v21, %v11287_v44 }
 0xad1   :  { %v10400_v40 = vadd.f32 %v5096_v9, %v11288_v41 }
 0xad2   :  { %v5165_v22 = vsel %vm221_vm0, %v10397_v37, 0.0 }
 0xad3   :  { %5166 = vadd.xlane.f32.xlu1 %v5165_v22  ;;  %v5162_v50 = vsel %vm221_vm0, %v10400_v40, 0.0 }
 0xad4   :  { %5163 = vadd.xlane.f32.xlu0 %v5162_v50 }
 0xb11   :  { %v5125_v46 = vpop.xlane.xlu1 %5124 }
 0xb12   :  { %v5169_v56 = vmul.f32 0.03125, %v5125_v46  ;;  %v5122_v11 = vpop.xlane.xlu0 %5121 }
 0xb13   :  { %v5168_v58 = vmul.f32 0.03125, %v5122_v11 }
 0xb14   :  { %v10407_v19 = vsub.f32 %v10313_v8, %v5169_v56 }
 0xb15   :  { %v10410_v51 = vsub.f32 %v10316_v12, %v5168_v58 }
 0xb16   :  { %v5201_v1 = vmul.f32 %v10407_v19, %v10407_v19 }
 0xb17   :  { %v5200_v27 = vmul.f32 %v10410_v51, %v10410_v51 }
 0xb18   :  { %v5219_v35 = vsel %vm221_vm0, %v5201_v1, 0.0 }
 0xb19   :  { %5220 = vadd.xlane.f32.xlu1 %v5219_v35  ;;  %v5216_v13 = vsel %vm221_vm0, %v5200_v27, 0.0 }
 0xb1a   :  { %5217 = vadd.xlane.f32.xlu0 %v5216_v13 }
 0xb1e   :  { %v5131_v16 = vpop.xlane.xlu1 %5130 }
 0xb1f   :  { %v5171_v5 = vmul.f32 0.03125, %v5131_v16  ;;  %v5128_v2 = vpop.xlane.xlu0 %5127  ;;  %v6772_v16 = vld [vmem:[%s11201_s6 + $0x20] sm:$0xff] }
 0xb20   :  { %v5170_v39 = vmul.f32 0.03125, %v5128_v2 }
 0xb21   :  { %v10419_v36 = vsub.f32 %v10325_v28, %v5171_v5  ;;  %v6773_v5 = vld [vmem:[%s11201_s6 + $0x28] sm:$0xff] }
 0xb22   :  { %v10422_v45 = vsub.f32 %v10329_v57, %v5170_v39  ;;  %v5137_v20 = vpop.xlane.xlu1 %5136  ;;  %v7694_v39 = vpack.c.bf16 %v6773_v5, %v6772_v16  ;;  %v10517_v5 = vld [vmem:[%s11197_s2 + $0x9] ss:$0 sm:$0xff] }
 0xb23   :  { %v5173_v25 = vmul.f32 0.03125, %v5137_v20  ;;  %v5134_v43 = vpop.xlane.xlu0 %5133  ;;  %v5203_v42 = vmul.f32 %v10419_v36, %v10419_v36 }
 0xb24   :  { %v5172_v14 = vmul.f32 0.03125, %v5134_v43  ;;  %v5202_v34 = vmul.f32 %v10422_v45, %v10422_v45  ;;  %7695 = vmatprep.subr.bf16.mxu1 %v7694_v39 }
 0xb25   :  { %v10429_v6 = vsub.f32 %v10333_v53, %v5173_v25  ;;  %v5225_v38 = vsel %vm221_vm0, %v5203_v42, 0.0  ;;  %7697 = vmatpush3.bf16.msra.mxu1 %v7694_v39 }
 0xb26   :  { %v10433_v26 = vsub.f32 %v10338_v63, %v5172_v14  ;;  %5226 = vadd.xlane.f32.xlu1 %v5225_v38  ;;  %v5222_v31 = vsel %vm221_vm0, %v5202_v34, 0.0 }
 0xb27   :  { %5223 = vadd.xlane.f32.xlu0 %v5222_v31  ;;  %v5205_v4 = vmul.f32 %v10429_v6, %v10429_v6 }
 0xb28   :  { %v5204_v3 = vmul.f32 %v10433_v26, %v10433_v26 }
 0xb29   :  { %v5231_v61 = vsel %vm221_vm0, %v5205_v4, 0.0 }
 0xb2a   :  { %5232 = vadd.xlane.f32.xlu1 %v5231_v61  ;;  %v5228_v15 = vsel %vm221_vm0, %v5204_v3, 0.0 }
 0xb2b   :  { %5229 = vadd.xlane.f32.xlu0 %v5228_v15 }
 0xb34   :  { %v5143_v23 = vpop.xlane.xlu1 %5142 }
 0xb35   :  { %v5175_v17 = vmul.f32 0.03125, %v5143_v23  ;;  %v5140_v10 = vpop.xlane.xlu0 %5139  ;;  %v6774_v23 = vld [vmem:[%s11201_s6 + $0x30] sm:$0xff] }
 0xb36   :  { %v5174_v60 = vmul.f32 0.03125, %v5140_v10 }
 0xb37   :  { %v10443_v47 = vsub.f32 %v10349_v48, %v5175_v17  ;;  %v6775_v17 = vld [vmem:[%s11201_s6 + $0x38] sm:$0xff] }
 0xb38   :  { %v10446_v24 = vsub.f32 %v10352_v30, %v5174_v60  ;;  %v7698_v60 = vpack.c.bf16 %v6775_v17, %v6774_v23 }
 0xb39   :  { %v5207_v49 = vmul.f32 %v10443_v47, %v10443_v47 }
 0xb3a   :  { %v5206_v29 = vmul.f32 %v10446_v24, %v10446_v24  ;;  %7699 = vmatprep.subr.bf16.mxu1 %v7698_v60 }
 0xb3b   :  { %v5237_v59 = vsel %vm221_vm0, %v5207_v49, 0.0  ;;  %7701 = vmatpush3.bf16.msra.mxu1 %v7698_v60 }
 0xb3c   :  { %5238 = vadd.xlane.f32.xlu1 %v5237_v59  ;;  %v5234_v52 = vsel %vm221_vm0, %v5206_v29, 0.0 }
 0xb3d   :  { %5235 = vadd.xlane.f32.xlu0 %v5234_v52 }
 0xb44   :  { %v5149_v18 = vpop.xlane.xlu1 %5148 }
 0xb45   :  { %v5177_v21 = vmul.f32 0.03125, %v5149_v18  ;;  %v5146_v33 = vpop.xlane.xlu0 %5145 }
 0xb46   :  { %v5176_v9 = vmul.f32 0.03125, %v5146_v33 }
 0xb47   :  { %v10455_v44 = vsub.f32 %v10361_v54, %v5177_v21 }
 0xb48   :  { %v10458_v41 = vsub.f32 %v10364_v32, %v5176_v9 }
 0xb49   :  { %v5209_v22 = vmul.f32 %v10455_v44, %v10455_v44 }
 0xb4a   :  { %v5208_v50 = vmul.f32 %v10458_v41, %v10458_v41 }
 0xb4b   :  { %v5243_v46 = vsel %vm221_vm0, %v5209_v22, 0.0 }
 0xb4c   :  { %5244 = vadd.xlane.f32.xlu1 %v5243_v46  ;;  %v5240_v56 = vsel %vm221_vm0, %v5208_v50, 0.0 }
 0xb4d   :  { %5241 = vadd.xlane.f32.xlu0 %v5240_v56  ;;  %v5155_v11 = vpop.xlane.xlu1 %5154 }
 0xb4e   :  { %v5179_v58 = vmul.f32 0.03125, %v5155_v11  ;;  %v5152_v1 = vpop.xlane.xlu0 %5151 }
 0xb4f   :  { %v5178_v27 = vmul.f32 0.03125, %v5152_v1 }
 0xb50   :  { %v10467_v35 = vsub.f32 %v10373_v62, %v5179_v58 }
 0xb51   :  { %v10470_v13 = vsub.f32 %v10376_v0, %v5178_v27 }
 0xb52   :  { %v5211_v2 = vmul.f32 %v10467_v35, %v10467_v35 }
 0xb53   :  { %v5210_v20 = vmul.f32 %v10470_v13, %v10470_v13 }
 0xb54   :  { %v5249_v25 = vsel %vm221_vm0, %v5211_v2, 0.0 }
 0xb55   :  { %5250 = vadd.xlane.f32.xlu1 %v5249_v25  ;;  %v5246_v43 = vsel %vm221_vm0, %v5210_v20, 0.0 }
 0xb56   :  { %5247 = vadd.xlane.f32.xlu0 %v5246_v43  ;;  %v5161_v42 = vpop.xlane.xlu1 %5160 }
 0xb57   :  { %v5181_v14 = vmul.f32 0.03125, %v5161_v42  ;;  %v5158_v34 = vpop.xlane.xlu0 %5157 }
 0xb58   :  { %v5180_v38 = vmul.f32 0.03125, %v5158_v34  ;;  %v10524_v34 = vld [vmem:[%s11197_s2 + $0xa] ss:$0 sm:$0xff] }
 0xb59   :  { %v10485_v31 = vsub.f32 %v10385_v7, %v5181_v14 }
 0xb5a   :  { %v10488_v4 = vsub.f32 %v10388_v55, %v5180_v38 }
 0xb5b   :  { %v5213_v3 = vmul.f32 %v10485_v31, %v10485_v31 }
 0xb5c   :  { %v5212_v61 = vmul.f32 %v10488_v4, %v10488_v4 }
 0xb5d   :  { %v5255_v15 = vsel %vm221_vm0, %v5213_v3, 0.0 }
 0xb5e   :  { %5256 = vadd.xlane.f32.xlu1 %v5255_v15  ;;  %v5252_v10 = vsel %vm221_vm0, %v5212_v61, 0.0 }
 0xb5f   :  { %5253 = vadd.xlane.f32.xlu0 %v5252_v10 }
 0xb60   :  { %v5167_v49 = vpop.xlane.xlu1 %5166 }
 0xb61   :  { %v5183_v29 = vmul.f32 0.03125, %v5167_v49  ;;  %v5164_v59 = vpop.xlane.xlu0 %5163 }
 0xb62   :  { %v5182_v52 = vmul.f32 0.03125, %v5164_v59 }
 0xb63   :  { %v10503_v18 = vsub.f32 %v10397_v37, %v5183_v29 }
 0xb64   :  { %v10506_v21 = vsub.f32 %v10400_v40, %v5182_v52 }
 0xb65   :  { %v5215_v33 = vmul.f32 %v10503_v18, %v10503_v18 }
 0xb66   :  { %v5214_v9 = vmul.f32 %v10506_v21, %v10506_v21 }
 0xb67   :  { %v5261_v22 = vsel %vm221_vm0, %v5215_v33, 0.0 }
 0xb68   :  { %5262 = vadd.xlane.f32.xlu1 %v5261_v22  ;;  %v5258_v50 = vsel %vm221_vm0, %v5214_v9, 0.0 }
 0xb69   :  { %5259 = vadd.xlane.f32.xlu0 %v5258_v50 }
 0xba6   :  { %v5221_v46 = vpop.xlane.xlu1 %5220 }
 0xba7   :  { %v5265_v56 = vmul.f32 0.03125, %v5221_v46  ;;  %v5218_v11 = vpop.xlane.xlu0 %5217 }
 0xba8   :  { %v5264_v58 = vmul.f32 0.03125, %v5218_v11 }
 0xba9   :  { %v5281_v1 = vadd.f32 1e-05, %v5265_v56 }
 0xbaa   :  { %v5280_v27 = vadd.f32 1e-05, %v5264_v58 }
 0xbab   :  { %8016 = vrsqrt.f32 %v5281_v1 }
 0xbac   :  { %8018 = vrsqrt.f32 %v5280_v27 }
 0xbb3   :  { %v5227_v20 = vpop.xlane.xlu1 %5226 }
 0xbb4   :  { %v5267_v25 = vmul.f32 0.03125, %v5227_v20  ;;  %v5224_v43 = vpop.xlane.xlu0 %5223 }
 0xbb5   :  { %v8017_v16 = vpop.eup %8016  ;;  %v5266_v14 = vmul.f32 0.03125, %v5224_v43 }
 0xbb6   :  { %v8019_v2 = vpop.eup %8018  ;;  %v5313_v39 = vmul.f32 %v8017_v16, %v10407_v19  ;;  %v5283_v3 = vadd.f32 1e-05, %v5267_v25 }
 0xbb7   :  { %v5312_v42 = vmul.f32 %v8019_v2, %v10410_v51  ;;  %v5282_v15 = vadd.f32 1e-05, %v5266_v14  ;;  %v5233_v23 = vpop.xlane.xlu1 %5232 }
 0xbb8   :  { %v5333_v38 = vmul.f32 %v10517_v5, %v5313_v39  ;;  %8020 = vrsqrt.f32 %v5283_v3  ;;  %v5269_v19 = vmul.f32 0.03125, %v5233_v23  ;;  %v5230_v17 = vpop.xlane.xlu0 %5229 }
 0xbb9   :  { %v5332_v61 = vmul.f32 %v10517_v5, %v5312_v42  ;;  %8022 = vrsqrt.f32 %v5282_v15  ;;  %v5268_v51 = vmul.f32 0.03125, %v5230_v17 }
 0xbba   :  { %v5353_v60 = vadd.f32 %v10524_v34, %v5333_v38  ;;  %v5285_v49 = vadd.f32 1e-05, %v5269_v19 }
 0xbbb   :  { %v5352_v10 = vadd.f32 %v10524_v34, %v5332_v61  ;;  %v5284_v29 = vadd.f32 1e-05, %v5268_v51 }
 0xbbc   :  { %8024 = vrsqrt.f32 %v5285_v49 }
 0xbbd   :  { %7435 = vmatprep.mubr.msk.f32.mxu1 %vm221_vm0, %v5352_v10  ;;  %8026 = vrsqrt.f32 %v5284_v29 }
 0xbbe   :  { %7436 = vmatmul.mubr.msk.f32.vlgmr.msra.gmra.mrb[64].mxu1 %vm221_vm0, %v5353_v60 }
 0xbc2   :  { %v8021_v59 = vpop.eup %8020 }
 0xbc3   :  { %v8023_v52 = vpop.eup %8022  ;;  %v5315_v33 = vmul.f32 %v8021_v59, %v10419_v36 }
 0xbc4   :  { %v5314_v9 = vmul.f32 %v8023_v52, %v10422_v45 }
 0xbc5   :  { %v5335_v22 = vmul.f32 %v10517_v5, %v5315_v33 }
 0xbc6   :  { %v8025_v50 = vpop.eup %8024  ;;  %v5334_v46 = vmul.f32 %v10517_v5, %v5314_v9 }
 0xbc7   :  { %v8027_v56 = vpop.eup %8026  ;;  %v5317_v11 = vmul.f32 %v8025_v50, %v10429_v6  ;;  %v5355_v27 = vadd.f32 %v10524_v34, %v5335_v22 }
 0xbc8   :  { %v5354_v58 = vadd.f32 %v10524_v34, %v5334_v46  ;;  %v5316_v1 = vmul.f32 %v8027_v56, %v10433_v26 }
 0xbc9   :  { %v5337_v16 = vmul.f32 %v10517_v5, %v5317_v11  ;;  %v5239_v2 = vpop.xlane.xlu1 %5238 }
 0xbca   :  { %7438 = vmatprep.mubr.msk.f32.mxu1 %vm221_vm0, %v5354_v58  ;;  %v5336_v36 = vmul.f32 %v10517_v5, %v5316_v1  ;;  %v5271_v45 = vmul.f32 0.03125, %v5239_v2  ;;  %v5236_v39 = vpop.xlane.xlu0 %5235 }
 0xbcb   :  { %7439 = vmatmul.mubr.msk.f32.gmra.mrb[66].mxu1 %vm221_vm0, %v5355_v27  ;;  %v5270_v20 = vmul.f32 0.03125, %v5236_v39  ;;  %v5357_v43 = vadd.f32 %v10524_v34, %v5337_v16 }
 0xbcc   :  { %v5356_v6 = vadd.f32 %v10524_v34, %v5336_v36  ;;  %v5287_v25 = vadd.f32 1e-05, %v5271_v45 }
 0xbcd   :  { %v5286_v26 = vadd.f32 1e-05, %v5270_v20 }
 0xbce   :  { %7441 = vmatprep.mubr.msk.f32.mxu1 %vm221_vm0, %v5356_v6  ;;  %8028 = vrsqrt.f32 %v5287_v25 }
 0xbcf   :  { %7442 = vmatmul.mubr.msk.f32.gmra.mrb[68].mxu1 %vm221_vm0, %v5357_v43  ;;  %8030 = vrsqrt.f32 %v5286_v26 }
 0xbd8   :  { %v8029_v3 = vpop.eup %8028 }
 0xbd9   :  { %v5245_v42 = vpop.xlane.xlu1 %5244  ;;  %v8031_v15 = vpop.eup %8030  ;;  %v5319_v19 = vmul.f32 %v8029_v3, %v10443_v47 }
 0xbda   :  { %v5273_v14 = vmul.f32 0.03125, %v5245_v42  ;;  %v5242_v38 = vpop.xlane.xlu0 %5241  ;;  %v5318_v10 = vmul.f32 %v8031_v15, %v10446_v24 }
 0xbdb   :  { %v5272_v61 = vmul.f32 0.03125, %v5242_v38  ;;  %v5339_v51 = vmul.f32 %v10517_v5, %v5319_v19 }
 0xbdc   :  { %v5289_v23 = vadd.f32 1e-05, %v5273_v14  ;;  %v5338_v60 = vmul.f32 %v10517_v5, %v5318_v10 }
 0xbdd   :  { %v5288_v17 = vadd.f32 1e-05, %v5272_v61  ;;  %v5359_v29 = vadd.f32 %v10524_v34, %v5339_v51 }
 0xbde   :  { %8032 = vrsqrt.f32 %v5289_v23  ;;  %v5358_v49 = vadd.f32 %v10524_v34, %v5338_v60 }
 0xbdf   :  { %8034 = vrsqrt.f32 %v5288_v17 }
 0xbe0   :  { %7444 = vmatprep.mubr.msk.f32.mxu1 %vm221_vm0, %v5358_v49 }
 0xbe1   :  { %7445 = vmatmul.mubr.msk.f32.gmra.mrb[70].mxu1 %vm221_vm0, %v5359_v29 }
 0xbe2   :  { %v5251_v59 = vpop.xlane.xlu1 %5250 }
 0xbe3   :  { %v5275_v52 = vmul.f32 0.03125, %v5251_v59  ;;  %v5248_v33 = vpop.xlane.xlu0 %5247 }
 0xbe4   :  { %v5274_v47 = vmul.f32 0.03125, %v5248_v33 }
 0xbe5   :  { %v5291_v9 = vadd.f32 1e-05, %v5275_v52 }
 0xbe6   :  { %v5290_v24 = vadd.f32 1e-05, %v5274_v47 }
 0xbe7   :  { %8036 = vrsqrt.f32 %v5291_v9 }
 0xbe8   :  { %v8033_v22 = vpop.eup %8032  ;;  %8038 = vrsqrt.f32 %v5290_v24 }
 0xbe9   :  { %v8035_v50 = vpop.eup %8034  ;;  %v5321_v46 = vmul.f32 %v8033_v22, %v10455_v44  ;;  %v6793_v22 = vld [vmem:[%s11202_s7 + $0x40] sm:$0xff] }
 0xbea   :  { %v5320_v56 = vmul.f32 %v8035_v50, %v10458_v41 }
 0xbeb   :  { %v5341_v11 = vmul.f32 %v10517_v5, %v5321_v46  ;;  %v5257_v1 = vpop.xlane.xlu1 %5256  ;;  %v6797_v46 = vld [vmem:[%s11202_s7 + $0x60] sm:$0xff] }
 0xbec   :  { %v5340_v58 = vmul.f32 %v10517_v5, %v5320_v56  ;;  %v5277_v27 = vmul.f32 0.03125, %v5257_v1  ;;  %v5254_v16 = vpop.xlane.xlu0 %5253  ;;  %v6798_v56 = vld [vmem:[%s11202_s7 + $0x68] sm:$0xff]  ;;  %v6800_v1 = vld [vmem:[%s11202_s7 + $0x78] sm:$0xff] }
 0xbed   :  { %v5276_v36 = vmul.f32 0.03125, %v5254_v16  ;;  %v5361_v45 = vadd.f32 %v10524_v34, %v5341_v11  ;;  %v7710_v11 = vpack.c.bf16 %v6798_v56, %v6797_v46  ;;  %v10615_v16 = vld [vmem:[%s11197_s2 + $0xb] ss:$0 sm:$0xff] }
 0xbee   :  { %v5360_v2 = vadd.f32 %v10524_v34, %v5340_v58  ;;  %v5293_v39 = vadd.f32 1e-05, %v5277_v27  ;;  %v6799_v58 = vld [vmem:[%s11202_s7 + $0x70] sm:$0xff] }
 0xbef   :  { %v5292_v20 = vadd.f32 1e-05, %v5276_v36  ;;  %v7714_v27 = vpack.c.bf16 %v6800_v1, %v6799_v58 }
 0xbf0   :  { %7447 = vmatprep.mubr.msk.f32.mxu1 %vm221_vm0, %v5360_v2  ;;  %8040 = vrsqrt.f32 %v5293_v39 }
 0xbf1   :  { %7448 = vmatmul.mubr.msk.f32.gmra.mrb[72].mxu1 %vm221_vm0, %v5361_v45  ;;  %v8037_v44 = vpop.eup %8036  ;;  %8042 = vrsqrt.f32 %v5292_v20 }
 0xbf2   :  { %v8039_v41 = vpop.eup %8038  ;;  %v5323_v6 = vmul.f32 %v8037_v44, %v10467_v35 }
 0xbf3   :  { %v5322_v25 = vmul.f32 %v8039_v41, %v10470_v13 }
 0xbf4   :  { %v5343_v43 = vmul.f32 %v10517_v5, %v5323_v6 }
 0xbf5   :  { %v5342_v26 = vmul.f32 %v10517_v5, %v5322_v25  ;;  %v5263_v42 = vpop.xlane.xlu1 %5262 }
 0xbf6   :  { %v5279_v14 = vmul.f32 0.03125, %v5263_v42  ;;  %v5260_v38 = vpop.xlane.xlu0 %5259  ;;  %v5363_v15 = vadd.f32 %v10524_v34, %v5343_v43 }
 0xbf7   :  { %v5362_v3 = vadd.f32 %v10524_v34, %v5342_v26  ;;  %v5278_v61 = vmul.f32 0.03125, %v5260_v38 }
 0xbf8   :  { %v5295_v23 = vadd.f32 1e-05, %v5279_v14 }
 0xbf9   :  { %7450 = vmatprep.mubr.msk.f32.mxu1 %vm221_vm0, %v5362_v3  ;;  %v5294_v19 = vadd.f32 1e-05, %v5278_v61 }
 0xbfa   :  { %7451 = vmatmul.mubr.msk.f32.gmra.mrb[74].mxu1 %vm221_vm0, %v5363_v15  ;;  %v8041_v35 = vpop.eup %8040  ;;  %8044 = vrsqrt.f32 %v5295_v23 }
 0xbfb   :  { %v8043_v13 = vpop.eup %8042  ;;  %8046 = vrsqrt.f32 %v5294_v19  ;;  %v5325_v17 = vmul.f32 %v8041_v35, %v10485_v31 }
 0xbfc   :  { %v5324_v10 = vmul.f32 %v8043_v13, %v10488_v4 }
 0xbfd   :  { %v5345_v51 = vmul.f32 %v10517_v5, %v5325_v17 }
 0xbfe   :  { %v5344_v60 = vmul.f32 %v10517_v5, %v5324_v10 }
 0xbff   :  { %v5365_v29 = vadd.f32 %v10524_v34, %v5345_v51 }
 0xc00   :  { %v5364_v49 = vadd.f32 %v10524_v34, %v5344_v60 }
 0xc02   :  { %7453 = vmatprep.mubr.msk.f32.mxu1 %vm221_vm0, %v5364_v49 }
 0xc03   :  { %7454 = vmatmul.mubr.msk.f32.gmra.mrb[76].mxu1 %vm221_vm0, %v5365_v29 }
 0xc04   :  { %v8045_v59 = vpop.eup %8044 }
 0xc05   :  { %v8047_v52 = vpop.eup %8046  ;;  %v5327_v33 = vmul.f32 %v8045_v59, %v10503_v18  ;;  %v6794_v18 = vld [vmem:[%s11202_s7 + $0x48] sm:$0xff] }
 0xc06   :  { %v5326_v31 = vmul.f32 %v8047_v52, %v10506_v21  ;;  %v7702_v21 = vpack.c.bf16 %v6794_v18, %v6793_v22 }
 0xc07   :  { %v5347_v4 = vmul.f32 %v10517_v5, %v5327_v33 }
 0xc08   :  { %v5346_v47 = vmul.f32 %v10517_v5, %v5326_v31  ;;  %7703 = vmatprep.subr.bf16.mxu0 %v7702_v21  ;;  %v6795_v5 = vld [vmem:[%s11202_s7 + $0x50] sm:$0xff] }
 0xc09   :  { %v5367_v24 = vadd.f32 %v10524_v34, %v5347_v4  ;;  %7705 = vmatpush3.bf16.msra.mxu0 %v7702_v21 }
 0xc0a   :  { %v5366_v9 = vadd.f32 %v10524_v34, %v5346_v47  ;;  %v6796_v34 = vld [vmem:[%s11202_s7 + $0x58] sm:$0xff] }
 0xc0b   :  { %v7706_v50 = vpack.c.bf16 %v6796_v34, %v6795_v5 }
 0xc0c   :  { %7456 = vmatprep.mubr.msk.f32.mxu1 %vm221_vm0, %v5366_v9 }
 0xc0d   :  { %7457 = vmatmul.mubr.msk.f32.gmra.mrb[78].mxu1 %vm221_vm0, %v5367_v24  ;;  %7707 = vmatprep.subr.bf16.mxu0 %v7706_v50 }
 0xc0e   :  { %7709 = vmatpush3.bf16.msra.mxu0 %v7706_v50 }
 0xc0f   :  { %7711 = vmatprep.subr.bf16.mxu0 %v7710_v11 }
 0xc12   :  { %7713 = vmatpush3.bf16.msra.mxu0 %v7710_v11 }
 0xc13   :  { %7715 = vmatprep.subr.bf16.mxu0 %v7714_v27 }
 0xc16   :  { %7717 = vmatpush3.bf16.msra.mxu0 %v7714_v27 }
 0xc91   :  { %v7437_v2 = vpop.f32.mrb[64].mxu1 }
 0xc92   :  { %v10618_v36 = vadd.f32 %v7437_v2, %v10615_v16  ;;  %v5491_v45 = vpop.f32.mrb[65].mxu1 }
 0xc93   :  { %v10621_v39 = vadd.f32 %v10615_v16, %v5491_v45 }
 0xc94   :  { %v10624_v20 = vmul.f32 0.70710677, %v10618_v36 }
 0xc95   :  { %v10627_v44 = vmul.f32 0.70710677, %v10621_v39 }
 0xc96   :  { %v5603_v41 = vand.u32 2147483647, %v10624_v20  ;;  %vm5907_vm1 = vcmp.ge.f32.partialorder %v10624_v20, 0.0 }
 0xc97   :  { %v5602_v6 = vand.u32 2147483647, %v10627_v44  ;;  %vm5906_vm11 = vcmp.ge.f32.partialorder %v10627_v44, 0.0 }
 0xc98   :  { %v5619_v25 = vmul.f32 0.3275911, %v5603_v41  ;;  %v5811_v14 = vsub.f32 0.0, %v5603_v41 }
 0xc99   :  { %v5618_v43 = vmul.f32 0.3275911, %v5602_v6  ;;  %v5810_v15 = vsub.f32 0.0, %v5602_v6 }
 0xc9a   :  { %v5635_v26 = vadd.f32 1.0, %v5619_v25  ;;  %v5827_v35 = vmul.f32 %v5811_v14, %v5603_v41 }
 0xc9b   :  { %v5634_v42 = vadd.f32 1.0, %v5618_v43  ;;  %v5826_v52 = vmul.f32 %v5810_v15, %v5602_v6 }
 0xc9c   :  { %8048 = vrcp.f32 %v5635_v26  ;;  %v5844_v24 = vmul.f32 1.442695, %v5827_v35 }
 0xc9d   :  { %8050 = vrcp.f32 %v5634_v42  ;;  %v5842_v50 = vmul.f32 1.442695, %v5826_v52 }
 0xc9e   :  { %v7440_v38 = vpop.f32.mrb[66].mxu1 }
 0xc9f   :  { %v10632_v3 = vadd.f32 %v7440_v38, %v10615_v16  ;;  %v5501_v61 = vpop.f32.mrb[67].mxu1 }
 0xca0   :  { %v10635_v23 = vadd.f32 %v10615_v16, %v5501_v61 }
 0xca1   :  { %v10638_v19 = vmul.f32 0.70710677, %v10632_v3 }
 0xca2   :  { %v10641_v13 = vmul.f32 0.70710677, %v10635_v23  ;;  %v7443_v17 = vpop.f32.mrb[68].mxu1 }
 0xca3   :  { %v5605_v51 = vand.u32 2147483647, %v10638_v19  ;;  %v10645_v60 = vadd.f32 %v7443_v17, %v10615_v16  ;;  %v5511_v49 = vpop.f32.mrb[69].mxu1  ;;  %vm5909_vm12 = vcmp.ge.f32.partialorder %v10638_v19, 0.0 }
 0xca4   :  { %v5604_v33 = vand.u32 2147483647, %v10641_v13  ;;  %v10649_v31 = vadd.f32 %v10615_v16, %v5511_v49  ;;  %vm5908_vm13 = vcmp.ge.f32.partialorder %v10641_v13, 0.0 }
 0xca5   :  { %v5621_v47 = vmul.f32 0.3275911, %v5605_v51  ;;  %v10652_v5 = vmul.f32 0.70710677, %v10645_v60  ;;  %v5813_v41 = vsub.f32 0.0, %v5605_v51 }
 0xca6   :  { %v8049_v10 = vpop.eup %8048  ;;  %v5620_v22 = vmul.f32 0.3275911, %v5604_v33  ;;  %v10655_v56 = vmul.f32 0.70710677, %v10649_v31  ;;  %v5812_v42 = vsub.f32 0.0, %v5604_v33 }
 0xca7   :  { %v8051_v29 = vpop.eup %8050  ;;  %v5667_v59 = vmul.f32 1.0614054, %v8049_v10  ;;  %v5637_v21 = vadd.f32 1.0, %v5621_v47  ;;  %v5607_v58 = vand.u32 2147483647, %v10652_v5  ;;  %v5829_v15 = vmul.f32 %v5813_v41, %v5605_v51 }
 0xca8   :  { %v5666_v4 = vmul.f32 1.0614054, %v8051_v29  ;;  %v5636_v46 = vadd.f32 1.0, %v5620_v22  ;;  %v5606_v6 = vand.u32 2147483647, %v10655_v56  ;;  %v5828_v52 = vmul.f32 %v5812_v42, %v5604_v33 }
 0xca9   :  { %v5683_v9 = vadd.f32 -1.4531521, %v5667_v59  ;;  %8052 = vrcp.f32 %v5637_v21  ;;  %v5623_v2 = vmul.f32 0.3275911, %v5607_v58  ;;  %v5815_v49 = vsub.f32 0.0, %v5607_v58 }
 0xcaa   :  { %v5682_v18 = vadd.f32 -1.4531521, %v5666_v4  ;;  %8054 = vrcp.f32 %v5636_v46  ;;  %v5622_v14 = vmul.f32 0.3275911, %v5606_v6  ;;  %v5571_v47 = vmul.f32 0.5, %v10618_v36 }
 0xcab   :  { %v5699_v34 = vmul.f32 %v8049_v10, %v5683_v9  ;;  %8056 = vpow2.f32 %v5844_v24  ;;  %v5639_v43 = vadd.f32 1.0, %v5623_v2  ;;  %v5570_v9 = vmul.f32 0.5, %v10621_v39 }
 0xcac   :  { %v5698_v11 = vmul.f32 %v8051_v29, %v5682_v18  ;;  %8058 = vpow2.f32 %v5842_v50  ;;  %v5638_v35 = vadd.f32 1.0, %v5622_v14  ;;  %v5848_v21 = vmul.f32 1.442695, %v5829_v15 }
 0xcad   :  { %v5715_v1 = vadd.f32 1.4214138, %v5699_v34  ;;  %8060 = vrcp.f32 %v5639_v43  ;;  %v5831_v46 = vmul.f32 %v5815_v49, %v5607_v58  ;;  %vm5911_vm14 = vcmp.ge.f32.partialorder %v10652_v5, 0.0 }
 0xcae   :  { %v5714_v27 = vadd.f32 1.4214138, %v5698_v11  ;;  %8062 = vrcp.f32 %v5638_v35  ;;  %vm5910_vm15 = vcmp.ge.f32.partialorder %v10655_v56, 0.0 }
 0xcaf   :  { %v5731_v45 = vmul.f32 %v8049_v10, %v5715_v1  ;;  %8064 = vpow2.f32 %v5848_v21 }
 0xcb0   :  { %v5730_v25 = vmul.f32 %v8051_v29, %v5714_v27  ;;  %v5846_v27 = vmul.f32 1.442695, %v5828_v52 }
 0xcb1   :  { %v5747_v26 = vadd.f32 -0.28449672, %v5731_v45 }
 0xcb2   :  { %v5746_v38 = vadd.f32 -0.28449672, %v5730_v25  ;;  %v5814_v25 = vsub.f32 0.0, %v5606_v6  ;;  %8066 = vpow2.f32 %v5846_v27 }
 0xcb3   :  { %v5763_v61 = vmul.f32 %v8049_v10, %v5747_v26  ;;  %v10659_v4 = vpop.eup %8052 }
 0xcb4   :  { %v5762_v17 = vmul.f32 %v8051_v29, %v5746_v38  ;;  %v10663_v22 = vpop.eup %8054  ;;  %v5669_v51 = vmul.f32 1.0614054, %v10659_v4  ;;  %v7446_v11 = vpop.f32.mrb[70].mxu1 }
 0xcb5   :  { %v5779_v59 = vadd.f32 0.2548296, %v5763_v61  ;;  %v8057_v34 = vpop.eup %8056  ;;  %v5668_v33 = vmul.f32 1.0614054, %v10663_v22  ;;  %v10670_v2 = vadd.f32 %v7446_v11, %v10615_v16  ;;  %v5852_v61 = vmul.f32 1.442695, %v5831_v46 }
 0xcb6   :  { %v5778_v24 = vadd.f32 0.2548296, %v5762_v17  ;;  %v8059_v36 = vpop.eup %8058  ;;  %v5685_v39 = vadd.f32 -1.4531521, %v5669_v51 }
 0xcb7   :  { %v5795_v18 = vmul.f32 %v8049_v10, %v5779_v59  ;;  %v5521_v10 = vpop.f32.mrb[71].mxu1  ;;  %v5684_v41 = vadd.f32 -1.4531521, %v5668_v33  ;;  %v10677_v58 = vmul.f32 0.70710677, %v10670_v2  ;;  %v10679_v42 = vpop.eup %8060  ;;  %8068 = vpow2.f32 %v5852_v61 }
 0xcb8   :  { %v5794_v50 = vmul.f32 %v8051_v29, %v5778_v24  ;;  %v10673_v43 = vadd.f32 %v10615_v16, %v5521_v10  ;;  %v5701_v26 = vmul.f32 %v10659_v4, %v5685_v39  ;;  %v5671_v49 = vmul.f32 1.0614054, %v10679_v42  ;;  %v10689_v51 = vpop.eup %8062 }
 0xcb9   :  { %v5875_v1 = vmul.f32 %v8057_v34, %v5795_v18  ;;  %v5700_v38 = vmul.f32 %v10663_v22, %v5684_v41  ;;  %v5830_v24 = vmul.f32 %v5814_v25, %v5606_v6  ;;  %v10687_v18 = vand.u32 2147483647, %v10677_v58 }
 0xcba   :  { %v5874_v45 = vmul.f32 %v8059_v36, %v5794_v50  ;;  %v10683_v15 = vmul.f32 0.70710677, %v10673_v43  ;;  %v5717_v17 = vadd.f32 1.4214138, %v5701_v26  ;;  %v5687_v50 = vadd.f32 -1.4531521, %v5671_v49  ;;  %v8065_v49 = vpop.eup %8064 }
 0xcbb   :  { %v5891_v29 = vsub.f32 1.0, %v5875_v1  ;;  %v5716_v52 = vadd.f32 1.4214138, %v5700_v38  ;;  %v5670_v36 = vmul.f32 1.0614054, %v10689_v51  ;;  %vm5913_vm2 = vcmp.ge.f32.partialorder %v10677_v58, 0.0 }
 0xcbc   :  { %v5890_v14 = vsub.f32 1.0, %v5874_v45  ;;  %v5733_v34 = vmul.f32 %v10659_v4, %v5717_v17  ;;  %v10695_v33 = vand.u32 2147483647, %v10683_v15  ;;  %v5703_v27 = vmul.f32 %v10679_v42, %v5687_v50 }
 0xcbd   :  { %v5923_v35 = vsub.f32 0.0, %v5891_v29  ;;  %v5732_v6 = vmul.f32 %v10663_v22, %v5716_v52  ;;  %v5625_v20 = vmul.f32 0.3275911, %v10687_v18  ;;  %v5686_v45 = vadd.f32 -1.4531521, %v5670_v36 }
 0xcbe   :  { %v5922_v59 = vsub.f32 0.0, %v5890_v14  ;;  %v5749_v39 = vadd.f32 -0.28449672, %v5733_v34  ;;  %v5850_v41 = vmul.f32 1.442695, %v5830_v24  ;;  %vm5912_vm3 = vcmp.ge.f32.partialorder %v10683_v15, 0.0 }
 0xcbf   :  { %v5939_v21 = vsel %vm5907_vm1, %v5891_v29, %v5923_v35  ;;  %v5748_v10 = vadd.f32 -0.28449672, %v5732_v6  ;;  %v5719_v26 = vadd.f32 1.4214138, %v5703_v27  ;;  %v5641_v44 = vadd.f32 1.0, %v5625_v20 }
 0xcc0   :  { %v5955_v46 = vadd.f32 1.0, %v5939_v21  ;;  %v5938_v11 = vsel %vm5906_vm11, %v5890_v14, %v5922_v59  ;;  %v5765_v29 = vmul.f32 %v10659_v4, %v5749_v39  ;;  %v5702_v35 = vmul.f32 %v10689_v51, %v5686_v45 }
 0xcc1   :  { %v5954_v1 = vadd.f32 1.0, %v5938_v11  ;;  %v5764_v38 = vmul.f32 %v10663_v22, %v5748_v10  ;;  %v5624_v17 = vmul.f32 0.3275911, %v10695_v33  ;;  %v5735_v52 = vmul.f32 %v10679_v42, %v5719_v26 }
 0xcc2   :  { %v5971_v14 = vmul.f32 %v5955_v46, %v5571_v47  ;;  %v5781_v59 = vadd.f32 0.2548296, %v5765_v29  ;;  %8070 = vrcp.f32 %v5641_v44  ;;  %v5718_v24 = vadd.f32 1.4214138, %v5702_v35  ;;  %v8067_v47 = vpop.eup %8066 }
 0xcc3   :  { %v5970_v25 = vmul.f32 %v5954_v1, %v5570_v9  ;;  %v5780_v9 = vadd.f32 0.2548296, %v5764_v38  ;;  %v5751_v50 = vadd.f32 -0.28449672, %v5735_v52  ;;  %8072 = vpow2.f32 %v5850_v41  ;;  %v8069_v29 = vpop.eup %8068 }
 0xcc4   :  { %v7449_v61 = vpop.f32.mrb[72].mxu1  ;;  %v5797_v34 = vmul.f32 %v10659_v4, %v5781_v59  ;;  %v5640_v46 = vadd.f32 1.0, %v5624_v17  ;;  %v5573_v6 = vmul.f32 0.5, %v10632_v3  ;;  %v5734_v1 = vmul.f32 %v10689_v51, %v5718_v24 }
 0xcc5   :  { %7475 = vmatprep.mubr.msk.f32.mxu0 %vm3001_vm7, %v5970_v25  ;;  %v10710_v21 = vadd.f32 %v7449_v61, %v10615_v16  ;;  %v5531_v11 = vpop.f32.mrb[73].mxu1  ;;  %v5796_v36 = vmul.f32 %v10663_v22, %v5780_v9  ;;  %v5767_v27 = vmul.f32 %v10679_v42, %v5751_v50  ;;  %v5817_v20 = vsub.f32 0.0, %v10687_v18 }
 0xcc6   :  { %7476 = vmatmul.mubr.msk.f32.vlgmr.msra.gmra.mrb[48].mxu0 %vm3001_vm7, %v5971_v14  ;;  %v5877_v39 = vmul.f32 %v8065_v49, %v5797_v34  ;;  %8074 = vrcp.f32 %v5640_v46  ;;  %v5750_v45 = vadd.f32 -0.28449672, %v5734_v1  ;;  %v10723_v41 = vadd.f32 %v10615_v16, %v5531_v11 }
 0xcc7   :  { %v5876_v10 = vmul.f32 %v8067_v47, %v5796_v36  ;;  %v10720_v4 = vmul.f32 0.70710677, %v10710_v21  ;;  %v5572_v3 = vmul.f32 0.5, %v10635_v23  ;;  %v5783_v22 = vadd.f32 0.2548296, %v5767_v27 }
 0xcc8   :  { %v5893_v25 = vsub.f32 1.0, %v5877_v39  ;;  %v5766_v44 = vmul.f32 %v10689_v51, %v5750_v45  ;;  %v5833_v17 = vmul.f32 %v5817_v20, %v10687_v18  ;;  %v10733_v49 = vmul.f32 0.70710677, %v10723_v41 }
 0xcc9   :  { %v5892_v26 = vsub.f32 1.0, %v5876_v10  ;;  %v5611_v14 = vand.u32 2147483647, %v10720_v4  ;;  %v5799_v35 = vmul.f32 %v10679_v42, %v5783_v22  ;;  %v5816_v23 = vsub.f32 0.0, %v10695_v33 }
 0xcca   :  { %v5925_v38 = vsub.f32 0.0, %v5893_v25  ;;  %v5782_v52 = vadd.f32 0.2548296, %v5766_v44  ;;  %v10742_v42 = vand.u32 2147483647, %v10733_v49  ;;  %vm5915_vm4 = vcmp.ge.f32.partialorder %v10720_v4, 0.0 }
 0xccb   :  { %v5924_v59 = vsub.f32 0.0, %v5892_v26  ;;  %v5627_v61 = vmul.f32 0.3275911, %v5611_v14  ;;  %v5879_v47 = vmul.f32 %v8069_v29, %v5799_v35  ;;  %v5856_v27 = vmul.f32 1.442695, %v5833_v17 }
 0xccc   :  { %v10736_v9 = vpop.eup %8070  ;;  %v5941_v24 = vsel %vm5909_vm12, %v5893_v25, %v5925_v38  ;;  %v5798_v46 = vmul.f32 %v10689_v51, %v5782_v52  ;;  %v5832_v25 = vmul.f32 %v5816_v23, %v10695_v33  ;;  %v5626_v22 = vmul.f32 0.3275911, %v10742_v42 }
 0xccd   :  { %v7452_v18 = vpop.f32.mrb[74].mxu1  ;;  %v5957_v34 = vadd.f32 1.0, %v5941_v24  ;;  %v5940_v50 = vsel %vm5908_vm13, %v5892_v26, %v5924_v59  ;;  %v5673_v11 = vmul.f32 1.0614054, %v10736_v9  ;;  %v8073_v1 = vpop.eup %8072  ;;  %v5895_v19 = vsub.f32 1.0, %v5879_v47 }
 0xcce   :  { %v5541_v36 = vpop.f32.mrb[75].mxu1  ;;  %v5956_v39 = vadd.f32 1.0, %v5940_v50  ;;  %v5643_v20 = vadd.f32 1.0, %v5627_v61  ;;  %v5878_v10 = vmul.f32 %v8073_v1, %v5798_v46  ;;  %v5642_v59 = vadd.f32 1.0, %v5626_v22 }
 0xccf   :  { %v5689_v45 = vadd.f32 -1.4531521, %v5673_v11  ;;  %v5973_v13 = vmul.f32 %v5957_v34, %v5573_v6  ;;  %v5927_v44 = vsub.f32 0.0, %v5895_v19  ;;  %v5819_v52 = vsub.f32 0.0, %v5611_v14 }
 0xcd0   :  { %v10750_v29 = vpop.eup %8074  ;;  %v5972_v26 = vmul.f32 %v5956_v39, %v5572_v3  ;;  %8076 = vrcp.f32 %v5643_v20  ;;  %v5894_v51 = vsub.f32 1.0, %v5878_v10  ;;  %v10757_v33 = vadd.f32 %v7452_v18, %v10615_v16 }
 0xcd1   :  { %v5705_v38 = vmul.f32 %v10736_v9, %v5689_v45  ;;  %v5672_v35 = vmul.f32 1.0614054, %v10750_v29  ;;  %v5943_v17 = vsel %vm5911_vm14, %v5895_v19, %v5927_v44  ;;  %8078 = vpow2.f32 %v5856_v27 }
 0xcd2   :  { %7478 = vmatprep.mubr.msk.f32.mxu0 %vm3001_vm7, %v5972_v26  ;;  %v5926_v23 = vsub.f32 0.0, %v5894_v51  ;;  %v5854_v61 = vmul.f32 1.442695, %v5832_v25  ;;  %8080 = vrcp.f32 %v5642_v59  ;;  %v10763_v24 = vmul.f32 0.70710677, %v10757_v33 }
 0xcd3   :  { %v5721_v6 = vadd.f32 1.4214138, %v5705_v38  ;;  %v5688_v3 = vadd.f32 -1.4531521, %v5672_v35  ;;  %7479 = vmatmul.mubr.msk.f32.gmra.mrb[50].mxu0 %vm3001_vm7, %v5973_v13  ;;  %v5959_v5 = vadd.f32 1.0, %v5943_v17  ;;  %v5574_v50 = vmul.f32 0.5, %v10649_v31 }
 0xcd4   :  { %v5942_v47 = vsel %vm5910_vm15, %v5894_v51, %v5926_v23  ;;  %v5835_v11 = vmul.f32 %v5819_v52, %v5611_v14  ;;  %v5613_v1 = vand.u32 2147483647, %v10763_v24  ;;  %v5575_v39 = vmul.f32 0.5, %v10645_v60 }
 0xcd5   :  { %v5737_v18 = vmul.f32 %v10736_v9, %v5721_v6  ;;  %v5704_v34 = vmul.f32 %v10750_v29, %v5688_v3  ;;  %v5958_v46 = vadd.f32 1.0, %v5942_v47  ;;  %v10771_v27 = vadd.f32 %v10615_v16, %v5541_v36 }
 0xcd6   :  { %v7455_v20 = vpop.f32.mrb[76].mxu1  ;;  %8082 = vpow2.f32 %v5854_v61  ;;  %v5818_v45 = vsub.f32 0.0, %v10742_v42  ;;  %v5629_v25 = vmul.f32 0.3275911, %v5613_v1  ;;  %v5975_v13 = vmul.f32 %v5959_v5, %v5575_v39 }
 0xcd7   :  { %v5753_v56 = vadd.f32 -0.28449672, %v5737_v18  ;;  %v5720_v19 = vadd.f32 1.4214138, %v5704_v34  ;;  %v5974_v10 = vmul.f32 %v5958_v46, %v5574_v50  ;;  %v5551_v22 = vpop.f32.mrb[77].mxu1  ;;  %v10782_v51 = vadd.f32 %v7455_v20, %v10615_v16 }
 0xcd8   :  { %v10777_v26 = vmul.f32 0.70710677, %v10771_v27  ;;  %v5860_v44 = vmul.f32 1.442695, %v5835_v11  ;;  %v5645_v36 = vadd.f32 1.0, %v5629_v25  ;;  %v5834_v17 = vmul.f32 %v5818_v45, %v10742_v42 }
 0xcd9   :  { %v5769_v31 = vmul.f32 %v10736_v9, %v5753_v56  ;;  %v5736_v14 = vmul.f32 %v10750_v29, %v5720_v19  ;;  %7481 = vmatprep.mubr.msk.f32.mxu0 %vm3001_vm7, %v5974_v10  ;;  %v5821_v52 = vsub.f32 0.0, %v5613_v1  ;;  %v10794_v34 = vmul.f32 0.70710677, %v10782_v51 }
 0xcda   :  { %v10779_v60 = vpop.eup %8076  ;;  %7482 = vmatmul.mubr.msk.f32.gmra.mrb[52].mxu0 %vm3001_vm7, %v5975_v13  ;;  %8084 = vrcp.f32 %v5645_v36  ;;  %v5612_v23 = vand.u32 2147483647, %v10777_v26  ;;  %v5858_v39 = vmul.f32 1.442695, %v5834_v17  ;;  %vm5914_vm5 = vcmp.ge.f32.partialorder %v10733_v49, 0.0 }
 0xcdb   :  { %v5785_v38 = vadd.f32 0.2548296, %v5769_v31  ;;  %v5752_v35 = vadd.f32 -0.28449672, %v5736_v14  ;;  %v5675_v59 = vmul.f32 1.0614054, %v10779_v60  ;;  %v8079_v6 = vpop.eup %8078  ;;  %8086 = vpow2.f32 %v5860_v44 }
 0xcdc   :  { %v10791_v47 = vpop.eup %8080  ;;  %v5628_v18 = vmul.f32 0.3275911, %v5612_v23  ;;  %v5837_v56 = vmul.f32 %v5821_v52, %v5613_v1  ;;  %v5577_v44 = vmul.f32 0.5, %v10670_v2  ;;  %vm5917_vm6 = vcmp.ge.f32.partialorder %v10763_v24, 0.0 }
 0xcdd   :  { %v5801_v3 = vmul.f32 %v10736_v9, %v5785_v38  ;;  %v5768_v61 = vmul.f32 %v10750_v29, %v5752_v35  ;;  %v5691_v5 = vadd.f32 -1.4531521, %v5675_v59  ;;  %v5674_v11 = vmul.f32 1.0614054, %v10791_v47 }
 0xcde   :  { %v5644_v19 = vadd.f32 1.0, %v5628_v18  ;;  %v10799_v9 = vand.u32 2147483647, %v10794_v34  ;;  %v10805_v38 = vadd.f32 %v10615_v16, %v5551_v22  ;;  %v5576_v22 = vmul.f32 0.5, %v10673_v43 }
 0xcdf   :  { %v5881_v50 = vmul.f32 %v8079_v6, %v5801_v3  ;;  %v5784_v46 = vadd.f32 0.2548296, %v5768_v61  ;;  %v5707_v42 = vmul.f32 %v10779_v60, %v5691_v5  ;;  %v5690_v13 = vadd.f32 -1.4531521, %v5674_v11 }
 0xce0   :  { %v7458_v20 = vpop.f32.mrb[78].mxu1  ;;  %v8083_v14 = vpop.eup %8082  ;;  %8088 = vrcp.f32 %v5644_v19  ;;  %v5631_v36 = vmul.f32 0.3275911, %v10799_v9  ;;  %v5820_v18 = vsub.f32 0.0, %v5612_v23  ;;  %vm5916_vm8 = vcmp.ge.f32.partialorder %v10777_v26, 0.0 }
 0xce1   :  { %v5897_v10 = vsub.f32 1.0, %v5881_v50  ;;  %v5800_v45 = vmul.f32 %v10750_v29, %v5784_v46  ;;  %v5723_v25 = vadd.f32 1.4214138, %v5707_v42  ;;  %v5561_v31 = vpop.f32.mrb[79].mxu1  ;;  %v5706_v17 = vmul.f32 %v10791_v47, %v5690_v13 }
 0xce2   :  { %8090 = vpow2.f32 %v5858_v39  ;;  %v5864_v29 = vmul.f32 1.442695, %v5837_v56  ;;  %v5647_v52 = vadd.f32 1.0, %v5631_v36  ;;  %v10814_v50 = vmul.f32 0.70710677, %v10805_v38 }
 0xce3   :  { %v5929_v1 = vsub.f32 0.0, %v5897_v10  ;;  %v5880_v35 = vmul.f32 %v8083_v14, %v5800_v45  ;;  %v5739_v59 = vmul.f32 %v10779_v60, %v5723_v25  ;;  %v5722_v61 = vadd.f32 1.4214138, %v5706_v17 }
 0xce4   :  { %v10810_v5 = vpop.eup %8084  ;;  %8092 = vrcp.f32 %v5647_v52  ;;  %v10821_v19 = vand.u32 2147483647, %v10814_v50  ;;  %v5836_v14 = vmul.f32 %v5820_v18, %v5612_v23  ;;  %v5823_v17 = vsub.f32 0.0, %v10799_v9 }
 0xce5   :  { %v5945_v6 = vsel %vm5913_vm2, %v5897_v10, %v5929_v1  ;;  %v5896_v3 = vsub.f32 1.0, %v5880_v35  ;;  %v5755_v2 = vadd.f32 -0.28449672, %v5739_v59  ;;  %v5738_v58 = vmul.f32 %v10791_v47, %v5722_v61  ;;  %v8087_v39 = vpop.eup %8086 }
 0xce6   :  { %v5677_v11 = vmul.f32 1.0614054, %v10810_v5  ;;  %v5961_v56 = vadd.f32 1.0, %v5945_v6  ;;  %8094 = vpow2.f32 %v5864_v29  ;;  %v5630_v36 = vmul.f32 0.3275911, %v10821_v19 }
 0xce7   :  { %v5928_v46 = vsub.f32 0.0, %v5896_v3  ;;  %v5771_v42 = vmul.f32 %v10779_v60, %v5755_v2  ;;  %v5754_v45 = vadd.f32 -0.28449672, %v5738_v58  ;;  %v10825_v1 = vadd.f32 %v7458_v20, %v10615_v16 }
 0xce8   :  { %v5693_v25 = vadd.f32 -1.4531521, %v5677_v11  ;;  %v5977_v52 = vmul.f32 %v5961_v56, %v5577_v44  ;;  %v10834_v23 = vadd.f32 %v10615_v16, %v5561_v31  ;;  %vm5919_vm9 = vcmp.ge.f32.partialorder %v10794_v34, 0.0 }
 0xce9   :  { %v5944_v43 = vsel %vm5912_vm3, %v5896_v3, %v5928_v46  ;;  %v5787_v10 = vadd.f32 0.2548296, %v5771_v42  ;;  %v5770_v59 = vmul.f32 %v10791_v47, %v5754_v45  ;;  %v5646_v3 = vadd.f32 1.0, %v5630_v36 }
 0xcea   :  { %v5960_v13 = vadd.f32 1.0, %v5944_v43  ;;  %v5709_v15 = vmul.f32 %v10810_v5, %v5693_v25  ;;  %v10831_v29 = vpop.eup %8088  ;;  %v5579_v46 = vmul.f32 0.5, %v10710_v21  ;;  %v5862_v42 = vmul.f32 1.442695, %v5836_v14 }
 0xceb   :  { %v5803_v35 = vmul.f32 %v10779_v60, %v5787_v10  ;;  %v5786_v61 = vadd.f32 0.2548296, %v5770_v59  ;;  %v5676_v18 = vmul.f32 1.0614054, %v10831_v29  ;;  %8096 = vrcp.f32 %v5646_v3 }
 0xcec   :  { %v5976_v6 = vmul.f32 %v5960_v13, %v5576_v22  ;;  %v5725_v20 = vadd.f32 1.4214138, %v5709_v15  ;;  %v8091_v60 = vpop.eup %8090  ;;  %v10839_v58 = vmul.f32 0.70710677, %v10825_v1  ;;  %v5839_v21 = vmul.f32 %v5823_v17, %v10799_v9 }
 0xced   :  { %v5883_v2 = vmul.f32 %v8087_v39, %v5803_v35  ;;  %v5802_v22 = vmul.f32 %v10791_v47, %v5786_v61  ;;  %v5692_v31 = vadd.f32 -1.4531521, %v5676_v18  ;;  %v10851_v56 = vmul.f32 0.70710677, %v10834_v23 }
 0xcee   :  { %7484 = vmatprep.mubr.msk.f32.mxu0 %vm3001_vm7, %v5976_v6  ;;  %v5741_v16 = vmul.f32 %v10810_v5, %v5725_v20  ;;  %v10845_v11 = vpop.eup %8092  ;;  %v5617_v39 = vand.u32 2147483647, %v10839_v58  ;;  %v5578_v13 = vmul.f32 0.5, %v10723_v41  ;;  %8098 = vpow2.f32 %v5862_v42 }
 0xcef   :  { %v5899_v44 = vsub.f32 1.0, %v5883_v2  ;;  %7485 = vmatmul.mubr.msk.f32.gmra.mrb[54].mxu0 %vm3001_vm7, %v5977_v52  ;;  %v5882_v10 = vmul.f32 %v8091_v60, %v5802_v22  ;;  %v5708_v47 = vmul.f32 %v10831_v29, %v5692_v31  ;;  %v5679_v14 = vmul.f32 1.0614054, %v10845_v11 }
 0xcf0   :  { %v5757_v45 = vadd.f32 -0.28449672, %v5741_v16  ;;  %v8095_v25 = vpop.eup %8094  ;;  %v5633_v36 = vmul.f32 0.3275911, %v5617_v39  ;;  %v5868_v17 = vmul.f32 1.442695, %v5839_v21 }
 0xcf1   :  { %v5931_v43 = vsub.f32 0.0, %v5899_v44  ;;  %v5898_v35 = vsub.f32 1.0, %v5882_v10  ;;  %v5724_v59 = vadd.f32 1.4214138, %v5708_v47  ;;  %v5695_v15 = vadd.f32 -1.4531521, %v5679_v14 }
 0xcf2   :  { %v5773_v9 = vmul.f32 %v10810_v5, %v5757_v45  ;;  %v5822_v52 = vsub.f32 0.0, %v10821_v19  ;;  %v5649_v6 = vadd.f32 1.0, %v5633_v36  ;;  %v5616_v41 = vand.u32 2147483647, %v10851_v56 }
 0xcf3   :  { %v5947_v4 = vsel %vm5915_vm4, %v5899_v44, %v5931_v43  ;;  %v5930_v3 = vsub.f32 0.0, %v5898_v35  ;;  %v5740_v61 = vmul.f32 %v10831_v29, %v5724_v59  ;;  %v5711_v18 = vmul.f32 %v10845_v11, %v5695_v15 }
 0xcf4   :  { %v5789_v2 = vadd.f32 0.2548296, %v5773_v9  ;;  %v5963_v20 = vadd.f32 1.0, %v5947_v4  ;;  %8100 = vrcp.f32 %v5649_v6  ;;  %v5632_v22 = vmul.f32 0.3275911, %v5616_v41 }
 0xcf5   :  { %v5946_v60 = vsel %vm5914_vm5, %v5898_v35, %v5930_v3  ;;  %v5756_v44 = vadd.f32 -0.28449672, %v5740_v61  ;;  %v10863_v16 = vpop.eup %8096  ;;  %v5727_v21 = vadd.f32 1.4214138, %v5711_v18  ;;  %8102 = vpow2.f32 %v5868_v17 }
 0xcf6   :  { %v5805_v42 = vmul.f32 %v10810_v5, %v5789_v2  ;;  %v5962_v31 = vadd.f32 1.0, %v5946_v60  ;;  %v5838_v43 = vmul.f32 %v5822_v52, %v10821_v19  ;;  %v5678_v49 = vmul.f32 1.0614054, %v10863_v16 }
 0xcf7   :  { %v5772_v45 = vmul.f32 %v10831_v29, %v5756_v44  ;;  %v5648_v47 = vadd.f32 1.0, %v5632_v22  ;;  %v5979_v14 = vmul.f32 %v5963_v20, %v5579_v46  ;;  %v5743_v4 = vmul.f32 %v10845_v11, %v5727_v21 }
 0xcf8   :  { %v5885_v10 = vmul.f32 %v8095_v25, %v5805_v42  ;;  %v5978_v36 = vmul.f32 %v5962_v31, %v5578_v13  ;;  %v5694_v9 = vadd.f32 -1.4531521, %v5678_v49  ;;  %v8099_v59 = vpop.eup %8098  ;;  %v5866_v6 = vmul.f32 1.442695, %v5838_v43 }
 0xcf9   :  { %v5788_v35 = vadd.f32 0.2548296, %v5772_v45  ;;  %8104 = vrcp.f32 %v5648_v47  ;;  %v5759_v15 = vadd.f32 -0.28449672, %v5743_v4  ;;  %v5825_v17 = vsub.f32 0.0, %v5617_v39 }
 0xcfa   :  { %v5901_v5 = vsub.f32 1.0, %v5885_v10  ;;  %7487 = vmatprep.mubr.msk.f32.mxu0 %vm3001_vm7, %v5978_v36  ;;  %v5710_v25 = vmul.f32 %v10863_v16, %v5694_v9  ;;  %8106 = vpow2.f32 %v5866_v6  ;;  %v5824_v18 = vsub.f32 0.0, %v5616_v41 }
 0xcfb   :  { %v5804_v19 = vmul.f32 %v10831_v29, %v5788_v35  ;;  %7488 = vmatmul.mubr.msk.f32.gmra.mrb[56].mxu0 %vm3001_vm7, %v5979_v14  ;;  %v5775_v13 = vmul.f32 %v10845_v11, %v5759_v15  ;;  %v5841_v20 = vmul.f32 %v5825_v17, %v5617_v39  ;;  %v5580_v35 = vmul.f32 0.5, %v10771_v27 }
 0xcfc   :  { %v5933_v46 = vsub.f32 0.0, %v5901_v5  ;;  %v5726_v3 = vadd.f32 1.4214138, %v5710_v25  ;;  %v5840_v47 = vmul.f32 %v5824_v18, %v5616_v41  ;;  %vm5918_vm10 = vcmp.ge.f32.partialorder %v10814_v50, 0.0 }
 0xcfd   :  { %v5884_v52 = vmul.f32 %v8099_v59, %v5804_v19  ;;  %v5791_v61 = vadd.f32 0.2548296, %v5775_v13  ;;  %v5872_v49 = vmul.f32 1.442695, %v5841_v20  ;;  %v5583_v34 = vmul.f32 0.5, %v10782_v51 }
 0xcfe   :  { %v8101_v2 = vpop.eup %8100  ;;  %v5742_v42 = vmul.f32 %v10863_v16, %v5726_v3  ;;  %v5949_v22 = vsel %vm5917_vm6, %v5901_v5, %v5933_v46  ;;  %v5870_v46 = vmul.f32 1.442695, %v5840_v47  ;;  %vm5921_vm1 = vcmp.ge.f32.partialorder %v10839_v58, 0.0  ;;  %v10899_v58 = vld [vmem:[%s11197_s2 + $0xc] ss:$0 sm:$0xff] }
 0xcff   :  { %v5900_v60 = vsub.f32 1.0, %v5884_v52  ;;  %v5681_v29 = vmul.f32 1.0614054, %v8101_v2  ;;  %v8103_v44 = vpop.eup %8102  ;;  %v5807_v31 = vmul.f32 %v10845_v11, %v5791_v61  ;;  %v5965_v14 = vadd.f32 1.0, %v5949_v22 }
 0xd00   :  { %v5758_v43 = vadd.f32 -0.28449672, %v5742_v42  ;;  %v5581_v11 = vmul.f32 0.5, %v10757_v33  ;;  %8108 = vpow2.f32 %v5872_v49  ;;  %vm5920_vm11 = vcmp.ge.f32.partialorder %v10851_v56, 0.0 }
 0xd01   :  { %v5932_v21 = vsub.f32 0.0, %v5900_v60  ;;  %v5697_v10 = vadd.f32 -1.4531521, %v5681_v29  ;;  %v5887_v45 = vmul.f32 %v8103_v44, %v5807_v31  ;;  %8110 = vpow2.f32 %v5870_v46 }
 0xd02   :  { %v5774_v24 = vmul.f32 %v10863_v16, %v5758_v43  ;;  %v5981_v19 = vmul.f32 %v5965_v14, %v5581_v11  ;;  %vm6556_vm12 = vcmask 1041409   ;;  %vm6558_vm13 = vcmask 1042434  }
 0xd03   :  { %v8105_v39 = vpop.eup %8104  ;;  %v5948_v36 = vsel %vm5916_vm8, %v5900_v60, %v5932_v21  ;;  %v5713_v4 = vmul.f32 %v8101_v2, %v5697_v10  ;;  %v5903_v5 = vsub.f32 1.0, %v5887_v45  ;;  %v5582_v10 = vmul.f32 0.5, %v10805_v38 }
 0xd04   :  { %v5964_v9 = vadd.f32 1.0, %v5948_v36  ;;  %v5680_v59 = vmul.f32 1.0614054, %v8105_v39  ;;  %v5790_v15 = vadd.f32 0.2548296, %v5774_v24  ;;  %v8107_v13 = vpop.eup %8106  ;;  %vm6560_vm14 = vcmask 1043459  }
 0xd05   :  { %v5729_v6 = vadd.f32 1.4214138, %v5713_v4  ;;  %v5935_v52 = vsub.f32 0.0, %v5903_v5  ;;  %vm6562_vm15 = vcmask 1044484   ;;  %vm6564_vm2 = vcmask 1045509  }
 0xd06   :  { %v5980_v17 = vmul.f32 %v5964_v9, %v5580_v35  ;;  %v5696_v26 = vadd.f32 -1.4531521, %v5680_v59  ;;  %v5806_v41 = vmul.f32 %v10863_v16, %v5790_v15  ;;  %v5584_v15 = vmul.f32 0.5, %v10834_v23 }
 0xd07   :  { %v5745_v25 = vmul.f32 %v8101_v2, %v5729_v6  ;;  %v5951_v60 = vsel %vm5919_vm9, %v5903_v5, %v5935_v52  ;;  %vm6566_vm3 = vcmask 1046534   ;;  %vm6568_vm4 = vcmask 1047559  }
 0xd08   :  { %v5712_v3 = vmul.f32 %v8105_v39, %v5696_v26  ;;  %7490 = vmatprep.mubr.msk.f32.mxu0 %vm3001_vm7, %v5980_v17  ;;  %v5886_v27 = vmul.f32 %v8107_v13, %v5806_v41  ;;  %v5967_v22 = vadd.f32 1.0, %v5951_v60 }
 0xd09   :  { %v5761_v61 = vadd.f32 -0.28449672, %v5745_v25  ;;  %7491 = vmatmul.mubr.msk.f32.gmra.mrb[58].mxu0 %vm3001_vm7, %v5981_v19 }
 0xd0a   :  { %v5728_v33 = vadd.f32 1.4214138, %v5712_v3  ;;  %v5902_v20 = vsub.f32 1.0, %v5886_v27  ;;  %v8109_v43 = vpop.eup %8108  ;;  %v5983_v24 = vmul.f32 %v5967_v22, %v5583_v34 }
 0xd0b   :  { %v5777_v18 = vmul.f32 %v8101_v2, %v5761_v61  ;;  %v8111_v50 = vpop.eup %8110 }
 0xd0c   :  { %v5744_v42 = vmul.f32 %v8105_v39, %v5728_v33  ;;  %v5934_v16 = vsub.f32 0.0, %v5902_v20 }
 0xd0d   :  { %v5793_v29 = vadd.f32 0.2548296, %v5777_v18 }
 0xd0e   :  { %v5760_v44 = vadd.f32 -0.28449672, %v5744_v42  ;;  %v5950_v31 = vsel %vm5918_vm10, %v5902_v20, %v5934_v16 }
 0xd0f   :  { %v5809_v21 = vmul.f32 %v8101_v2, %v5793_v29  ;;  %v5966_v45 = vadd.f32 1.0, %v5950_v31 }
 0xd10   :  { %v5776_v49 = vmul.f32 %v8105_v39, %v5760_v44 }
 0xd11   :  { %v5889_v47 = vmul.f32 %v8109_v43, %v5809_v21  ;;  %v5982_v14 = vmul.f32 %v5966_v45, %v5582_v10 }
 0xd12   :  { %v5792_v36 = vadd.f32 0.2548296, %v5776_v49 }
 0xd13   :  { %v5905_v4 = vsub.f32 1.0, %v5889_v47  ;;  %7493 = vmatprep.mubr.msk.f32.mxu0 %vm3001_vm7, %v5982_v14 }
 0xd14   :  { %v5808_v35 = vmul.f32 %v8105_v39, %v5792_v36  ;;  %7494 = vmatmul.mubr.msk.f32.gmra.mrb[60].mxu0 %vm3001_vm7, %v5983_v24  ;;  %v5585_v39 = vmul.f32 0.5, %v10825_v1 }
 0xd15   :  { %v5937_v9 = vsub.f32 0.0, %v5905_v4 }
 0xd16   :  { %v5888_v2 = vmul.f32 %v8111_v50, %v5808_v35 }
 0xd17   :  { %v5953_v5 = vsel %vm5921_vm1, %v5905_v4, %v5937_v9 }
 0xd18   :  { %v5904_v38 = vsub.f32 1.0, %v5888_v2  ;;  %v5969_v51 = vadd.f32 1.0, %v5953_v5 }
 0xd1a   :  { %v5936_v59 = vsub.f32 0.0, %v5904_v38  ;;  %v5985_v26 = vmul.f32 %v5969_v51, %v5585_v39 }
 0xd1c   :  { %v5952_v11 = vsel %vm5920_vm11, %v5904_v38, %v5936_v59 }
 0xd1d   :  { %v5968_v6 = vadd.f32 1.0, %v5952_v11 }
 0xd1f   :  { %v5984_v17 = vmul.f32 %v5968_v6, %v5584_v15 }
 0xd21   :  { %7496 = vmatprep.mubr.msk.f32.mxu0 %vm3001_vm7, %v5984_v17 }
 0xd22   :  { %7497 = vmatmul.mubr.msk.f32.gmra.mrb[62].mxu0 %vm3001_vm7, %v5985_v26  ;;  %vm8170_vm7 = vmmov 0  }
 0xd99   :  { %v7477_v19 = vpop.f32.mrb[48].mxu0 }
 0xd9a   :  { %v6119_v56 = vadd.f32 %v7477_v19, %v10899_v58  ;;  %v6113_v41 = vpop.f32.mrb[49].mxu0 }
 0xd9b   :  { %v6114_v23 = vadd.f32 %v10899_v58, %v6113_v41 }
 0xd9c   :  { %v10904_v25 = vadd.f32 %v6119_v56, %v10313_v8 }
 0xd9d   :  { %v10907_v1 = vadd.f32 %v6114_v23, %v10316_v12 }
 0xd9e   :  { %v6213_v46 = vsel %vm221_vm0, %v10904_v25, 0.0 }
 0xd9f   :  { %6214 = vadd.xlane.f32.xlu1 %v6213_v46  ;;  %v6210_v13 = vsel %vm221_vm0, %v10907_v1, 0.0 }
 0xda0   :  { %6211 = vadd.xlane.f32.xlu0 %v6210_v13 }
 0xda6   :  { %v7480_v52 = vpop.f32.mrb[50].mxu0 }
 0xda7   :  { %v6129_v3 = vadd.f32 %v7480_v52, %v10899_v58  ;;  %v6123_v27 = vpop.f32.mrb[51].mxu0 }
 0xda8   :  { %v6124_v61 = vadd.f32 %v10899_v58, %v6123_v27 }
 0xda9   :  { %v10916_v8 = vadd.f32 %v6129_v3, %v10325_v28 }
 0xdaa   :  { %v10919_v12 = vadd.f32 %v6124_v61, %v10329_v57 }
 0xdab   :  { %v6219_v33 = vsel %vm221_vm0, %v10916_v8, 0.0 }
 0xdac   :  { %6220 = vadd.xlane.f32.xlu1 %v6219_v33  ;;  %v6216_v20 = vsel %vm221_vm0, %v10919_v12, 0.0 }
 0xdad   :  { %6217 = vadd.xlane.f32.xlu0 %v6216_v20  ;;  %v7483_v18 = vpop.f32.mrb[52].mxu0 }
 0xdae   :  { %v6139_v60 = vadd.f32 %v7483_v18, %v10899_v58  ;;  %v6133_v42 = vpop.f32.mrb[53].mxu0 }
 0xdaf   :  { %v6134_v16 = vadd.f32 %v10899_v58, %v6133_v42 }
 0xdb0   :  { %v10928_v28 = vadd.f32 %v6139_v60, %v10333_v53 }
 0xdb1   :  { %v10931_v57 = vadd.f32 %v6134_v16, %v10338_v63 }
 0xdb2   :  { %v6225_v29 = vsel %vm221_vm0, %v10928_v28, 0.0 }
 0xdb3   :  { %6226 = vadd.xlane.f32.xlu1 %v6225_v29  ;;  %v6222_v44 = vsel %vm221_vm0, %v10931_v57, 0.0 }
 0xdb4   :  { %6223 = vadd.xlane.f32.xlu0 %v6222_v44 }
 0xdc2   :  { %v7486_v22 = vpop.f32.mrb[54].mxu0 }
 0xdc3   :  { %v6149_v31 = vadd.f32 %v7486_v22, %v10899_v58  ;;  %v6143_v21 = vpop.f32.mrb[55].mxu0 }
 0xdc4   :  { %v6144_v43 = vadd.f32 %v10899_v58, %v6143_v21 }
 0xdc5   :  { %v10940_v53 = vadd.f32 %v6149_v31, %v10349_v48 }
 0xdc6   :  { %v10943_v63 = vadd.f32 %v6144_v43, %v10352_v30 }
 0xdc7   :  { %v6231_v10 = vsel %vm221_vm0, %v10940_v53, 0.0 }
 0xdc8   :  { %6232 = vadd.xlane.f32.xlu1 %v6231_v10  ;;  %v6228_v45 = vsel %vm221_vm0, %v10943_v63, 0.0 }
 0xdc9   :  { %6229 = vadd.xlane.f32.xlu0 %v6228_v45 }
 0xdce   :  { %v7489_v49 = vpop.f32.mrb[56].mxu0 }
 0xdcf   :  { %v6159_v34 = vadd.f32 %v7489_v49, %v10899_v58  ;;  %v6153_v47 = vpop.f32.mrb[57].mxu0 }
 0xdd0   :  { %v6154_v14 = vadd.f32 %v10899_v58, %v6153_v47 }
 0xdd1   :  { %v10952_v48 = vadd.f32 %v6159_v34, %v10361_v54 }
 0xdd2   :  { %v10955_v30 = vadd.f32 %v6154_v14, %v10364_v32 }
 0xdd3   :  { %v6237_v36 = vsel %vm221_vm0, %v10952_v48, 0.0 }
 0xdd4   :  { %6238 = vadd.xlane.f32.xlu1 %v6237_v36  ;;  %v6234_v24 = vsel %vm221_vm0, %v10955_v30, 0.0 }
 0xdd5   :  { %6235 = vadd.xlane.f32.xlu0 %v6234_v24 }
 0xddc   :  { %v7492_v4 = vpop.f32.mrb[58].mxu0 }
 0xddd   :  { %v6169_v35 = vadd.f32 %v7492_v4, %v10899_v58  ;;  %v6163_v50 = vpop.f32.mrb[59].mxu0 }
 0xdde   :  { %v6164_v9 = vadd.f32 %v10899_v58, %v6163_v50 }
 0xddf   :  { %v10964_v54 = vadd.f32 %v6169_v35, %v10373_v62 }
 0xde0   :  { %v10967_v32 = vadd.f32 %v6164_v9, %v10376_v0 }
 0xde1   :  { %v6243_v2 = vsel %vm221_vm0, %v10964_v54, 0.0 }
 0xde2   :  { %6244 = vadd.xlane.f32.xlu1 %v6243_v2  ;;  %v6240_v38 = vsel %vm221_vm0, %v10967_v32, 0.0 }
 0xde3   :  { %6241 = vadd.xlane.f32.xlu0 %v6240_v38 }
 0xde7   :  { %v7495_v5 = vpop.f32.mrb[60].mxu0 }
 0xde8   :  { %v6179_v59 = vadd.f32 %v7495_v5, %v10899_v58  ;;  %v6173_v51 = vpop.f32.mrb[61].mxu0 }
 0xde9   :  { %v6174_v11 = vadd.f32 %v10899_v58, %v6173_v51 }
 0xdea   :  { %v10976_v62 = vadd.f32 %v6179_v59, %v10385_v7 }
 0xdeb   :  { %v10979_v0 = vadd.f32 %v6174_v11, %v10388_v55 }
 0xdec   :  { %v6249_v15 = vsel %vm221_vm0, %v10976_v62, 0.0 }
 0xded   :  { %6250 = vadd.xlane.f32.xlu1 %v6249_v15  ;;  %v6246_v6 = vsel %vm221_vm0, %v10979_v0, 0.0 }
 0xdee   :  { %6247 = vadd.xlane.f32.xlu0 %v6246_v6 }
 0xdf5   :  { %v7498_v39 = vpop.f32.mrb[62].mxu0 }
 0xdf6   :  { %v6189_v17 = vadd.f32 %v7498_v39, %v10899_v58  ;;  %v6183_v26 = vpop.f32.mrb[63].mxu0 }
 0xdf7   :  { %v6184_v19 = vadd.f32 %v10899_v58, %v6183_v26 }
 0xdf8   :  { %v10988_v7 = vadd.f32 %v6189_v17, %v10397_v37 }
 0xdf9   :  { %v10991_v55 = vadd.f32 %v6184_v19, %v10400_v40 }
 0xdfa   :  { %v6255_v56 = vsel %vm221_vm0, %v10988_v7, 0.0 }
 0xdfb   :  { %6256 = vadd.xlane.f32.xlu1 %v6255_v56  ;;  %v6252_v41 = vsel %vm221_vm0, %v10991_v55, 0.0 }
 0xdfc   :  { %6253 = vadd.xlane.f32.xlu0 %v6252_v41 }
 0xe2c   :  { %v6215_v23 = vpop.xlane.xlu1 %6214 }
 0xe2d   :  { %v6259_v46 = vmul.f32 0.03125, %v6215_v23  ;;  %v6212_v13 = vpop.xlane.xlu0 %6211 }
 0xe2e   :  { %v6258_v52 = vmul.f32 0.03125, %v6212_v13 }
 0xe2f   :  { %v10998_v58 = vsub.f32 %v10904_v25, %v6259_v46 }
 0xe30   :  { %v11001_v37 = vsub.f32 %v10907_v1, %v6258_v52 }
 0xe31   :  { %v6291_v40 = vmul.f32 %v10998_v58, %v10998_v58 }
 0xe32   :  { %v6290_v3 = vmul.f32 %v11001_v37, %v11001_v37 }
 0xe33   :  { %v6309_v27 = vsel %vm221_vm0, %v6291_v40, 0.0 }
 0xe34   :  { %6310 = vadd.xlane.f32.xlu1 %v6309_v27  ;;  %v6306_v61 = vsel %vm221_vm0, %v6290_v3, 0.0 }
 0xe35   :  { %6307 = vadd.xlane.f32.xlu0 %v6306_v61 }
 0xe39   :  { %v6221_v33 = vpop.xlane.xlu1 %6220 }
 0xe3a   :  { %v6261_v20 = vmul.f32 0.03125, %v6221_v33  ;;  %v6218_v18 = vpop.xlane.xlu0 %6217 }
 0xe3b   :  { %v6260_v25 = vmul.f32 0.03125, %v6218_v18 }
 0xe3c   :  { %v11010_v60 = vsub.f32 %v10916_v8, %v6261_v20 }
 0xe3d   :  { %v11013_v1 = vsub.f32 %v10919_v12, %v6260_v25 }
 0xe3e   :  { %v6293_v42 = vmul.f32 %v11010_v60, %v11010_v60 }
 0xe3f   :  { %v6292_v16 = vmul.f32 %v11013_v1, %v11013_v1 }
 0xe40   :  { %v6315_v29 = vsel %vm221_vm0, %v6293_v42, 0.0  ;;  %v6227_v44 = vpop.xlane.xlu1 %6226 }
 0xe41   :  { %6316 = vadd.xlane.f32.xlu1 %v6315_v29  ;;  %v6312_v22 = vsel %vm221_vm0, %v6292_v16, 0.0  ;;  %v6263_v31 = vmul.f32 0.03125, %v6227_v44  ;;  %v6224_v21 = vpop.xlane.xlu0 %6223 }
 0xe42   :  { %6313 = vadd.xlane.f32.xlu0 %v6312_v22  ;;  %v6262_v8 = vmul.f32 0.03125, %v6224_v21  ;;  %v6541_v21 = vld [vmem:[%s11203_s8 + $0x10] sm:$0xff] }
 0xe43   :  { %v11022_v43 = vsub.f32 %v10928_v28, %v6263_v31 }
 0xe44   :  { %v11025_v12 = vsub.f32 %v10931_v57, %v6262_v8  ;;  %v8169_v8 = vmov 0.0|0.0  }
 0xe45   :  { %v6295_v10 = vmul.f32 %v11022_v43, %v11022_v43  ;;  %7718 = vmatprep.subr.bf16.mxu1 %v8169_v8 }
 0xe46   :  { %v6294_v45 = vmul.f32 %v11025_v12, %v11025_v12 }
 0xe47   :  { %v6321_v49 = vsel %vm221_vm0, %v6295_v10, 0.0 }
 0xe48   :  { %6322 = vadd.xlane.f32.xlu1 %v6321_v49  ;;  %v6318_v34 = vsel %vm221_vm0, %v6294_v45, 0.0  ;;  %v6542_v45 = vld [vmem:[%s11203_s8 + $0x18] sm:$0xff]  ;;  %v8171_v49 = vmov 0.0  }
 0xe49   :  { %6319 = vadd.xlane.f32.xlu0 %v6318_v34  ;;  %7507 = vmatprep.mubr.msk.f32.mxu1 %vm8170_vm7, %v8171_v49  ;;  %v7722_v34 = vpack.c.bf16 %v6542_v45, %v6541_v21 }
 0xe55   :  { %v6233_v47 = vpop.xlane.xlu1 %6232 }
 0xe56   :  { %v6265_v14 = vmul.f32 0.03125, %v6233_v47  ;;  %v6230_v36 = vpop.xlane.xlu0 %6229 }
 0xe57   :  { %v6264_v28 = vmul.f32 0.03125, %v6230_v36 }
 0xe58   :  { %v11034_v24 = vsub.f32 %v10940_v53, %v6265_v14 }
 0xe59   :  { %v11037_v57 = vsub.f32 %v10943_v63, %v6264_v28 }
 0xe5a   :  { %v6297_v4 = vmul.f32 %v11034_v24, %v11034_v24 }
 0xe5b   :  { %v6296_v35 = vmul.f32 %v11037_v57, %v11037_v57 }
 0xe5c   :  { %v6327_v50 = vsel %vm221_vm0, %v6297_v4, 0.0 }
 0xe5d   :  { %6328 = vadd.xlane.f32.xlu1 %v6327_v50  ;;  %v6324_v9 = vsel %vm221_vm0, %v6296_v35, 0.0 }
 0xe5e   :  { %6325 = vadd.xlane.f32.xlu0 %v6324_v9 }
 0xe61   :  { %v6239_v2 = vpop.xlane.xlu1 %6238 }
 0xe62   :  { %v6267_v38 = vmul.f32 0.03125, %v6239_v2  ;;  %v6236_v5 = vpop.xlane.xlu0 %6235 }
 0xe63   :  { %v6266_v53 = vmul.f32 0.03125, %v6236_v5 }
 0xe64   :  { %v11046_v59 = vsub.f32 %v10952_v48, %v6267_v38 }
 0xe65   :  { %v11049_v63 = vsub.f32 %v10955_v30, %v6266_v53 }
 0xe66   :  { %v6299_v51 = vmul.f32 %v11046_v59, %v11046_v59 }
 0xe67   :  { %v6298_v11 = vmul.f32 %v11049_v63, %v11049_v63 }
 0xe68   :  { %v6333_v15 = vsel %vm221_vm0, %v6299_v51, 0.0 }
 0xe69   :  { %6334 = vadd.xlane.f32.xlu1 %v6333_v15  ;;  %v6330_v6 = vsel %vm221_vm0, %v6298_v11, 0.0 }
 0xe6a   :  { %6331 = vadd.xlane.f32.xlu0 %v6330_v6 }
 0xe6f   :  { %v6245_v39 = vpop.xlane.xlu1 %6244 }
 0xe70   :  { %v6269_v17 = vmul.f32 0.03125, %v6245_v39  ;;  %v6242_v26 = vpop.xlane.xlu0 %6241 }
 0xe71   :  { %v6268_v48 = vmul.f32 0.03125, %v6242_v26 }
 0xe72   :  { %v11058_v19 = vsub.f32 %v10964_v54, %v6269_v17 }
 0xe73   :  { %v11061_v30 = vsub.f32 %v10967_v32, %v6268_v48 }
 0xe74   :  { %v6301_v56 = vmul.f32 %v11058_v19, %v11058_v19 }
 0xe75   :  { %v6300_v41 = vmul.f32 %v11061_v30, %v11061_v30 }
 0xe76   :  { %v6339_v23 = vsel %vm221_vm0, %v6301_v56, 0.0 }
 0xe77   :  { %6340 = vadd.xlane.f32.xlu1 %v6339_v23  ;;  %v6336_v46 = vsel %vm221_vm0, %v6300_v41, 0.0 }
 0xe78   :  { %6337 = vadd.xlane.f32.xlu0 %v6336_v46 }
 0xe7a   :  { %v6251_v13 = vpop.xlane.xlu1 %6250 }
 0xe7b   :  { %v6271_v52 = vmul.f32 0.03125, %v6251_v13  ;;  %v6248_v40 = vpop.xlane.xlu0 %6247 }
 0xe7c   :  { %v6270_v54 = vmul.f32 0.03125, %v6248_v40 }
 0xe7d   :  { %v11070_v3 = vsub.f32 %v10976_v62, %v6271_v52 }
 0xe7e   :  { %v11073_v32 = vsub.f32 %v10979_v0, %v6270_v54 }
 0xe7f   :  { %v6303_v27 = vmul.f32 %v11070_v3, %v11070_v3 }
 0xe80   :  { %v6302_v61 = vmul.f32 %v11073_v32, %v11073_v32 }
 0xe81   :  { %v6345_v33 = vsel %vm221_vm0, %v6303_v27, 0.0 }
 0xe82   :  { %6346 = vadd.xlane.f32.xlu1 %v6345_v33  ;;  %v6342_v20 = vsel %vm221_vm0, %v6302_v61, 0.0 }
 0xe83   :  { %6343 = vadd.xlane.f32.xlu0 %v6342_v20 }
 0xe88   :  { %v6257_v18 = vpop.xlane.xlu1 %6256 }
 0xe89   :  { %v6273_v25 = vmul.f32 0.03125, %v6257_v18  ;;  %v6254_v42 = vpop.xlane.xlu0 %6253 }
 0xe8a   :  { %v6272_v62 = vmul.f32 0.03125, %v6254_v42 }
 0xe8b   :  { %v11082_v16 = vsub.f32 %v10988_v7, %v6273_v25  ;;  %v6539_v7 = vld [vmem:[%s11203_s8] sm:$0xff] }
 0xe8c   :  { %v11085_v0 = vsub.f32 %v10991_v55, %v6272_v62  ;;  %v6540_v55 = vld [vmem:[%s11203_s8 + $0x8] sm:$0xff] }
 0xe8d   :  { %v6305_v29 = vmul.f32 %v11082_v16, %v11082_v16  ;;  %v7719_v10 = vpack.c.bf16 %v6540_v55, %v6539_v7 }
 0xe8e   :  { %v6304_v44 = vmul.f32 %v11085_v0, %v11085_v0 }
 0xe8f   :  { %v6351_v22 = vsel %vm221_vm0, %v6305_v29, 0.0  ;;  %7720 = vmatpush3.bf16.msra.mxu1 %v7719_v10 }
 0xe90   :  { %6352 = vadd.xlane.f32.xlu1 %v6351_v22  ;;  %v6348_v31 = vsel %vm221_vm0, %v6304_v44, 0.0  ;;  %7721 = vmatprep.subr.bf16.mxu1 %v8169_v8 }
 0xe91   :  { %6349 = vadd.xlane.f32.xlu0 %v6348_v31 }
 0xe93   :  { %7723 = vmatpush3.bf16.msra.mxu1 %v7722_v34 }
 0xec1   :  { %v6311_v47 = vpop.xlane.xlu1 %6310 }
 0xec2   :  { %v6308_v14 = vpop.xlane.xlu0 %6307  ;;  %v6355_v9 = vmul.f32 0.03125, %v6311_v47 }
 0xec3   :  { %v6354_v38 = vmul.f32 0.03125, %v6308_v14 }
 0xec4   :  { %v6371_v51 = vadd.f32 1e-05, %v6355_v9 }
 0xec5   :  { %v6370_v15 = vadd.f32 1e-05, %v6354_v38 }
 0xec6   :  { %8112 = vrsqrt.f32 %v6371_v51 }
 0xec7   :  { %8114 = vrsqrt.f32 %v6370_v15 }
 0xece   :  { %v6317_v36 = vpop.xlane.xlu1 %6316 }
 0xecf   :  { %v6314_v28 = vpop.xlane.xlu0 %6313  ;;  %v6357_v5 = vmul.f32 0.03125, %v6317_v36 }
 0xed0   :  { %v6356_v53 = vmul.f32 0.03125, %v6314_v28  ;;  %v8113_v42 = vpop.eup %8112  ;;  %v11112_v28 = vld [vmem:[%s11197_s2 + $0xd] ss:$0 sm:$0xff] }
 0xed1   :  { %v6373_v17 = vadd.f32 1e-05, %v6357_v5  ;;  %v8115_v29 = vpop.eup %8114 }
 0xed2   :  { %v6372_v56 = vadd.f32 1e-05, %v6356_v53 }
 0xed3   :  { %8116 = vrsqrt.f32 %v6373_v17 }
 0xed4   :  { %8118 = vrsqrt.f32 %v6372_v56 }
 0xed5   :  { %v6323_v4 = vpop.xlane.xlu1 %6322 }
 0xed6   :  { %v6320_v35 = vpop.xlane.xlu0 %6319  ;;  %v6359_v11 = vmul.f32 0.03125, %v6323_v4  ;;  %v6403_v4 = vmul.f32 %v8113_v42, %v10998_v58 }
 0xed7   :  { %v6358_v6 = vmul.f32 0.03125, %v6320_v35  ;;  %v6402_v35 = vmul.f32 %v8115_v29, %v11001_v37 }
 0xed8   :  { %v6375_v23 = vadd.f32 1e-05, %v6359_v11 }
 0xed9   :  { %v6374_v13 = vadd.f32 1e-05, %v6358_v6 }
 0xeda   :  { %8120 = vrsqrt.f32 %v6375_v23 }
 0xedb   :  { %8122 = vrsqrt.f32 %v6374_v13 }
 0xedd   :  { %v8117_v22 = vpop.eup %8116 }
 0xede   :  { %v8119_v31 = vpop.eup %8118  ;;  %v6405_v10 = vmul.f32 %v8117_v22, %v11010_v60 }
 0xedf   :  { %v6404_v49 = vmul.f32 %v8119_v31, %v11013_v1 }
 0xee0   :  { %v6425_v9 = vmul.f32 %v11112_v28, %v6405_v10 }
 0xee1   :  { %v6424_v38 = vmul.f32 %v11112_v28, %v6404_v49 }
 0xee4   :  { %v8121_v7 = vpop.eup %8120 }
 0xee5   :  { %v8123_v55 = vpop.eup %8122  ;;  %v6407_v47 = vmul.f32 %v8121_v7, %v11022_v43 }
 0xee6   :  { %v6406_v14 = vmul.f32 %v8123_v55, %v11025_v12 }
 0xee7   :  { %v6427_v37 = vmul.f32 %v11112_v28, %v6407_v47 }
 0xee8   :  { %v6426_v11 = vmul.f32 %v11112_v28, %v6406_v14 }
 0xeea   :  { %v6329_v50 = vpop.xlane.xlu1 %6328 }
 0xeeb   :  { %v6326_v2 = vpop.xlane.xlu0 %6325  ;;  %v6361_v26 = vmul.f32 0.03125, %v6329_v50 }
 0xeec   :  { %v6360_v41 = vmul.f32 0.03125, %v6326_v2 }
 0xeed   :  { %v6377_v40 = vadd.f32 1e-05, %v6361_v26 }
 0xeee   :  { %v6376_v54 = vadd.f32 1e-05, %v6360_v41 }
 0xeef   :  { %8124 = vrsqrt.f32 %v6377_v40 }
 0xef0   :  { %8126 = vrsqrt.f32 %v6376_v54 }
 0xef6   :  { %v6335_v39 = vpop.xlane.xlu1 %6334 }
 0xef7   :  { %v6332_v48 = vpop.xlane.xlu0 %6331  ;;  %v6363_v46 = vmul.f32 0.03125, %v6335_v39 }
 0xef8   :  { %v6362_v52 = vmul.f32 0.03125, %v6332_v48 }
 0xef9   :  { %v6379_v27 = vadd.f32 1e-05, %v6363_v46  ;;  %v8125_v21 = vpop.eup %8124 }
 0xefa   :  { %v6378_v61 = vadd.f32 1e-05, %v6362_v52  ;;  %v8127_v8 = vpop.eup %8126  ;;  %v6409_v1 = vmul.f32 %v8125_v21, %v11034_v24  ;;  %v6423_v24 = vmul.f32 %v11112_v28, %v6403_v4 }
 0xefb   :  { %8128 = vrsqrt.f32 %v6379_v27  ;;  %v6408_v43 = vmul.f32 %v8127_v8, %v11037_v57  ;;  %v6422_v57 = vmul.f32 %v11112_v28, %v6402_v35 }
 0xefc   :  { %8130 = vrsqrt.f32 %v6378_v61 }
 0xefd   :  { %v6428_v17 = vmul.f32 %v11112_v28, %v6408_v43 }
 0xf04   :  { %v6341_v33 = vpop.xlane.xlu1 %6340 }
 0xf05   :  { %v6365_v20 = vmul.f32 0.03125, %v6341_v33  ;;  %v6338_v18 = vpop.xlane.xlu0 %6337  ;;  %v8129_v45 = vpop.eup %8128 }
 0xf06   :  { %v6364_v25 = vmul.f32 0.03125, %v6338_v18  ;;  %v8131_v34 = vpop.eup %8130  ;;  %v6411_v5 = vmul.f32 %v8129_v45, %v11046_v59  ;;  %v11131_v59 = vld [vmem:[%s11197_s2 + $0xe] ss:$0 sm:$0xff] }
 0xf07   :  { %v6381_v62 = vadd.f32 1e-05, %v6365_v20  ;;  %v6410_v53 = vmul.f32 %v8131_v34, %v11049_v63  ;;  %v6429_v63 = vmul.f32 %v11112_v28, %v6409_v1  ;;  %v6444_v26 = vadd.f32 %v11131_v59, %v6424_v38 }
 0xf08   :  { %v6380_v44 = vadd.f32 1e-05, %v6364_v25  ;;  %v6431_v48 = vmul.f32 %v11112_v28, %v6411_v5  ;;  %v6446_v41 = vadd.f32 %v11131_v59, %v6426_v11  ;;  %v6443_v13 = vadd.f32 %v11131_v59, %v6423_v24 }
 0xf09   :  { %8132 = vrsqrt.f32 %v6381_v62  ;;  %v6430_v56 = vmul.f32 %v11112_v28, %v6410_v53  ;;  %v6442_v52 = vadd.f32 %v11131_v59, %v6422_v57  ;;  %v6449_v40 = vadd.f32 %v11131_v59, %v6429_v63 }
 0xf0a   :  { %8134 = vrsqrt.f32 %v6380_v44  ;;  %v6448_v54 = vadd.f32 %v11131_v59, %v6428_v17  ;;  %v6467_v61 = vsel %vm221_vm0, %v6444_v26, 0.0  ;;  %v6451_v33 = vadd.f32 %v11131_v59, %v6431_v48 }
 0xf0b   :  { %v6450_v20 = vadd.f32 %v11131_v59, %v6430_v56  ;;  %v6476_v25 = vsel %vm221_vm0, %v6446_v41, 0.0  ;;  %v6459_v29 = vsel %vm221_vm0, %v6443_v13, 0.0  ;;  %v6458_v44 = vsel %vm221_vm0, %v6442_v52, 0.0 }
 0xf0c   :  { %v6486_v7 = vsel %vm221_vm0, %v6449_v40, 0.0  ;;  %v6485_v55 = vsel %vm221_vm0, %v6448_v54, 0.0  ;;  %v6495_v49 = vsel %vm221_vm0, %v6451_v33, 0.0 }
 0xf0d   :  { %v6494_v34 = vsel %vm221_vm0, %v6450_v20, 0.0 }
 0xf0f   :  { %v6347_v36 = vpop.xlane.xlu1 %6346 }
 0xf10   :  { %v6367_v50 = vmul.f32 0.03125, %v6347_v36  ;;  %v6344_v60 = vpop.xlane.xlu0 %6343 }
 0xf11   :  { %v6366_v2 = vmul.f32 0.03125, %v6344_v60  ;;  %v6460_v60 = vadd.f32 %v6459_v29, %v6458_v44 }
 0xf12   :  { %v6383_v51 = vadd.f32 1e-05, %v6367_v50 }
 0xf13   :  { %v8133_v12 = vpop.eup %8132  ;;  %v6382_v6 = vadd.f32 1e-05, %v6366_v2  ;;  %v6496_v2 = vadd.f32 %v6495_v49, %v6494_v34 }
 0xf14   :  { %v8135_v58 = vpop.eup %8134  ;;  %v6413_v15 = vmul.f32 %v8133_v12, %v11058_v19  ;;  %8136 = vrsqrt.f32 %v6383_v51  ;;  %v6445_v19 = vadd.f32 %v11131_v59, %v6425_v9  ;;  %v6487_v9 = vadd.f32 %v6486_v7, %v6485_v55 }
 0xf15   :  { %v6412_v39 = vmul.f32 %v8135_v58, %v11061_v30  ;;  %8138 = vrsqrt.f32 %v6382_v6  ;;  %v6447_v30 = vadd.f32 %v11131_v59, %v6427_v37  ;;  %v6461_v37 = vrot.slane %v6460_v60, 4 }
 0xf16   :  { %v6433_v23 = vmul.f32 %v11112_v28, %v6413_v15  ;;  %v6468_v27 = vsel %vm221_vm0, %v6445_v19, 0.0  ;;  %v6497_v15 = vrot.slane %v6496_v2, 4 }
 0xf17   :  { %v6432_v46 = vmul.f32 %v11112_v28, %v6412_v39  ;;  %v6477_v18 = vsel %vm221_vm0, %v6447_v30, 0.0  ;;  %v6469_v31 = vadd.f32 %v6468_v27, %v6467_v61  ;;  %v6462_v17 = vadd.f32 %v6461_v37, %v6460_v60 }
 0xf18   :  { %v6453_v42 = vadd.f32 %v11131_v59, %v6433_v23  ;;  %v6478_v45 = vadd.f32 %v6477_v18, %v6476_v25  ;;  %v6498_v26 = vadd.f32 %v6497_v15, %v6496_v2 }
 0xf19   :  { %v6452_v62 = vadd.f32 %v11131_v59, %v6432_v46  ;;  %v6470_v38 = vrot.slane %v6469_v31, 4  ;;  %v6463_v52 = vrot.slane %v6462_v17, 2 }
 0xf1a   :  { %v6504_v36 = vsel %vm221_vm0, %v6453_v42, 0.0  ;;  %v6479_v51 = vrot.slane %v6478_v45, 4  ;;  %v6499_v27 = vrot.slane %v6498_v26, 2 }
 0xf1b   :  { %v6503_v4 = vsel %vm221_vm0, %v6452_v62, 0.0  ;;  %v6471_v6 = vadd.f32 %v6470_v38, %v6469_v31  ;;  %v6464_v29 = vadd.f32 %v6463_v52, %v6462_v17 }
 0xf1c   :  { %v6505_v5 = vadd.f32 %v6504_v36, %v6503_v4  ;;  %v6480_v39 = vadd.f32 %v6479_v51, %v6478_v45  ;;  %v6500_v7 = vadd.f32 %v6499_v27, %v6498_v26  ;;  %v6820_v26 = vld [vmem:[%s11197_s2 + $0xf] ss:$0 sm:$0xff] }
 0xf1d   :  { %v6353_v22 = vpop.xlane.xlu1 %6352  ;;  %v6472_v56 = vrot.slane %v6471_v6, 2  ;;  %v6465_v45 = vrot.slane %v6464_v29, 1 }
 0xf1e   :  { %v6369_v21 = vmul.f32 0.03125, %v6353_v22  ;;  %v6350_v8 = vpop.xlane.xlu0 %6349  ;;  %v8137_v10 = vpop.eup %8136  ;;  %v6506_v24 = vrot.slane %v6505_v5, 4  ;;  %v6481_v23 = vrot.slane %v6480_v39, 2 }
 0xf1f   :  { %v6368_v47 = vmul.f32 0.03125, %v6350_v8  ;;  %v8139_v14 = vpop.eup %8138  ;;  %v6415_v35 = vmul.f32 %v8137_v10, %v11070_v3  ;;  %v6488_v3 = vrot.slane %v6487_v9, 4  ;;  %v6473_v33 = vadd.f32 %v6472_v56, %v6471_v6 }
 0xf20   :  { %v6385_v50 = vadd.f32 1e-05, %v6369_v21  ;;  %v6414_v1 = vmul.f32 %v8139_v14, %v11073_v32  ;;  %v6507_v30 = vadd.f32 %v6506_v24, %v6505_v5  ;;  %v6482_v25 = vadd.f32 %v6481_v23, %v6480_v39 }
 0xf21   :  { %v6384_v43 = vadd.f32 1e-05, %v6368_v47  ;;  %v6435_v12 = vmul.f32 %v11112_v28, %v6415_v35  ;;  %v6489_v19 = vadd.f32 %v6488_v3, %v6487_v9  ;;  %v6474_v55 = vrot.slane %v6473_v33, 1 }
 0xf22   :  { %8140 = vrsqrt.f32 %v6385_v50  ;;  %v6434_v53 = vmul.f32 %v11112_v28, %v6414_v1  ;;  %v6508_v18 = vrot.slane %v6507_v30, 2  ;;  %v6466_v50 = vadd.f32 %v6465_v45, %v6464_v29 }
 0xf23   :  { %8142 = vrsqrt.f32 %v6384_v43  ;;  %v6455_v58 = vadd.f32 %v11131_v59, %v6435_v12  ;;  %v6490_v40 = vrot.slane %v6489_v19, 2  ;;  %v6475_v47 = vadd.f32 %v6474_v55, %v6473_v33 }
 0xf24   :  { %v6454_v11 = vadd.f32 %v11131_v59, %v6434_v53  ;;  %v6509_v21 = vadd.f32 %v6508_v18, %v6507_v30  ;;  %v6531_v5 = vmul.f32 0.0625, %v6466_v50 }
 0xf25   :  { %v6513_v32 = vsel %vm221_vm0, %v6455_v58, 0.0  ;;  %v6491_v44 = vadd.f32 %v6490_v40, %v6489_v19  ;;  %v6532_v1 = vmul.f32 0.0625, %v6475_v47 }
 0xf26   :  { %v6512_v57 = vsel %vm221_vm0, %v6454_v11, 0.0  ;;  %v6510_v14 = vrot.slane %v6509_v21, 1 }
 0xf27   :  { %v6514_v63 = vadd.f32 %v6513_v32, %v6512_v57  ;;  %v6492_v34 = vrot.slane %v6491_v44, 1  ;;  %v6557_v11 = vsel %vm6556_vm12, %v6532_v1, %v6531_v5 }
 0xf28   :  { %v6511_v43 = vadd.f32 %v6510_v14, %v6509_v21 }
 0xf29   :  { %v6515_v48 = vrot.slane %v6514_v63, 4 }
 0xf2a   :  { %v6536_v3 = vmul.f32 0.0625, %v6511_v43 }
 0xf2b   :  { %v6516_v46 = vadd.f32 %v6515_v48, %v6514_v63 }
 0xf2c   :  { %v8141_v41 = vpop.eup %8140 }
 0xf2d   :  { %v8143_v13 = vpop.eup %8142  ;;  %v6417_v54 = vmul.f32 %v8141_v41, %v11082_v16  ;;  %v6517_v62 = vrot.slane %v6516_v46, 2 }
 0xf2e   :  { %v6416_v61 = vmul.f32 %v8143_v13, %v11085_v0  ;;  %v6483_v0 = vrot.slane %v6482_v25, 1 }
 0xf2f   :  { %v6437_v20 = vmul.f32 %v11112_v28, %v6417_v54  ;;  %v6518_v10 = vadd.f32 %v6517_v62, %v6516_v46 }
 0xf30   :  { %v6436_v42 = vmul.f32 %v11112_v28, %v6416_v61  ;;  %v6501_v28 = vrot.slane %v6500_v7, 1  ;;  %v6484_v4 = vadd.f32 %v6483_v0, %v6482_v25 }
 0xf31   :  { %v6457_v22 = vadd.f32 %v11131_v59, %v6437_v20  ;;  %v6519_v35 = vrot.slane %v6518_v10, 1 }
 0xf32   :  { %v6456_v31 = vadd.f32 %v11131_v59, %v6436_v42  ;;  %v6493_v59 = vadd.f32 %v6492_v34, %v6491_v44  ;;  %v6502_v9 = vadd.f32 %v6501_v28, %v6500_v7  ;;  %v6533_v38 = vmul.f32 0.0625, %v6484_v4 }
 0xf33   :  { %v6522_v16 = vsel %vm221_vm0, %v6457_v22, 0.0  ;;  %v6520_v12 = vadd.f32 %v6519_v35, %v6518_v10 }
 0xf34   :  { %v6521_v8 = vsel %vm221_vm0, %v6456_v31, 0.0  ;;  %v6534_v51 = vmul.f32 0.0625, %v6493_v59  ;;  %v6535_v58 = vmul.f32 0.0625, %v6502_v9  ;;  %v6559_v32 = vsel %vm6558_vm13, %v6533_v38, %v6557_v11 }
 0xf35   :  { %v6523_v49 = vadd.f32 %v6522_v16, %v6521_v8  ;;  %v6537_v15 = vmul.f32 0.0625, %v6520_v12 }
 0xf36   :  { %v6561_v24 = vsel %vm6560_vm14, %v6534_v51, %v6559_v32 }
 0xf37   :  { %v6524_v36 = vrot.slane %v6523_v49, 4  ;;  %v6563_v57 = vsel %vm6562_vm15, %v6535_v58, %v6561_v24 }
 0xf38   :  { %v6565_v63 = vsel %vm6564_vm2, %v6536_v3, %v6563_v57 }
 0xf39   :  { %v6525_v60 = vadd.f32 %v6524_v36, %v6523_v49  ;;  %v6567_v17 = vsel %vm6566_vm3, %v6537_v15, %v6565_v63 }
 0xf3b   :  { %v6526_v2 = vrot.slane %v6525_v60, 2 }
 0xf3d   :  { %v6527_v53 = vadd.f32 %v6526_v2, %v6525_v60 }
 0xf3f   :  { %v6528_v37 = vrot.slane %v6527_v53, 1 }
 0xf41   :  { %v6529_v6 = vadd.f32 %v6528_v37, %v6527_v53 }
 0xf43   :  { %v6538_v39 = vmul.f32 0.0625, %v6529_v6 }
 0xf45   :  { %v6569_v19 = vsel %vm6568_vm4, %v6538_v39, %v6567_v17 }
 0xf46   :  { %7508 = vmatmul.mubr.msk.f32.vlgmr.msra.gmra.mrb[80].mxu1 %vm221_vm0, %v6569_v19 }
0x1019   :  { %v6638_v48 = vpop.f32.mrb[80].mxu1 }
0x101a   :  { %v6639_v56 = vadd.f32 %v6820_v26, %v6638_v48  ;;  %v7509_v30 = vpop.f32.mrb[81].mxu1 }
0x101c   :  { %6642 = vst [vmem:[#allocation2] sm:$0xff] %v6639_v56 }
0x101d   :  { %8156 = shalt.err (!%p8153_p4)
}
0x101e   :  { %s8157_s30 = scalar_lea.hbm %s11204_s9, 128 }
0x101f   :  { %p8158_p5 = scmp.ne.s32.totalorder %s11204_s9, %s8157_s30  ;;  %p8161_p6 = scmp.lt.u32.totalorder %s8157_s30, %s11204_s9 }
0x1021   :  { %p8163_p7 = pnand %p8161_p6, %p8158_p5 }
0x1023   :  { %8166 = shalt.err (!%p8163_p7)
}
0x1024   :  { %6652 = dma.vmem_to_hbm [thread:$0]  %s6650_s27, 128, %s11204_s9, [#allocation3]  }
0x1025   :  { %8167 = dma.done.wait [#allocation3], 128  }
0x1026   :  { %8168 = vsyncadd [#allocation3], 4294967168 }
0x1027   :  { %6656 = vsyncpa [#allocation3], 1 }

</bundles_post_ra>
